<compile_context>
chip_gen: v7x
topology: tpu7x:2x2x1
jax: 0.10.0
libtpu: 0.0.40
codegen_flags: <defaults>
</compile_context>

<pallas_src>
import functools
import math

import jax
import jax.numpy as jnp
from jax.experimental import pallas as pl
from jax.experimental.pallas import tpu as pltpu


_MXU_TARGET_ROWS = 256       # fill the 256-wide MXU M dim on v6e/v7x (also fine on v5e)
_NEG_INF = -1e20             # matches the PyTorch masked_fill value


# ----------------------------- in-kernel helpers -----------------------------

def _layernorm(x, gamma, beta, eps=1e-5):
    # x: (M, D) f32; gamma/beta: (D,)
    mu = jnp.mean(x, axis=-1, keepdims=True)
    var = jnp.mean((x - mu) ** 2, axis=-1, keepdims=True)
    return (x - mu) * jax.lax.rsqrt(var + eps) * gamma + beta


def _mh_attention(q3, k3, v3, keep_mask, *, n_head, cdt):
    """Multi-head attention context (no output projection).

    q3: (Bt, Lq, D) f32 with 1/sqrt(d_model) already folded into the Q weights;
    k3/v3: (Bt, Lk, D) f32.  keep_mask: bool, broadcastable to (Bt, Lq, Lk).

    Heads are taken as static lane slices of the projection outputs (free when
    dk % 128 == 0) instead of stacking Q/K/V into (Bt*H, L, dk) tensors, which
    removes the stack relayout copies flagged in review.  Per-head softmax is
    mathematically identical to a joint softmax over heads.
    Returns the concatenated context, shape (Bt*Lq, D), f32.
    """
    bt, lq, d = q3.shape
    lk = k3.shape[1]
    dk = d // n_head

    ctx_heads = []
    for h in range(n_head):
        sl = slice(h * dk, (h + 1) * dk)
        qh = q3[:, :, sl].astype(cdt)               # (Bt, Lq, dk)
        kh = k3[:, :, sl].astype(cdt)               # (Bt, Lk, dk)
        vh = v3[:, :, sl].astype(cdt)               # (Bt, Lk, dk)

        s = jnp.einsum('bqd,bkd->bqk', qh, kh,
                       preferred_element_type=jnp.float32)      # (Bt, Lq, Lk)
        s = jnp.where(keep_mask, s, jnp.float32(_NEG_INF))

        m = jnp.max(s, axis=-1, keepdims=True)
        p = jnp.exp(s - m)
        denom = jnp.sum(p, axis=-1, keepdims=True)
        alpha = (p * pl.reciprocal(denom, approx=True)).astype(cdt)

        ctx_heads.append(jnp.einsum('bqk,bkd->bqd', alpha, vh,
                                    preferred_element_type=jnp.float32))
    ctx = jnp.concatenate(ctx_heads, axis=-1)                    # (Bt, Lq, D)
    return ctx.reshape(bt * lq, d)


# ----------------------------- the Pallas kernel -----------------------------

def decoder_block_kernel(
    # data (per batch-block)
    x_ref, kenc_ref, venc_ref, srckeep_ref,
    # self-attention weights (fused QKV, scale folded into Q cols) + output projection
    wqkv1_ref, wo1_ref, bo1_ref,
    # cross-attention weights (scale folded into [0])
    wqkv2_ref, wo2_ref, bo2_ref,
    # layernorm params: rows = [norm, Lnorm1, Lnorm2]
    ln_g_ref, ln_b_ref,
    # FFNN weights
    ff1w_ref, ff1b_ref, ff2w_ref, ff2b_ref,
    # output
    out_ref,
    *, n_head,
):
    f32 = jnp.float32
    cdt = wqkv1_ref.dtype                            # matmul compute dtype (bf16)

    x_c = x_ref[...]                                 # (Bt, Lq, D) bf16
    bt, lq, d = x_c.shape
    lk = kenc_ref.shape[1]
    m_rows = bt * lq

    x2_c = x_c.reshape(m_rows, d)                    # bf16, feeds the MXU
    x2 = x2_c.astype(f32)                            # f32 for residual / LayerNorm

    # ---------- decoder self-attention: MHA(X, X, X, causal target mask) ----------
    qkv = jnp.dot(x2_c, wqkv1_ref[...], preferred_element_type=f32)   # fused (M, 3D)
    q1 = qkv[:, 0 * d:1 * d].reshape(bt, lq, d)
    k1 = qkv[:, 1 * d:2 * d].reshape(bt, lq, d)
    v1 = qkv[:, 2 * d:3 * d].reshape(bt, lq, d)

    row = jax.lax.broadcasted_iota(jnp.int32, (lq, lq), 0)
    col = jax.lax.broadcasted_iota(jnp.int32, (lq, lq), 1)
    causal_keep = (row >= col)[None, :, :]            # (1, Lq, Lq), True = attend

    ctx1 = _mh_attention(q1, k1, v1, causal_keep, n_head=n_head, cdt=cdt)
    attn1 = jnp.dot(ctx1.astype(cdt), wo1_ref[...],
                    preferred_element_type=f32) + bo1_ref[0]

    # Q = dropout(norm(attn + X)); dropout = identity in eval mode
    q = _layernorm(attn1 + x2, ln_g_ref[0], ln_b_ref[0])              # (M, D) f32

    # ---------- transformer block: cross attention MHA(Q, K_enc, V_enc, src mask) ----------
    kenc2 = kenc_ref[...].reshape(bt * lk, d)         # bf16
    venc2 = venc_ref[...].reshape(bt * lk, d)         # bf16
    q2p = jnp.dot(q.astype(cdt), wqkv2_ref[0],
                  preferred_element_type=f32).reshape(bt, lq, d)
    k2p = jnp.dot(kenc2, wqkv2_ref[1],
                  preferred_element_type=f32).reshape(bt, lk, d)
    v2p = jnp.dot(venc2, wqkv2_ref[2],
                  preferred_element_type=f32).reshape(bt, lk, d)

    src_keep = srckeep_ref[...] != 0.0                # (Bt, 1, Lk) -> broadcast over Lq
    ctx2 = _mh_attention(q2p, k2p, v2p, src_keep, n_head=n_head, cdt=cdt)
    attn2 = jnp.dot(ctx2.astype(cdt), wo2_ref[...],
                    preferred_element_type=f32) + bo2_ref[0]
    x_tb = _layernorm(attn2 + q, ln_g_ref[1], ln_b_ref[1])            # (M, D) f32

    # ---------- FFNN: Linear -> LeakyReLU(0.01) -> Linear ----------
    h = jnp.dot(x_tb.astype(cdt), ff1w_ref[...],
                preferred_element_type=f32) + ff1b_ref[0]
    h = jnp.where(h > 0, h, f32(0.01) * h)
    ff = jnp.dot(h.astype(cdt), ff2w_ref[...],
                 preferred_element_type=f32) + ff2b_ref[0]

    out = _layernorm(ff + x_tb, ln_g_ref[2], ln_b_ref[2])
    out_ref[...] = out.reshape(bt, lq, d).astype(out_ref.dtype)


# ----------------------------- parameter preparation (one-time) -----------------------------

def prepare_decoder_block_params(params, *, n_head, compute_dtype=jnp.bfloat16):
    """Hoisted off the hot path: fuse self-attn QKV into one (D, 3D) matrix, fold the
    1/sqrt(d_model) softmax scale into both Q projections, cast matmul weights to bf16."""
    d_model = params['wqkv1'].shape[-1]
    assert d_model % n_head == 0, "d_model must be divisible by n_head"
    scale = 1.0 / math.sqrt(d_model)
    f32 = jnp.float32

    wq1 = params['wqkv1'][0] * scale
    wqkv1 = jnp.concatenate([wq1, params['wqkv1'][1], params['wqkv1'][2]],
                            axis=1).astype(compute_dtype)                    # (D, 3D)
    wqkv2 = params['wqkv2'].at[0].multiply(scale).astype(compute_dtype)      # (3, D, D)

    return {
        'n_head': n_head,
        'd_model': d_model,
        'd_ff': params['ff1_w'].shape[1],
        'compute_dtype': compute_dtype,
        'wqkv1': wqkv1,
        'wo1': params['wo1'].astype(compute_dtype),
        'bo1': params['bo1'].astype(f32),
        'wqkv2': wqkv2,
        'wo2': params['wo2'].astype(compute_dtype),
        'bo2': params['bo2'].astype(f32),
        'ln_g': params['ln_g'].astype(f32),
        'ln_b': params['ln_b'].astype(f32),
        'ff1_w': params['ff1_w'].astype(compute_dtype),
        'ff1_b': params['ff1_b'].astype(f32),
        'ff2_w': params['ff2_w'].astype(compute_dtype),
        'ff2_b': params['ff2_b'].astype(f32),
    }


# ----------------------------- VMEM sizing helpers -----------------------------

def _weight_vmem_bytes(d, fd, w_bytes=2):
    matmul_w = 8 * d * d + 2 * d * fd                 # wqkv1 + wqkv2 + wo1 + wo2 + ff1 + ff2
    small = 9 * d + fd                                # biases + LN params (f32 words)
    return w_bytes * matmul_w + 4 * small


def _step_activation_bytes(bt, lq, lk, d, fd):
    m = bt * lq
    io = 2 * (2 * bt * (lq * d + 2 * lk * d)          # bf16 x / k_enc / v_enc, double-buffered
              + 4 * bt * lk                           # f32 source-mask block
              + 4 * m * d)                            # output block
    inter = 4 * (m * (3 * d + 8 * d + fd)             # qkv + q/k/v/ctx/residual temps + ffn hidden
                 + 3 * bt * lq * max(lq, lk))         # one head's scores / exp / alpha
    return io + inter


def _choose_block_batch(batch, lq, lk, d, fd, requested, vmem_budget, weight_bytes):
    if requested is not None:
        bt = max(1, min(int(requested), batch))
    else:
        bt = min(batch, max(1, -(-_MXU_TARGET_ROWS // lq)))   # target M = Bt*Lq >= 256
    while batch % bt:
        bt -= 1

    if requested is None and batch // bt == 1:
        # v7x megacore: keep >=2 "parallel" grid steps only if each step still has a full
        # complement of MXU rows; on single-TC chips (v5e/v6e) one fat step is best.
        for cand in range(bt // 2, 0, -1):
            if batch % cand == 0 and cand * lq >= _MXU_TARGET_ROWS:
                bt = cand
                break

    # cap Bt so the per-step working set (scores, FFN hidden, IO blocks) fits VMEM
    while bt > 1 and weight_bytes + _step_activation_bytes(bt, lq, lk, d, fd) > vmem_budget:
        bt -= 1
        while batch % bt:
            bt -= 1
    return bt


# ----------------------------- wrapper -----------------------------

def decoder_block(x, k_enc, v_enc, src_key_keep, prepared, *,
                  block_batch=None, out_dtype=None):
    """Fused DecoderBlock forward (eval mode).

    x:            (B, Lq, D)  decoder input (GT token embeddings)
    k_enc, v_enc: (B, Lk, D)  encoder features
    src_key_keep: (B, Lk)     1.0 = attend to this encoder position, 0.0 = padded
    prepared:     output of prepare_decoder_block_params (weights fused / scaled / cast)
    The target (look-ahead) mask is the standard causal mask, built in-kernel.
    Pass bf16 activations to avoid the boundary cast on the hot path.
    """
    B, Lq, D = x.shape
    Lk = k_enc.shape[1]
    n_head = prepared['n_head']
    FD = prepared['d_ff']
    cdt = prepared['compute_dtype']
    assert D == prepared['d_model']
    if out_dtype is None:
        out_dtype = x.dtype

    # bf16 activation DMA (halves activation HBM traffic; LN/softmax stay f32 in-kernel)
    x_c = x.astype(cdt)
    k_c = k_enc.astype(cdt)
    v_c = v_enc.astype(cdt)
    src_keep = src_key_keep.astype(jnp.float32).reshape(B, 1, Lk)

    try:
        vmem_cap = int(pltpu.get_tpu_info().vmem_capacity_bytes)
    except Exception:
        vmem_cap = 64 * 1024 * 1024          # conservative default (v7x per-TC VMEM)

    w_bytes = _weight_vmem_bytes(D, FD)
    # budget assumes double-buffered weights (conservative: also covers the fallback path)
    Bt = _choose_block_batch(B, Lq, Lk, D, FD, block_batch,
                             int(0.8 * vmem_cap), 2 * w_bytes)

    vmem_limit = int(1.3 * (2 * w_bytes + _step_activation_bytes(Bt, Lq, Lk, D, FD)))
    vmem_limit = min(max(vmem_limit, 32 * 1024 * 1024), int(0.9 * vmem_cap))

    kernel = functools.partial(decoder_block_kernel, n_head=n_head)
    operands = (x_c, k_c, v_c, src_keep,
                prepared['wqkv1'], prepared['wo1'], prepared['bo1'],
                prepared['wqkv2'], prepared['wo2'], prepared['bo2'],
                prepared['ln_g'], prepared['ln_b'],
                prepared['ff1_w'], prepared['ff1_b'],
                prepared['ff2_w'], prepared['ff2_b'])

    def batch_spec(shape):
        nd = len(shape)
        return pl.BlockSpec((Bt,) + shape, lambda b: (b,) + (0,) * nd)

    def build(single_buffer_weights):
        # Constant-index weights: double buffering is pure VMEM waste, so request single
        # buffering when this Pallas version supports pipeline_mode.
        wkw = {'pipeline_mode': pl.Buffered(1)} if single_buffer_weights else {}

        def weight_spec(shape):
            return pl.BlockSpec(shape, lambda b: (0,) * len(shape), **wkw)

        in_specs = [
            batch_spec((Lq, D)),       # x (bf16)
            batch_spec((Lk, D)),       # k_enc (bf16)
            batch_spec((Lk, D)),       # v_enc (bf16)
            batch_spec((1, Lk)),       # source key-padding mask (f32)
            weight_spec((D, 3 * D)),   # fused self-attn QKV (bf16, scale folded into Q cols)
            weight_spec((D, D)),       # wo1
            weight_spec((1, D)),       # bo1
            weight_spec((3, D, D)),    # cross-attn WQ/WK/WV (scale folded into [0])
            weight_spec((D, D)),       # wo2
            weight_spec((1, D)),       # bo2
            weight_spec((3, D)),       # LN gammas
            weight_spec((3, D)),       # LN betas
            weight_spec((D, FD)),      # ff1_w
            weight_spec((1, FD)),      # ff1_b
            weight_spec((FD, D)),      # ff2_w
            weight_spec((1, D)),       # ff2_b
        ]
        return pl.pallas_call(
            kernel,
            out_shape=jax.ShapeDtypeStruct((B, Lq, D), out_dtype),
            grid_spec=pltpu.PrefetchScalarGridSpec(
                num_scalar_prefetch=0,
                grid=(B // Bt,),
                in_specs=in_specs,
                out_specs=pl.BlockSpec((Bt, Lq, D), lambda b: (b, 0, 0)),
            ),
            compiler_params=pltpu.CompilerParams(
                dimension_semantics=("parallel",),
                vmem_limit_bytes=vmem_limit,
            ),
        )

    try:
        return build(single_buffer_weights=True)(*operands)
    except Exception:
        # pl.Buffered(1) not supported by this Pallas version -> default double buffering.
        return build(single_buffer_weights=False)(*operands)


# ----------------------------- pure-JAX reference -----------------------------
# Mirrors the PyTorch module (eval mode).  Inputs are rounded to bf16 and matmul operands
# cast to bf16 exactly like the kernel, so the comparison isolates kernel bugs rather than
# MXU precision.

def _ref_mha(q_in, k_in, v_in, wq, wk, wv, wo, bo, keep_mask, n_head, d_model, cdt):
    B, Lq, D = q_in.shape
    Lk = k_in.shape[1]
    dk = d_model // n_head
    f32 = jnp.float32
    Q = jnp.dot(q_in.astype(cdt), wq, preferred_element_type=f32).reshape(B, Lq, n_head, dk)
    K = jnp.dot(k_in.astype(cdt), wk, preferred_element_type=f32).reshape(B, Lk, n_head, dk)
    V = jnp.dot(v_in.astype(cdt), wv, preferred_element_type=f32).reshape(B, Lk, n_head, dk)
    e = jnp.einsum('nqhd,nkhd->nhqk', Q.astype(cdt), K.astype(cdt),
                   preferred_element_type=f32)
    e = jnp.where(keep_mask, e, f32(_NEG_INF))               # masked_fill(Mask == 0, -1e20)
    alpha = jax.nn.softmax(e / math.sqrt(d_model), axis=3)   # scale AFTER masking, sqrt(d_model)
    ctx = jnp.einsum('bhqk,bkhd->bqhd', alpha.astype(cdt), V.astype(cdt),
                     preferred_element_type=f32).reshape(B, Lq, D)
    return jnp.dot(ctx.astype(cdt), wo, preferred_element_type=f32) + bo


def _ref_ln(x, g, b, eps=1e-5):
    mu = x.mean(-1, keepdims=True)
    var = ((x - mu) ** 2).mean(-1, keepdims=True)
    return (x - mu) / jnp.sqrt(var + eps) * g + b


def decoder_block_ref(x, k_enc, v_enc, src_key_keep, p, *, n_head):
    B, Lq, D = x.shape
    cdt = jnp.bfloat16
    f32 = jnp.float32

    # mirror the kernel's bf16 activation DMA
    x = x.astype(cdt).astype(f32)
    k_enc = k_enc.astype(cdt).astype(f32)
    v_enc = v_enc.astype(cdt).astype(f32)

    wq1, wk1, wv1 = (p['wqkv1'][i].astype(cdt) for i in range(3))
    wq2, wk2, wv2 = (p['wqkv2'][i].astype(cdt) for i in range(3))
    wo1 = p['wo1'].astype(cdt)
    wo2 = p['wo2'].astype(cdt)
    ff1w = p['ff1_w'].astype(cdt)
    ff2w = p['ff2_w'].astype(cdt)

    causal = (jnp.arange(Lq)[:, None] >= jnp.arange(Lq)[None, :])[None, None]   # (1,1,Lq,Lq)
    src_keep = (src_key_keep != 0.0)[:, None, None, :]                          # (B,1,1,Lk)

    a1 = _ref_mha(x, x, x, wq1, wk1, wv1, wo1, p['bo1'][0], causal, n_head, D, cdt)
    q = _ref_ln(a1 + x, p['ln_g'][0], p['ln_b'][0])
    a2 = _ref_mha(q, k_enc, v_enc, wq2, wk2, wv2, wo2, p['bo2'][0], src_keep, n_head, D, cdt)
    x2 = _ref_ln(a2 + q, p['ln_g'][1], p['ln_b'][1])
    h = jnp.dot(x2.astype(cdt), ff1w, preferred_element_type=f32) + p['ff1_b'][0]
    h = jnp.where(h > 0, h, 0.01 * h)
    ff = jnp.dot(h.astype(cdt), ff2w, preferred_element_type=f32) + p['ff2_b'][0]
    return _ref_ln(ff + x2, p['ln_g'][2], p['ln_b'][2])


# ----------------------------- main -----------------------------

if __name__ == "__main__":
    # NOTE: realistic deployments should use d_model / d_ff that are multiples of 128 so the
    # per-head slices and MXU contractions are lane-aligned; small shapes here keep the test fast.
    B, Lq, Lk = 4, 8, 8
    d_model, n_head, forward_expansion = 32, 4, 2
    FD = forward_expansion * d_model

    key = jax.random.PRNGKey(0)
    ks = jax.random.split(key, 16)

    params = {
        'wqkv1': jax.random.normal(ks[0], (3, d_model, d_model), jnp.float32) * 0.05,
        'wo1':   jax.random.normal(ks[1], (d_model, d_model), jnp.float32) * 0.05,
        'bo1':   jax.random.normal(ks[2], (1, d_model), jnp.float32) * 0.01,
        'wqkv2': jax.random.normal(ks[3], (3, d_model, d_model), jnp.float32) * 0.05,
        'wo2':   jax.random.normal(ks[4], (d_model, d_model), jnp.float32) * 0.05,
        'bo2':   jax.random.normal(ks[5], (1, d_model), jnp.float32) * 0.01,
        'ln_g':  jnp.ones((3, d_model), jnp.float32)
                 + jax.random.normal(ks[6], (3, d_model), jnp.float32) * 0.01,
        'ln_b':  jax.random.normal(ks[7], (3, d_model), jnp.float32) * 0.01,
        'ff1_w': jax.random.normal(ks[8], (d_model, FD), jnp.float32) * 0.05,
        'ff1_b': jax.random.normal(ks[9], (1, FD), jnp.float32) * 0.01,
        'ff2_w': jax.random.normal(ks[10], (FD, d_model), jnp.float32) * 0.05,
        'ff2_b': jax.random.normal(ks[11], (1, d_model), jnp.float32) * 0.01,
    }

    x = jax.random.normal(ks[12], (B, Lq, d_model), jnp.float32)       # decoder GT input
    k_enc = jax.random.normal(ks[13], (B, Lk, d_model), jnp.float32)   # encoder features
    v_enc = jax.random.normal(ks[14], (B, Lk, d_model), jnp.float32)   # encoder features

    # source key-padding mask: 1 = real encoder token, 0 = padded position
    src_key_keep = jnp.ones((B, Lk), jnp.float32)
    src_key_keep = src_key_keep.at[1, Lk - 1].set(0.0)
    src_key_keep = src_key_keep.at[3, Lk - 2:].set(0.0)

    # One-time weight preparation (fused QKV, folded softmax scale, bf16 casts)
    prepared = prepare_decoder_block_params(params, n_head=n_head)

    # Bt is chosen automatically (targets >=256 rows per grid step); no block_batch override.
    out = decoder_block(x, k_enc, v_enc, src_key_keep, prepared)
    out = jax.block_until_ready(out)

    ref = decoder_block_ref(x, k_enc, v_enc, src_key_keep, params, n_head=n_head)
    ref = jax.block_until_ready(ref)

    assert out.shape == (B, Lq, d_model)
    max_err = jnp.max(jnp.abs(out - ref))
    assert jnp.allclose(out, ref, atol=2e-2, rtol=2e-2), f"max abs err {max_err}"

    print("KERNEL_OK")
</pallas_src>

<mosaic_0001>
module attributes {stable_mosaic.version = 11 : i64} {
  func.func @decoder_block_kernel(%arg0: i32, %arg1: memref<4x8x32xbf16, #tpu.memory_space<vmem>>, %arg2: memref<4x8x32xbf16, #tpu.memory_space<vmem>>, %arg3: memref<4x8x32xbf16, #tpu.memory_space<vmem>>, %arg4: memref<4x1x8xf32, #tpu.memory_space<vmem>>, %arg5: memref<32x96xbf16, #tpu.memory_space<vmem>>, %arg6: memref<32x32xbf16, #tpu.memory_space<vmem>>, %arg7: memref<1x32xf32, #tpu.memory_space<vmem>>, %arg8: memref<3x32x32xbf16, #tpu.memory_space<vmem>>, %arg9: memref<32x32xbf16, #tpu.memory_space<vmem>>, %arg10: memref<1x32xf32, #tpu.memory_space<vmem>>, %arg11: memref<3x32xf32, #tpu.memory_space<vmem>>, %arg12: memref<3x32xf32, #tpu.memory_space<vmem>>, %arg13: memref<32x64xbf16, #tpu.memory_space<vmem>>, %arg14: memref<1x64xf32, #tpu.memory_space<vmem>>, %arg15: memref<64x32xbf16, #tpu.memory_space<vmem>>, %arg16: memref<1x32xf32, #tpu.memory_space<vmem>>, %arg17: memref<4x8x32xf32, #tpu.memory_space<vmem>>) attributes {dimension_semantics = [#tpu.dimension_semantics<parallel>], iteration_bounds = array<i64: 1>, scalar_prefetch = 0 : i64, scratch_operands = 0 : i64, tpu.core_type = #tpu.core_type<tc>, window_params = [{transform_indices = @transform_0, window_bounds = array<i64: 4, 8, 32>}, {transform_indices = @transform_1, window_bounds = array<i64: 4, 8, 32>}, {transform_indices = @transform_2, window_bounds = array<i64: 4, 8, 32>}, {transform_indices = @transform_3, window_bounds = array<i64: 4, 1, 8>}, {pipeline_mode = #tpu.pipeline_mode<synchronous>, transform_indices = @transform_4, window_bounds = array<i64: 32, 96>}, {pipeline_mode = #tpu.pipeline_mode<synchronous>, transform_indices = @transform_5, window_bounds = array<i64: 32, 32>}, {pipeline_mode = #tpu.pipeline_mode<synchronous>, transform_indices = @transform_6, window_bounds = array<i64: 1, 32>}, {pipeline_mode = #tpu.pipeline_mode<synchronous>, transform_indices = @transform_7, window_bounds = array<i64: 3, 32, 32>}, {pipeline_mode = #tpu.pipeline_mode<synchronous>, transform_indices = @transform_8, window_bounds = array<i64: 32, 32>}, {pipeline_mode = #tpu.pipeline_mode<synchronous>, transform_indices = @transform_9, window_bounds = array<i64: 1, 32>}, {pipeline_mode = #tpu.pipeline_mode<synchronous>, transform_indices = @transform_10, window_bounds = array<i64: 3, 32>}, {pipeline_mode = #tpu.pipeline_mode<synchronous>, transform_indices = @transform_11, window_bounds = array<i64: 3, 32>}, {pipeline_mode = #tpu.pipeline_mode<synchronous>, transform_indices = @transform_12, window_bounds = array<i64: 32, 64>}, {pipeline_mode = #tpu.pipeline_mode<synchronous>, transform_indices = @transform_13, window_bounds = array<i64: 1, 64>}, {pipeline_mode = #tpu.pipeline_mode<synchronous>, transform_indices = @transform_14, window_bounds = array<i64: 64, 32>}, {pipeline_mode = #tpu.pipeline_mode<synchronous>, transform_indices = @transform_15, window_bounds = array<i64: 1, 32>}, {transform_indices = @transform_16, window_bounds = array<i64: 4, 8, 32>}]} {
    %c0 = arith.constant 0 : index
    %c0_0 = arith.constant 0 : index
    %c0_1 = arith.constant 0 : index
    %0 = vector.load %arg1[%c0, %c0_0, %c0_1] : memref<4x8x32xbf16, #tpu.memory_space<vmem>>, vector<4x8x32xbf16>
    %1 = vector.shape_cast %0 : vector<4x8x32xbf16> to vector<32x32xbf16>
    %2 = arith.extf %1 : vector<32x32xbf16> to vector<32x32xf32>
    %c0_2 = arith.constant 0 : index
    %c0_3 = arith.constant 0 : index
    %3 = vector.load %arg5[%c0_2, %c0_3] : memref<32x96xbf16, #tpu.memory_space<vmem>>, vector<32x96xbf16>
    %cst = arith.constant dense<0.000000e+00> : vector<32x96xf32>
    %4 = tpu.matmul %1, %3, %cst {dimension_numbers = #tpu.dot_dimension_numbers<[1], [0], [0], [1], [0, 0, 1, 1], [], []>} : vector<32x32xbf16>, vector<32x96xbf16>, vector<32x96xf32> -> vector<32x96xf32>
    %5 = vector.extract_strided_slice %4 {offsets = [0, 0], sizes = [32, 32], strides = [1, 1]} : vector<32x96xf32> to vector<32x32xf32>
    %6 = vector.shape_cast %5 : vector<32x32xf32> to vector<4x8x32xf32>
    %7 = vector.extract_strided_slice %4 {offsets = [0, 32], sizes = [32, 32], strides = [1, 1]} : vector<32x96xf32> to vector<32x32xf32>
    %8 = vector.shape_cast %7 : vector<32x32xf32> to vector<4x8x32xf32>
    %9 = vector.extract_strided_slice %4 {offsets = [0, 64], sizes = [32, 32], strides = [1, 1]} : vector<32x96xf32> to vector<32x32xf32>
    %10 = vector.shape_cast %9 : vector<32x32xf32> to vector<4x8x32xf32>
    %11 = tpu.iota {dimensions = array<i32: 0>} : vector<8x8xi32>
    %12 = tpu.iota {dimensions = array<i32: 1>} : vector<8x8xi32>
    %13 = arith.cmpi sge, %11, %12 : vector<8x8xi32>
    %14 = vector.shape_cast %13 : vector<8x8xi1> to vector<1x8x8xi1>
    %15 = vector.extract_strided_slice %6 {offsets = [0, 0, 0], sizes = [4, 8, 8], strides = [1, 1, 1]} : vector<4x8x32xf32> to vector<4x8x8xf32>
    %16 = arith.truncf %15 : vector<4x8x8xf32> to vector<4x8x8xbf16>
    %17 = vector.extract_strided_slice %8 {offsets = [0, 0, 0], sizes = [4, 8, 8], strides = [1, 1, 1]} : vector<4x8x32xf32> to vector<4x8x8xf32>
    %18 = arith.truncf %17 : vector<4x8x8xf32> to vector<4x8x8xbf16>
    %19 = vector.extract_strided_slice %10 {offsets = [0, 0, 0], sizes = [4, 8, 8], strides = [1, 1, 1]} : vector<4x8x32xf32> to vector<4x8x8xf32>
    %20 = arith.truncf %19 : vector<4x8x8xf32> to vector<4x8x8xbf16>
    "tpu.trace_start"() <{level = 10 : i32, message = "bqd,bkd->bqk"}> : () -> ()
    %cst_4 = arith.constant dense<0.000000e+00> : vector<4x8x8xf32>
    %21 = tpu.matmul %16, %18, %cst_4 {dimension_numbers = #tpu.dot_dimension_numbers<[2], [2], [1], [1], [0, 0, 0, 1, 1, 1], [0], [0]>} : vector<4x8x8xbf16>, vector<4x8x8xbf16>, vector<4x8x8xf32> -> vector<4x8x8xf32>
    %cst_5 = arith.constant -1.000000e+20 : f32
    "tpu.trace_stop"() : () -> ()
    %22 = vector.shape_cast %14 : vector<1x8x8xi1> to vector<1x8x8xi1>
    %23 = vector.broadcast %22 : vector<1x8x8xi1> to vector<4x8x8xi1>
    %24 = vector.broadcast %cst_5 : f32 to vector<4x8x8xf32>
    %25 = arith.select %23, %21, %24 : vector<4x8x8xi1>, vector<4x8x8xf32>
    %cst_6 = arith.constant dense<0xFF800000> : vector<4x8xf32>
    %26 = vector.multi_reduction <maximumf>, %25, %cst_6 [2] : vector<4x8x8xf32> to vector<4x8xf32>
    %27 = vector.shape_cast %26 : vector<4x8xf32> to vector<4x8x1xf32>
    %28 = vector.broadcast %27 : vector<4x8x1xf32> to vector<4x8x8xf32>
    %29 = arith.subf %25, %28 : vector<4x8x8xf32>
    %30 = math.exp %29 : vector<4x8x8xf32>
    %cst_7 = arith.constant dense<0.000000e+00> : vector<4x8xf32>
    %31 = vector.multi_reduction <add>, %30, %cst_7 [2] : vector<4x8x8xf32> to vector<4x8xf32>
    %32 = vector.shape_cast %31 : vector<4x8xf32> to vector<4x8x1xf32>
    %33 = tpu.reciprocal %32 {approx = true} : vector<4x8x1xf32> -> vector<4x8x1xf32>
    %34 = vector.broadcast %33 : vector<4x8x1xf32> to vector<4x8x8xf32>
    %35 = arith.mulf %30, %34 : vector<4x8x8xf32>
    %36 = arith.truncf %35 : vector<4x8x8xf32> to vector<4x8x8xbf16>
    "tpu.trace_start"() <{level = 10 : i32, message = "bqk,bkd->bqd"}> : () -> ()
    %cst_8 = arith.constant dense<0.000000e+00> : vector<4x8x8xf32>
    %37 = tpu.matmul %36, %20, %cst_8 {dimension_numbers = #tpu.dot_dimension_numbers<[2], [1], [1], [2], [0, 0, 0, 1, 1, 2], [0], [0]>} : vector<4x8x8xbf16>, vector<4x8x8xbf16>, vector<4x8x8xf32> -> vector<4x8x8xf32>
    "tpu.trace_stop"() : () -> ()
    %38 = vector.extract_strided_slice %6 {offsets = [0, 0, 8], sizes = [4, 8, 8], strides = [1, 1, 1]} : vector<4x8x32xf32> to vector<4x8x8xf32>
    %39 = arith.truncf %38 : vector<4x8x8xf32> to vector<4x8x8xbf16>
    %40 = vector.extract_strided_slice %8 {offsets = [0, 0, 8], sizes = [4, 8, 8], strides = [1, 1, 1]} : vector<4x8x32xf32> to vector<4x8x8xf32>
    %41 = arith.truncf %40 : vector<4x8x8xf32> to vector<4x8x8xbf16>
    %42 = vector.extract_strided_slice %10 {offsets = [0, 0, 8], sizes = [4, 8, 8], strides = [1, 1, 1]} : vector<4x8x32xf32> to vector<4x8x8xf32>
    %43 = arith.truncf %42 : vector<4x8x8xf32> to vector<4x8x8xbf16>
    "tpu.trace_start"() <{level = 10 : i32, message = "bqd,bkd->bqk"}> : () -> ()
    %cst_9 = arith.constant dense<0.000000e+00> : vector<4x8x8xf32>
    %44 = tpu.matmul %39, %41, %cst_9 {dimension_numbers = #tpu.dot_dimension_numbers<[2], [2], [1], [1], [0, 0, 0, 1, 1, 1], [0], [0]>} : vector<4x8x8xbf16>, vector<4x8x8xbf16>, vector<4x8x8xf32> -> vector<4x8x8xf32>
    %cst_10 = arith.constant -1.000000e+20 : f32
    "tpu.trace_stop"() : () -> ()
    %45 = vector.shape_cast %14 : vector<1x8x8xi1> to vector<1x8x8xi1>
    %46 = vector.broadcast %45 : vector<1x8x8xi1> to vector<4x8x8xi1>
    %47 = vector.broadcast %cst_10 : f32 to vector<4x8x8xf32>
    %48 = arith.select %46, %44, %47 : vector<4x8x8xi1>, vector<4x8x8xf32>
    %cst_11 = arith.constant dense<0xFF800000> : vector<4x8xf32>
    %49 = vector.multi_reduction <maximumf>, %48, %cst_11 [2] : vector<4x8x8xf32> to vector<4x8xf32>
    %50 = vector.shape_cast %49 : vector<4x8xf32> to vector<4x8x1xf32>
    %51 = vector.broadcast %50 : vector<4x8x1xf32> to vector<4x8x8xf32>
    %52 = arith.subf %48, %51 : vector<4x8x8xf32>
    %53 = math.exp %52 : vector<4x8x8xf32>
    %cst_12 = arith.constant dense<0.000000e+00> : vector<4x8xf32>
    %54 = vector.multi_reduction <add>, %53, %cst_12 [2] : vector<4x8x8xf32> to vector<4x8xf32>
    %55 = vector.shape_cast %54 : vector<4x8xf32> to vector<4x8x1xf32>
    %56 = tpu.reciprocal %55 {approx = true} : vector<4x8x1xf32> -> vector<4x8x1xf32>
    %57 = vector.broadcast %56 : vector<4x8x1xf32> to vector<4x8x8xf32>
    %58 = arith.mulf %53, %57 : vector<4x8x8xf32>
    %59 = arith.truncf %58 : vector<4x8x8xf32> to vector<4x8x8xbf16>
    "tpu.trace_start"() <{level = 10 : i32, message = "bqk,bkd->bqd"}> : () -> ()
    %cst_13 = arith.constant dense<0.000000e+00> : vector<4x8x8xf32>
    %60 = tpu.matmul %59, %43, %cst_13 {dimension_numbers = #tpu.dot_dimension_numbers<[2], [1], [1], [2], [0, 0, 0, 1, 1, 2], [0], [0]>} : vector<4x8x8xbf16>, vector<4x8x8xbf16>, vector<4x8x8xf32> -> vector<4x8x8xf32>
    "tpu.trace_stop"() : () -> ()
    %61 = vector.extract_strided_slice %6 {offsets = [0, 0, 16], sizes = [4, 8, 8], strides = [1, 1, 1]} : vector<4x8x32xf32> to vector<4x8x8xf32>
    %62 = arith.truncf %61 : vector<4x8x8xf32> to vector<4x8x8xbf16>
    %63 = vector.extract_strided_slice %8 {offsets = [0, 0, 16], sizes = [4, 8, 8], strides = [1, 1, 1]} : vector<4x8x32xf32> to vector<4x8x8xf32>
    %64 = arith.truncf %63 : vector<4x8x8xf32> to vector<4x8x8xbf16>
    %65 = vector.extract_strided_slice %10 {offsets = [0, 0, 16], sizes = [4, 8, 8], strides = [1, 1, 1]} : vector<4x8x32xf32> to vector<4x8x8xf32>
    %66 = arith.truncf %65 : vector<4x8x8xf32> to vector<4x8x8xbf16>
    "tpu.trace_start"() <{level = 10 : i32, message = "bqd,bkd->bqk"}> : () -> ()
    %cst_14 = arith.constant dense<0.000000e+00> : vector<4x8x8xf32>
    %67 = tpu.matmul %62, %64, %cst_14 {dimension_numbers = #tpu.dot_dimension_numbers<[2], [2], [1], [1], [0, 0, 0, 1, 1, 1], [0], [0]>} : vector<4x8x8xbf16>, vector<4x8x8xbf16>, vector<4x8x8xf32> -> vector<4x8x8xf32>
    %cst_15 = arith.constant -1.000000e+20 : f32
    "tpu.trace_stop"() : () -> ()
    %68 = vector.shape_cast %14 : vector<1x8x8xi1> to vector<1x8x8xi1>
    %69 = vector.broadcast %68 : vector<1x8x8xi1> to vector<4x8x8xi1>
    %70 = vector.broadcast %cst_15 : f32 to vector<4x8x8xf32>
    %71 = arith.select %69, %67, %70 : vector<4x8x8xi1>, vector<4x8x8xf32>
    %cst_16 = arith.constant dense<0xFF800000> : vector<4x8xf32>
    %72 = vector.multi_reduction <maximumf>, %71, %cst_16 [2] : vector<4x8x8xf32> to vector<4x8xf32>
    %73 = vector.shape_cast %72 : vector<4x8xf32> to vector<4x8x1xf32>
    %74 = vector.broadcast %73 : vector<4x8x1xf32> to vector<4x8x8xf32>
    %75 = arith.subf %71, %74 : vector<4x8x8xf32>
    %76 = math.exp %75 : vector<4x8x8xf32>
    %cst_17 = arith.constant dense<0.000000e+00> : vector<4x8xf32>
    %77 = vector.multi_reduction <add>, %76, %cst_17 [2] : vector<4x8x8xf32> to vector<4x8xf32>
    %78 = vector.shape_cast %77 : vector<4x8xf32> to vector<4x8x1xf32>
    %79 = tpu.reciprocal %78 {approx = true} : vector<4x8x1xf32> -> vector<4x8x1xf32>
    %80 = vector.broadcast %79 : vector<4x8x1xf32> to vector<4x8x8xf32>
    %81 = arith.mulf %76, %80 : vector<4x8x8xf32>
    %82 = arith.truncf %81 : vector<4x8x8xf32> to vector<4x8x8xbf16>
    "tpu.trace_start"() <{level = 10 : i32, message = "bqk,bkd->bqd"}> : () -> ()
    %cst_18 = arith.constant dense<0.000000e+00> : vector<4x8x8xf32>
    %83 = tpu.matmul %82, %66, %cst_18 {dimension_numbers = #tpu.dot_dimension_numbers<[2], [1], [1], [2], [0, 0, 0, 1, 1, 2], [0], [0]>} : vector<4x8x8xbf16>, vector<4x8x8xbf16>, vector<4x8x8xf32> -> vector<4x8x8xf32>
    "tpu.trace_stop"() : () -> ()
    %84 = vector.extract_strided_slice %6 {offsets = [0, 0, 24], sizes = [4, 8, 8], strides = [1, 1, 1]} : vector<4x8x32xf32> to vector<4x8x8xf32>
    %85 = arith.truncf %84 : vector<4x8x8xf32> to vector<4x8x8xbf16>
    %86 = vector.extract_strided_slice %8 {offsets = [0, 0, 24], sizes = [4, 8, 8], strides = [1, 1, 1]} : vector<4x8x32xf32> to vector<4x8x8xf32>
    %87 = arith.truncf %86 : vector<4x8x8xf32> to vector<4x8x8xbf16>
    %88 = vector.extract_strided_slice %10 {offsets = [0, 0, 24], sizes = [4, 8, 8], strides = [1, 1, 1]} : vector<4x8x32xf32> to vector<4x8x8xf32>
    %89 = arith.truncf %88 : vector<4x8x8xf32> to vector<4x8x8xbf16>
    "tpu.trace_start"() <{level = 10 : i32, message = "bqd,bkd->bqk"}> : () -> ()
    %cst_19 = arith.constant dense<0.000000e+00> : vector<4x8x8xf32>
    %90 = tpu.matmul %85, %87, %cst_19 {dimension_numbers = #tpu.dot_dimension_numbers<[2], [2], [1], [1], [0, 0, 0, 1, 1, 1], [0], [0]>} : vector<4x8x8xbf16>, vector<4x8x8xbf16>, vector<4x8x8xf32> -> vector<4x8x8xf32>
    %cst_20 = arith.constant -1.000000e+20 : f32
    "tpu.trace_stop"() : () -> ()
    %91 = vector.shape_cast %14 : vector<1x8x8xi1> to vector<1x8x8xi1>
    %92 = vector.broadcast %91 : vector<1x8x8xi1> to vector<4x8x8xi1>
    %93 = vector.broadcast %cst_20 : f32 to vector<4x8x8xf32>
    %94 = arith.select %92, %90, %93 : vector<4x8x8xi1>, vector<4x8x8xf32>
    %cst_21 = arith.constant dense<0xFF800000> : vector<4x8xf32>
    %95 = vector.multi_reduction <maximumf>, %94, %cst_21 [2] : vector<4x8x8xf32> to vector<4x8xf32>
    %96 = vector.shape_cast %95 : vector<4x8xf32> to vector<4x8x1xf32>
    %97 = vector.broadcast %96 : vector<4x8x1xf32> to vector<4x8x8xf32>
    %98 = arith.subf %94, %97 : vector<4x8x8xf32>
    %99 = math.exp %98 : vector<4x8x8xf32>
    %cst_22 = arith.constant dense<0.000000e+00> : vector<4x8xf32>
    %100 = vector.multi_reduction <add>, %99, %cst_22 [2] : vector<4x8x8xf32> to vector<4x8xf32>
    %101 = vector.shape_cast %100 : vector<4x8xf32> to vector<4x8x1xf32>
    %102 = tpu.reciprocal %101 {approx = true} : vector<4x8x1xf32> -> vector<4x8x1xf32>
    %103 = vector.broadcast %102 : vector<4x8x1xf32> to vector<4x8x8xf32>
    %104 = arith.mulf %99, %103 : vector<4x8x8xf32>
    %105 = arith.truncf %104 : vector<4x8x8xf32> to vector<4x8x8xbf16>
    "tpu.trace_start"() <{level = 10 : i32, message = "bqk,bkd->bqd"}> : () -> ()
    %cst_23 = arith.constant dense<0.000000e+00> : vector<4x8x8xf32>
    %106 = tpu.matmul %105, %89, %cst_23 {dimension_numbers = #tpu.dot_dimension_numbers<[2], [1], [1], [2], [0, 0, 0, 1, 1, 2], [0], [0]>} : vector<4x8x8xbf16>, vector<4x8x8xbf16>, vector<4x8x8xf32> -> vector<4x8x8xf32>
    "tpu.trace_stop"() : () -> ()
    %107 = tpu.concatenate %37, %60, %83, %106 in 2 : vector<4x8x8xf32>, vector<4x8x8xf32>, vector<4x8x8xf32>, vector<4x8x8xf32> -> vector<4x8x32xf32>
    %108 = vector.shape_cast %107 : vector<4x8x32xf32> to vector<32x32xf32>
    %109 = arith.truncf %108 : vector<32x32xf32> to vector<32x32xbf16>
    %c0_24 = arith.constant 0 : index
    %c0_25 = arith.constant 0 : index
    %110 = vector.load %arg6[%c0_24, %c0_25] : memref<32x32xbf16, #tpu.memory_space<vmem>>, vector<32x32xbf16>
    %cst_26 = arith.constant dense<0.000000e+00> : vector<32x32xf32>
    %111 = tpu.matmul %109, %110, %cst_26 {dimension_numbers = #tpu.dot_dimension_numbers<[1], [0], [0], [1], [0, 0, 1, 1], [], []>} : vector<32x32xbf16>, vector<32x32xbf16>, vector<32x32xf32> -> vector<32x32xf32>
    %c0_27 = arith.constant 0 : index
    %c0_28 = arith.constant 0 : index
    %112 = vector.load %arg7[%c0_27, %c0_28] : memref<1x32xf32, #tpu.memory_space<vmem>>, vector<1x32xf32>
    %113 = vector.shape_cast %112 : vector<1x32xf32> to vector<32xf32>
    %114 = vector.shape_cast %113 : vector<32xf32> to vector<1x32xf32>
    %115 = vector.broadcast %114 : vector<1x32xf32> to vector<32x32xf32>
    %116 = arith.addf %111, %115 : vector<32x32xf32>
    %117 = arith.addf %116, %2 : vector<32x32xf32>
    %c0_29 = arith.constant 0 : index
    %c0_30 = arith.constant 0 : index
    %118 = vector.load %arg11[%c0_29, %c0_30] : memref<3x32xf32, #tpu.memory_space<vmem>>, vector<1x32xf32>
    %119 = vector.shape_cast %118 : vector<1x32xf32> to vector<32xf32>
    %c0_31 = arith.constant 0 : index
    %c0_32 = arith.constant 0 : index
    %120 = vector.load %arg12[%c0_31, %c0_32] : memref<3x32xf32, #tpu.memory_space<vmem>>, vector<1x32xf32>
    %121 = vector.shape_cast %120 : vector<1x32xf32> to vector<32xf32>
    %cst_33 = arith.constant dense<0.000000e+00> : vector<32xf32>
    %122 = vector.multi_reduction <add>, %117, %cst_33 [1] : vector<32x32xf32> to vector<32xf32>
    %123 = vector.shape_cast %122 : vector<32xf32> to vector<32x1xf32>
    %cst_34 = arith.constant 3.200000e+01 : f32
    %124 = vector.broadcast %cst_34 : f32 to vector<32x1xf32>
    %125 = arith.divf %123, %124 : vector<32x1xf32>
    %126 = vector.broadcast %125 : vector<32x1xf32> to vector<32x32xf32>
    %127 = arith.subf %117, %126 : vector<32x32xf32>
    %128 = arith.mulf %127, %127 : vector<32x32xf32>
    %cst_35 = arith.constant dense<0.000000e+00> : vector<32xf32>
    %129 = vector.multi_reduction <add>, %128, %cst_35 [1] : vector<32x32xf32> to vector<32xf32>
    %130 = vector.shape_cast %129 : vector<32xf32> to vector<32x1xf32>
    %cst_36 = arith.constant 3.200000e+01 : f32
    %131 = vector.broadcast %cst_36 : f32 to vector<32x1xf32>
    %132 = arith.divf %130, %131 : vector<32x1xf32>
    %133 = vector.broadcast %125 : vector<32x1xf32> to vector<32x32xf32>
    %134 = arith.subf %117, %133 : vector<32x32xf32>
    %cst_37 = arith.constant 9.99999974E-6 : f32
    %135 = vector.broadcast %cst_37 : f32 to vector<32x1xf32>
    %136 = arith.addf %132, %135 : vector<32x1xf32>
    %137 = math.rsqrt %136 : vector<32x1xf32>
    %138 = vector.broadcast %137 : vector<32x1xf32> to vector<32x32xf32>
    %139 = arith.mulf %134, %138 : vector<32x32xf32>
    %140 = vector.shape_cast %119 : vector<32xf32> to vector<1x32xf32>
    %141 = vector.broadcast %140 : vector<1x32xf32> to vector<32x32xf32>
    %142 = arith.mulf %139, %141 : vector<32x32xf32>
    %143 = vector.shape_cast %121 : vector<32xf32> to vector<1x32xf32>
    %144 = vector.broadcast %143 : vector<1x32xf32> to vector<32x32xf32>
    %145 = arith.addf %142, %144 : vector<32x32xf32>
    %c0_38 = arith.constant 0 : index
    %c0_39 = arith.constant 0 : index
    %c0_40 = arith.constant 0 : index
    %146 = vector.load %arg2[%c0_38, %c0_39, %c0_40] : memref<4x8x32xbf16, #tpu.memory_space<vmem>>, vector<4x8x32xbf16>
    %147 = vector.shape_cast %146 : vector<4x8x32xbf16> to vector<32x32xbf16>
    %c0_41 = arith.constant 0 : index
    %c0_42 = arith.constant 0 : index
    %c0_43 = arith.constant 0 : index
    %148 = vector.load %arg3[%c0_41, %c0_42, %c0_43] : memref<4x8x32xbf16, #tpu.memory_space<vmem>>, vector<4x8x32xbf16>
    %149 = vector.shape_cast %148 : vector<4x8x32xbf16> to vector<32x32xbf16>
    %150 = arith.truncf %145 : vector<32x32xf32> to vector<32x32xbf16>
    %c0_44 = arith.constant 0 : index
    %c0_45 = arith.constant 0 : index
    %c0_46 = arith.constant 0 : index
    %151 = vector.load %arg8[%c0_44, %c0_45, %c0_46] : memref<3x32x32xbf16, #tpu.memory_space<vmem>>, vector<1x32x32xbf16>
    %152 = vector.shape_cast %151 : vector<1x32x32xbf16> to vector<32x32xbf16>
    %cst_47 = arith.constant dense<0.000000e+00> : vector<32x32xf32>
    %153 = tpu.matmul %150, %152, %cst_47 {dimension_numbers = #tpu.dot_dimension_numbers<[1], [0], [0], [1], [0, 0, 1, 1], [], []>} : vector<32x32xbf16>, vector<32x32xbf16>, vector<32x32xf32> -> vector<32x32xf32>
    %154 = vector.shape_cast %153 : vector<32x32xf32> to vector<4x8x32xf32>
    %c1 = arith.constant 1 : index
    %c0_48 = arith.constant 0 : index
    %c0_49 = arith.constant 0 : index
    %155 = vector.load %arg8[%c1, %c0_48, %c0_49] : memref<3x32x32xbf16, #tpu.memory_space<vmem>>, vector<1x32x32xbf16>
    %156 = vector.shape_cast %155 : vector<1x32x32xbf16> to vector<32x32xbf16>
    %cst_50 = arith.constant dense<0.000000e+00> : vector<32x32xf32>
    %157 = tpu.matmul %147, %156, %cst_50 {dimension_numbers = #tpu.dot_dimension_numbers<[1], [0], [0], [1], [0, 0, 1, 1], [], []>} : vector<32x32xbf16>, vector<32x32xbf16>, vector<32x32xf32> -> vector<32x32xf32>
    %158 = vector.shape_cast %157 : vector<32x32xf32> to vector<4x8x32xf32>
    %c2 = arith.constant 2 : index
    %c0_51 = arith.constant 0 : index
    %c0_52 = arith.constant 0 : index
    %159 = vector.load %arg8[%c2, %c0_51, %c0_52] : memref<3x32x32xbf16, #tpu.memory_space<vmem>>, vector<1x32x32xbf16>
    %160 = vector.shape_cast %159 : vector<1x32x32xbf16> to vector<32x32xbf16>
    %cst_53 = arith.constant dense<0.000000e+00> : vector<32x32xf32>
    %161 = tpu.matmul %149, %160, %cst_53 {dimension_numbers = #tpu.dot_dimension_numbers<[1], [0], [0], [1], [0, 0, 1, 1], [], []>} : vector<32x32xbf16>, vector<32x32xbf16>, vector<32x32xf32> -> vector<32x32xf32>
    %162 = vector.shape_cast %161 : vector<32x32xf32> to vector<4x8x32xf32>
    %c0_54 = arith.constant 0 : index
    %c0_55 = arith.constant 0 : index
    %c0_56 = arith.constant 0 : index
    %163 = vector.load %arg4[%c0_54, %c0_55, %c0_56] : memref<4x1x8xf32, #tpu.memory_space<vmem>>, vector<4x1x8xf32>
    %cst_57 = arith.constant 0.000000e+00 : f32
    %164 = vector.broadcast %cst_57 : f32 to vector<4x1x8xf32>
    %165 = arith.cmpf one, %163, %164 : vector<4x1x8xf32>
    %166 = vector.extract_strided_slice %154 {offsets = [0, 0, 0], sizes = [4, 8, 8], strides = [1, 1, 1]} : vector<4x8x32xf32> to vector<4x8x8xf32>
    %167 = arith.truncf %166 : vector<4x8x8xf32> to vector<4x8x8xbf16>
    %168 = vector.extract_strided_slice %158 {offsets = [0, 0, 0], sizes = [4, 8, 8], strides = [1, 1, 1]} : vector<4x8x32xf32> to vector<4x8x8xf32>
    %169 = arith.truncf %168 : vector<4x8x8xf32> to vector<4x8x8xbf16>
    %170 = vector.extract_strided_slice %162 {offsets = [0, 0, 0], sizes = [4, 8, 8], strides = [1, 1, 1]} : vector<4x8x32xf32> to vector<4x8x8xf32>
    %171 = arith.truncf %170 : vector<4x8x8xf32> to vector<4x8x8xbf16>
    "tpu.trace_start"() <{level = 10 : i32, message = "bqd,bkd->bqk"}> : () -> ()
    %cst_58 = arith.constant dense<0.000000e+00> : vector<4x8x8xf32>
    %172 = tpu.matmul %167, %169, %cst_58 {dimension_numbers = #tpu.dot_dimension_numbers<[2], [2], [1], [1], [0, 0, 0, 1, 1, 1], [0], [0]>} : vector<4x8x8xbf16>, vector<4x8x8xbf16>, vector<4x8x8xf32> -> vector<4x8x8xf32>
    %cst_59 = arith.constant -1.000000e+20 : f32
    "tpu.trace_stop"() : () -> ()
    %173 = vector.shape_cast %165 : vector<4x1x8xi1> to vector<4x1x8xi1>
    %174 = vector.broadcast %173 : vector<4x1x8xi1> to vector<4x8x8xi1>
    %175 = vector.broadcast %cst_59 : f32 to vector<4x8x8xf32>
    %176 = arith.select %174, %172, %175 : vector<4x8x8xi1>, vector<4x8x8xf32>
    %cst_60 = arith.constant dense<0xFF800000> : vector<4x8xf32>
    %177 = vector.multi_reduction <maximumf>, %176, %cst_60 [2] : vector<4x8x8xf32> to vector<4x8xf32>
    %178 = vector.shape_cast %177 : vector<4x8xf32> to vector<4x8x1xf32>
    %179 = vector.broadcast %178 : vector<4x8x1xf32> to vector<4x8x8xf32>
    %180 = arith.subf %176, %179 : vector<4x8x8xf32>
    %181 = math.exp %180 : vector<4x8x8xf32>
    %cst_61 = arith.constant dense<0.000000e+00> : vector<4x8xf32>
    %182 = vector.multi_reduction <add>, %181, %cst_61 [2] : vector<4x8x8xf32> to vector<4x8xf32>
    %183 = vector.shape_cast %182 : vector<4x8xf32> to vector<4x8x1xf32>
    %184 = tpu.reciprocal %183 {approx = true} : vector<4x8x1xf32> -> vector<4x8x1xf32>
    %185 = vector.broadcast %184 : vector<4x8x1xf32> to vector<4x8x8xf32>
    %186 = arith.mulf %181, %185 : vector<4x8x8xf32>
    %187 = arith.truncf %186 : vector<4x8x8xf32> to vector<4x8x8xbf16>
    "tpu.trace_start"() <{level = 10 : i32, message = "bqk,bkd->bqd"}> : () -> ()
    %cst_62 = arith.constant dense<0.000000e+00> : vector<4x8x8xf32>
    %188 = tpu.matmul %187, %171, %cst_62 {dimension_numbers = #tpu.dot_dimension_numbers<[2], [1], [1], [2], [0, 0, 0, 1, 1, 2], [0], [0]>} : vector<4x8x8xbf16>, vector<4x8x8xbf16>, vector<4x8x8xf32> -> vector<4x8x8xf32>
    "tpu.trace_stop"() : () -> ()
    %189 = vector.extract_strided_slice %154 {offsets = [0, 0, 8], sizes = [4, 8, 8], strides = [1, 1, 1]} : vector<4x8x32xf32> to vector<4x8x8xf32>
    %190 = arith.truncf %189 : vector<4x8x8xf32> to vector<4x8x8xbf16>
    %191 = vector.extract_strided_slice %158 {offsets = [0, 0, 8], sizes = [4, 8, 8], strides = [1, 1, 1]} : vector<4x8x32xf32> to vector<4x8x8xf32>
    %192 = arith.truncf %191 : vector<4x8x8xf32> to vector<4x8x8xbf16>
    %193 = vector.extract_strided_slice %162 {offsets = [0, 0, 8], sizes = [4, 8, 8], strides = [1, 1, 1]} : vector<4x8x32xf32> to vector<4x8x8xf32>
    %194 = arith.truncf %193 : vector<4x8x8xf32> to vector<4x8x8xbf16>
    "tpu.trace_start"() <{level = 10 : i32, message = "bqd,bkd->bqk"}> : () -> ()
    %cst_63 = arith.constant dense<0.000000e+00> : vector<4x8x8xf32>
    %195 = tpu.matmul %190, %192, %cst_63 {dimension_numbers = #tpu.dot_dimension_numbers<[2], [2], [1], [1], [0, 0, 0, 1, 1, 1], [0], [0]>} : vector<4x8x8xbf16>, vector<4x8x8xbf16>, vector<4x8x8xf32> -> vector<4x8x8xf32>
    %cst_64 = arith.constant -1.000000e+20 : f32
    "tpu.trace_stop"() : () -> ()
    %196 = vector.shape_cast %165 : vector<4x1x8xi1> to vector<4x1x8xi1>
    %197 = vector.broadcast %196 : vector<4x1x8xi1> to vector<4x8x8xi1>
    %198 = vector.broadcast %cst_64 : f32 to vector<4x8x8xf32>
    %199 = arith.select %197, %195, %198 : vector<4x8x8xi1>, vector<4x8x8xf32>
    %cst_65 = arith.constant dense<0xFF800000> : vector<4x8xf32>
    %200 = vector.multi_reduction <maximumf>, %199, %cst_65 [2] : vector<4x8x8xf32> to vector<4x8xf32>
    %201 = vector.shape_cast %200 : vector<4x8xf32> to vector<4x8x1xf32>
    %202 = vector.broadcast %201 : vector<4x8x1xf32> to vector<4x8x8xf32>
    %203 = arith.subf %199, %202 : vector<4x8x8xf32>
    %204 = math.exp %203 : vector<4x8x8xf32>
    %cst_66 = arith.constant dense<0.000000e+00> : vector<4x8xf32>
    %205 = vector.multi_reduction <add>, %204, %cst_66 [2] : vector<4x8x8xf32> to vector<4x8xf32>
    %206 = vector.shape_cast %205 : vector<4x8xf32> to vector<4x8x1xf32>
    %207 = tpu.reciprocal %206 {approx = true} : vector<4x8x1xf32> -> vector<4x8x1xf32>
    %208 = vector.broadcast %207 : vector<4x8x1xf32> to vector<4x8x8xf32>
    %209 = arith.mulf %204, %208 : vector<4x8x8xf32>
    %210 = arith.truncf %209 : vector<4x8x8xf32> to vector<4x8x8xbf16>
    "tpu.trace_start"() <{level = 10 : i32, message = "bqk,bkd->bqd"}> : () -> ()
    %cst_67 = arith.constant dense<0.000000e+00> : vector<4x8x8xf32>
    %211 = tpu.matmul %210, %194, %cst_67 {dimension_numbers = #tpu.dot_dimension_numbers<[2], [1], [1], [2], [0, 0, 0, 1, 1, 2], [0], [0]>} : vector<4x8x8xbf16>, vector<4x8x8xbf16>, vector<4x8x8xf32> -> vector<4x8x8xf32>
    "tpu.trace_stop"() : () -> ()
    %212 = vector.extract_strided_slice %154 {offsets = [0, 0, 16], sizes = [4, 8, 8], strides = [1, 1, 1]} : vector<4x8x32xf32> to vector<4x8x8xf32>
    %213 = arith.truncf %212 : vector<4x8x8xf32> to vector<4x8x8xbf16>
    %214 = vector.extract_strided_slice %158 {offsets = [0, 0, 16], sizes = [4, 8, 8], strides = [1, 1, 1]} : vector<4x8x32xf32> to vector<4x8x8xf32>
    %215 = arith.truncf %214 : vector<4x8x8xf32> to vector<4x8x8xbf16>
    %216 = vector.extract_strided_slice %162 {offsets = [0, 0, 16], sizes = [4, 8, 8], strides = [1, 1, 1]} : vector<4x8x32xf32> to vector<4x8x8xf32>
    %217 = arith.truncf %216 : vector<4x8x8xf32> to vector<4x8x8xbf16>
    "tpu.trace_start"() <{level = 10 : i32, message = "bqd,bkd->bqk"}> : () -> ()
    %cst_68 = arith.constant dense<0.000000e+00> : vector<4x8x8xf32>
    %218 = tpu.matmul %213, %215, %cst_68 {dimension_numbers = #tpu.dot_dimension_numbers<[2], [2], [1], [1], [0, 0, 0, 1, 1, 1], [0], [0]>} : vector<4x8x8xbf16>, vector<4x8x8xbf16>, vector<4x8x8xf32> -> vector<4x8x8xf32>
    %cst_69 = arith.constant -1.000000e+20 : f32
    "tpu.trace_stop"() : () -> ()
    %219 = vector.shape_cast %165 : vector<4x1x8xi1> to vector<4x1x8xi1>
    %220 = vector.broadcast %219 : vector<4x1x8xi1> to vector<4x8x8xi1>
    %221 = vector.broadcast %cst_69 : f32 to vector<4x8x8xf32>
    %222 = arith.select %220, %218, %221 : vector<4x8x8xi1>, vector<4x8x8xf32>
    %cst_70 = arith.constant dense<0xFF800000> : vector<4x8xf32>
    %223 = vector.multi_reduction <maximumf>, %222, %cst_70 [2] : vector<4x8x8xf32> to vector<4x8xf32>
    %224 = vector.shape_cast %223 : vector<4x8xf32> to vector<4x8x1xf32>
    %225 = vector.broadcast %224 : vector<4x8x1xf32> to vector<4x8x8xf32>
    %226 = arith.subf %222, %225 : vector<4x8x8xf32>
    %227 = math.exp %226 : vector<4x8x8xf32>
    %cst_71 = arith.constant dense<0.000000e+00> : vector<4x8xf32>
    %228 = vector.multi_reduction <add>, %227, %cst_71 [2] : vector<4x8x8xf32> to vector<4x8xf32>
    %229 = vector.shape_cast %228 : vector<4x8xf32> to vector<4x8x1xf32>
    %230 = tpu.reciprocal %229 {approx = true} : vector<4x8x1xf32> -> vector<4x8x1xf32>
    %231 = vector.broadcast %230 : vector<4x8x1xf32> to vector<4x8x8xf32>
    %232 = arith.mulf %227, %231 : vector<4x8x8xf32>
    %233 = arith.truncf %232 : vector<4x8x8xf32> to vector<4x8x8xbf16>
    "tpu.trace_start"() <{level = 10 : i32, message = "bqk,bkd->bqd"}> : () -> ()
    %cst_72 = arith.constant dense<0.000000e+00> : vector<4x8x8xf32>
    %234 = tpu.matmul %233, %217, %cst_72 {dimension_numbers = #tpu.dot_dimension_numbers<[2], [1], [1], [2], [0, 0, 0, 1, 1, 2], [0], [0]>} : vector<4x8x8xbf16>, vector<4x8x8xbf16>, vector<4x8x8xf32> -> vector<4x8x8xf32>
    "tpu.trace_stop"() : () -> ()
    %235 = vector.extract_strided_slice %154 {offsets = [0, 0, 24], sizes = [4, 8, 8], strides = [1, 1, 1]} : vector<4x8x32xf32> to vector<4x8x8xf32>
    %236 = arith.truncf %235 : vector<4x8x8xf32> to vector<4x8x8xbf16>
    %237 = vector.extract_strided_slice %158 {offsets = [0, 0, 24], sizes = [4, 8, 8], strides = [1, 1, 1]} : vector<4x8x32xf32> to vector<4x8x8xf32>
    %238 = arith.truncf %237 : vector<4x8x8xf32> to vector<4x8x8xbf16>
    %239 = vector.extract_strided_slice %162 {offsets = [0, 0, 24], sizes = [4, 8, 8], strides = [1, 1, 1]} : vector<4x8x32xf32> to vector<4x8x8xf32>
    %240 = arith.truncf %239 : vector<4x8x8xf32> to vector<4x8x8xbf16>
    "tpu.trace_start"() <{level = 10 : i32, message = "bqd,bkd->bqk"}> : () -> ()
    %cst_73 = arith.constant dense<0.000000e+00> : vector<4x8x8xf32>
    %241 = tpu.matmul %236, %238, %cst_73 {dimension_numbers = #tpu.dot_dimension_numbers<[2], [2], [1], [1], [0, 0, 0, 1, 1, 1], [0], [0]>} : vector<4x8x8xbf16>, vector<4x8x8xbf16>, vector<4x8x8xf32> -> vector<4x8x8xf32>
    %cst_74 = arith.constant -1.000000e+20 : f32
    "tpu.trace_stop"() : () -> ()
    %242 = vector.shape_cast %165 : vector<4x1x8xi1> to vector<4x1x8xi1>
    %243 = vector.broadcast %242 : vector<4x1x8xi1> to vector<4x8x8xi1>
    %244 = vector.broadcast %cst_74 : f32 to vector<4x8x8xf32>
    %245 = arith.select %243, %241, %244 : vector<4x8x8xi1>, vector<4x8x8xf32>
    %cst_75 = arith.constant dense<0xFF800000> : vector<4x8xf32>
    %246 = vector.multi_reduction <maximumf>, %245, %cst_75 [2] : vector<4x8x8xf32> to vector<4x8xf32>
    %247 = vector.shape_cast %246 : vector<4x8xf32> to vector<4x8x1xf32>
    %248 = vector.broadcast %247 : vector<4x8x1xf32> to vector<4x8x8xf32>
    %249 = arith.subf %245, %248 : vector<4x8x8xf32>
    %250 = math.exp %249 : vector<4x8x8xf32>
    %cst_76 = arith.constant dense<0.000000e+00> : vector<4x8xf32>
    %251 = vector.multi_reduction <add>, %250, %cst_76 [2] : vector<4x8x8xf32> to vector<4x8xf32>
    %252 = vector.shape_cast %251 : vector<4x8xf32> to vector<4x8x1xf32>
    %253 = tpu.reciprocal %252 {approx = true} : vector<4x8x1xf32> -> vector<4x8x1xf32>
    %254 = vector.broadcast %253 : vector<4x8x1xf32> to vector<4x8x8xf32>
    %255 = arith.mulf %250, %254 : vector<4x8x8xf32>
    %256 = arith.truncf %255 : vector<4x8x8xf32> to vector<4x8x8xbf16>
    "tpu.trace_start"() <{level = 10 : i32, message = "bqk,bkd->bqd"}> : () -> ()
    %cst_77 = arith.constant dense<0.000000e+00> : vector<4x8x8xf32>
    %257 = tpu.matmul %256, %240, %cst_77 {dimension_numbers = #tpu.dot_dimension_numbers<[2], [1], [1], [2], [0, 0, 0, 1, 1, 2], [0], [0]>} : vector<4x8x8xbf16>, vector<4x8x8xbf16>, vector<4x8x8xf32> -> vector<4x8x8xf32>
    "tpu.trace_stop"() : () -> ()
    %258 = tpu.concatenate %188, %211, %234, %257 in 2 : vector<4x8x8xf32>, vector<4x8x8xf32>, vector<4x8x8xf32>, vector<4x8x8xf32> -> vector<4x8x32xf32>
    %259 = vector.shape_cast %258 : vector<4x8x32xf32> to vector<32x32xf32>
    %260 = arith.truncf %259 : vector<32x32xf32> to vector<32x32xbf16>
    %c0_78 = arith.constant 0 : index
    %c0_79 = arith.constant 0 : index
    %261 = vector.load %arg9[%c0_78, %c0_79] : memref<32x32xbf16, #tpu.memory_space<vmem>>, vector<32x32xbf16>
    %cst_80 = arith.constant dense<0.000000e+00> : vector<32x32xf32>
    %262 = tpu.matmul %260, %261, %cst_80 {dimension_numbers = #tpu.dot_dimension_numbers<[1], [0], [0], [1], [0, 0, 1, 1], [], []>} : vector<32x32xbf16>, vector<32x32xbf16>, vector<32x32xf32> -> vector<32x32xf32>
    %c0_81 = arith.constant 0 : index
    %c0_82 = arith.constant 0 : index
    %263 = vector.load %arg10[%c0_81, %c0_82] : memref<1x32xf32, #tpu.memory_space<vmem>>, vector<1x32xf32>
    %264 = vector.shape_cast %263 : vector<1x32xf32> to vector<32xf32>
    %265 = vector.shape_cast %264 : vector<32xf32> to vector<1x32xf32>
    %266 = vector.broadcast %265 : vector<1x32xf32> to vector<32x32xf32>
    %267 = arith.addf %262, %266 : vector<32x32xf32>
    %268 = arith.addf %267, %145 : vector<32x32xf32>
    %c1_83 = arith.constant 1 : index
    %c0_84 = arith.constant 0 : index
    %269 = vector.load %arg11[%c1_83, %c0_84] : memref<3x32xf32, #tpu.memory_space<vmem>>, vector<1x32xf32>
    %270 = vector.shape_cast %269 : vector<1x32xf32> to vector<32xf32>
    %c1_85 = arith.constant 1 : index
    %c0_86 = arith.constant 0 : index
    %271 = vector.load %arg12[%c1_85, %c0_86] : memref<3x32xf32, #tpu.memory_space<vmem>>, vector<1x32xf32>
    %272 = vector.shape_cast %271 : vector<1x32xf32> to vector<32xf32>
    %cst_87 = arith.constant dense<0.000000e+00> : vector<32xf32>
    %273 = vector.multi_reduction <add>, %268, %cst_87 [1] : vector<32x32xf32> to vector<32xf32>
    %274 = vector.shape_cast %273 : vector<32xf32> to vector<32x1xf32>
    %cst_88 = arith.constant 3.200000e+01 : f32
    %275 = vector.broadcast %cst_88 : f32 to vector<32x1xf32>
    %276 = arith.divf %274, %275 : vector<32x1xf32>
    %277 = vector.broadcast %276 : vector<32x1xf32> to vector<32x32xf32>
    %278 = arith.subf %268, %277 : vector<32x32xf32>
    %279 = arith.mulf %278, %278 : vector<32x32xf32>
    %cst_89 = arith.constant dense<0.000000e+00> : vector<32xf32>
    %280 = vector.multi_reduction <add>, %279, %cst_89 [1] : vector<32x32xf32> to vector<32xf32>
    %281 = vector.shape_cast %280 : vector<32xf32> to vector<32x1xf32>
    %cst_90 = arith.constant 3.200000e+01 : f32
    %282 = vector.broadcast %cst_90 : f32 to vector<32x1xf32>
    %283 = arith.divf %281, %282 : vector<32x1xf32>
    %284 = vector.broadcast %276 : vector<32x1xf32> to vector<32x32xf32>
    %285 = arith.subf %268, %284 : vector<32x32xf32>
    %cst_91 = arith.constant 9.99999974E-6 : f32
    %286 = vector.broadcast %cst_91 : f32 to vector<32x1xf32>
    %287 = arith.addf %283, %286 : vector<32x1xf32>
    %288 = math.rsqrt %287 : vector<32x1xf32>
    %289 = vector.broadcast %288 : vector<32x1xf32> to vector<32x32xf32>
    %290 = arith.mulf %285, %289 : vector<32x32xf32>
    %291 = vector.shape_cast %270 : vector<32xf32> to vector<1x32xf32>
    %292 = vector.broadcast %291 : vector<1x32xf32> to vector<32x32xf32>
    %293 = arith.mulf %290, %292 : vector<32x32xf32>
    %294 = vector.shape_cast %272 : vector<32xf32> to vector<1x32xf32>
    %295 = vector.broadcast %294 : vector<1x32xf32> to vector<32x32xf32>
    %296 = arith.addf %293, %295 : vector<32x32xf32>
    %297 = arith.truncf %296 : vector<32x32xf32> to vector<32x32xbf16>
    %c0_92 = arith.constant 0 : index
    %c0_93 = arith.constant 0 : index
    %298 = vector.load %arg13[%c0_92, %c0_93] : memref<32x64xbf16, #tpu.memory_space<vmem>>, vector<32x64xbf16>
    %cst_94 = arith.constant dense<0.000000e+00> : vector<32x64xf32>
    %299 = tpu.matmul %297, %298, %cst_94 {dimension_numbers = #tpu.dot_dimension_numbers<[1], [0], [0], [1], [0, 0, 1, 1], [], []>} : vector<32x32xbf16>, vector<32x64xbf16>, vector<32x64xf32> -> vector<32x64xf32>
    %c0_95 = arith.constant 0 : index
    %c0_96 = arith.constant 0 : index
    %300 = vector.load %arg14[%c0_95, %c0_96] : memref<1x64xf32, #tpu.memory_space<vmem>>, vector<1x64xf32>
    %301 = vector.shape_cast %300 : vector<1x64xf32> to vector<64xf32>
    %302 = vector.shape_cast %301 : vector<64xf32> to vector<1x64xf32>
    %303 = vector.broadcast %302 : vector<1x64xf32> to vector<32x64xf32>
    %304 = arith.addf %299, %303 : vector<32x64xf32>
    %cst_97 = arith.constant 0.000000e+00 : f32
    %305 = vector.broadcast %cst_97 : f32 to vector<32x64xf32>
    %306 = arith.cmpf ogt, %304, %305 : vector<32x64xf32>
    %cst_98 = arith.constant 0.00999999977 : f32
    %307 = vector.broadcast %cst_98 : f32 to vector<32x64xf32>
    %308 = arith.mulf %307, %304 : vector<32x64xf32>
    %309 = arith.select %306, %304, %308 : vector<32x64xi1>, vector<32x64xf32>
    %310 = arith.truncf %309 : vector<32x64xf32> to vector<32x64xbf16>
    %c0_99 = arith.constant 0 : index
    %c0_100 = arith.constant 0 : index
    %311 = vector.load %arg15[%c0_99, %c0_100] : memref<64x32xbf16, #tpu.memory_space<vmem>>, vector<64x32xbf16>
    %cst_101 = arith.constant dense<0.000000e+00> : vector<32x32xf32>
    %312 = tpu.matmul %310, %311, %cst_101 {dimension_numbers = #tpu.dot_dimension_numbers<[1], [0], [0], [1], [0, 0, 1, 1], [], []>} : vector<32x64xbf16>, vector<64x32xbf16>, vector<32x32xf32> -> vector<32x32xf32>
    %c0_102 = arith.constant 0 : index
    %c0_103 = arith.constant 0 : index
    %313 = vector.load %arg16[%c0_102, %c0_103] : memref<1x32xf32, #tpu.memory_space<vmem>>, vector<1x32xf32>
    %314 = vector.shape_cast %313 : vector<1x32xf32> to vector<32xf32>
    %315 = vector.shape_cast %314 : vector<32xf32> to vector<1x32xf32>
    %316 = vector.broadcast %315 : vector<1x32xf32> to vector<32x32xf32>
    %317 = arith.addf %312, %316 : vector<32x32xf32>
    %318 = arith.addf %317, %296 : vector<32x32xf32>
    %c2_104 = arith.constant 2 : index
    %c0_105 = arith.constant 0 : index
    %319 = vector.load %arg11[%c2_104, %c0_105] : memref<3x32xf32, #tpu.memory_space<vmem>>, vector<1x32xf32>
    %320 = vector.shape_cast %319 : vector<1x32xf32> to vector<32xf32>
    %c2_106 = arith.constant 2 : index
    %c0_107 = arith.constant 0 : index
    %321 = vector.load %arg12[%c2_106, %c0_107] : memref<3x32xf32, #tpu.memory_space<vmem>>, vector<1x32xf32>
    %322 = vector.shape_cast %321 : vector<1x32xf32> to vector<32xf32>
    %cst_108 = arith.constant dense<0.000000e+00> : vector<32xf32>
    %323 = vector.multi_reduction <add>, %318, %cst_108 [1] : vector<32x32xf32> to vector<32xf32>
    %324 = vector.shape_cast %323 : vector<32xf32> to vector<32x1xf32>
    %cst_109 = arith.constant 3.200000e+01 : f32
    %325 = vector.broadcast %cst_109 : f32 to vector<32x1xf32>
    %326 = arith.divf %324, %325 : vector<32x1xf32>
    %327 = vector.broadcast %326 : vector<32x1xf32> to vector<32x32xf32>
    %328 = arith.subf %318, %327 : vector<32x32xf32>
    %329 = arith.mulf %328, %328 : vector<32x32xf32>
    %cst_110 = arith.constant dense<0.000000e+00> : vector<32xf32>
    %330 = vector.multi_reduction <add>, %329, %cst_110 [1] : vector<32x32xf32> to vector<32xf32>
    %331 = vector.shape_cast %330 : vector<32xf32> to vector<32x1xf32>
    %cst_111 = arith.constant 3.200000e+01 : f32
    %332 = vector.broadcast %cst_111 : f32 to vector<32x1xf32>
    %333 = arith.divf %331, %332 : vector<32x1xf32>
    %334 = vector.broadcast %326 : vector<32x1xf32> to vector<32x32xf32>
    %335 = arith.subf %318, %334 : vector<32x32xf32>
    %cst_112 = arith.constant 9.99999974E-6 : f32
    %336 = vector.broadcast %cst_112 : f32 to vector<32x1xf32>
    %337 = arith.addf %333, %336 : vector<32x1xf32>
    %338 = math.rsqrt %337 : vector<32x1xf32>
    %339 = vector.broadcast %338 : vector<32x1xf32> to vector<32x32xf32>
    %340 = arith.mulf %335, %339 : vector<32x32xf32>
    %341 = vector.shape_cast %320 : vector<32xf32> to vector<1x32xf32>
    %342 = vector.broadcast %341 : vector<1x32xf32> to vector<32x32xf32>
    %343 = arith.mulf %340, %342 : vector<32x32xf32>
    %344 = vector.shape_cast %322 : vector<32xf32> to vector<1x32xf32>
    %345 = vector.broadcast %344 : vector<1x32xf32> to vector<32x32xf32>
    %346 = arith.addf %343, %345 : vector<32x32xf32>
    %347 = vector.shape_cast %346 : vector<32x32xf32> to vector<4x8x32xf32>
    %c0_113 = arith.constant 0 : index
    %c0_114 = arith.constant 0 : index
    %c0_115 = arith.constant 0 : index
    %348 = vector.load %arg17[%c0_113, %c0_114, %c0_115] : memref<4x8x32xf32, #tpu.memory_space<vmem>>, vector<4x8x32xf32>
    tpu.vector_store %arg17[%c0_113, %c0_114, %c0_115], %347 {strides = array<i32>} : memref<4x8x32xf32, #tpu.memory_space<vmem>>, vector<4x8x32xf32>,
    return
  }
  func.func @transform_0(%arg0: i32) -> (i32, i32, i32) {
    %c0_i32 = arith.constant 0 : i32
    %c0_i32_0 = arith.constant 0 : i32
    %c0_i32_1 = arith.constant 0 : i32
    return %arg0, %c0_i32, %c0_i32_0 : i32, i32, i32
  }
  func.func @transform_1(%arg0: i32) -> (i32, i32, i32) {
    %c0_i32 = arith.constant 0 : i32
    %c0_i32_0 = arith.constant 0 : i32
    %c0_i32_1 = arith.constant 0 : i32
    return %arg0, %c0_i32, %c0_i32_0 : i32, i32, i32
  }
  func.func @transform_2(%arg0: i32) -> (i32, i32, i32) {
    %c0_i32 = arith.constant 0 : i32
    %c0_i32_0 = arith.constant 0 : i32
    %c0_i32_1 = arith.constant 0 : i32
    return %arg0, %c0_i32, %c0_i32_0 : i32, i32, i32
  }
  func.func @transform_3(%arg0: i32) -> (i32, i32, i32) {
    %c0_i32 = arith.constant 0 : i32
    %c0_i32_0 = arith.constant 0 : i32
    %c0_i32_1 = arith.constant 0 : i32
    return %arg0, %c0_i32, %c0_i32_0 : i32, i32, i32
  }
  func.func @transform_4(%arg0: i32) -> (i32, i32) {
    %c0_i32 = arith.constant 0 : i32
    %c0_i32_0 = arith.constant 0 : i32
    %c0_i32_1 = arith.constant 0 : i32
    return %c0_i32, %c0_i32_0 : i32, i32
  }
  func.func @transform_5(%arg0: i32) -> (i32, i32) {
    %c0_i32 = arith.constant 0 : i32
    %c0_i32_0 = arith.constant 0 : i32
    %c0_i32_1 = arith.constant 0 : i32
    return %c0_i32, %c0_i32_0 : i32, i32
  }
  func.func @transform_6(%arg0: i32) -> (i32, i32) {
    %c0_i32 = arith.constant 0 : i32
    %c0_i32_0 = arith.constant 0 : i32
    %c0_i32_1 = arith.constant 0 : i32
    return %c0_i32, %c0_i32_0 : i32, i32
  }
  func.func @transform_7(%arg0: i32) -> (i32, i32, i32) {
    %c0_i32 = arith.constant 0 : i32
    %c0_i32_0 = arith.constant 0 : i32
    %c0_i32_1 = arith.constant 0 : i32
    %c0_i32_2 = arith.constant 0 : i32
    return %c0_i32, %c0_i32_0, %c0_i32_1 : i32, i32, i32
  }
  func.func @transform_8(%arg0: i32) -> (i32, i32) {
    %c0_i32 = arith.constant 0 : i32
    %c0_i32_0 = arith.constant 0 : i32
    %c0_i32_1 = arith.constant 0 : i32
    return %c0_i32, %c0_i32_0 : i32, i32
  }
  func.func @transform_9(%arg0: i32) -> (i32, i32) {
    %c0_i32 = arith.constant 0 : i32
    %c0_i32_0 = arith.constant 0 : i32
    %c0_i32_1 = arith.constant 0 : i32
    return %c0_i32, %c0_i32_0 : i32, i32
  }
  func.func @transform_10(%arg0: i32) -> (i32, i32) {
    %c0_i32 = arith.constant 0 : i32
    %c0_i32_0 = arith.constant 0 : i32
    %c0_i32_1 = arith.constant 0 : i32
    return %c0_i32, %c0_i32_0 : i32, i32
  }
  func.func @transform_11(%arg0: i32) -> (i32, i32) {
    %c0_i32 = arith.constant 0 : i32
    %c0_i32_0 = arith.constant 0 : i32
    %c0_i32_1 = arith.constant 0 : i32
    return %c0_i32, %c0_i32_0 : i32, i32
  }
  func.func @transform_12(%arg0: i32) -> (i32, i32) {
    %c0_i32 = arith.constant 0 : i32
    %c0_i32_0 = arith.constant 0 : i32
    %c0_i32_1 = arith.constant 0 : i32
    return %c0_i32, %c0_i32_0 : i32, i32
  }
  func.func @transform_13(%arg0: i32) -> (i32, i32) {
    %c0_i32 = arith.constant 0 : i32
    %c0_i32_0 = arith.constant 0 : i32
    %c0_i32_1 = arith.constant 0 : i32
    return %c0_i32, %c0_i32_0 : i32, i32
  }
  func.func @transform_14(%arg0: i32) -> (i32, i32) {
    %c0_i32 = arith.constant 0 : i32
    %c0_i32_0 = arith.constant 0 : i32
    %c0_i32_1 = arith.constant 0 : i32
    return %c0_i32, %c0_i32_0 : i32, i32
  }
  func.func @transform_15(%arg0: i32) -> (i32, i32) {
    %c0_i32 = arith.constant 0 : i32
    %c0_i32_0 = arith.constant 0 : i32
    %c0_i32_1 = arith.constant 0 : i32
    return %c0_i32, %c0_i32_0 : i32, i32
  }
  func.func @transform_16(%arg0: i32) -> (i32, i32, i32) {
    %c0_i32 = arith.constant 0 : i32
    %c0_i32_0 = arith.constant 0 : i32
    %c0_i32_1 = arith.constant 0 : i32
    return %arg0, %c0_i32, %c0_i32_0 : i32, i32, i32
  }
}

module attributes {stable_mosaic.version = 11 : i64} {
  func.func @decoder_block_kernel(%arg0: i32, %arg1: memref<4x8x32xbf16, #tpu.memory_space<vmem>>, %arg2: memref<4x8x32xbf16, #tpu.memory_space<vmem>>, %arg3: memref<4x8x32xbf16, #tpu.memory_space<vmem>>, %arg4: memref<4x1x8xf32, #tpu.memory_space<vmem>>, %arg5: memref<32x96xbf16, #tpu.memory_space<vmem>>, %arg6: memref<32x32xbf16, #tpu.memory_space<vmem>>, %arg7: memref<1x32xf32, #tpu.memory_space<vmem>>, %arg8: memref<3x32x32xbf16, #tpu.memory_space<vmem>>, %arg9: memref<32x32xbf16, #tpu.memory_space<vmem>>, %arg10: memref<1x32xf32, #tpu.memory_space<vmem>>, %arg11: memref<3x32xf32, #tpu.memory_space<vmem>>, %arg12: memref<3x32xf32, #tpu.memory_space<vmem>>, %arg13: memref<32x64xbf16, #tpu.memory_space<vmem>>, %arg14: memref<1x64xf32, #tpu.memory_space<vmem>>, %arg15: memref<64x32xbf16, #tpu.memory_space<vmem>>, %arg16: memref<1x32xf32, #tpu.memory_space<vmem>>, %arg17: memref<4x8x32xf32, #tpu.memory_space<vmem>>) attributes {dimension_semantics = [#tpu.dimension_semantics<parallel>], iteration_bounds = array<i64: 1>, scalar_prefetch = 0 : i64, scratch_operands = 0 : i64, tpu.core_type = #tpu.core_type<tc>, window_params = [{transform_indices = @transform_0, window_bounds = array<i64: 4, 8, 32>}, {transform_indices = @transform_1, window_bounds = array<i64: 4, 8, 32>}, {transform_indices = @transform_2, window_bounds = array<i64: 4, 8, 32>}, {transform_indices = @transform_3, window_bounds = array<i64: 4, 1, 8>}, {pipeline_mode = #tpu.pipeline_mode<synchronous>, transform_indices = @transform_4, window_bounds = array<i64: 32, 96>}, {pipeline_mode = #tpu.pipeline_mode<synchronous>, transform_indices = @transform_5, window_bounds = array<i64: 32, 32>}, {pipeline_mode = #tpu.pipeline_mode<synchronous>, transform_indices = @transform_6, window_bounds = array<i64: 1, 32>}, {pipeline_mode = #tpu.pipeline_mode<synchronous>, transform_indices = @transform_7, window_bounds = array<i64: 3, 32, 32>}, {pipeline_mode = #tpu.pipeline_mode<synchronous>, transform_indices = @transform_8, window_bounds = array<i64: 32, 32>}, {pipeline_mode = #tpu.pipeline_mode<synchronous>, transform_indices = @transform_9, window_bounds = array<i64: 1, 32>}, {pipeline_mode = #tpu.pipeline_mode<synchronous>, transform_indices = @transform_10, window_bounds = array<i64: 3, 32>}, {pipeline_mode = #tpu.pipeline_mode<synchronous>, transform_indices = @transform_11, window_bounds = array<i64: 3, 32>}, {pipeline_mode = #tpu.pipeline_mode<synchronous>, transform_indices = @transform_12, window_bounds = array<i64: 32, 64>}, {pipeline_mode = #tpu.pipeline_mode<synchronous>, transform_indices = @transform_13, window_bounds = array<i64: 1, 64>}, {pipeline_mode = #tpu.pipeline_mode<synchronous>, transform_indices = @transform_14, window_bounds = array<i64: 64, 32>}, {pipeline_mode = #tpu.pipeline_mode<synchronous>, transform_indices = @transform_15, window_bounds = array<i64: 1, 32>}, {transform_indices = @transform_16, window_bounds = array<i64: 4, 8, 32>}]} {
    %c0 = arith.constant 0 : index
    %c0_0 = arith.constant 0 : index
    %c0_1 = arith.constant 0 : index
    %0 = vector.load %arg1[%c0, %c0_0, %c0_1] : memref<4x8x32xbf16, #tpu.memory_space<vmem>>, vector<4x8x32xbf16>
    %1 = vector.shape_cast %0 : vector<4x8x32xbf16> to vector<32x32xbf16>
    %2 = arith.extf %1 : vector<32x32xbf16> to vector<32x32xf32>
    %c0_2 = arith.constant 0 : index
    %c0_3 = arith.constant 0 : index
    %3 = vector.load %arg5[%c0_2, %c0_3] : memref<32x96xbf16, #tpu.memory_space<vmem>>, vector<32x96xbf16>
    %cst = arith.constant dense<0.000000e+00> : vector<32x96xf32>
    %4 = tpu.matmul %1, %3, %cst {dimension_numbers = #tpu.dot_dimension_numbers<[1], [0], [0], [1], [0, 0, 1, 1], [], []>} : vector<32x32xbf16>, vector<32x96xbf16>, vector<32x96xf32> -> vector<32x96xf32>
    %5 = vector.extract_strided_slice %4 {offsets = [0, 0], sizes = [32, 32], strides = [1, 1]} : vector<32x96xf32> to vector<32x32xf32>
    %6 = vector.shape_cast %5 : vector<32x32xf32> to vector<4x8x32xf32>
    %7 = vector.extract_strided_slice %4 {offsets = [0, 32], sizes = [32, 32], strides = [1, 1]} : vector<32x96xf32> to vector<32x32xf32>
    %8 = vector.shape_cast %7 : vector<32x32xf32> to vector<4x8x32xf32>
    %9 = vector.extract_strided_slice %4 {offsets = [0, 64], sizes = [32, 32], strides = [1, 1]} : vector<32x96xf32> to vector<32x32xf32>
    %10 = vector.shape_cast %9 : vector<32x32xf32> to vector<4x8x32xf32>
    %11 = tpu.iota {dimensions = array<i32: 0>} : vector<8x8xi32>
    %12 = tpu.iota {dimensions = array<i32: 1>} : vector<8x8xi32>
    %13 = arith.cmpi sge, %11, %12 : vector<8x8xi32>
    %14 = vector.shape_cast %13 : vector<8x8xi1> to vector<1x8x8xi1>
    %15 = vector.extract_strided_slice %6 {offsets = [0, 0, 0], sizes = [4, 8, 8], strides = [1, 1, 1]} : vector<4x8x32xf32> to vector<4x8x8xf32>
    %16 = arith.truncf %15 : vector<4x8x8xf32> to vector<4x8x8xbf16>
    %17 = vector.extract_strided_slice %8 {offsets = [0, 0, 0], sizes = [4, 8, 8], strides = [1, 1, 1]} : vector<4x8x32xf32> to vector<4x8x8xf32>
    %18 = arith.truncf %17 : vector<4x8x8xf32> to vector<4x8x8xbf16>
    %19 = vector.extract_strided_slice %10 {offsets = [0, 0, 0], sizes = [4, 8, 8], strides = [1, 1, 1]} : vector<4x8x32xf32> to vector<4x8x8xf32>
    %20 = arith.truncf %19 : vector<4x8x8xf32> to vector<4x8x8xbf16>
    "tpu.trace_start"() <{level = 10 : i32, message = "bqd,bkd->bqk"}> : () -> ()
    %cst_4 = arith.constant dense<0.000000e+00> : vector<4x8x8xf32>
    %21 = tpu.matmul %16, %18, %cst_4 {dimension_numbers = #tpu.dot_dimension_numbers<[2], [2], [1], [1], [0, 0, 0, 1, 1, 1], [0], [0]>} : vector<4x8x8xbf16>, vector<4x8x8xbf16>, vector<4x8x8xf32> -> vector<4x8x8xf32>
    %cst_5 = arith.constant -1.000000e+20 : f32
    "tpu.trace_stop"() : () -> ()
    %22 = vector.shape_cast %14 : vector<1x8x8xi1> to vector<1x8x8xi1>
    %23 = vector.broadcast %22 : vector<1x8x8xi1> to vector<4x8x8xi1>
    %24 = vector.broadcast %cst_5 : f32 to vector<4x8x8xf32>
    %25 = arith.select %23, %21, %24 : vector<4x8x8xi1>, vector<4x8x8xf32>
    %cst_6 = arith.constant dense<0xFF800000> : vector<4x8xf32>
    %26 = vector.multi_reduction <maximumf>, %25, %cst_6 [2] : vector<4x8x8xf32> to vector<4x8xf32>
    %27 = vector.shape_cast %26 : vector<4x8xf32> to vector<4x8x1xf32>
    %28 = vector.broadcast %27 : vector<4x8x1xf32> to vector<4x8x8xf32>
    %29 = arith.subf %25, %28 : vector<4x8x8xf32>
    %30 = math.exp %29 : vector<4x8x8xf32>
    %cst_7 = arith.constant dense<0.000000e+00> : vector<4x8xf32>
    %31 = vector.multi_reduction <add>, %30, %cst_7 [2] : vector<4x8x8xf32> to vector<4x8xf32>
    %32 = vector.shape_cast %31 : vector<4x8xf32> to vector<4x8x1xf32>
    %33 = tpu.reciprocal %32 {approx = true} : vector<4x8x1xf32> -> vector<4x8x1xf32>
    %34 = vector.broadcast %33 : vector<4x8x1xf32> to vector<4x8x8xf32>
    %35 = arith.mulf %30, %34 : vector<4x8x8xf32>
    %36 = arith.truncf %35 : vector<4x8x8xf32> to vector<4x8x8xbf16>
    "tpu.trace_start"() <{level = 10 : i32, message = "bqk,bkd->bqd"}> : () -> ()
    %cst_8 = arith.constant dense<0.000000e+00> : vector<4x8x8xf32>
    %37 = tpu.matmul %36, %20, %cst_8 {dimension_numbers = #tpu.dot_dimension_numbers<[2], [1], [1], [2], [0, 0, 0, 1, 1, 2], [0], [0]>} : vector<4x8x8xbf16>, vector<4x8x8xbf16>, vector<4x8x8xf32> -> vector<4x8x8xf32>
    "tpu.trace_stop"() : () -> ()
    %38 = vector.extract_strided_slice %6 {offsets = [0, 0, 8], sizes = [4, 8, 8], strides = [1, 1, 1]} : vector<4x8x32xf32> to vector<4x8x8xf32>
    %39 = arith.truncf %38 : vector<4x8x8xf32> to vector<4x8x8xbf16>
    %40 = vector.extract_strided_slice %8 {offsets = [0, 0, 8], sizes = [4, 8, 8], strides = [1, 1, 1]} : vector<4x8x32xf32> to vector<4x8x8xf32>
    %41 = arith.truncf %40 : vector<4x8x8xf32> to vector<4x8x8xbf16>
    %42 = vector.extract_strided_slice %10 {offsets = [0, 0, 8], sizes = [4, 8, 8], strides = [1, 1, 1]} : vector<4x8x32xf32> to vector<4x8x8xf32>
    %43 = arith.truncf %42 : vector<4x8x8xf32> to vector<4x8x8xbf16>
    "tpu.trace_start"() <{level = 10 : i32, message = "bqd,bkd->bqk"}> : () -> ()
    %cst_9 = arith.constant dense<0.000000e+00> : vector<4x8x8xf32>
    %44 = tpu.matmul %39, %41, %cst_9 {dimension_numbers = #tpu.dot_dimension_numbers<[2], [2], [1], [1], [0, 0, 0, 1, 1, 1], [0], [0]>} : vector<4x8x8xbf16>, vector<4x8x8xbf16>, vector<4x8x8xf32> -> vector<4x8x8xf32>
    %cst_10 = arith.constant -1.000000e+20 : f32
    "tpu.trace_stop"() : () -> ()
    %45 = vector.shape_cast %14 : vector<1x8x8xi1> to vector<1x8x8xi1>
    %46 = vector.broadcast %45 : vector<1x8x8xi1> to vector<4x8x8xi1>
    %47 = vector.broadcast %cst_10 : f32 to vector<4x8x8xf32>
    %48 = arith.select %46, %44, %47 : vector<4x8x8xi1>, vector<4x8x8xf32>
    %cst_11 = arith.constant dense<0xFF800000> : vector<4x8xf32>
    %49 = vector.multi_reduction <maximumf>, %48, %cst_11 [2] : vector<4x8x8xf32> to vector<4x8xf32>
    %50 = vector.shape_cast %49 : vector<4x8xf32> to vector<4x8x1xf32>
    %51 = vector.broadcast %50 : vector<4x8x1xf32> to vector<4x8x8xf32>
    %52 = arith.subf %48, %51 : vector<4x8x8xf32>
    %53 = math.exp %52 : vector<4x8x8xf32>
    %cst_12 = arith.constant dense<0.000000e+00> : vector<4x8xf32>
    %54 = vector.multi_reduction <add>, %53, %cst_12 [2] : vector<4x8x8xf32> to vector<4x8xf32>
    %55 = vector.shape_cast %54 : vector<4x8xf32> to vector<4x8x1xf32>
    %56 = tpu.reciprocal %55 {approx = true} : vector<4x8x1xf32> -> vector<4x8x1xf32>
    %57 = vector.broadcast %56 : vector<4x8x1xf32> to vector<4x8x8xf32>
    %58 = arith.mulf %53, %57 : vector<4x8x8xf32>
    %59 = arith.truncf %58 : vector<4x8x8xf32> to vector<4x8x8xbf16>
    "tpu.trace_start"() <{level = 10 : i32, message = "bqk,bkd->bqd"}> : () -> ()
    %cst_13 = arith.constant dense<0.000000e+00> : vector<4x8x8xf32>
    %60 = tpu.matmul %59, %43, %cst_13 {dimension_numbers = #tpu.dot_dimension_numbers<[2], [1], [1], [2], [0, 0, 0, 1, 1, 2], [0], [0]>} : vector<4x8x8xbf16>, vector<4x8x8xbf16>, vector<4x8x8xf32> -> vector<4x8x8xf32>
    "tpu.trace_stop"() : () -> ()
    %61 = vector.extract_strided_slice %6 {offsets = [0, 0, 16], sizes = [4, 8, 8], strides = [1, 1, 1]} : vector<4x8x32xf32> to vector<4x8x8xf32>
    %62 = arith.truncf %61 : vector<4x8x8xf32> to vector<4x8x8xbf16>
    %63 = vector.extract_strided_slice %8 {offsets = [0, 0, 16], sizes = [4, 8, 8], strides = [1, 1, 1]} : vector<4x8x32xf32> to vector<4x8x8xf32>
    %64 = arith.truncf %63 : vector<4x8x8xf32> to vector<4x8x8xbf16>
    %65 = vector.extract_strided_slice %10 {offsets = [0, 0, 16], sizes = [4, 8, 8], strides = [1, 1, 1]} : vector<4x8x32xf32> to vector<4x8x8xf32>
    %66 = arith.truncf %65 : vector<4x8x8xf32> to vector<4x8x8xbf16>
    "tpu.trace_start"() <{level = 10 : i32, message = "bqd,bkd->bqk"}> : () -> ()
    %cst_14 = arith.constant dense<0.000000e+00> : vector<4x8x8xf32>
    %67 = tpu.matmul %62, %64, %cst_14 {dimension_numbers = #tpu.dot_dimension_numbers<[2], [2], [1], [1], [0, 0, 0, 1, 1, 1], [0], [0]>} : vector<4x8x8xbf16>, vector<4x8x8xbf16>, vector<4x8x8xf32> -> vector<4x8x8xf32>
    %cst_15 = arith.constant -1.000000e+20 : f32
    "tpu.trace_stop"() : () -> ()
    %68 = vector.shape_cast %14 : vector<1x8x8xi1> to vector<1x8x8xi1>
    %69 = vector.broadcast %68 : vector<1x8x8xi1> to vector<4x8x8xi1>
    %70 = vector.broadcast %cst_15 : f32 to vector<4x8x8xf32>
    %71 = arith.select %69, %67, %70 : vector<4x8x8xi1>, vector<4x8x8xf32>
    %cst_16 = arith.constant dense<0xFF800000> : vector<4x8xf32>
    %72 = vector.multi_reduction <maximumf>, %71, %cst_16 [2] : vector<4x8x8xf32> to vector<4x8xf32>
    %73 = vector.shape_cast %72 : vector<4x8xf32> to vector<4x8x1xf32>
    %74 = vector.broadcast %73 : vector<4x8x1xf32> to vector<4x8x8xf32>
    %75 = arith.subf %71, %74 : vector<4x8x8xf32>
    %76 = math.exp %75 : vector<4x8x8xf32>
    %cst_17 = arith.constant dense<0.000000e+00> : vector<4x8xf32>
    %77 = vector.multi_reduction <add>, %76, %cst_17 [2] : vector<4x8x8xf32> to vector<4x8xf32>
    %78 = vector.shape_cast %77 : vector<4x8xf32> to vector<4x8x1xf32>
    %79 = tpu.reciprocal %78 {approx = true} : vector<4x8x1xf32> -> vector<4x8x1xf32>
    %80 = vector.broadcast %79 : vector<4x8x1xf32> to vector<4x8x8xf32>
    %81 = arith.mulf %76, %80 : vector<4x8x8xf32>
    %82 = arith.truncf %81 : vector<4x8x8xf32> to vector<4x8x8xbf16>
    "tpu.trace_start"() <{level = 10 : i32, message = "bqk,bkd->bqd"}> : () -> ()
    %cst_18 = arith.constant dense<0.000000e+00> : vector<4x8x8xf32>
    %83 = tpu.matmul %82, %66, %cst_18 {dimension_numbers = #tpu.dot_dimension_numbers<[2], [1], [1], [2], [0, 0, 0, 1, 1, 2], [0], [0]>} : vector<4x8x8xbf16>, vector<4x8x8xbf16>, vector<4x8x8xf32> -> vector<4x8x8xf32>
    "tpu.trace_stop"() : () -> ()
    %84 = vector.extract_strided_slice %6 {offsets = [0, 0, 24], sizes = [4, 8, 8], strides = [1, 1, 1]} : vector<4x8x32xf32> to vector<4x8x8xf32>
    %85 = arith.truncf %84 : vector<4x8x8xf32> to vector<4x8x8xbf16>
    %86 = vector.extract_strided_slice %8 {offsets = [0, 0, 24], sizes = [4, 8, 8], strides = [1, 1, 1]} : vector<4x8x32xf32> to vector<4x8x8xf32>
    %87 = arith.truncf %86 : vector<4x8x8xf32> to vector<4x8x8xbf16>
    %88 = vector.extract_strided_slice %10 {offsets = [0, 0, 24], sizes = [4, 8, 8], strides = [1, 1, 1]} : vector<4x8x32xf32> to vector<4x8x8xf32>
    %89 = arith.truncf %88 : vector<4x8x8xf32> to vector<4x8x8xbf16>
    "tpu.trace_start"() <{level = 10 : i32, message = "bqd,bkd->bqk"}> : () -> ()
    %cst_19 = arith.constant dense<0.000000e+00> : vector<4x8x8xf32>
    %90 = tpu.matmul %85, %87, %cst_19 {dimension_numbers = #tpu.dot_dimension_numbers<[2], [2], [1], [1], [0, 0, 0, 1, 1, 1], [0], [0]>} : vector<4x8x8xbf16>, vector<4x8x8xbf16>, vector<4x8x8xf32> -> vector<4x8x8xf32>
    %cst_20 = arith.constant -1.000000e+20 : f32
    "tpu.trace_stop"() : () -> ()
    %91 = vector.shape_cast %14 : vector<1x8x8xi1> to vector<1x8x8xi1>
    %92 = vector.broadcast %91 : vector<1x8x8xi1> to vector<4x8x8xi1>
    %93 = vector.broadcast %cst_20 : f32 to vector<4x8x8xf32>
    %94 = arith.select %92, %90, %93 : vector<4x8x8xi1>, vector<4x8x8xf32>
    %cst_21 = arith.constant dense<0xFF800000> : vector<4x8xf32>
    %95 = vector.multi_reduction <maximumf>, %94, %cst_21 [2] : vector<4x8x8xf32> to vector<4x8xf32>
    %96 = vector.shape_cast %95 : vector<4x8xf32> to vector<4x8x1xf32>
    %97 = vector.broadcast %96 : vector<4x8x1xf32> to vector<4x8x8xf32>
    %98 = arith.subf %94, %97 : vector<4x8x8xf32>
    %99 = math.exp %98 : vector<4x8x8xf32>
    %cst_22 = arith.constant dense<0.000000e+00> : vector<4x8xf32>
    %100 = vector.multi_reduction <add>, %99, %cst_22 [2] : vector<4x8x8xf32> to vector<4x8xf32>
    %101 = vector.shape_cast %100 : vector<4x8xf32> to vector<4x8x1xf32>
    %102 = tpu.reciprocal %101 {approx = true} : vector<4x8x1xf32> -> vector<4x8x1xf32>
    %103 = vector.broadcast %102 : vector<4x8x1xf32> to vector<4x8x8xf32>
    %104 = arith.mulf %99, %103 : vector<4x8x8xf32>
    %105 = arith.truncf %104 : vector<4x8x8xf32> to vector<4x8x8xbf16>
    "tpu.trace_start"() <{level = 10 : i32, message = "bqk,bkd->bqd"}> : () -> ()
    %cst_23 = arith.constant dense<0.000000e+00> : vector<4x8x8xf32>
    %106 = tpu.matmul %105, %89, %cst_23 {dimension_numbers = #tpu.dot_dimension_numbers<[2], [1], [1], [2], [0, 0, 0, 1, 1, 2], [0], [0]>} : vector<4x8x8xbf16>, vector<4x8x8xbf16>, vector<4x8x8xf32> -> vector<4x8x8xf32>
    "tpu.trace_stop"() : () -> ()
    %107 = tpu.concatenate %37, %60, %83, %106 in 2 : vector<4x8x8xf32>, vector<4x8x8xf32>, vector<4x8x8xf32>, vector<4x8x8xf32> -> vector<4x8x32xf32>
    %108 = vector.shape_cast %107 : vector<4x8x32xf32> to vector<32x32xf32>
    %109 = arith.truncf %108 : vector<32x32xf32> to vector<32x32xbf16>
    %c0_24 = arith.constant 0 : index
    %c0_25 = arith.constant 0 : index
    %110 = vector.load %arg6[%c0_24, %c0_25] : memref<32x32xbf16, #tpu.memory_space<vmem>>, vector<32x32xbf16>
    %cst_26 = arith.constant dense<0.000000e+00> : vector<32x32xf32>
    %111 = tpu.matmul %109, %110, %cst_26 {dimension_numbers = #tpu.dot_dimension_numbers<[1], [0], [0], [1], [0, 0, 1, 1], [], []>} : vector<32x32xbf16>, vector<32x32xbf16>, vector<32x32xf32> -> vector<32x32xf32>
    %c0_27 = arith.constant 0 : index
    %c0_28 = arith.constant 0 : index
    %112 = vector.load %arg7[%c0_27, %c0_28] : memref<1x32xf32, #tpu.memory_space<vmem>>, vector<1x32xf32>
    %113 = vector.shape_cast %112 : vector<1x32xf32> to vector<32xf32>
    %114 = vector.shape_cast %113 : vector<32xf32> to vector<1x32xf32>
    %115 = vector.broadcast %114 : vector<1x32xf32> to vector<32x32xf32>
    %116 = arith.addf %111, %115 : vector<32x32xf32>
    %117 = arith.addf %116, %2 : vector<32x32xf32>
    %c0_29 = arith.constant 0 : index
    %c0_30 = arith.constant 0 : index
    %118 = vector.load %arg11[%c0_29, %c0_30] : memref<3x32xf32, #tpu.memory_space<vmem>>, vector<1x32xf32>
    %119 = vector.shape_cast %118 : vector<1x32xf32> to vector<32xf32>
    %c0_31 = arith.constant 0 : index
    %c0_32 = arith.constant 0 : index
    %120 = vector.load %arg12[%c0_31, %c0_32] : memref<3x32xf32, #tpu.memory_space<vmem>>, vector<1x32xf32>
    %121 = vector.shape_cast %120 : vector<1x32xf32> to vector<32xf32>
    %cst_33 = arith.constant dense<0.000000e+00> : vector<32xf32>
    %122 = vector.multi_reduction <add>, %117, %cst_33 [1] : vector<32x32xf32> to vector<32xf32>
    %123 = vector.shape_cast %122 : vector<32xf32> to vector<32x1xf32>
    %cst_34 = arith.constant 3.200000e+01 : f32
    %124 = vector.broadcast %cst_34 : f32 to vector<32x1xf32>
    %125 = arith.divf %123, %124 : vector<32x1xf32>
    %126 = vector.broadcast %125 : vector<32x1xf32> to vector<32x32xf32>
    %127 = arith.subf %117, %126 : vector<32x32xf32>
    %128 = arith.mulf %127, %127 : vector<32x32xf32>
    %cst_35 = arith.constant dense<0.000000e+00> : vector<32xf32>
    %129 = vector.multi_reduction <add>, %128, %cst_35 [1] : vector<32x32xf32> to vector<32xf32>
    %130 = vector.shape_cast %129 : vector<32xf32> to vector<32x1xf32>
    %cst_36 = arith.constant 3.200000e+01 : f32
    %131 = vector.broadcast %cst_36 : f32 to vector<32x1xf32>
    %132 = arith.divf %130, %131 : vector<32x1xf32>
    %133 = vector.broadcast %125 : vector<32x1xf32> to vector<32x32xf32>
    %134 = arith.subf %117, %133 : vector<32x32xf32>
    %cst_37 = arith.constant 9.99999974E-6 : f32
    %135 = vector.broadcast %cst_37 : f32 to vector<32x1xf32>
    %136 = arith.addf %132, %135 : vector<32x1xf32>
    %137 = math.rsqrt %136 : vector<32x1xf32>
    %138 = vector.broadcast %137 : vector<32x1xf32> to vector<32x32xf32>
    %139 = arith.mulf %134, %138 : vector<32x32xf32>
    %140 = vector.shape_cast %119 : vector<32xf32> to vector<1x32xf32>
    %141 = vector.broadcast %140 : vector<1x32xf32> to vector<32x32xf32>
    %142 = arith.mulf %139, %141 : vector<32x32xf32>
    %143 = vector.shape_cast %121 : vector<32xf32> to vector<1x32xf32>
    %144 = vector.broadcast %143 : vector<1x32xf32> to vector<32x32xf32>
    %145 = arith.addf %142, %144 : vector<32x32xf32>
    %c0_38 = arith.constant 0 : index
    %c0_39 = arith.constant 0 : index
    %c0_40 = arith.constant 0 : index
    %146 = vector.load %arg2[%c0_38, %c0_39, %c0_40] : memref<4x8x32xbf16, #tpu.memory_space<vmem>>, vector<4x8x32xbf16>
    %147 = vector.shape_cast %146 : vector<4x8x32xbf16> to vector<32x32xbf16>
    %c0_41 = arith.constant 0 : index
    %c0_42 = arith.constant 0 : index
    %c0_43 = arith.constant 0 : index
    %148 = vector.load %arg3[%c0_41, %c0_42, %c0_43] : memref<4x8x32xbf16, #tpu.memory_space<vmem>>, vector<4x8x32xbf16>
    %149 = vector.shape_cast %148 : vector<4x8x32xbf16> to vector<32x32xbf16>
    %150 = arith.truncf %145 : vector<32x32xf32> to vector<32x32xbf16>
    %c0_44 = arith.constant 0 : index
    %c0_45 = arith.constant 0 : index
    %c0_46 = arith.constant 0 : index
    %151 = vector.load %arg8[%c0_44, %c0_45, %c0_46] : memref<3x32x32xbf16, #tpu.memory_space<vmem>>, vector<1x32x32xbf16>
    %152 = vector.shape_cast %151 : vector<1x32x32xbf16> to vector<32x32xbf16>
    %cst_47 = arith.constant dense<0.000000e+00> : vector<32x32xf32>
    %153 = tpu.matmul %150, %152, %cst_47 {dimension_numbers = #tpu.dot_dimension_numbers<[1], [0], [0], [1], [0, 0, 1, 1], [], []>} : vector<32x32xbf16>, vector<32x32xbf16>, vector<32x32xf32> -> vector<32x32xf32>
    %154 = vector.shape_cast %153 : vector<32x32xf32> to vector<4x8x32xf32>
    %c1 = arith.constant 1 : index
    %c0_48 = arith.constant 0 : index
    %c0_49 = arith.constant 0 : index
    %155 = vector.load %arg8[%c1, %c0_48, %c0_49] : memref<3x32x32xbf16, #tpu.memory_space<vmem>>, vector<1x32x32xbf16>
    %156 = vector.shape_cast %155 : vector<1x32x32xbf16> to vector<32x32xbf16>
    %cst_50 = arith.constant dense<0.000000e+00> : vector<32x32xf32>
    %157 = tpu.matmul %147, %156, %cst_50 {dimension_numbers = #tpu.dot_dimension_numbers<[1], [0], [0], [1], [0, 0, 1, 1], [], []>} : vector<32x32xbf16>, vector<32x32xbf16>, vector<32x32xf32> -> vector<32x32xf32>
    %158 = vector.shape_cast %157 : vector<32x32xf32> to vector<4x8x32xf32>
    %c2 = arith.constant 2 : index
    %c0_51 = arith.constant 0 : index
    %c0_52 = arith.constant 0 : index
    %159 = vector.load %arg8[%c2, %c0_51, %c0_52] : memref<3x32x32xbf16, #tpu.memory_space<vmem>>, vector<1x32x32xbf16>
    %160 = vector.shape_cast %159 : vector<1x32x32xbf16> to vector<32x32xbf16>
    %cst_53 = arith.constant dense<0.000000e+00> : vector<32x32xf32>
    %161 = tpu.matmul %149, %160, %cst_53 {dimension_numbers = #tpu.dot_dimension_numbers<[1], [0], [0], [1], [0, 0, 1, 1], [], []>} : vector<32x32xbf16>, vector<32x32xbf16>, vector<32x32xf32> -> vector<32x32xf32>
    %162 = vector.shape_cast %161 : vector<32x32xf32> to vector<4x8x32xf32>
    %c0_54 = arith.constant 0 : index
    %c0_55 = arith.constant 0 : index
    %c0_56 = arith.constant 0 : index
    %163 = vector.load %arg4[%c0_54, %c0_55, %c0_56] : memref<4x1x8xf32, #tpu.memory_space<vmem>>, vector<4x1x8xf32>
    %cst_57 = arith.constant 0.000000e+00 : f32
    %164 = vector.broadcast %cst_57 : f32 to vector<4x1x8xf32>
    %165 = arith.cmpf one, %163, %164 : vector<4x1x8xf32>
    %166 = vector.extract_strided_slice %154 {offsets = [0, 0, 0], sizes = [4, 8, 8], strides = [1, 1, 1]} : vector<4x8x32xf32> to vector<4x8x8xf32>
    %167 = arith.truncf %166 : vector<4x8x8xf32> to vector<4x8x8xbf16>
    %168 = vector.extract_strided_slice %158 {offsets = [0, 0, 0], sizes = [4, 8, 8], strides = [1, 1, 1]} : vector<4x8x32xf32> to vector<4x8x8xf32>
    %169 = arith.truncf %168 : vector<4x8x8xf32> to vector<4x8x8xbf16>
    %170 = vector.extract_strided_slice %162 {offsets = [0, 0, 0], sizes = [4, 8, 8], strides = [1, 1, 1]} : vector<4x8x32xf32> to vector<4x8x8xf32>
    %171 = arith.truncf %170 : vector<4x8x8xf32> to vector<4x8x8xbf16>
    "tpu.trace_start"() <{level = 10 : i32, message = "bqd,bkd->bqk"}> : () -> ()
    %cst_58 = arith.constant dense<0.000000e+00> : vector<4x8x8xf32>
    %172 = tpu.matmul %167, %169, %cst_58 {dimension_numbers = #tpu.dot_dimension_numbers<[2], [2], [1], [1], [0, 0, 0, 1, 1, 1], [0], [0]>} : vector<4x8x8xbf16>, vector<4x8x8xbf16>, vector<4x8x8xf32> -> vector<4x8x8xf32>
    %cst_59 = arith.constant -1.000000e+20 : f32
    "tpu.trace_stop"() : () -> ()
    %173 = vector.shape_cast %165 : vector<4x1x8xi1> to vector<4x1x8xi1>
    %174 = vector.broadcast %173 : vector<4x1x8xi1> to vector<4x8x8xi1>
    %175 = vector.broadcast %cst_59 : f32 to vector<4x8x8xf32>
    %176 = arith.select %174, %172, %175 : vector<4x8x8xi1>, vector<4x8x8xf32>
    %cst_60 = arith.constant dense<0xFF800000> : vector<4x8xf32>
    %177 = vector.multi_reduction <maximumf>, %176, %cst_60 [2] : vector<4x8x8xf32> to vector<4x8xf32>
    %178 = vector.shape_cast %177 : vector<4x8xf32> to vector<4x8x1xf32>
    %179 = vector.broadcast %178 : vector<4x8x1xf32> to vector<4x8x8xf32>
    %180 = arith.subf %176, %179 : vector<4x8x8xf32>
    %181 = math.exp %180 : vector<4x8x8xf32>
    %cst_61 = arith.constant dense<0.000000e+00> : vector<4x8xf32>
    %182 = vector.multi_reduction <add>, %181, %cst_61 [2] : vector<4x8x8xf32> to vector<4x8xf32>
    %183 = vector.shape_cast %182 : vector<4x8xf32> to vector<4x8x1xf32>
    %184 = tpu.reciprocal %183 {approx = true} : vector<4x8x1xf32> -> vector<4x8x1xf32>
    %185 = vector.broadcast %184 : vector<4x8x1xf32> to vector<4x8x8xf32>
    %186 = arith.mulf %181, %185 : vector<4x8x8xf32>
    %187 = arith.truncf %186 : vector<4x8x8xf32> to vector<4x8x8xbf16>
    "tpu.trace_start"() <{level = 10 : i32, message = "bqk,bkd->bqd"}> : () -> ()
    %cst_62 = arith.constant dense<0.000000e+00> : vector<4x8x8xf32>
    %188 = tpu.matmul %187, %171, %cst_62 {dimension_numbers = #tpu.dot_dimension_numbers<[2], [1], [1], [2], [0, 0, 0, 1, 1, 2], [0], [0]>} : vector<4x8x8xbf16>, vector<4x8x8xbf16>, vector<4x8x8xf32> -> vector<4x8x8xf32>
    "tpu.trace_stop"() : () -> ()
    %189 = vector.extract_strided_slice %154 {offsets = [0, 0, 8], sizes = [4, 8, 8], strides = [1, 1, 1]} : vector<4x8x32xf32> to vector<4x8x8xf32>
    %190 = arith.truncf %189 : vector<4x8x8xf32> to vector<4x8x8xbf16>
    %191 = vector.extract_strided_slice %158 {offsets = [0, 0, 8], sizes = [4, 8, 8], strides = [1, 1, 1]} : vector<4x8x32xf32> to vector<4x8x8xf32>
    %192 = arith.truncf %191 : vector<4x8x8xf32> to vector<4x8x8xbf16>
    %193 = vector.extract_strided_slice %162 {offsets = [0, 0, 8], sizes = [4, 8, 8], strides = [1, 1, 1]} : vector<4x8x32xf32> to vector<4x8x8xf32>
    %194 = arith.truncf %193 : vector<4x8x8xf32> to vector<4x8x8xbf16>
    "tpu.trace_start"() <{level = 10 : i32, message = "bqd,bkd->bqk"}> : () -> ()
    %cst_63 = arith.constant dense<0.000000e+00> : vector<4x8x8xf32>
    %195 = tpu.matmul %190, %192, %cst_63 {dimension_numbers = #tpu.dot_dimension_numbers<[2], [2], [1], [1], [0, 0, 0, 1, 1, 1], [0], [0]>} : vector<4x8x8xbf16>, vector<4x8x8xbf16>, vector<4x8x8xf32> -> vector<4x8x8xf32>
    %cst_64 = arith.constant -1.000000e+20 : f32
    "tpu.trace_stop"() : () -> ()
    %196 = vector.shape_cast %165 : vector<4x1x8xi1> to vector<4x1x8xi1>
    %197 = vector.broadcast %196 : vector<4x1x8xi1> to vector<4x8x8xi1>
    %198 = vector.broadcast %cst_64 : f32 to vector<4x8x8xf32>
    %199 = arith.select %197, %195, %198 : vector<4x8x8xi1>, vector<4x8x8xf32>
    %cst_65 = arith.constant dense<0xFF800000> : vector<4x8xf32>
    %200 = vector.multi_reduction <maximumf>, %199, %cst_65 [2] : vector<4x8x8xf32> to vector<4x8xf32>
    %201 = vector.shape_cast %200 : vector<4x8xf32> to vector<4x8x1xf32>
    %202 = vector.broadcast %201 : vector<4x8x1xf32> to vector<4x8x8xf32>
    %203 = arith.subf %199, %202 : vector<4x8x8xf32>
    %204 = math.exp %203 : vector<4x8x8xf32>
    %cst_66 = arith.constant dense<0.000000e+00> : vector<4x8xf32>
    %205 = vector.multi_reduction <add>, %204, %cst_66 [2] : vector<4x8x8xf32> to vector<4x8xf32>
    %206 = vector.shape_cast %205 : vector<4x8xf32> to vector<4x8x1xf32>
    %207 = tpu.reciprocal %206 {approx = true} : vector<4x8x1xf32> -> vector<4x8x1xf32>
    %208 = vector.broadcast %207 : vector<4x8x1xf32> to vector<4x8x8xf32>
    %209 = arith.mulf %204, %208 : vector<4x8x8xf32>
    %210 = arith.truncf %209 : vector<4x8x8xf32> to vector<4x8x8xbf16>
    "tpu.trace_start"() <{level = 10 : i32, message = "bqk,bkd->bqd"}> : () -> ()
    %cst_67 = arith.constant dense<0.000000e+00> : vector<4x8x8xf32>
    %211 = tpu.matmul %210, %194, %cst_67 {dimension_numbers = #tpu.dot_dimension_numbers<[2], [1], [1], [2], [0, 0, 0, 1, 1, 2], [0], [0]>} : vector<4x8x8xbf16>, vector<4x8x8xbf16>, vector<4x8x8xf32> -> vector<4x8x8xf32>
    "tpu.trace_stop"() : () -> ()
    %212 = vector.extract_strided_slice %154 {offsets = [0, 0, 16], sizes = [4, 8, 8], strides = [1, 1, 1]} : vector<4x8x32xf32> to vector<4x8x8xf32>
    %213 = arith.truncf %212 : vector<4x8x8xf32> to vector<4x8x8xbf16>
    %214 = vector.extract_strided_slice %158 {offsets = [0, 0, 16], sizes = [4, 8, 8], strides = [1, 1, 1]} : vector<4x8x32xf32> to vector<4x8x8xf32>
    %215 = arith.truncf %214 : vector<4x8x8xf32> to vector<4x8x8xbf16>
    %216 = vector.extract_strided_slice %162 {offsets = [0, 0, 16], sizes = [4, 8, 8], strides = [1, 1, 1]} : vector<4x8x32xf32> to vector<4x8x8xf32>
    %217 = arith.truncf %216 : vector<4x8x8xf32> to vector<4x8x8xbf16>
    "tpu.trace_start"() <{level = 10 : i32, message = "bqd,bkd->bqk"}> : () -> ()
    %cst_68 = arith.constant dense<0.000000e+00> : vector<4x8x8xf32>
    %218 = tpu.matmul %213, %215, %cst_68 {dimension_numbers = #tpu.dot_dimension_numbers<[2], [2], [1], [1], [0, 0, 0, 1, 1, 1], [0], [0]>} : vector<4x8x8xbf16>, vector<4x8x8xbf16>, vector<4x8x8xf32> -> vector<4x8x8xf32>
    %cst_69 = arith.constant -1.000000e+20 : f32
    "tpu.trace_stop"() : () -> ()
    %219 = vector.shape_cast %165 : vector<4x1x8xi1> to vector<4x1x8xi1>
    %220 = vector.broadcast %219 : vector<4x1x8xi1> to vector<4x8x8xi1>
    %221 = vector.broadcast %cst_69 : f32 to vector<4x8x8xf32>
    %222 = arith.select %220, %218, %221 : vector<4x8x8xi1>, vector<4x8x8xf32>
    %cst_70 = arith.constant dense<0xFF800000> : vector<4x8xf32>
    %223 = vector.multi_reduction <maximumf>, %222, %cst_70 [2] : vector<4x8x8xf32> to vector<4x8xf32>
    %224 = vector.shape_cast %223 : vector<4x8xf32> to vector<4x8x1xf32>
    %225 = vector.broadcast %224 : vector<4x8x1xf32> to vector<4x8x8xf32>
    %226 = arith.subf %222, %225 : vector<4x8x8xf32>
    %227 = math.exp %226 : vector<4x8x8xf32>
    %cst_71 = arith.constant dense<0.000000e+00> : vector<4x8xf32>
    %228 = vector.multi_reduction <add>, %227, %cst_71 [2] : vector<4x8x8xf32> to vector<4x8xf32>
    %229 = vector.shape_cast %228 : vector<4x8xf32> to vector<4x8x1xf32>
    %230 = tpu.reciprocal %229 {approx = true} : vector<4x8x1xf32> -> vector<4x8x1xf32>
    %231 = vector.broadcast %230 : vector<4x8x1xf32> to vector<4x8x8xf32>
    %232 = arith.mulf %227, %231 : vector<4x8x8xf32>
    %233 = arith.truncf %232 : vector<4x8x8xf32> to vector<4x8x8xbf16>
    "tpu.trace_start"() <{level = 10 : i32, message = "bqk,bkd->bqd"}> : () -> ()
    %cst_72 = arith.constant dense<0.000000e+00> : vector<4x8x8xf32>
    %234 = tpu.matmul %233, %217, %cst_72 {dimension_numbers = #tpu.dot_dimension_numbers<[2], [1], [1], [2], [0, 0, 0, 1, 1, 2], [0], [0]>} : vector<4x8x8xbf16>, vector<4x8x8xbf16>, vector<4x8x8xf32> -> vector<4x8x8xf32>
    "tpu.trace_stop"() : () -> ()
    %235 = vector.extract_strided_slice %154 {offsets = [0, 0, 24], sizes = [4, 8, 8], strides = [1, 1, 1]} : vector<4x8x32xf32> to vector<4x8x8xf32>
    %236 = arith.truncf %235 : vector<4x8x8xf32> to vector<4x8x8xbf16>
    %237 = vector.extract_strided_slice %158 {offsets = [0, 0, 24], sizes = [4, 8, 8], strides = [1, 1, 1]} : vector<4x8x32xf32> to vector<4x8x8xf32>
    %238 = arith.truncf %237 : vector<4x8x8xf32> to vector<4x8x8xbf16>
    %239 = vector.extract_strided_slice %162 {offsets = [0, 0, 24], sizes = [4, 8, 8], strides = [1, 1, 1]} : vector<4x8x32xf32> to vector<4x8x8xf32>
    %240 = arith.truncf %239 : vector<4x8x8xf32> to vector<4x8x8xbf16>
    "tpu.trace_start"() <{level = 10 : i32, message = "bqd,bkd->bqk"}> : () -> ()
    %cst_73 = arith.constant dense<0.000000e+00> : vector<4x8x8xf32>
    %241 = tpu.matmul %236, %238, %cst_73 {dimension_numbers = #tpu.dot_dimension_numbers<[2], [2], [1], [1], [0, 0, 0, 1, 1, 1], [0], [0]>} : vector<4x8x8xbf16>, vector<4x8x8xbf16>, vector<4x8x8xf32> -> vector<4x8x8xf32>
    %cst_74 = arith.constant -1.000000e+20 : f32
    "tpu.trace_stop"() : () -> ()
    %242 = vector.shape_cast %165 : vector<4x1x8xi1> to vector<4x1x8xi1>
    %243 = vector.broadcast %242 : vector<4x1x8xi1> to vector<4x8x8xi1>
    %244 = vector.broadcast %cst_74 : f32 to vector<4x8x8xf32>
    %245 = arith.select %243, %241, %244 : vector<4x8x8xi1>, vector<4x8x8xf32>
    %cst_75 = arith.constant dense<0xFF800000> : vector<4x8xf32>
    %246 = vector.multi_reduction <maximumf>, %245, %cst_75 [2] : vector<4x8x8xf32> to vector<4x8xf32>
    %247 = vector.shape_cast %246 : vector<4x8xf32> to vector<4x8x1xf32>
    %248 = vector.broadcast %247 : vector<4x8x1xf32> to vector<4x8x8xf32>
    %249 = arith.subf %245, %248 : vector<4x8x8xf32>
    %250 = math.exp %249 : vector<4x8x8xf32>
    %cst_76 = arith.constant dense<0.000000e+00> : vector<4x8xf32>
    %251 = vector.multi_reduction <add>, %250, %cst_76 [2] : vector<4x8x8xf32> to vector<4x8xf32>
    %252 = vector.shape_cast %251 : vector<4x8xf32> to vector<4x8x1xf32>
    %253 = tpu.reciprocal %252 {approx = true} : vector<4x8x1xf32> -> vector<4x8x1xf32>
    %254 = vector.broadcast %253 : vector<4x8x1xf32> to vector<4x8x8xf32>
    %255 = arith.mulf %250, %254 : vector<4x8x8xf32>
    %256 = arith.truncf %255 : vector<4x8x8xf32> to vector<4x8x8xbf16>
    "tpu.trace_start"() <{level = 10 : i32, message = "bqk,bkd->bqd"}> : () -> ()
    %cst_77 = arith.constant dense<0.000000e+00> : vector<4x8x8xf32>
    %257 = tpu.matmul %256, %240, %cst_77 {dimension_numbers = #tpu.dot_dimension_numbers<[2], [1], [1], [2], [0, 0, 0, 1, 1, 2], [0], [0]>} : vector<4x8x8xbf16>, vector<4x8x8xbf16>, vector<4x8x8xf32> -> vector<4x8x8xf32>
    "tpu.trace_stop"() : () -> ()
    %258 = tpu.concatenate %188, %211, %234, %257 in 2 : vector<4x8x8xf32>, vector<4x8x8xf32>, vector<4x8x8xf32>, vector<4x8x8xf32> -> vector<4x8x32xf32>
    %259 = vector.shape_cast %258 : vector<4x8x32xf32> to vector<32x32xf32>
    %260 = arith.truncf %259 : vector<32x32xf32> to vector<32x32xbf16>
    %c0_78 = arith.constant 0 : index
    %c0_79 = arith.constant 0 : index
    %261 = vector.load %arg9[%c0_78, %c0_79] : memref<32x32xbf16, #tpu.memory_space<vmem>>, vector<32x32xbf16>
    %cst_80 = arith.constant dense<0.000000e+00> : vector<32x32xf32>
    %262 = tpu.matmul %260, %261, %cst_80 {dimension_numbers = #tpu.dot_dimension_numbers<[1], [0], [0], [1], [0, 0, 1, 1], [], []>} : vector<32x32xbf16>, vector<32x32xbf16>, vector<32x32xf32> -> vector<32x32xf32>
    %c0_81 = arith.constant 0 : index
    %c0_82 = arith.constant 0 : index
    %263 = vector.load %arg10[%c0_81, %c0_82] : memref<1x32xf32, #tpu.memory_space<vmem>>, vector<1x32xf32>
    %264 = vector.shape_cast %263 : vector<1x32xf32> to vector<32xf32>
    %265 = vector.shape_cast %264 : vector<32xf32> to vector<1x32xf32>
    %266 = vector.broadcast %265 : vector<1x32xf32> to vector<32x32xf32>
    %267 = arith.addf %262, %266 : vector<32x32xf32>
    %268 = arith.addf %267, %145 : vector<32x32xf32>
    %c1_83 = arith.constant 1 : index
    %c0_84 = arith.constant 0 : index
    %269 = vector.load %arg11[%c1_83, %c0_84] : memref<3x32xf32, #tpu.memory_space<vmem>>, vector<1x32xf32>
    %270 = vector.shape_cast %269 : vector<1x32xf32> to vector<32xf32>
    %c1_85 = arith.constant 1 : index
    %c0_86 = arith.constant 0 : index
    %271 = vector.load %arg12[%c1_85, %c0_86] : memref<3x32xf32, #tpu.memory_space<vmem>>, vector<1x32xf32>
    %272 = vector.shape_cast %271 : vector<1x32xf32> to vector<32xf32>
    %cst_87 = arith.constant dense<0.000000e+00> : vector<32xf32>
    %273 = vector.multi_reduction <add>, %268, %cst_87 [1] : vector<32x32xf32> to vector<32xf32>
    %274 = vector.shape_cast %273 : vector<32xf32> to vector<32x1xf32>
    %cst_88 = arith.constant 3.200000e+01 : f32
    %275 = vector.broadcast %cst_88 : f32 to vector<32x1xf32>
    %276 = arith.divf %274, %275 : vector<32x1xf32>
    %277 = vector.broadcast %276 : vector<32x1xf32> to vector<32x32xf32>
    %278 = arith.subf %268, %277 : vector<32x32xf32>
    %279 = arith.mulf %278, %278 : vector<32x32xf32>
    %cst_89 = arith.constant dense<0.000000e+00> : vector<32xf32>
    %280 = vector.multi_reduction <add>, %279, %cst_89 [1] : vector<32x32xf32> to vector<32xf32>
    %281 = vector.shape_cast %280 : vector<32xf32> to vector<32x1xf32>
    %cst_90 = arith.constant 3.200000e+01 : f32
    %282 = vector.broadcast %cst_90 : f32 to vector<32x1xf32>
    %283 = arith.divf %281, %282 : vector<32x1xf32>
    %284 = vector.broadcast %276 : vector<32x1xf32> to vector<32x32xf32>
    %285 = arith.subf %268, %284 : vector<32x32xf32>
    %cst_91 = arith.constant 9.99999974E-6 : f32
    %286 = vector.broadcast %cst_91 : f32 to vector<32x1xf32>
    %287 = arith.addf %283, %286 : vector<32x1xf32>
    %288 = math.rsqrt %287 : vector<32x1xf32>
    %289 = vector.broadcast %288 : vector<32x1xf32> to vector<32x32xf32>
    %290 = arith.mulf %285, %289 : vector<32x32xf32>
    %291 = vector.shape_cast %270 : vector<32xf32> to vector<1x32xf32>
    %292 = vector.broadcast %291 : vector<1x32xf32> to vector<32x32xf32>
    %293 = arith.mulf %290, %292 : vector<32x32xf32>
    %294 = vector.shape_cast %272 : vector<32xf32> to vector<1x32xf32>
    %295 = vector.broadcast %294 : vector<1x32xf32> to vector<32x32xf32>
    %296 = arith.addf %293, %295 : vector<32x32xf32>
    %297 = arith.truncf %296 : vector<32x32xf32> to vector<32x32xbf16>
    %c0_92 = arith.constant 0 : index
    %c0_93 = arith.constant 0 : index
    %298 = vector.load %arg13[%c0_92, %c0_93] : memref<32x64xbf16, #tpu.memory_space<vmem>>, vector<32x64xbf16>
    %cst_94 = arith.constant dense<0.000000e+00> : vector<32x64xf32>
    %299 = tpu.matmul %297, %298, %cst_94 {dimension_numbers = #tpu.dot_dimension_numbers<[1], [0], [0], [1], [0, 0, 1, 1], [], []>} : vector<32x32xbf16>, vector<32x64xbf16>, vector<32x64xf32> -> vector<32x64xf32>
    %c0_95 = arith.constant 0 : index
    %c0_96 = arith.constant 0 : index
    %300 = vector.load %arg14[%c0_95, %c0_96] : memref<1x64xf32, #tpu.memory_space<vmem>>, vector<1x64xf32>
    %301 = vector.shape_cast %300 : vector<1x64xf32> to vector<64xf32>
    %302 = vector.shape_cast %301 : vector<64xf32> to vector<1x64xf32>
    %303 = vector.broadcast %302 : vector<1x64xf32> to vector<32x64xf32>
    %304 = arith.addf %299, %303 : vector<32x64xf32>
    %cst_97 = arith.constant 0.000000e+00 : f32
    %305 = vector.broadcast %cst_97 : f32 to vector<32x64xf32>
    %306 = arith.cmpf ogt, %304, %305 : vector<32x64xf32>
    %cst_98 = arith.constant 0.00999999977 : f32
    %307 = vector.broadcast %cst_98 : f32 to vector<32x64xf32>
    %308 = arith.mulf %307, %304 : vector<32x64xf32>
    %309 = arith.select %306, %304, %308 : vector<32x64xi1>, vector<32x64xf32>
    %310 = arith.truncf %309 : vector<32x64xf32> to vector<32x64xbf16>
    %c0_99 = arith.constant 0 : index
    %c0_100 = arith.constant 0 : index
    %311 = vector.load %arg15[%c0_99, %c0_100] : memref<64x32xbf16, #tpu.memory_space<vmem>>, vector<64x32xbf16>
    %cst_101 = arith.constant dense<0.000000e+00> : vector<32x32xf32>
    %312 = tpu.matmul %310, %311, %cst_101 {dimension_numbers = #tpu.dot_dimension_numbers<[1], [0], [0], [1], [0, 0, 1, 1], [], []>} : vector<32x64xbf16>, vector<64x32xbf16>, vector<32x32xf32> -> vector<32x32xf32>
    %c0_102 = arith.constant 0 : index
    %c0_103 = arith.constant 0 : index
    %313 = vector.load %arg16[%c0_102, %c0_103] : memref<1x32xf32, #tpu.memory_space<vmem>>, vector<1x32xf32>
    %314 = vector.shape_cast %313 : vector<1x32xf32> to vector<32xf32>
    %315 = vector.shape_cast %314 : vector<32xf32> to vector<1x32xf32>
    %316 = vector.broadcast %315 : vector<1x32xf32> to vector<32x32xf32>
    %317 = arith.addf %312, %316 : vector<32x32xf32>
    %318 = arith.addf %317, %296 : vector<32x32xf32>
    %c2_104 = arith.constant 2 : index
    %c0_105 = arith.constant 0 : index
    %319 = vector.load %arg11[%c2_104, %c0_105] : memref<3x32xf32, #tpu.memory_space<vmem>>, vector<1x32xf32>
    %320 = vector.shape_cast %319 : vector<1x32xf32> to vector<32xf32>
    %c2_106 = arith.constant 2 : index
    %c0_107 = arith.constant 0 : index
    %321 = vector.load %arg12[%c2_106, %c0_107] : memref<3x32xf32, #tpu.memory_space<vmem>>, vector<1x32xf32>
    %322 = vector.shape_cast %321 : vector<1x32xf32> to vector<32xf32>
    %cst_108 = arith.constant dense<0.000000e+00> : vector<32xf32>
    %323 = vector.multi_reduction <add>, %318, %cst_108 [1] : vector<32x32xf32> to vector<32xf32>
    %324 = vector.shape_cast %323 : vector<32xf32> to vector<32x1xf32>
    %cst_109 = arith.constant 3.200000e+01 : f32
    %325 = vector.broadcast %cst_109 : f32 to vector<32x1xf32>
    %326 = arith.divf %324, %325 : vector<32x1xf32>
    %327 = vector.broadcast %326 : vector<32x1xf32> to vector<32x32xf32>
    %328 = arith.subf %318, %327 : vector<32x32xf32>
    %329 = arith.mulf %328, %328 : vector<32x32xf32>
    %cst_110 = arith.constant dense<0.000000e+00> : vector<32xf32>
    %330 = vector.multi_reduction <add>, %329, %cst_110 [1] : vector<32x32xf32> to vector<32xf32>
    %331 = vector.shape_cast %330 : vector<32xf32> to vector<32x1xf32>
    %cst_111 = arith.constant 3.200000e+01 : f32
    %332 = vector.broadcast %cst_111 : f32 to vector<32x1xf32>
    %333 = arith.divf %331, %332 : vector<32x1xf32>
    %334 = vector.broadcast %326 : vector<32x1xf32> to vector<32x32xf32>
    %335 = arith.subf %318, %334 : vector<32x32xf32>
    %cst_112 = arith.constant 9.99999974E-6 : f32
    %336 = vector.broadcast %cst_112 : f32 to vector<32x1xf32>
    %337 = arith.addf %333, %336 : vector<32x1xf32>
    %338 = math.rsqrt %337 : vector<32x1xf32>
    %339 = vector.broadcast %338 : vector<32x1xf32> to vector<32x32xf32>
    %340 = arith.mulf %335, %339 : vector<32x32xf32>
    %341 = vector.shape_cast %320 : vector<32xf32> to vector<1x32xf32>
    %342 = vector.broadcast %341 : vector<1x32xf32> to vector<32x32xf32>
    %343 = arith.mulf %340, %342 : vector<32x32xf32>
    %344 = vector.shape_cast %322 : vector<32xf32> to vector<1x32xf32>
    %345 = vector.broadcast %344 : vector<1x32xf32> to vector<32x32xf32>
    %346 = arith.addf %343, %345 : vector<32x32xf32>
    %347 = vector.shape_cast %346 : vector<32x32xf32> to vector<4x8x32xf32>
    %c0_113 = arith.constant 0 : index
    %c0_114 = arith.constant 0 : index
    %c0_115 = arith.constant 0 : index
    %348 = vector.load %arg17[%c0_113, %c0_114, %c0_115] : memref<4x8x32xf32, #tpu.memory_space<vmem>>, vector<4x8x32xf32>
    tpu.vector_store %arg17[%c0_113, %c0_114, %c0_115], %347 {strides = array<i32>} : memref<4x8x32xf32, #tpu.memory_space<vmem>>, vector<4x8x32xf32>,
    return
  }
  func.func @transform_0(%arg0: i32) -> (i32, i32, i32) {
    %c0_i32 = arith.constant 0 : i32
    %c0_i32_0 = arith.constant 0 : i32
    %c0_i32_1 = arith.constant 0 : i32
    return %arg0, %c0_i32, %c0_i32_0 : i32, i32, i32
  }
  func.func @transform_1(%arg0: i32) -> (i32, i32, i32) {
    %c0_i32 = arith.constant 0 : i32
    %c0_i32_0 = arith.constant 0 : i32
    %c0_i32_1 = arith.constant 0 : i32
    return %arg0, %c0_i32, %c0_i32_0 : i32, i32, i32
  }
  func.func @transform_2(%arg0: i32) -> (i32, i32, i32) {
    %c0_i32 = arith.constant 0 : i32
    %c0_i32_0 = arith.constant 0 : i32
    %c0_i32_1 = arith.constant 0 : i32
    return %arg0, %c0_i32, %c0_i32_0 : i32, i32, i32
  }
  func.func @transform_3(%arg0: i32) -> (i32, i32, i32) {
    %c0_i32 = arith.constant 0 : i32
    %c0_i32_0 = arith.constant 0 : i32
    %c0_i32_1 = arith.constant 0 : i32
    return %arg0, %c0_i32, %c0_i32_0 : i32, i32, i32
  }
  func.func @transform_4(%arg0: i32) -> (i32, i32) {
    %c0_i32 = arith.constant 0 : i32
    %c0_i32_0 = arith.constant 0 : i32
    %c0_i32_1 = arith.constant 0 : i32
    return %c0_i32, %c0_i32_0 : i32, i32
  }
  func.func @transform_5(%arg0: i32) -> (i32, i32) {
    %c0_i32 = arith.constant 0 : i32
    %c0_i32_0 = arith.constant 0 : i32
    %c0_i32_1 = arith.constant 0 : i32
    return %c0_i32, %c0_i32_0 : i32, i32
  }
  func.func @transform_6(%arg0: i32) -> (i32, i32) {
    %c0_i32 = arith.constant 0 : i32
    %c0_i32_0 = arith.constant 0 : i32
    %c0_i32_1 = arith.constant 0 : i32
    return %c0_i32, %c0_i32_0 : i32, i32
  }
  func.func @transform_7(%arg0: i32) -> (i32, i32, i32) {
    %c0_i32 = arith.constant 0 : i32
    %c0_i32_0 = arith.constant 0 : i32
    %c0_i32_1 = arith.constant 0 : i32
    %c0_i32_2 = arith.constant 0 : i32
    return %c0_i32, %c0_i32_0, %c0_i32_1 : i32, i32, i32
  }
  func.func @transform_8(%arg0: i32) -> (i32, i32) {
    %c0_i32 = arith.constant 0 : i32
    %c0_i32_0 = arith.constant 0 : i32
    %c0_i32_1 = arith.constant 0 : i32
    return %c0_i32, %c0_i32_0 : i32, i32
  }
  func.func @transform_9(%arg0: i32) -> (i32, i32) {
    %c0_i32 = arith.constant 0 : i32
    %c0_i32_0 = arith.constant 0 : i32
    %c0_i32_1 = arith.constant 0 : i32
    return %c0_i32, %c0_i32_0 : i32, i32
  }
  func.func @transform_10(%arg0: i32) -> (i32, i32) {
    %c0_i32 = arith.constant 0 : i32
    %c0_i32_0 = arith.constant 0 : i32
    %c0_i32_1 = arith.constant 0 : i32
    return %c0_i32, %c0_i32_0 : i32, i32
  }
  func.func @transform_11(%arg0: i32) -> (i32, i32) {
    %c0_i32 = arith.constant 0 : i32
    %c0_i32_0 = arith.constant 0 : i32
    %c0_i32_1 = arith.constant 0 : i32
    return %c0_i32, %c0_i32_0 : i32, i32
  }
  func.func @transform_12(%arg0: i32) -> (i32, i32) {
    %c0_i32 = arith.constant 0 : i32
    %c0_i32_0 = arith.constant 0 : i32
    %c0_i32_1 = arith.constant 0 : i32
    return %c0_i32, %c0_i32_0 : i32, i32
  }
  func.func @transform_13(%arg0: i32) -> (i32, i32) {
    %c0_i32 = arith.constant 0 : i32
    %c0_i32_0 = arith.constant 0 : i32
    %c0_i32_1 = arith.constant 0 : i32
    return %c0_i32, %c0_i32_0 : i32, i32
  }
  func.func @transform_14(%arg0: i32) -> (i32, i32) {
    %c0_i32 = arith.constant 0 : i32
    %c0_i32_0 = arith.constant 0 : i32
    %c0_i32_1 = arith.constant 0 : i32
    return %c0_i32, %c0_i32_0 : i32, i32
  }
  func.func @transform_15(%arg0: i32) -> (i32, i32) {
    %c0_i32 = arith.constant 0 : i32
    %c0_i32_0 = arith.constant 0 : i32
    %c0_i32_1 = arith.constant 0 : i32
    return %c0_i32, %c0_i32_0 : i32, i32
  }
  func.func @transform_16(%arg0: i32) -> (i32, i32, i32) {
    %c0_i32 = arith.constant 0 : i32
    %c0_i32_0 = arith.constant 0 : i32
    %c0_i32_1 = arith.constant 0 : i32
    return %arg0, %c0_i32, %c0_i32_0 : i32, i32, i32
  }
}

</mosaic_0001>

<bundles_post_ra>
// kernel: tpu_custom_call.1
= control target key start
LH: loop header
LB: loop body
LE: loop exit
PB: predicated region body
PF: predicated region fallthrough
CT: control target
= control target key end

     0   :  { %s7202_s0 = inlined_call_operand.hbm [shape: bf16[4,8,32], index: 0, kind: input, shape index: {}]   ;;  %s7203_s1 = inlined_call_operand.hbm [shape: bf16[4,8,32], index: 1, kind: input, shape index: {}]   ;;  %s7204_s2 = inlined_call_operand.hbm [shape: bf16[4,8,32], index: 2, kind: input, shape index: {}]   ;;  %s7205_s3 = inlined_call_operand.hbm [shape: f32[4,1,8], index: 3, kind: input, shape index: {}]   ;;  %s7206_s4 = inlined_call_operand.hbm [shape: bf16[32,96], index: 4, kind: input, shape index: {}]   ;;  %s7207_s5 = inlined_call_operand.hbm [shape: bf16[32,32], index: 5, kind: input, shape index: {}]   ;;  %s7208_s6 = inlined_call_operand.vmem [shape: f32[1,32], index: 6, kind: input, shape index: {}]   ;;  %s7209_s7 = inlined_call_operand.vmem [shape: bf16[3,32,32], index: 7, kind: input, shape index: {}]   ;;  %s7210_s8 = inlined_call_operand.hbm [shape: bf16[32,32], index: 8, kind: input, shape index: {}]   ;;  %s7211_s9 = inlined_call_operand.hbm [shape: f32[1,32], index: 9, kind: input, shape index: {}]   ;;  %s7212_s10 = inlined_call_operand.vmem [shape: f32[3,32], index: 10, kind: input, shape index: {}]   ;;  %s7213_s11 = inlined_call_operand.vmem [shape: f32[3,32], index: 11, kind: input, shape index: {}]   ;;  %s7214_s12 = inlined_call_operand.vmem [shape: bf16[32,64], index: 12, kind: input, shape index: {}]   ;;  %s7215_s13 = inlined_call_operand.vmem [shape: f32[1,64], index: 13, kind: input, shape index: {}]   ;;  %s7216_s14 = inlined_call_operand.vmem [shape: bf16[64,32], index: 14, kind: input, shape index: {}]   ;;  %s7217_s15 = inlined_call_operand.vmem [shape: f32[1,32], index: 15, kind: input, shape index: {}]   ;;  %s7218_s16 = inlined_call_operand.hbm [shape: f32[4,8,32], index: 16, kind: output, shape index: {}]  }
   0x1   :  { %7224 = sst [smem:[#allocation23_spill]] %s7202_s0 }
   0x2   :  { %21 = vsyncpa [#allocation3], 0 }
   0x3   :  { %22 = vsyncpa [#allocation6], 0 }
   0x4   :  { %23 = vsyncpa [#allocation9], 0 }
   0x5   :  { %24 = vsyncpa [#allocation12], 0 }
   0x6   :  { %25 = vsyncpa [#allocation15], 0 }
   0x7   :  { %26 = vsyncpa [#allocation4], 0  ;;  %s6024_s21 = smov [#allocation5]   ;;  %s6025_s23 = smov [#allocation8]  }
   0x8   :  { %s44_s22 = sshll.u32 %s6024_s21, 4  ;;  %s68_s24 = sshll.u32 %s6025_s23, 4  ;;  %s45_s22 = int_to_ptr.vmem [resolvable:$true] %s44_s22  ;;  %s6138_s24 = int_to_ptr.vmem [resolvable:$true] %s68_s24 }
   0x9   :  { %s5814_s27 = scalar_lea.hbm %s7203_s1, 256 }
   0xa   :  { %p5815_p0 = scmp.ne.s32.totalorder %s7203_s1, %s5814_s27  ;;  %p5818_p1 = scmp.lt.u32.totalorder %s5814_s27, %s7203_s1 }
   0xc   :  { %p5820_p2 = pnand %p5818_p1, %p5815_p0 }
   0xe   :  { %5823 = shalt.err (!%p5820_p2)
}
   0xf   :  { %s5824_s17 = scalar_lea.vmem %s45_s22, 256  ;;  %p5829_p4 = scmp.lt.s32.totalorder %s45_s22, %s45_s22 }
  0x10   :  { %p5825_p3 = scmp.ne.s32.totalorder %s45_s22, %s5824_s17  ;;  %p5830_p5 = scmp.lt.s32.totalorder %s5824_s17, %s5824_s17 }
  0x12   :  { %p5831_p6 = por %p5830_p5, %p5829_p4 }
  0x14   :  { %p5832_p7 = pnand %p5831_p6, %p5825_p3 }
  0x16   :  { %5835 = shalt.err (!%p5832_p7)
}
  0x17   :  { %s7220_s18 = smov 64   ;;  %s7222_s19 = smov 4  }
  0x18   :  { %50 = dma.hbm_to_vmem [thread:$0]  %s7203_s1, 256, %s45_s22, [#allocation6], %s7220_s18, %s7220_s18, %s7222_s19  }
  0x19   :  { %s5836_s26 = scalar_lea.hbm %s7205_s3, 64 }
  0x1a   :  { %p5837_p8 = scmp.ne.s32.totalorder %s7205_s3, %s5836_s26  ;;  %p5840_p9 = scmp.lt.u32.totalorder %s5836_s26, %s7205_s3 }
  0x1c   :  { %p5842_p10 = pnand %p5840_p9, %p5837_p8 }
  0x1e   :  { %5845 = shalt.err (!%p5842_p10)
}
  0x1f   :  { %s5846_s0 = scalar_lea.vmem %s6138_s24, 64  ;;  %p5851_p12 = scmp.lt.s32.totalorder %s6138_s24, %s6138_s24 }
  0x20   :  { %p5847_p11 = scmp.ne.s32.totalorder %s6138_s24, %s5846_s0  ;;  %p5852_p13 = scmp.lt.s32.totalorder %s5846_s0, %s5846_s0 }
  0x22   :  { %p5853_p0 = por %p5852_p13, %p5851_p12 }
  0x24   :  { %p5854_p1 = pnand %p5853_p0, %p5847_p11 }
  0x26   :  { %5857 = shalt.err (!%p5854_p1)
}
  0x27   :  { %s6028_s1 = smov 16   ;;  %s6029_s22 = smov 1  }
  0x28   :  { %74 = dma.hbm_to_vmem [thread:$0]  %s7205_s3, 64, %s6138_s24, [#allocation9], %s6028_s1, %s6028_s1, %s6029_s22  }
  0x29   :  { %s6030_s21 = smov [#allocation11]   ;;  %s6031_s25 = smov [#allocation2]  }
  0x2a   :  { %s92_s23 = sshll.u32 %s6030_s21, 4  ;;  %s32_s26 = sshll.u32 %s6031_s25, 4  ;;  %s93_s23 = int_to_ptr.vmem [resolvable:$true] %s92_s23  ;;  %s6174_s26 = int_to_ptr.vmem [resolvable:$true] %s32_s26 }
  0x2b   :  { %s5858_s29 = scalar_lea.hbm %s7207_s5, 256 }
  0x2c   :  { %p5859_p2 = scmp.ne.s32.totalorder %s7207_s5, %s5858_s29  ;;  %p5862_p3 = scmp.lt.u32.totalorder %s5858_s29, %s7207_s5 }
  0x2e   :  { %p5864_p4 = pnand %p5862_p3, %p5859_p2 }
  0x30   :  { %5867 = shalt.err (!%p5864_p4)
}
  0x31   :  { %s5868_s3 = scalar_lea.vmem %s93_s23, 256  ;;  %p5873_p6 = scmp.lt.s32.totalorder %s93_s23, %s93_s23 }
  0x32   :  { %p5869_p5 = scmp.ne.s32.totalorder %s93_s23, %s5868_s3  ;;  %p5874_p7 = scmp.lt.s32.totalorder %s5868_s3, %s5868_s3 }
  0x34   :  { %p5875_p8 = por %p5874_p7, %p5873_p6 }
  0x36   :  { %p5876_p9 = pnand %p5875_p8, %p5869_p5 }
  0x38   :  { %5879 = shalt.err (!%p5876_p9)
}
  0x39   :  { %s7225_s24 = smov 4   ;;  %s7226_s22 = smov 64  }
  0x3a   :  { %98 = dma.hbm_to_vmem [thread:$0]  %s7207_s5, 256, %s93_s23, [#allocation12], %s7226_s22, %s7226_s22, %s7225_s24  }
  0x3b   :  { %s7227_s18 = sld [smem:[#allocation23_spill]] }
  0x41   :  { %s5880_s19 = scalar_lea.hbm %s7227_s18, 256 }
  0x42   :  { %p5881_p10 = scmp.ne.s32.totalorder %s7227_s18, %s5880_s19  ;;  %p5884_p11 = scmp.lt.u32.totalorder %s5880_s19, %s7227_s18 }
  0x44   :  { %p5886_p12 = pnand %p5884_p11, %p5881_p10 }
  0x46   :  { %5889 = shalt.err (!%p5886_p12)
}
  0x47   :  { %s5890_s0 = scalar_lea.vmem %s6174_s26, 256  ;;  %p5895_p0 = scmp.lt.s32.totalorder %s6174_s26, %s6174_s26 }
  0x48   :  { %p5891_p13 = scmp.ne.s32.totalorder %s6174_s26, %s5890_s0  ;;  %p5896_p1 = scmp.lt.s32.totalorder %s5890_s0, %s5890_s0 }
  0x4a   :  { %p5897_p2 = por %p5896_p1, %p5895_p0 }
  0x4c   :  { %p5898_p3 = pnand %p5897_p2, %p5891_p13 }
  0x4e   :  { %5901 = shalt.err (!%p5898_p3)
}
  0x4f   :  { %38 = dma.hbm_to_vmem [thread:$0]  %s7227_s18, 256, %s6174_s26, [#allocation3], %s7226_s22, %s7226_s22, %s7225_s24  }
  0x50   :  { %s6032_s3 = smov [#allocation7]   ;;  %s6033_s20 = smov [#allocation10]  }
  0x51   :  { %s56_s17 = sshll.u32 %s6032_s3, 4  ;;  %s80_s21 = sshll.u32 %s6033_s20, 4  ;;  %s57_s17 = int_to_ptr.vmem [resolvable:$true] %s56_s17  ;;  %s6211_s21 = int_to_ptr.vmem [resolvable:$true] %s80_s21 }
  0x52   :  { %s5902_s27 = scalar_lea.hbm %s7204_s2, 256 }
  0x53   :  { %p5903_p4 = scmp.ne.s32.totalorder %s7204_s2, %s5902_s27  ;;  %p5906_p5 = scmp.lt.u32.totalorder %s5902_s27, %s7204_s2 }
  0x55   :  { %p5908_p6 = pnand %p5906_p5, %p5903_p4 }
  0x57   :  { %5911 = shalt.err (!%p5908_p6)
}
  0x58   :  { %s5912_s26 = scalar_lea.vmem %s57_s17, 256  ;;  %p5917_p8 = scmp.lt.s32.totalorder %s57_s17, %s57_s17 }
  0x59   :  { %p5913_p7 = scmp.ne.s32.totalorder %s57_s17, %s5912_s26  ;;  %p5918_p9 = scmp.lt.s32.totalorder %s5912_s26, %s5912_s26 }
  0x5b   :  { %p5919_p10 = por %p5918_p9, %p5917_p8 }
  0x5d   :  { %p5920_p11 = pnand %p5919_p10, %p5913_p7 }
  0x5f   :  { %5923 = shalt.err (!%p5920_p11)
}
  0x60   :  { %62 = dma.hbm_to_vmem [thread:$0]  %s7204_s2, 256, %s57_s17, [#allocation6], %s7226_s22, %s7226_s22, %s7225_s24  }
  0x61   :  { %s5924_s20 = scalar_lea.hbm %s7206_s4, 256 }
  0x62   :  { %p5925_p12 = scmp.ne.s32.totalorder %s7206_s4, %s5924_s20  ;;  %p5928_p13 = scmp.lt.u32.totalorder %s5924_s20, %s7206_s4 }
  0x64   :  { %p5930_p0 = pnand %p5928_p13, %p5925_p12 }
  0x66   :  { %5933 = shalt.err (!%p5930_p0)
}
  0x67   :  { %s5934_s29 = scalar_lea.vmem %s6211_s21, 256  ;;  %p5939_p2 = scmp.lt.s32.totalorder %s6211_s21, %s6211_s21 }
  0x68   :  { %p5935_p1 = scmp.ne.s32.totalorder %s6211_s21, %s5934_s29  ;;  %p5940_p3 = scmp.lt.s32.totalorder %s5934_s29, %s5934_s29 }
  0x6a   :  { %p5941_p4 = por %p5940_p3, %p5939_p2 }
  0x6c   :  { %p5942_p5 = pnand %p5941_p4, %p5935_p1 }
  0x6e   :  { %5945 = shalt.err (!%p5942_p5)
}
  0x6f   :  { %86 = dma.hbm_to_vmem [thread:$0]  %s7206_s4, 256, %s6211_s21, [#allocation9], %s7226_s22, %s7226_s22, %s7225_s24  }
  0x70   :  { %s6034_s30 = smov [#allocation13]   ;;  %s6035_s26 = smov [#allocation14]  }
  0x71   :  { %s108_s0 = sshll.u32 %s6034_s30, 4  ;;  %s121_s18 = sshll.u32 %s6035_s26, 4  ;;  %s109_s0 = int_to_ptr.vmem [resolvable:$true] %s108_s0  ;;  %s122_s18 = int_to_ptr.vmem [resolvable:$true] %s121_s18 }
  0x72   :  { %s5946_s3 = scalar_lea.hbm %s7210_s8, 256 }
  0x73   :  { %p5947_p6 = scmp.ne.s32.totalorder %s7210_s8, %s5946_s3  ;;  %p5950_p7 = scmp.lt.u32.totalorder %s5946_s3, %s7210_s8 }
  0x75   :  { %p5952_p8 = pnand %p5950_p7, %p5947_p6 }
  0x77   :  { %5955 = shalt.err (!%p5952_p8)
}
  0x78   :  { %s5956_s4 = scalar_lea.vmem %s109_s0, 256  ;;  %p5961_p10 = scmp.lt.s32.totalorder %s109_s0, %s109_s0 }
  0x79   :  { %p5957_p9 = scmp.ne.s32.totalorder %s109_s0, %s5956_s4  ;;  %p5962_p11 = scmp.lt.s32.totalorder %s5956_s4, %s5956_s4 }
  0x7b   :  { %p5963_p12 = por %p5962_p11, %p5961_p10 }
  0x7d   :  { %p5964_p13 = pnand %p5963_p12, %p5957_p9 }
  0x7f   :  { %5967 = shalt.err (!%p5964_p13)
}
  0x80   :  { %114 = dma.hbm_to_vmem [thread:$0]  %s7210_s8, 256, %s109_s0, [#allocation12], %s7226_s22, %s7226_s22, %s7225_s24  }
  0x81   :  { %s5968_s17 = scalar_lea.hbm %s7211_s9, 16 }
  0x82   :  { %p5969_p0 = scmp.ne.s32.totalorder %s7211_s9, %s5968_s17  ;;  %p5972_p1 = scmp.lt.u32.totalorder %s5968_s17, %s7211_s9 }
  0x84   :  { %p5974_p2 = pnand %p5972_p1, %p5969_p0 }
  0x86   :  { %5977 = shalt.err (!%p5974_p2)
}
  0x87   :  { %s5978_s3 = scalar_lea.vmem %s122_s18, 16  ;;  %s5982_s20 = scalar_lea.vmem %s122_s18, 32 }
  0x88   :  { %p5979_p3 = scmp.ne.s32.totalorder %s122_s18, %s5978_s3  ;;  %p5983_p4 = scmp.lt.s32.totalorder %s122_s18, %s122_s18 }
  0x89   :  { %p5984_p5 = scmp.lt.s32.totalorder %s5982_s20, %s5978_s3 }
  0x8b   :  { %p5985_p6 = por %p5984_p5, %p5983_p4 }
  0x8d   :  { %p5986_p7 = pnand %p5985_p6, %p5979_p3 }
  0x8f   :  { %5989 = shalt.err (!%p5986_p7)
}
  0x90   :  { %124 = dma.hbm_to_vmem [thread:$0]  %s7211_s9, 16, %s122_s18, [#allocation15]  }
  0x91   :  { %6012 = dma.done.wait [#allocation3], 256  }
  0x92   :  { %6013 = vsyncadd [#allocation3], 4294967040 }
  0x93   :  { %6014 = dma.done.wait [#allocation6], 512  }
  0x94   :  { %6015 = vsyncadd [#allocation6], 4294966784 }
  0x95   :  { %6016 = dma.done.wait [#allocation9], 320  }
  0x96   :  { %6017 = vsyncadd [#allocation9], 4294966976 }
  0x97   :  { %6018 = dma.done.wait [#allocation12], 512  }
  0x98   :  { %6019 = vsyncadd [#allocation12], 4294966784 }
  0x99   :  { %6020 = dma.done.wait [#allocation15], 16  }
  0x9a   :  { %6021 = vsyncadd [#allocation15], 4294967280  ;;  %v5634_v0 = vld [vmem:[#allocation10] sm:$0xff]   ;;  %v5635_v1 = vld [vmem:[#allocation10 + $0x8] sm:$0xff]   ;;  %vm196_vm0 = vcmask 261120   ;;  %v6036_v4 = vmov 0.0   ;;  %v252_v21 = vlaneseq }
  0x9b   :  { %5093 = vmatprep.subr.bf16.mxu0 %v5634_v0  ;;  %v162_v2 = vld [vmem:[#allocation2] sm:$0xff]   ;;  %v164_v3 = vld [vmem:[#allocation2 + $0x8] sm:$0xff]   ;;  %5101 = vmatprep.subr.bf16.mxu1 %v6036_v4  ;;  %vm6037_vm1 = vmmov 0   ;;  %s6038_s9 = smov 96   ;;  %vm264_vm2 = vcmask 64512   ;;  %vm517_vm4 = vcmask 1043456  }
  0x9c   :  { %5094 = vmatpush3.bf16.msra.mxu0 %v5634_v0  ;;  %5097 = vmatprep.mubr.msk.bf16.mxu0 %vm196_vm0, %v162_v2  ;;  %v6319_v22 = vshrl.u32 %v252_v21, 7  ;;  %v255_v23 = vand.u32 127, %v252_v21  ;;  %s6039_s0 = smov 88   ;;  %s6040_s18 = smov 120   ;;  %vm2089_vm5 = vcmask 130048   ;;  %vm2094_vm6 = vcmask 195584  }
  0x9d   :  { %5095 = vmatprep.subr.bf16.mxu0 %v5635_v1  ;;  %5103 = vmatprep.mubr.msk.bf16.mxu1 %vm6037_vm1, %v6036_v4  ;;  %s6042_s25 = smov 80   ;;  %s6043_s19 = smov 112  }
  0x9e   :  { %vm6322_vm3 = vcmp.ge.s32.totalorder %v6319_v22, %v255_v23  ;;  %s6044_s27 = smov 48   ;;  %s6045_s4 = smov 72  }
  0x9f   :  { %s6046_s21 = smov 104   ;;  %s6047_s28 = smov 40  }
  0xa0   :  { %5096 = vmatpush3.bf16.msra.mxu0 %v5635_v1  ;;  %s6048_s29 = smov 8   ;;  %s6049_s2 = smov 24  }
  0xa1   :  { %5107 = vmatprep.subr.bf16.mxu0 %v6036_v4 }
  0xa3   :  { %5098 = vmatmul.mubr.msk.bf16.vlgmr.msra.gmra.mrb[0].mxu0 %vm196_vm0, %v164_v3 }
  0xa4   :  { %5109 = vmatprep.mubr.msk.bf16.mxu0 %vm6037_vm1, %v6036_v4 }
 0x176   :  { %v5099_v5 = vpop.f32.mrb[0].mxu0 }
 0x177   :  { %v6283_v6 = vpack.c.bf16 %v5099_v5, %v5099_v5  ;;  %v237_v7 = vpop.f32.mrb[1].mxu0 }
 0x178   :  { %v6285_v8 = vpack.c.bf16 %v237_v7, %v237_v7  ;;  %v5100_v9 = vpop.f32.mrb[2].mxu0 }
 0x179   :  { %361 = vrot.lane.b32.xlu1 %v6283_v6, %s6038_s9  ;;  %v240_v10 = vpop.f32.mrb[3].mxu0  ;;  %v6289_v11 = vpack.c.bf16 %v5100_v9, %v5100_v9 }
 0x17a   :  { %262 = vrot.lane.b32.xlu0 %v6285_v8, %s6038_s9  ;;  %v6291_v12 = vpack.c.bf16 %v240_v10, %v240_v10 }
 0x17d   :  { %410 = vrot.lane.b32.xlu1 %v6289_v11, %s6038_s9 }
 0x17e   :  { %312 = vrot.lane.b32.xlu0 %v6291_v12, %s6038_s9 }
 0x1eb   :  { %v362_v15 = vpop.permute.xlu1 %361 }
 0x1ec   :  { %v263_v13 = vpop.permute.xlu0 %262  ;;  %v367_v18 = vsel %vm264_vm2, %v362_v15, 0 }
 0x1ed   :  { %v269_v14 = vsel %vm264_vm2, %v263_v13, 0 }
 0x1ee   :  { %5102 = vmatpush3.bf16.xpose.msra.mxu1 %v269_v14 }
 0x1ef   :  { %5113 = vmatprep.subr.bf16.mxu1 %v6036_v4  ;;  %v411_v19 = vpop.permute.xlu1 %410 }
 0x1f0   :  { %v313_v16 = vpop.permute.xlu0 %312  ;;  %v416_v20 = vsel %vm264_vm2, %v411_v19, 0 }
 0x1f1   :  { %v318_v17 = vsel %vm264_vm2, %v313_v16, 0 }
 0x1f2   :  { %5108 = vmatpush3.bf16.xpose.msra.mxu0 %v318_v17 }
 0x1f3   :  { %5119 = vmatprep.subr.bf16.mxu0 %v6036_v4 }
 0x1f5   :  { %5104 = vmatmul.mubr.msk.bf16.vlgmr.msra.gmra.mrb[0].mxu1 %vm264_vm2, %v6285_v8 }
 0x1f6   :  { %5114 = vmatpush3.bf16.xpose.msra.mxu1 %v367_v18  ;;  %5115 = vmatprep.mubr.msk.bf16.mxu1 %vm6037_vm1, %v6036_v4 }
 0x1f7   :  { %5125 = vmatprep.subr.bf16.mxu1 %v6036_v4 }
 0x1f9   :  { %5110 = vmatmul.mubr.msk.bf16.vlgmr.msra.gmra.mrb[4].mxu0 %vm264_vm2, %v6291_v12 }
 0x1fa   :  { %5120 = vmatpush3.bf16.xpose.msra.mxu0 %v416_v20  ;;  %5121 = vmatprep.mubr.msk.bf16.mxu0 %vm6037_vm1, %v6036_v4 }
 0x1fb   :  { %5131 = vmatprep.subr.bf16.mxu0 %v6036_v4 }
 0x1fd   :  { %5116 = vmatmul.mubr.msk.bf16.vlgmr.msra.gmra.mrb[4].mxu1 %vm264_vm2, %v6283_v6 }
 0x1fe   :  { %5127 = vmatprep.mubr.msk.bf16.mxu1 %vm6037_vm1, %v6036_v4 }
 0x201   :  { %5122 = vmatmul.mubr.msk.bf16.vlgmr.msra.gmra.mrb[8].mxu0 %vm264_vm2, %v6289_v11 }
 0x202   :  { %5133 = vmatprep.mubr.msk.bf16.mxu0 %vm6037_vm1, %v6036_v4 }
 0x2c8   :  { %v305_v25 = vpop.f32.mrb[0].mxu1 }
 0x2c9   :  { %v460_v26 = vsel %vm6322_vm3, %v305_v25, -1e+20  ;;  %v5105_v27 = vpop.f32.mrb[1].mxu1 }
 0x2ca   :  { %v308_v28 = vpop.f32.mrb[2].mxu1  ;;  %v464_v29 = vsel %vm264_vm2, %v460_v26, -inf }
 0x2cb   :  { %v5106_v30 = vpop.f32.mrb[3].mxu1  ;;  %465 = vmax.xlane.f32.xlu0 %v464_v29 }
 0x2cc   :  { %v354_v31 = vpop.f32.mrb[4].mxu0 }
 0x2cd   :  { %v461_v32 = vsel %vm6322_vm3, %v354_v31, -1e+20  ;;  %v5111_v33 = vpop.f32.mrb[5].mxu0 }
 0x2ce   :  { %v357_v34 = vpop.f32.mrb[6].mxu0  ;;  %v467_v35 = vsel %vm264_vm2, %v461_v32, -inf }
 0x2cf   :  { %468 = vmax.xlane.f32.xlu1 %v467_v35  ;;  %v5112_v36 = vpop.f32.mrb[7].mxu0 }
 0x2d0   :  { %v403_v37 = vpop.f32.mrb[4].mxu1 }
 0x2d1   :  { %v462_v38 = vsel %vm6322_vm3, %v403_v37, -1e+20  ;;  %v5117_v39 = vpop.f32.mrb[5].mxu1 }
 0x2d2   :  { %v406_v40 = vpop.f32.mrb[6].mxu1  ;;  %v470_v41 = vsel %vm264_vm2, %v462_v38, -inf }
 0x2d3   :  { %v5118_v42 = vpop.f32.mrb[7].mxu1  ;;  %471 = vmax.xlane.f32.xlu0 %v470_v41 }
 0x2d4   :  { %v452_v43 = vpop.f32.mrb[8].mxu0 }
 0x2d5   :  { %v463_v44 = vsel %vm6322_vm3, %v452_v43, -1e+20  ;;  %v5123_v45 = vpop.f32.mrb[9].mxu0 }
 0x2d6   :  { %v455_v46 = vpop.f32.mrb[10].mxu0  ;;  %v473_v47 = vsel %vm264_vm2, %v463_v44, -inf }
 0x2d7   :  { %474 = vmax.xlane.f32.xlu0 %v473_v47  ;;  %v5124_v48 = vpop.f32.mrb[11].mxu0 }
 0x2e0   :  { %512 = vrot.lane.b32.xlu1 %v6285_v8, %s7226_s22 }
 0x358   :  { %v466_v49 = vpop.xlane.xlu0 %465 }
 0x359   :  { %v476_v50 = vsub.f32 %v460_v26, %v466_v49 }
 0x35b   :  { %v480_v51 = vmul.f32 1.442695, %v476_v50 }
 0x35c   :  { %v469_v52 = vpop.xlane.xlu1 %468 }
 0x35d   :  { %5660 = vpow2.f32 %v480_v51  ;;  %v477_v53 = vsub.f32 %v461_v32, %v469_v52 }
 0x35f   :  { %v482_v54 = vmul.f32 1.442695, %v477_v53 }
 0x360   :  { %v513_v55 = vpop.permute.xlu1 %512  ;;  %v472_v61 = vpop.xlane.xlu0 %471 }
 0x361   :  { %5662 = vpow2.f32 %v482_v54  ;;  %v519_v56 = vsel %vm517_vm4, %v513_v55, 0  ;;  %v478_v63 = vsub.f32 %v462_v38, %v472_v61 }
 0x362   :  { %5126 = vmatpush3.bf16.msra.mxu1 %v519_v56 }
 0x363   :  { %5137 = vmatprep.subr.bf16.mxu1 %v6036_v4  ;;  %v484_v1 = vmul.f32 1.442695, %v478_v63 }
 0x364   :  { %v475_v62 = vpop.xlane.xlu0 %474 }
 0x365   :  { %v479_v0 = vsub.f32 %v463_v44, %v475_v62  ;;  %5664 = vpow2.f32 %v484_v1 }
 0x367   :  { %v5661_v57 = vpop.eup %5660  ;;  %v486_v2 = vmul.f32 1.442695, %v479_v0 }
 0x368   :  { %v488_v58 = vsel %vm264_vm2, %v5661_v57, 0.0 }
 0x369   :  { %489 = vadd.xlane.f32.xlu1 %v488_v58  ;;  %5666 = vpow2.f32 %v486_v2 }
 0x36b   :  { %v5663_v59 = vpop.eup %5662 }
 0x36c   :  { %v491_v60 = vsel %vm264_vm2, %v5663_v59, 0.0 }
 0x36d   :  { %492 = vadd.xlane.f32.xlu0 %v491_v60 }
 0x36f   :  { %v5665_v3 = vpop.eup %5664 }
 0x370   :  { %v494_v7 = vsel %vm264_vm2, %v5665_v3, 0.0 }
 0x373   :  { %v5667_v5 = vpop.eup %5666 }
 0x374   :  { %v497_v9 = vsel %vm264_vm2, %v5667_v5, 0.0 }
 0x37a   :  { %609 = vrot.lane.b32.xlu1 %v6283_v6, %s7226_s22 }
 0x37e   :  { %657 = vrot.lane.b32.xlu1 %v6289_v11, %s7226_s22 }
 0x383   :  { %561 = vrot.lane.b32.xlu0 %v6291_v12, %s7226_s22  ;;  %s6041_s22 = smov 56  }
 0x3a2   :  { %495 = vadd.xlane.f32.xlu1 %v494_v7  ;;  %498 = vadd.xlane.f32.xlu0 %v497_v9 }
 0x3b3   :  { %757 = vrot.lane.b32.xlu1 %v6291_v12, %s6039_s0 }
 0x3b7   :  { %755 = vrot.lane.b32.xlu1 %v6291_v12, %s6040_s18 }
 0x3b8   :  { %707 = vrot.lane.b32.xlu0 %v6285_v8, %s6039_s0 }
 0x3bb   :  { %857 = vrot.lane.b32.xlu1 %v6289_v11, %s6039_s0 }
 0x3bc   :  { %705 = vrot.lane.b32.xlu0 %v6285_v8, %s6040_s18 }
 0x3bf   :  { %855 = vrot.lane.b32.xlu1 %v6289_v11, %s6040_s18 }
 0x3c0   :  { %807 = vrot.lane.b32.xlu0 %v6283_v6, %s6039_s0 }
 0x3c4   :  { %805 = vrot.lane.b32.xlu0 %v6283_v6, %s6040_s18 }
 0x3f6   :  { %v490_v10 = vpop.xlane.xlu1 %489 }
 0x3f7   :  { %5668 = vrcp.f32 %v490_v10 }
 0x3fa   :  { %v493_v13 = vpop.xlane.xlu0 %492  ;;  %v610_v17 = vpop.permute.xlu1 %609 }
 0x3fb   :  { %5670 = vrcp.f32 %v493_v13  ;;  %v615_v21 = vsel %vm517_vm4, %v610_v17, 0 }
 0x3fe   :  { %v562_v14 = vpop.permute.xlu0 %561  ;;  %v658_v25 = vpop.permute.xlu1 %657 }
 0x3ff   :  { %v567_v15 = vsel %vm517_vm4, %v562_v14, 0  ;;  %v663_v27 = vsel %vm517_vm4, %v658_v25, 0 }
 0x400   :  { %5132 = vmatpush3.bf16.msra.mxu0 %v567_v15 }
 0x401   :  { %v5669_v16 = vpop.eup %5668  ;;  %5143 = vmatprep.subr.bf16.mxu0 %v6036_v4 }
 0x402   :  { %v504_v18 = vmul.f32 %v5669_v16, %v5661_v57 }
 0x404   :  { %v508_v19 = vpack.c.bf16 %v504_v18, %v504_v18 }
 0x405   :  { %v5671_v20 = vpop.eup %5670 }
 0x406   :  { %5128 = vmatmul.mubr.msk.bf16.vlgmr.msra.gmra.mrb[8].mxu1 %vm264_vm2, %v508_v19  ;;  %v505_v23 = vmul.f32 %v5671_v20, %v5663_v59 }
 0x407   :  { %5138 = vmatpush3.bf16.msra.mxu1 %v615_v21  ;;  %5139 = vmatprep.mubr.msk.bf16.mxu1 %vm6037_vm1, %v6036_v4 }
 0x408   :  { %v509_v26 = vpack.c.bf16 %v505_v23, %v505_v23  ;;  %5149 = vmatprep.subr.bf16.mxu1 %v6036_v4 }
 0x40a   :  { %5134 = vmatmul.mubr.msk.bf16.vlgmr.msra.gmra.mrb[12].mxu0 %vm264_vm2, %v509_v26 }
 0x40b   :  { %5144 = vmatpush3.bf16.msra.mxu0 %v663_v27  ;;  %5145 = vmatprep.mubr.msk.bf16.mxu0 %vm6037_vm1, %v6036_v4 }
 0x40c   :  { %5155 = vmatprep.subr.bf16.mxu0 %v6036_v4 }
 0x42f   :  { %v496_v28 = vpop.xlane.xlu1 %495  ;;  %v499_v29 = vpop.xlane.xlu0 %498 }
 0x430   :  { %5672 = vrcp.f32 %v496_v28 }
 0x431   :  { %5674 = vrcp.f32 %v499_v29 }
 0x433   :  { %v708_v30 = vpop.permute.xlu0 %707  ;;  %v758_v31 = vpop.permute.xlu1 %757 }
 0x434   :  { %v713_v39 = vsel %vm264_vm2, %v708_v30, 0  ;;  %v763_v41 = vsel %vm264_vm2, %v758_v31, 0 }
 0x437   :  { %v706_v37 = vpop.permute.xlu0 %705  ;;  %v756_v40 = vpop.permute.xlu1 %755 }
 0x43a   :  { %v5673_v32 = vpop.eup %5672 }
 0x43b   :  { %v5675_v33 = vpop.eup %5674  ;;  %v506_v34 = vmul.f32 %v5673_v32, %v5665_v3  ;;  %v808_v42 = vpop.permute.xlu0 %807 }
 0x43c   :  { %v507_v35 = vmul.f32 %v5675_v33, %v5667_v5  ;;  %v858_v43 = vpop.permute.xlu1 %857  ;;  %v813_v44 = vsel %vm264_vm2, %v808_v42, 0 }
 0x43d   :  { %v510_v36 = vpack.c.bf16 %v506_v34, %v506_v34  ;;  %v863_v45 = vsel %vm264_vm2, %v858_v43, 0 }
 0x43e   :  { %v511_v38 = vpack.c.bf16 %v507_v35, %v507_v35 }
 0x43f   :  { %5140 = vmatmul.mubr.msk.bf16.vlgmr.msra.gmra.mrb[12].mxu1 %vm264_vm2, %v510_v36  ;;  %v806_v46 = vpop.permute.xlu0 %805 }
 0x440   :  { %5146 = vmatmul.mubr.msk.bf16.vlgmr.msra.gmra.mrb[16].mxu0 %vm264_vm2, %v511_v38  ;;  %5150 = vmatpush3.bf16.xpose.msra.mxu1 %v713_v39  ;;  %v856_v47 = vpop.permute.xlu1 %855 }
 0x441   :  { %5156 = vmatpush3.bf16.xpose.msra.mxu0 %v763_v41  ;;  %5151 = vmatprep.mubr.msk.bf16.mxu1 %vm6037_vm1, %v6036_v4 }
 0x442   :  { %5157 = vmatprep.mubr.msk.bf16.mxu0 %vm6037_vm1, %v6036_v4  ;;  %5161 = vmatprep.subr.bf16.mxu1 %v6036_v4 }
 0x443   :  { %5167 = vmatprep.subr.bf16.mxu0 %v6036_v4 }
 0x447   :  { %5152 = vmatmul.mubr.msk.bf16.vlgmr.msra.gmra.mrb[16].mxu1 %vm264_vm2, %v706_v37 }
 0x448   :  { %5158 = vmatmul.mubr.msk.bf16.vlgmr.msra.gmra.mrb[20].mxu0 %vm264_vm2, %v756_v40  ;;  %5162 = vmatpush3.bf16.xpose.msra.mxu1 %v813_v44 }
 0x449   :  { %5168 = vmatpush3.bf16.xpose.msra.mxu0 %v863_v45  ;;  %5163 = vmatprep.mubr.msk.bf16.mxu1 %vm6037_vm1, %v6036_v4 }
 0x44a   :  { %5169 = vmatprep.mubr.msk.bf16.mxu0 %vm6037_vm1, %v6036_v4  ;;  %5173 = vmatprep.subr.bf16.mxu1 %v6036_v4 }
 0x44b   :  { %5179 = vmatprep.subr.bf16.mxu0 %v6036_v4 }
 0x44f   :  { %5164 = vmatmul.mubr.msk.bf16.vlgmr.msra.gmra.mrb[20].mxu1 %vm264_vm2, %v806_v46 }
 0x450   :  { %5170 = vmatmul.mubr.msk.bf16.vlgmr.msra.gmra.mrb[24].mxu0 %vm264_vm2, %v856_v47  ;;  %5175 = vmatprep.mubr.msk.bf16.mxu1 %vm6037_vm1, %v6036_v4 }
 0x451   :  { %5181 = vmatprep.mubr.msk.bf16.mxu0 %vm6037_vm1, %v6036_v4 }
 0x4d9   :  { %v6402_v48 = vpop.f32.mrb[8].mxu1 }
 0x4da   :  { %v5129_v49 = vpop.f32.mrb[9].mxu1 }
 0x4db   :  { %v558_v50 = vpop.f32.mrb[10].mxu1 }
 0x4dc   :  { %v5130_v51 = vpop.f32.mrb[11].mxu1 }
 0x4dd   :  { %v6404_v52 = vpop.f32.mrb[12].mxu0 }
 0x4de   :  { %v5135_v53 = vpop.f32.mrb[13].mxu0 }
 0x4df   :  { %v606_v54 = vpop.f32.mrb[14].mxu0 }
 0x4e0   :  { %v5136_v55 = vpop.f32.mrb[15].mxu0 }
 0x512   :  { %v6406_v56 = vpop.f32.mrb[12].mxu1 }
 0x513   :  { %v6408_v57 = vpop.f32.mrb[16].mxu0  ;;  %v5141_v58 = vpop.f32.mrb[13].mxu1 }
 0x514   :  { %v5147_v59 = vpop.f32.mrb[17].mxu0  ;;  %v654_v60 = vpop.f32.mrb[14].mxu1 }
 0x515   :  { %v702_v61 = vpop.f32.mrb[18].mxu0  ;;  %v5142_v62 = vpop.f32.mrb[15].mxu1 }
 0x516   :  { %v5148_v63 = vpop.f32.mrb[19].mxu0 }
 0x51a   :  { %v749_v0 = vpop.f32.mrb[16].mxu1 }
 0x51b   :  { %v905_v1 = vsel %vm6322_vm3, %v749_v0, -1e+20  ;;  %v799_v2 = vpop.f32.mrb[20].mxu0  ;;  %v5153_v3 = vpop.f32.mrb[17].mxu1 }
 0x51c   :  { %v906_v5 = vsel %vm6322_vm3, %v799_v2, -1e+20  ;;  %v5159_v7 = vpop.f32.mrb[21].mxu0  ;;  %v752_v9 = vpop.f32.mrb[18].mxu1  ;;  %v909_v10 = vsel %vm264_vm2, %v905_v1, -inf }
 0x51d   :  { %v802_v13 = vpop.f32.mrb[22].mxu0  ;;  %v912_v14 = vsel %vm264_vm2, %v906_v5, -inf  ;;  %910 = vmax.xlane.f32.xlu0 %v909_v10  ;;  %v5154_v15 = vpop.f32.mrb[19].mxu1 }
 0x51e   :  { %913 = vmax.xlane.f32.xlu1 %v912_v14  ;;  %v5160_v16 = vpop.f32.mrb[23].mxu0 }
 0x522   :  { %v849_v17 = vpop.f32.mrb[20].mxu1 }
 0x523   :  { %v907_v18 = vsel %vm6322_vm3, %v849_v17, -1e+20  ;;  %v899_v19 = vpop.f32.mrb[24].mxu0  ;;  %v5165_v20 = vpop.f32.mrb[21].mxu1 }
 0x524   :  { %v5171_v21 = vpop.f32.mrb[25].mxu0  ;;  %v852_v23 = vpop.f32.mrb[22].mxu1  ;;  %v915_v25 = vsel %vm264_vm2, %v907_v18, -inf  ;;  %v908_v26 = vsel %vm6322_vm3, %v899_v19, -1e+20 }
 0x525   :  { %v902_v27 = vpop.f32.mrb[26].mxu0  ;;  %916 = vmax.xlane.f32.xlu0 %v915_v25  ;;  %v5166_v28 = vpop.f32.mrb[23].mxu1  ;;  %v918_v30 = vsel %vm264_vm2, %v908_v26, -inf }
 0x526   :  { %v5172_v29 = vpop.f32.mrb[27].mxu0 }
 0x529   :  { %919 = vmax.xlane.f32.xlu0 %v918_v30 }
 0x52f   :  { %957 = vrot.lane.b32.xlu1 %v6285_v8, %s6041_s22 }
 0x5aa   :  { %v911_v31 = vpop.xlane.xlu0 %910 }
 0x5ab   :  { %v914_v32 = vpop.xlane.xlu1 %913  ;;  %v921_v33 = vsub.f32 %v905_v1, %v911_v31 }
 0x5ac   :  { %v922_v34 = vsub.f32 %v906_v5, %v914_v32 }
 0x5ad   :  { %v925_v35 = vmul.f32 1.442695, %v921_v33 }
 0x5ae   :  { %v927_v36 = vmul.f32 1.442695, %v922_v34 }
 0x5af   :  { %5676 = vpow2.f32 %v925_v35  ;;  %v958_v37 = vpop.permute.xlu1 %957 }
 0x5b0   :  { %5678 = vpow2.f32 %v927_v36  ;;  %v963_v38 = vsel %vm517_vm4, %v958_v37, 0 }
 0x5b1   :  { %5174 = vmatpush3.bf16.msra.mxu1 %v963_v38 }
 0x5b2   :  { %5185 = vmatprep.subr.bf16.mxu1 %v6036_v4  ;;  %v917_v43 = vpop.xlane.xlu0 %916 }
 0x5b3   :  { %v923_v46 = vsub.f32 %v907_v18, %v917_v43 }
 0x5b5   :  { %v929_v49 = vmul.f32 1.442695, %v923_v46 }
 0x5b6   :  { %v920_v44 = vpop.xlane.xlu0 %919 }
 0x5b7   :  { %v924_v45 = vsub.f32 %v908_v26, %v920_v44 }
 0x5b9   :  { %v5677_v39 = vpop.eup %5676  ;;  %v931_v47 = vmul.f32 1.442695, %v924_v45 }
 0x5ba   :  { %v5679_v40 = vpop.eup %5678  ;;  %v933_v41 = vsel %vm264_vm2, %v5677_v39, 0.0 }
 0x5bb   :  { %v936_v42 = vsel %vm264_vm2, %v5679_v40, 0.0  ;;  %934 = vadd.xlane.f32.xlu1 %v933_v41  ;;  %5680 = vpow2.f32 %v931_v47 }
 0x5bc   :  { %937 = vadd.xlane.f32.xlu0 %v936_v42  ;;  %5682 = vpow2.f32 %v929_v49 }
 0x5c5   :  { %v5681_v50 = vpop.eup %5680 }
 0x5c6   :  { %v5683_v51 = vpop.eup %5682  ;;  %v942_v53 = vsel %vm264_vm2, %v5681_v50, 0.0 }
 0x5c7   :  { %v939_v54 = vsel %vm264_vm2, %v5683_v51, 0.0 }
 0x5cc   :  { %1053 = vrot.lane.b32.xlu1 %v6283_v6, %s6041_s22 }
 0x5d0   :  { %1101 = vrot.lane.b32.xlu1 %v6289_v11, %s6041_s22 }
 0x5d2   :  { %1005 = vrot.lane.b32.xlu0 %v6291_v12, %s6041_s22 }
 0x5f1   :  { %943 = vadd.xlane.f32.xlu0 %v942_v53 }
 0x5f4   :  { %940 = vadd.xlane.f32.xlu1 %v939_v54 }
 0x605   :  { %1201 = vrot.lane.b32.xlu1 %v6291_v12, %s6042_s25 }
 0x607   :  { %1151 = vrot.lane.b32.xlu0 %v6285_v8, %s6042_s25 }
 0x609   :  { %1199 = vrot.lane.b32.xlu1 %v6291_v12, %s6043_s19 }
 0x60b   :  { %1149 = vrot.lane.b32.xlu0 %v6285_v8, %s6043_s19 }
 0x60d   :  { %1301 = vrot.lane.b32.xlu1 %v6289_v11, %s6042_s25 }
 0x60f   :  { %1251 = vrot.lane.b32.xlu0 %v6283_v6, %s6042_s25 }
 0x611   :  { %1299 = vrot.lane.b32.xlu1 %v6289_v11, %s6043_s19 }
 0x613   :  { %1249 = vrot.lane.b32.xlu0 %v6283_v6, %s6043_s19 }
 0x648   :  { %v935_v55 = vpop.xlane.xlu1 %934 }
 0x649   :  { %5684 = vrcp.f32 %v935_v55  ;;  %v938_v58 = vpop.xlane.xlu0 %937 }
 0x64a   :  { %5686 = vrcp.f32 %v938_v58 }
 0x64c   :  { %v1054_v61 = vpop.permute.xlu1 %1053 }
 0x64d   :  { %v1006_v59 = vpop.permute.xlu0 %1005  ;;  %v1059_v7 = vsel %vm517_vm4, %v1054_v61, 0 }
 0x64e   :  { %v1011_v60 = vsel %vm517_vm4, %v1006_v59, 0 }
 0x64f   :  { %5180 = vmatpush3.bf16.msra.mxu0 %v1011_v60 }
 0x650   :  { %5191 = vmatprep.subr.bf16.mxu0 %v6036_v4  ;;  %v1102_v2 = vpop.permute.xlu1 %1101 }
 0x651   :  { %v1107_v9 = vsel %vm517_vm4, %v1102_v2, 0 }
 0x653   :  { %v5685_v62 = vpop.eup %5684 }
 0x654   :  { %v5687_v63 = vpop.eup %5686  ;;  %v949_v0 = vmul.f32 %v5685_v62, %v5677_v39 }
 0x655   :  { %v950_v1 = vmul.f32 %v5687_v63, %v5679_v40 }
 0x656   :  { %v953_v3 = vpack.c.bf16 %v949_v0, %v949_v0 }
 0x657   :  { %v954_v5 = vpack.c.bf16 %v950_v1, %v950_v1 }
 0x658   :  { %5176 = vmatmul.mubr.msk.bf16.vlgmr.msra.gmra.mrb[24].mxu1 %vm264_vm2, %v953_v3 }
 0x659   :  { %5182 = vmatmul.mubr.msk.bf16.vlgmr.msra.gmra.mrb[28].mxu0 %vm264_vm2, %v954_v5  ;;  %5186 = vmatpush3.bf16.msra.mxu1 %v1059_v7 }
 0x65a   :  { %5192 = vmatpush3.bf16.msra.mxu0 %v1107_v9  ;;  %5193 = vmatprep.mubr.msk.bf16.mxu0 %vm6037_vm1, %v6036_v4 }
 0x65b   :  { %5203 = vmatprep.subr.bf16.mxu0 %v6036_v4  ;;  %5187 = vmatprep.mubr.msk.bf16.mxu1 %vm6037_vm1, %v6036_v4 }
 0x65c   :  { %5197 = vmatprep.subr.bf16.mxu1 %v6036_v4 }
 0x67e   :  { %v944_v10 = vpop.xlane.xlu0 %943 }
 0x67f   :  { %5688 = vrcp.f32 %v944_v10 }
 0x681   :  { %v941_v13 = vpop.xlane.xlu1 %940 }
 0x682   :  { %5690 = vrcp.f32 %v941_v13  ;;  %v1152_v16 = vpop.permute.xlu0 %1151 }
 0x683   :  { %v1157_v27 = vsel %vm264_vm2, %v1152_v16, 0 }
 0x685   :  { %v1202_v14 = vpop.permute.xlu1 %1201 }
 0x686   :  { %v1207_v23 = vsel %vm264_vm2, %v1202_v14, 0  ;;  %v1150_v26 = vpop.permute.xlu0 %1149 }
 0x689   :  { %v5689_v15 = vpop.eup %5688  ;;  %v1200_v20 = vpop.permute.xlu1 %1199 }
 0x68a   :  { %v952_v17 = vmul.f32 %v5689_v15, %v5681_v50  ;;  %v1252_v29 = vpop.permute.xlu0 %1251 }
 0x68b   :  { %v1257_v31 = vsel %vm264_vm2, %v1252_v29, 0 }
 0x68c   :  { %v5691_v18 = vpop.eup %5690  ;;  %v956_v19 = vpack.c.bf16 %v952_v17, %v952_v17 }
 0x68d   :  { %v951_v21 = vmul.f32 %v5691_v18, %v5683_v51  ;;  %v1302_v28 = vpop.permute.xlu1 %1301 }
 0x68e   :  { %5194 = vmatmul.mubr.msk.bf16.vlgmr.msra.gmra.mrb[32].mxu0 %vm264_vm2, %v956_v19  ;;  %v1307_v30 = vsel %vm264_vm2, %v1302_v28, 0  ;;  %v1250_v33 = vpop.permute.xlu0 %1249 }
 0x68f   :  { %5204 = vmatpush3.bf16.xpose.msra.mxu0 %v1207_v23  ;;  %v955_v25 = vpack.c.bf16 %v951_v21, %v951_v21  ;;  %5205 = vmatprep.mubr.msk.bf16.mxu0 %vm6037_vm1, %v6036_v4 }
 0x690   :  { %5215 = vmatprep.subr.bf16.mxu0 %v6036_v4 }
 0x691   :  { %5188 = vmatmul.mubr.msk.bf16.vlgmr.msra.gmra.mrb[28].mxu1 %vm264_vm2, %v955_v25  ;;  %v1300_v32 = vpop.permute.xlu1 %1299 }
 0x692   :  { %5198 = vmatpush3.bf16.xpose.msra.mxu1 %v1157_v27  ;;  %5199 = vmatprep.mubr.msk.bf16.mxu1 %vm6037_vm1, %v6036_v4 }
 0x693   :  { %5209 = vmatprep.subr.bf16.mxu1 %v6036_v4 }
 0x696   :  { %5206 = vmatmul.mubr.msk.bf16.vlgmr.msra.gmra.mrb[36].mxu0 %vm264_vm2, %v1200_v20 }
 0x697   :  { %5216 = vmatpush3.bf16.xpose.msra.mxu0 %v1307_v30  ;;  %5217 = vmatprep.mubr.msk.bf16.mxu0 %vm6037_vm1, %v6036_v4 }
 0x698   :  { %5227 = vmatprep.subr.bf16.mxu0 %v6036_v4 }
 0x699   :  { %5200 = vmatmul.mubr.msk.bf16.vlgmr.msra.gmra.mrb[32].mxu1 %vm264_vm2, %v1150_v26 }
 0x69a   :  { %5210 = vmatpush3.bf16.xpose.msra.mxu1 %v1257_v31  ;;  %5211 = vmatprep.mubr.msk.bf16.mxu1 %vm6037_vm1, %v6036_v4 }
 0x69b   :  { %5221 = vmatprep.subr.bf16.mxu1 %v6036_v4 }
 0x69e   :  { %5218 = vmatmul.mubr.msk.bf16.vlgmr.msra.gmra.mrb[40].mxu0 %vm264_vm2, %v1300_v32 }
 0x69f   :  { %5229 = vmatprep.mubr.msk.bf16.mxu0 %vm6037_vm1, %v6036_v4 }
 0x6a1   :  { %5212 = vmatmul.mubr.msk.bf16.vlgmr.msra.gmra.mrb[36].mxu1 %vm264_vm2, %v1250_v33 }
 0x6a2   :  { %5223 = vmatprep.mubr.msk.bf16.mxu1 %vm6037_vm1, %v6036_v4 }
 0x72b   :  { %v6482_v34 = vpop.f32.mrb[24].mxu1 }
 0x72c   :  { %v6484_v35 = vpop.f32.mrb[28].mxu0  ;;  %v5177_v36 = vpop.f32.mrb[25].mxu1 }
 0x72d   :  { %v5574_v37 = vpack.i.bf16 %v6484_v35, %v6482_v34  ;;  %v5183_v38 = vpop.f32.mrb[29].mxu0  ;;  %v1002_v39 = vpop.f32.mrb[26].mxu1 }
 0x72e   :  { %v1050_v40 = vpop.f32.mrb[30].mxu0  ;;  %v5178_v41 = vpop.f32.mrb[27].mxu1 }
 0x72f   :  { %v5184_v42 = vpop.f32.mrb[31].mxu0 }
 0x761   :  { %v6488_v43 = vpop.f32.mrb[32].mxu0 }
 0x762   :  { %v5195_v44 = vpop.f32.mrb[33].mxu0 }
 0x763   :  { %v1146_v45 = vpop.f32.mrb[34].mxu0 }
 0x764   :  { %v5196_v46 = vpop.f32.mrb[35].mxu0  ;;  %v6490_v47 = vpop.f32.mrb[28].mxu1 }
 0x765   :  { %v5579_v49 = vpack.i.bf16 %v6488_v43, %v6490_v47  ;;  %v5189_v50 = vpop.f32.mrb[29].mxu1 }
 0x766   :  { %v1098_v51 = vpop.f32.mrb[30].mxu1 }
 0x767   :  { %v5190_v53 = vpop.f32.mrb[31].mxu1 }
 0x769   :  { %v1243_v54 = vpop.f32.mrb[36].mxu0 }
 0x76a   :  { %v1350_v55 = vsel %vm6322_vm3, %v1243_v54, -1e+20  ;;  %v5207_v58 = vpop.f32.mrb[37].mxu0 }
 0x76b   :  { %v1246_v59 = vpop.f32.mrb[38].mxu0  ;;  %v1356_v60 = vsel %vm264_vm2, %v1350_v55, -inf }
 0x76c   :  { %1357 = vmax.xlane.f32.xlu1 %v1356_v60  ;;  %v5208_v61 = vpop.f32.mrb[39].mxu0  ;;  %v1193_v62 = vpop.f32.mrb[32].mxu1 }
 0x76d   :  { %v1349_v63 = vsel %vm6322_vm3, %v1193_v62, -1e+20  ;;  %v5201_v0 = vpop.f32.mrb[33].mxu1 }
 0x76e   :  { %v1196_v1 = vpop.f32.mrb[34].mxu1  ;;  %v1353_v2 = vsel %vm264_vm2, %v1349_v63, -inf }
 0x76f   :  { %1354 = vmax.xlane.f32.xlu0 %v1353_v2  ;;  %v5202_v3 = vpop.f32.mrb[35].mxu1 }
 0x771   :  { %v1343_v5 = vpop.f32.mrb[40].mxu0 }
 0x772   :  { %v5219_v7 = vpop.f32.mrb[41].mxu0  ;;  %v1352_v18 = vsel %vm6322_vm3, %v1343_v5, -1e+20 }
 0x773   :  { %v1346_v9 = vpop.f32.mrb[42].mxu0  ;;  %v1362_v20 = vsel %vm264_vm2, %v1352_v18, -inf }
 0x774   :  { %v5220_v10 = vpop.f32.mrb[43].mxu0  ;;  %v1293_v13 = vpop.f32.mrb[36].mxu1 }
 0x775   :  { %v1351_v14 = vsel %vm6322_vm3, %v1293_v13, -1e+20  ;;  %v5213_v15 = vpop.f32.mrb[37].mxu1 }
 0x776   :  { %v1296_v16 = vpop.f32.mrb[38].mxu1  ;;  %v1359_v17 = vsel %vm264_vm2, %v1351_v14, -inf }
 0x777   :  { %1360 = vmax.xlane.f32.xlu0 %v1359_v17  ;;  %v5214_v19 = vpop.f32.mrb[39].mxu1 }
 0x77b   :  { %1363 = vmax.xlane.f32.xlu0 %v1362_v20 }
 0x77d   :  { %1401 = vrot.lane.b32.xlu1 %v6285_v8, %s6044_s27 }
 0x7f9   :  { %v1358_v21 = vpop.xlane.xlu1 %1357 }
 0x7fa   :  { %v1366_v23 = vsub.f32 %v1350_v55, %v1358_v21 }
 0x7fc   :  { %v1371_v25 = vmul.f32 1.442695, %v1366_v23  ;;  %v1355_v26 = vpop.xlane.xlu0 %1354 }
 0x7fd   :  { %v1402_v27 = vpop.permute.xlu1 %1401  ;;  %v1365_v28 = vsub.f32 %v1349_v63, %v1355_v26 }
 0x7fe   :  { %5692 = vpow2.f32 %v1371_v25  ;;  %v1407_v29 = vsel %vm517_vm4, %v1402_v27, 0 }
 0x7ff   :  { %v1369_v30 = vmul.f32 1.442695, %v1365_v28  ;;  %5222 = vmatpush3.bf16.msra.mxu1 %v1407_v29 }
 0x800   :  { %5233 = vmatprep.subr.bf16.mxu1 %v6036_v4 }
 0x801   :  { %5694 = vpow2.f32 %v1369_v30 }
 0x804   :  { %v1361_v38 = vpop.xlane.xlu0 %1360 }
 0x805   :  { %v1367_v42 = vsub.f32 %v1351_v14, %v1361_v38 }
 0x807   :  { %v1373_v44 = vmul.f32 1.442695, %v1367_v42 }
 0x808   :  { %v5693_v31 = vpop.eup %5692  ;;  %v1364_v39 = vpop.xlane.xlu0 %1363 }
 0x809   :  { %v1380_v32 = vsel %vm264_vm2, %v5693_v31, 0.0  ;;  %v1368_v40 = vsub.f32 %v1352_v18, %v1364_v39 }
 0x80a   :  { %1381 = vadd.xlane.f32.xlu0 %v1380_v32 }
 0x80b   :  { %v5695_v33 = vpop.eup %5694  ;;  %v1375_v41 = vmul.f32 1.442695, %v1368_v40 }
 0x80c   :  { %v1377_v36 = vsel %vm264_vm2, %v5695_v33, 0.0 }
 0x80d   :  { %1378 = vadd.xlane.f32.xlu1 %v1377_v36  ;;  %5696 = vpow2.f32 %v1375_v41 }
 0x80e   :  { %5698 = vpow2.f32 %v1373_v44 }
 0x817   :  { %v5697_v45 = vpop.eup %5696 }
 0x818   :  { %v1386_v46 = vsel %vm264_vm2, %v5697_v45, 0.0  ;;  %v5699_v50 = vpop.eup %5698 }
 0x819   :  { %v1383_v51 = vsel %vm264_vm2, %v5699_v50, 0.0 }
 0x81e   :  { %1497 = vrot.lane.b32.xlu1 %v6283_v6, %s6044_s27 }
 0x820   :  { %1449 = vrot.lane.b32.xlu0 %v6291_v12, %s6044_s27 }
 0x822   :  { %1545 = vrot.lane.b32.xlu1 %v6289_v11, %s6044_s27 }
 0x83f   :  { %1387 = vadd.xlane.f32.xlu0 %v1386_v46 }
 0x846   :  { %1384 = vadd.xlane.f32.xlu1 %v1383_v51 }
 0x855   :  { %1595 = vrot.lane.b32.xlu0 %v6285_v8, %s6045_s4 }
 0x857   :  { %1645 = vrot.lane.b32.xlu1 %v6291_v12, %s6045_s4 }
 0x859   :  { %1593 = vrot.lane.b32.xlu0 %v6285_v8, %s6046_s21 }
 0x85b   :  { %1643 = vrot.lane.b32.xlu1 %v6291_v12, %s6046_s21 }
 0x85d   :  { %1695 = vrot.lane.b32.xlu0 %v6283_v6, %s6045_s4 }
 0x85f   :  { %1745 = vrot.lane.b32.xlu1 %v6289_v11, %s6045_s4  ;;  %s6051_s4 = smov [#allocation16]  }
 0x861   :  { %1693 = vrot.lane.b32.xlu0 %v6283_v6, %s6046_s21 }
 0x863   :  { %1743 = vrot.lane.b32.xlu1 %v6289_v11, %s6046_s21 }
 0x897   :  { %v1382_v53 = vpop.xlane.xlu0 %1381 }
 0x898   :  { %5700 = vrcp.f32 %v1382_v53 }
 0x89a   :  { %v1379_v54 = vpop.xlane.xlu1 %1378 }
 0x89b   :  { %5702 = vrcp.f32 %v1379_v54  ;;  %v1450_v55 = vpop.permute.xlu0 %1449 }
 0x89c   :  { %v1455_v58 = vsel %vm517_vm4, %v1450_v55, 0 }
 0x89d   :  { %5228 = vmatpush3.bf16.msra.mxu0 %v1455_v58 }
 0x89e   :  { %v1498_v59 = vpop.permute.xlu1 %1497  ;;  %5239 = vmatprep.subr.bf16.mxu0 %v6036_v4 }
 0x89f   :  { %v1503_v5 = vsel %vm517_vm4, %v1498_v59, 0 }
 0x8a2   :  { %v5701_v60 = vpop.eup %5700  ;;  %v1546_v62 = vpop.permute.xlu1 %1545 }
 0x8a3   :  { %v1394_v61 = vmul.f32 %v5701_v60, %v5693_v31  ;;  %v1551_v2 = vsel %vm517_vm4, %v1546_v62, 0 }
 0x8a5   :  { %v5703_v63 = vpop.eup %5702  ;;  %v1398_v0 = vpack.c.bf16 %v1394_v61, %v1394_v61 }
 0x8a6   :  { %v1393_v1 = vmul.f32 %v5703_v63, %v5695_v33 }
 0x8a7   :  { %5230 = vmatmul.mubr.msk.bf16.vlgmr.msra.gmra.mrb[44].mxu0 %vm264_vm2, %v1398_v0 }
 0x8a8   :  { %5240 = vmatpush3.bf16.msra.mxu0 %v1551_v2  ;;  %v1397_v3 = vpack.c.bf16 %v1393_v1, %v1393_v1  ;;  %5241 = vmatprep.mubr.msk.bf16.mxu0 %vm6037_vm1, %v6036_v4 }
 0x8a9   :  { %5251 = vmatprep.subr.bf16.mxu0 %v6036_v4 }
 0x8aa   :  { %5224 = vmatmul.mubr.msk.bf16.vlgmr.msra.gmra.mrb[40].mxu1 %vm264_vm2, %v1397_v3 }
 0x8ab   :  { %5234 = vmatpush3.bf16.msra.mxu1 %v1503_v5  ;;  %5235 = vmatprep.mubr.msk.bf16.mxu1 %vm6037_vm1, %v6036_v4 }
 0x8ac   :  { %5245 = vmatprep.subr.bf16.mxu1 %v6036_v4 }
 0x8cc   :  { %v1388_v7 = vpop.xlane.xlu0 %1387 }
 0x8cd   :  { %5704 = vrcp.f32 %v1388_v7 }
 0x8d0   :  { %v1596_v17 = vpop.permute.xlu0 %1595 }
 0x8d1   :  { %v1601_v26 = vsel %vm264_vm2, %v1596_v17, 0 }
 0x8d3   :  { %v1385_v9 = vpop.xlane.xlu1 %1384 }
 0x8d4   :  { %5706 = vrcp.f32 %v1385_v9  ;;  %v1594_v25 = vpop.permute.xlu0 %1593 }
 0x8d7   :  { %v5705_v10 = vpop.eup %5704  ;;  %v1646_v13 = vpop.permute.xlu1 %1645 }
 0x8d8   :  { %v1396_v14 = vmul.f32 %v5705_v10, %v5697_v45  ;;  %v1651_v18 = vsel %vm264_vm2, %v1646_v13, 0  ;;  %v1696_v28 = vpop.permute.xlu0 %1695 }
 0x8d9   :  { %v1701_v29 = vsel %vm264_vm2, %v1696_v28, 0 }
 0x8da   :  { %v1400_v15 = vpack.c.bf16 %v1396_v14, %v1396_v14 }
 0x8db   :  { %v1644_v16 = vpop.permute.xlu1 %1643 }
 0x8dc   :  { %5242 = vmatmul.mubr.msk.bf16.vlgmr.msra.gmra.mrb[48].mxu0 %vm264_vm2, %v1400_v15  ;;  %v1694_v31 = vpop.permute.xlu0 %1693 }
 0x8dd   :  { %5252 = vmatpush3.bf16.xpose.msra.mxu0 %v1651_v18  ;;  %5253 = vmatprep.mubr.msk.bf16.mxu0 %vm6037_vm1, %v6036_v4 }
 0x8de   :  { %v5707_v19 = vpop.eup %5706  ;;  %5263 = vmatprep.subr.bf16.mxu0 %v6036_v4 }
 0x8df   :  { %v1395_v20 = vmul.f32 %v5707_v19, %v5699_v50  ;;  %v1746_v21 = vpop.permute.xlu1 %1745 }
 0x8e0   :  { %v1751_v27 = vsel %vm264_vm2, %v1746_v21, 0 }
 0x8e1   :  { %v1399_v23 = vpack.c.bf16 %v1395_v20, %v1395_v20 }
 0x8e3   :  { %5236 = vmatmul.mubr.msk.bf16.vlgmr.msra.gmra.mrb[44].mxu1 %vm264_vm2, %v1399_v23  ;;  %v1744_v30 = vpop.permute.xlu1 %1743 }
 0x8e4   :  { %5246 = vmatpush3.bf16.xpose.msra.mxu1 %v1601_v26  ;;  %5254 = vmatmul.mubr.msk.bf16.vlgmr.msra.gmra.mrb[52].mxu0 %vm264_vm2, %v1644_v16 }
 0x8e5   :  { %5264 = vmatpush3.bf16.xpose.msra.mxu0 %v1751_v27  ;;  %5247 = vmatprep.mubr.msk.bf16.mxu1 %vm6037_vm1, %v6036_v4 }
 0x8e6   :  { %5257 = vmatprep.subr.bf16.mxu1 %v6036_v4  ;;  %5265 = vmatprep.mubr.msk.bf16.mxu0 %vm6037_vm1, %v6036_v4 }
 0x8e7   :  { %5275 = vmatprep.subr.bf16.mxu0 %v6036_v4 }
 0x8eb   :  { %5248 = vmatmul.mubr.msk.bf16.vlgmr.msra.gmra.mrb[48].mxu1 %vm264_vm2, %v1594_v25 }
 0x8ec   :  { %5258 = vmatpush3.bf16.xpose.msra.mxu1 %v1701_v29  ;;  %5266 = vmatmul.mubr.msk.bf16.vlgmr.msra.gmra.mrb[56].mxu0 %vm264_vm2, %v1744_v30 }
 0x8ed   :  { %5259 = vmatprep.mubr.msk.bf16.mxu1 %vm6037_vm1, %v6036_v4  ;;  %5269 = vmatprep.subr.bf16.mxu1 %v6036_v4 }
 0x8ee   :  { %5277 = vmatprep.mubr.msk.bf16.mxu0 %vm6037_vm1, %v6036_v4 }
 0x8f3   :  { %5260 = vmatmul.mubr.msk.bf16.vlgmr.msra.gmra.mrb[52].mxu1 %vm264_vm2, %v1694_v31 }
 0x8f4   :  { %5271 = vmatprep.mubr.msk.bf16.mxu1 %vm6037_vm1, %v6036_v4 }
 0x97a   :  { %v6566_v32 = vpop.f32.mrb[44].mxu0 }
 0x97b   :  { %v5231_v33 = vpop.f32.mrb[45].mxu0 }
 0x97c   :  { %v1494_v36 = vpop.f32.mrb[46].mxu0 }
 0x97d   :  { %v5232_v38 = vpop.f32.mrb[47].mxu0  ;;  %v6568_v39 = vpop.f32.mrb[40].mxu1 }
 0x97e   :  { %v5584_v40 = vpack.i.bf16 %v6566_v32, %v6568_v39  ;;  %v5225_v41 = vpop.f32.mrb[41].mxu1 }
 0x97f   :  { %v1446_v42 = vpop.f32.mrb[42].mxu1 }
 0x980   :  { %v5226_v44 = vpop.f32.mrb[43].mxu1 }
 0x9af   :  { %v6572_v45 = vpop.f32.mrb[48].mxu0 }
 0x9b0   :  { %v5243_v46 = vpop.f32.mrb[49].mxu0 }
 0x9b1   :  { %v1590_v50 = vpop.f32.mrb[50].mxu0 }
 0x9b2   :  { %v5244_v51 = vpop.f32.mrb[51].mxu0 }
 0x9b6   :  { %v6574_v53 = vpop.f32.mrb[44].mxu1 }
 0x9b7   :  { %v5589_v54 = vpack.i.bf16 %v6572_v45, %v6574_v53  ;;  %v1687_v55 = vpop.f32.mrb[52].mxu0  ;;  %v5237_v58 = vpop.f32.mrb[45].mxu1 }
 0x9b8   :  { %v1794_v59 = vsel %vm6322_vm3, %v1687_v55, -1e+20  ;;  %v5255_v60 = vpop.f32.mrb[53].mxu0  ;;  %v1542_v61 = vpop.f32.mrb[46].mxu1 }
 0x9b9   :  { %v1690_v62 = vpop.f32.mrb[54].mxu0  ;;  %v5238_v63 = vpop.f32.mrb[47].mxu1  ;;  %v1800_v0 = vsel %vm264_vm2, %v1794_v59, -inf }
 0x9ba   :  { %1801 = vmax.xlane.f32.xlu1 %v1800_v0  ;;  %v5256_v1 = vpop.f32.mrb[55].mxu0 }
 0x9be   :  { %v1637_v2 = vpop.f32.mrb[48].mxu1 }
 0x9bf   :  { %v1793_v3 = vsel %vm6322_vm3, %v1637_v2, -1e+20  ;;  %v1787_v5 = vpop.f32.mrb[56].mxu0  ;;  %v5249_v7 = vpop.f32.mrb[49].mxu1 }
 0x9c0   :  { %v5267_v9 = vpop.f32.mrb[57].mxu0  ;;  %v1640_v10 = vpop.f32.mrb[50].mxu1  ;;  %v1797_v13 = vsel %vm264_vm2, %v1793_v3, -inf  ;;  %v1796_v23 = vsel %vm6322_vm3, %v1787_v5, -1e+20 }
 0x9c1   :  { %v1790_v14 = vpop.f32.mrb[58].mxu0  ;;  %1798 = vmax.xlane.f32.xlu0 %v1797_v13  ;;  %v5250_v15 = vpop.f32.mrb[51].mxu1  ;;  %v1806_v26 = vsel %vm264_vm2, %v1796_v23, -inf  ;;  %v5638_v9 = vld [vmem:[#allocation11] sm:$0xff]  }
 0x9c2   :  { %v5268_v16 = vpop.f32.mrb[59].mxu0 }
 0x9c3   :  { %v5639_v16 = vld [vmem:[#allocation11 + $0x8] sm:$0xff]  }
 0x9c6   :  { %v1737_v17 = vpop.f32.mrb[52].mxu1 }
 0x9c7   :  { %v1795_v18 = vsel %vm6322_vm3, %v1737_v17, -1e+20  ;;  %v5261_v19 = vpop.f32.mrb[53].mxu1 }
 0x9c8   :  { %v1740_v20 = vpop.f32.mrb[54].mxu1  ;;  %v1803_v21 = vsel %vm264_vm2, %v1795_v18, -inf }
 0x9c9   :  { %1804 = vmax.xlane.f32.xlu0 %v1803_v21  ;;  %v5262_v25 = vpop.f32.mrb[55].mxu1 }
 0x9cb   :  { %1845 = vrot.lane.b32.xlu1 %v6285_v8, %s6047_s28 }
 0x9cd   :  { %1807 = vmax.xlane.f32.xlu0 %v1806_v26 }
 0xa47   :  { %v1802_v27 = vpop.xlane.xlu1 %1801 }
 0xa48   :  { %v1810_v28 = vsub.f32 %v1794_v59, %v1802_v27 }
 0xa4a   :  { %v1815_v29 = vmul.f32 1.442695, %v1810_v28 }
 0xa4b   :  { %v1846_v30 = vpop.permute.xlu1 %1845 }
 0xa4c   :  { %5708 = vpow2.f32 %v1815_v29  ;;  %v1851_v31 = vsel %vm517_vm4, %v1846_v30, 0 }
 0xa4d   :  { %5270 = vmatpush3.bf16.msra.mxu1 %v1851_v31 }
 0xa4e   :  { %v1799_v33 = vpop.xlane.xlu0 %1798  ;;  %5281 = vmatprep.subr.bf16.mxu1 %v6036_v4 }
 0xa4f   :  { %v1809_v24 = vsub.f32 %v1793_v3, %v1799_v33 }
 0xa51   :  { %v1813_v36 = vmul.f32 1.442695, %v1809_v24 }
 0xa53   :  { %5710 = vpow2.f32 %v1813_v36 }
 0xa56   :  { %v5709_v38 = vpop.eup %5708  ;;  %v1805_v41 = vpop.xlane.xlu0 %1804 }
 0xa57   :  { %v1811_v8 = vsub.f32 %v1795_v18, %v1805_v41  ;;  %v1824_v42 = vsel %vm264_vm2, %v5709_v38, 0.0 }
 0xa58   :  { %1825 = vadd.xlane.f32.xlu0 %v1824_v42 }
 0xa59   :  { %v1817_v44 = vmul.f32 1.442695, %v1811_v8 }
 0xa5a   :  { %v1808_v46 = vpop.xlane.xlu0 %1807 }
 0xa5b   :  { %5712 = vpow2.f32 %v1817_v44  ;;  %v1812_v50 = vsub.f32 %v1796_v23, %v1808_v46 }
 0xa5d   :  { %v5711_v51 = vpop.eup %5710  ;;  %v1819_v55 = vmul.f32 1.442695, %v1812_v50 }
 0xa5e   :  { %v1821_v58 = vsel %vm264_vm2, %v5711_v51, 0.0 }
 0xa5f   :  { %5714 = vpow2.f32 %v1819_v55  ;;  %1822 = vadd.xlane.f32.xlu1 %v1821_v58 }
 0xa65   :  { %v5713_v59 = vpop.eup %5712 }
 0xa66   :  { %v1827_v60 = vsel %vm264_vm2, %v5713_v59, 0.0 }
 0xa67   :  { %1828 = vadd.xlane.f32.xlu1 %v1827_v60 }
 0xa69   :  { %v5715_v61 = vpop.eup %5714 }
 0xa6a   :  { %v1830_v62 = vsel %vm264_vm2, %v5715_v61, 0.0 }
 0xa6b   :  { %1831 = vadd.xlane.f32.xlu0 %v1830_v62 }
 0xa78   :  { %1941 = vrot.lane.b32.xlu1 %v6283_v6, %s6047_s28 }
 0xa7c   :  { %1989 = vrot.lane.b32.xlu1 %v6289_v11, %s6047_s28 }
 0xa80   :  { %5580 = vrot.lane.b32.xlu1 %v5579_v49, %s6048_s29 }
 0xa81   :  { %1893 = vrot.lane.b32.xlu0 %v6291_v12, %s6047_s28 }
 0xa84   :  { %5590 = vrot.lane.b32.xlu1 %v5589_v54, %s6028_s1 }
 0xa85   :  { %5575 = vrot.lane.b32.xlu0 %v5574_v37, %s6048_s29 }
 0xa89   :  { %5585 = vrot.lane.b32.xlu0 %v5584_v40, %s6028_s1 }
 0xae5   :  { %v1826_v6 = vpop.xlane.xlu0 %1825 }
 0xaec   :  { %v1823_v11 = vpop.xlane.xlu1 %1822 }
 0xaed   :  { %5716 = vrcp.f32 %v1823_v11 }
 0xaee   :  { %5718 = vrcp.f32 %v1826_v6 }
 0xaf4   :  { %v1829_v12 = vpop.xlane.xlu1 %1828 }
 0xaf5   :  { %5720 = vrcp.f32 %v1829_v12 }
 0xaf7   :  { %v5717_v43 = vpop.eup %5716 }
 0xaf8   :  { %v5719_v47 = vpop.eup %5718  ;;  %v1942_v49 = vpop.permute.xlu1 %1941  ;;  %v1837_v53 = vmul.f32 %v5717_v43, %v5711_v51 }
 0xaf9   :  { %v1832_v45 = vpop.xlane.xlu0 %1831  ;;  %v1838_v34 = vmul.f32 %v5719_v47, %v5709_v38  ;;  %v1947_v35 = vsel %vm517_vm4, %v1942_v49, 0 }
 0xafa   :  { %5722 = vrcp.f32 %v1832_v45  ;;  %v1841_v54 = vpack.c.bf16 %v1837_v53, %v1837_v53 }
 0xafb   :  { %v1842_v63 = vpack.c.bf16 %v1838_v34, %v1838_v34 }
 0xafc   :  { %5272 = vmatmul.mubr.msk.bf16.vlgmr.msra.gmra.mrb[56].mxu1 %vm264_vm2, %v1841_v54  ;;  %v1990_v39 = vpop.permute.xlu1 %1989 }
 0xafd   :  { %v1894_v37 = vpop.permute.xlu0 %1893  ;;  %5282 = vmatpush3.bf16.msra.mxu1 %v1947_v35  ;;  %5283 = vmatprep.mubr.msk.bf16.mxu1 %vm6037_vm1, %v6036_v4  ;;  %v1995_v1 = vsel %vm517_vm4, %v1990_v39, 0 }
 0xafe   :  { %v1899_v32 = vsel %vm517_vm4, %v1894_v37, 0  ;;  %5293 = vmatprep.subr.bf16.mxu1 %v5638_v9 }
 0xaff   :  { %5276 = vmatpush3.bf16.msra.mxu0 %v1899_v32  ;;  %v5721_v40 = vpop.eup %5720 }
 0xb00   :  { %5287 = vmatprep.subr.bf16.mxu0 %v6036_v4  ;;  %v1839_v0 = vmul.f32 %v5721_v40, %v5713_v59  ;;  %v5581_v38 = vpop.permute.xlu1 %5580  ;;  %v5812_v40 = vld [vmem:[#allocation2] sm:$0xff]  }
 0xb01   :  { %v5576_v24 = vpop.permute.xlu0 %5575  ;;  %v5583_v12 = vunpack.i.h.bf16 %v5581_v38  ;;  %v5582_v43 = vunpack.i.l.bf16 %v5581_v38 }
 0xb02   :  { %5278 = vmatmul.mubr.msk.bf16.vlgmr.msra.gmra.mrb[60].mxu0 %vm264_vm2, %v1842_v63  ;;  %v1843_v2 = vpack.c.bf16 %v1839_v0, %v1839_v0  ;;  %v5578_v41 = vunpack.i.h.bf16 %v5576_v24  ;;  %v5577_v8 = vunpack.i.l.bf16 %v5576_v24  ;;  %v166_v63 = vunpack.c.l.bf16 %v5812_v40 }
 0xb03   :  { %5288 = vmatpush3.bf16.msra.mxu0 %v1995_v1  ;;  %5289 = vmatprep.mubr.msk.bf16.mxu0 %vm6037_vm1, %v6036_v4  ;;  %v2087_v45 = vsel %vm264_vm2, %v6406_v56, %v5582_v43  ;;  %v167_v1 = vunpack.c.h.bf16 %v5812_v40  ;;  %v5646_v43 = vld [vmem:[%s7209_s7 + $0x20] sm:$0xff]  }
 0xb04   :  { %v5723_v3 = vpop.eup %5722  ;;  %5284 = vmatmul.mubr.msk.bf16.vlgmr.msra.gmra.mrb[60].mxu1 %vm264_vm2, %v1843_v2  ;;  %v2086_v50 = vsel %vm264_vm2, %v6404_v52, %v5578_v41  ;;  %v2085_v51 = vsel %vm264_vm2, %v6402_v48, %v5577_v8  ;;  %v2088_v48 = vsel %vm264_vm2, %v6408_v57, %v5583_v12  ;;  %v4847_v57 = vld [vmem:[%s7208_s6] ss:$0 sm:$0xff]  ;;  %v5645_v12 = vld [vmem:[%s7209_s7 + $0x8] sm:$0xff]  }
 0xb05   :  { %v1840_v5 = vmul.f32 %v5723_v3, %v5715_v61  ;;  %5294 = vmatpush3.bf16.msra.mxu1 %v5638_v9  ;;  %v5586_v36 = vpop.permute.xlu0 %5585  ;;  %v5591_v61 = vpop.permute.xlu1 %5590  ;;  %v4852_v40 = vld [vmem:[%s7212_s10] ss:$0 sm:$0xff] }
 0xb06   :  { %5295 = vmatprep.subr.bf16.mxu1 %v5639_v16  ;;  %v5588_v42 = vunpack.i.h.bf16 %v5586_v36  ;;  %v5587_v44 = vunpack.i.l.bf16 %v5586_v36  ;;  %v5593_v47 = vunpack.i.h.bf16 %v5591_v61  ;;  %v5592_v49 = vunpack.i.l.bf16 %v5591_v61  ;;  %v5641_v61 = vld [vmem:[%s7209_s7 + $0x18] sm:$0xff]  }
 0xb07   :  { %v1844_v7 = vpack.c.bf16 %v1840_v5, %v1840_v5 }
 0xb08   :  { %v2090_v59 = vsel %vm2089_vm5, %v2085_v51, %v5587_v44  ;;  %v2091_v60 = vsel %vm2089_vm5, %v2086_v50, %v5588_v42  ;;  %v2092_v34 = vsel %vm2089_vm5, %v2087_v45, %v5592_v49  ;;  %v2093_v35 = vsel %vm2089_vm5, %v2088_v48, %v5593_v47 }
 0xb09   :  { %5296 = vmatpush3.bf16.msra.mxu1 %v5639_v16 }
 0xb0a   :  { %5290 = vmatmul.mubr.msk.bf16.vlgmr.msra.gmra.mrb[64].mxu0 %vm264_vm2, %v1844_v7  ;;  %v5813_v7 = vld [vmem:[#allocation2 + $0x8] sm:$0xff]  }
 0xb0b   :  { %v168_v9 = vunpack.c.l.bf16 %v5813_v7 }
 0xbcf   :  { %v1887_v10 = vpop.f32.mrb[56].mxu1 }
 0xbd0   :  { %v5273_v13 = vpop.f32.mrb[57].mxu1 }
 0xbd1   :  { %v1890_v14 = vpop.f32.mrb[58].mxu1 }
 0xbd2   :  { %v5274_v15 = vpop.f32.mrb[59].mxu1 }
 0xbd3   :  { %v169_v15 = vunpack.c.h.bf16 %v5813_v7 }
 0xbd5   :  { %v1935_v17 = vpop.f32.mrb[60].mxu0 }
 0xbd6   :  { %v5594_v18 = vpack.i.bf16 %v1935_v17, %v1887_v10  ;;  %v5279_v19 = vpop.f32.mrb[61].mxu0 }
 0xbd7   :  { %v1938_v20 = vpop.f32.mrb[62].mxu0  ;;  %v1983_v21 = vpop.f32.mrb[60].mxu1 }
 0xbd8   :  { %5595 = vrot.lane.b32.xlu0 %v5594_v18, %s6049_s2  ;;  %v5280_v23 = vpop.f32.mrb[63].mxu0  ;;  %v5285_v25 = vpop.f32.mrb[61].mxu1 }
 0xbd9   :  { %v1986_v26 = vpop.f32.mrb[62].mxu1 }
 0xbda   :  { %v5286_v27 = vpop.f32.mrb[63].mxu1 }
 0xbdd   :  { %v2031_v28 = vpop.f32.mrb[64].mxu0 }
 0xbde   :  { %v5599_v29 = vpack.i.bf16 %v2031_v28, %v1983_v21  ;;  %v5291_v30 = vpop.f32.mrb[65].mxu0 }
 0xbdf   :  { %v2034_v31 = vpop.f32.mrb[66].mxu0 }
 0xbe0   :  { %5600 = vrot.lane.b32.xlu1 %v5599_v29, %s6049_s2  ;;  %v5292_v33 = vpop.f32.mrb[67].mxu0 }
 0xc4a   :  { %v5596_v46 = vpop.permute.xlu0 %5595 }
 0xc4b   :  { %v5598_v55 = vunpack.i.h.bf16 %v5596_v46  ;;  %v5597_v58 = vunpack.i.l.bf16 %v5596_v46 }
 0xc4d   :  { %v2095_v62 = vsel %vm2094_vm6, %v2090_v59, %v5597_v58  ;;  %v2096_v6 = vsel %vm2094_vm6, %v2091_v60, %v5598_v55  ;;  %v5640_v60 = vld [vmem:[%s7209_s7 + $0x10] sm:$0xff]  }
 0xc4e   :  { %v2099_v11 = vpack.c.bf16 %v2096_v6, %v2095_v62  ;;  %5309 = vmatprep.subr.bf16.mxu1 %v5640_v60  ;;  %v5642_v62 = vld [vmem:[#allocation5] sm:$0xff]   ;;  %v5643_v6 = vld [vmem:[#allocation5 + $0x8] sm:$0xff]  }
 0xc50   :  { %5297 = vmatprep.mubr.msk.bf16.mxu1 %vm196_vm0, %v2099_v11  ;;  %v5644_v11 = vld [vmem:[%s7209_s7] sm:$0xff]  }
 0xc51   :  { %5301 = vmatprep.subr.bf16.mxu0 %v5644_v11 }
 0xc52   :  { %v5601_v52 = vpop.permute.xlu1 %5600  ;;  %5302 = vmatpush3.bf16.msra.mxu0 %v5644_v11 }
 0xc53   :  { %v5603_v53 = vunpack.i.h.bf16 %v5601_v52  ;;  %v5602_v54 = vunpack.i.l.bf16 %v5601_v52  ;;  %5303 = vmatprep.subr.bf16.mxu0 %v5645_v12 }
 0xc55   :  { %v2098_v37 = vsel %vm2094_vm6, %v2093_v35, %v5603_v53  ;;  %v2097_v32 = vsel %vm2094_vm6, %v2092_v34, %v5602_v54 }
 0xc56   :  { %v2100_v39 = vpack.c.bf16 %v2098_v37, %v2097_v32  ;;  %5304 = vmatpush3.bf16.msra.mxu0 %v5645_v12 }
 0xc57   :  { %5317 = vmatprep.subr.bf16.mxu0 %v5646_v43 }
 0xc58   :  { %5298 = vmatmul.mubr.msk.bf16.vlgmr.msra.gmra.mrb[64].mxu1 %vm196_vm0, %v2100_v39 }
 0xc59   :  { %5310 = vmatpush3.bf16.msra.mxu1 %v5640_v60  ;;  %5313 = vmatprep.mubr.msk.bf16.mxu1 %vm196_vm0, %v5642_v62 }
 0xc5a   :  { %5311 = vmatprep.subr.bf16.mxu1 %v5641_v61 }
 0xc5d   :  { %5312 = vmatpush3.bf16.msra.mxu1 %v5641_v61 }
 0xc5e   :  { %5325 = vmatprep.subr.bf16.mxu1 %v6036_v4 }
 0xc60   :  { %5314 = vmatmul.mubr.msk.bf16.vlgmr.msra.gmra.mrb[68].mxu1 %vm196_vm0, %v5643_v6 }
 0xc61   :  { %5327 = vmatprep.mubr.msk.bf16.mxu1 %vm6037_vm1, %v6036_v4 }
 0xd2b   :  { %v5299_v56 = vpop.f32.mrb[64].mxu1 }
 0xd2c   :  { %v2164_v0 = vpop.f32.mrb[65].mxu1  ;;  %v2173_v2 = vadd.f32 %v5299_v56, %v4847_v57 }
 0xd2d   :  { %v2165_v3 = vadd.f32 %v4847_v57, %v2164_v0  ;;  %v5300_v5 = vpop.f32.mrb[66].mxu1 }
 0xd2e   :  { %v2167_v10 = vpop.f32.mrb[67].mxu1  ;;  %v2176_v16 = vadd.f32 %v5300_v5, %v4847_v57  ;;  %v2181_v19 = vadd.f32 %v2173_v2, %v168_v9 }
 0xd2f   :  { %v2168_v13 = vadd.f32 %v4847_v57, %v2167_v10  ;;  %v2179_v14 = vadd.f32 %v2165_v3, %v166_v63  ;;  %v4853_v3 = vld [vmem:[%s7213_s11] ss:$0 sm:$0xff] }
 0xd30   :  { %v2191_v21 = vsel %vm196_vm0, %v2181_v19, 0.0  ;;  %v2182_v23 = vadd.f32 %v2176_v16, %v169_v15 }
 0xd31   :  { %v2185_v17 = vsel %vm196_vm0, %v2179_v14, 0.0  ;;  %v2180_v18 = vadd.f32 %v2168_v13, %v167_v1 }
 0xd32   :  { %2186 = vadd.xlane.f32.xlu0 %v2185_v17  ;;  %v2194_v25 = vsel %vm196_vm0, %v2182_v23, 0.0 }
 0xd33   :  { %v2188_v20 = vsel %vm196_vm0, %v2180_v18, 0.0 }
 0xd34   :  { %2189 = vadd.xlane.f32.xlu1 %v2188_v20  ;;  %v5648_v20 = vld [vmem:[#allocation7] sm:$0xff]  }
 0xd36   :  { %2192 = vadd.xlane.f32.xlu0 %v2191_v21 }
 0xd3a   :  { %2195 = vadd.xlane.f32.xlu0 %v2194_v25  ;;  %v5649_v25 = vld [vmem:[#allocation7 + $0x8] sm:$0xff]  }
 0xdbf   :  { %v2187_v26 = vpop.xlane.xlu0 %2186 }
 0xdc0   :  { %v2198_v27 = vmul.f32 0.03125, %v2187_v26  ;;  %v5315_v26 = vpop.f32.mrb[68].mxu1 }
 0xdc1   :  { %v2190_v28 = vpop.xlane.xlu1 %2189 }
 0xdc2   :  { %v2202_v29 = vsub.f32 %v2179_v14, %v2198_v27  ;;  %v2199_v30 = vmul.f32 0.03125, %v2190_v28  ;;  %v2402_v27 = vpop.f32.mrb[69].mxu1 }
 0xdc3   :  { %v2193_v31 = vpop.xlane.xlu0 %2192  ;;  %v6711_v28 = vpack.c.bf16 %v2402_v27, %v2402_v27 }
 0xdc4   :  { %v2203_v33 = vsub.f32 %v2180_v18, %v2199_v30  ;;  %v2200_v24 = vmul.f32 0.03125, %v2193_v31  ;;  %v2206_v36 = vmul.f32 %v2202_v29, %v2202_v29 }
 0xdc6   :  { %v2204_v38 = vsub.f32 %v2181_v19, %v2200_v24  ;;  %v2210_v41 = vsel %vm196_vm0, %v2206_v36, 0.0  ;;  %v2207_v8 = vmul.f32 %v2203_v33, %v2203_v33  ;;  %v6721_v36 = vpack.c.bf16 %v5315_v26, %v5315_v26 }
 0xdc7   :  { %2211 = vadd.xlane.f32.xlu1 %v2210_v41  ;;  %v2196_v42 = vpop.xlane.xlu0 %2195 }
 0xdc8   :  { %v2201_v44 = vmul.f32 0.03125, %v2196_v42  ;;  %v2213_v46 = vsel %vm196_vm0, %v2207_v8, 0.0  ;;  %v2208_v50 = vmul.f32 %v2204_v38, %v2204_v38 }
 0xdc9   :  { %2214 = vadd.xlane.f32.xlu0 %v2213_v46 }
 0xdca   :  { %v2205_v51 = vsub.f32 %v2182_v23, %v2201_v44  ;;  %v2216_v55 = vsel %vm196_vm0, %v2208_v50, 0.0  ;;  %v5647_v23 = vld [vmem:[%s7209_s7 + $0x28] sm:$0xff]  }
 0xdcb   :  { %2217 = vadd.xlane.f32.xlu1 %v2216_v55 }
 0xdcc   :  { %v2209_v58 = vmul.f32 %v2205_v51, %v2205_v51 }
 0xdce   :  { %v2219_v59 = vsel %vm196_vm0, %v2209_v58, 0.0 }
 0xdcf   :  { %2220 = vadd.xlane.f32.xlu0 %v2219_v59 }
 0xe54   :  { %v2212_v47 = vpop.xlane.xlu1 %2211 }
 0xe55   :  { %v2222_v49 = vmul.f32 0.03125, %v2212_v47 }
 0xe56   :  { %v2215_v52 = vpop.xlane.xlu0 %2214 }
 0xe57   :  { %v2226_v48 = vadd.f32 1e-05, %v2222_v49  ;;  %v2223_v45 = vmul.f32 0.03125, %v2215_v52  ;;  %v2499_v49 = vld [vmem:[#allocation8] sm:$0x1] }
 0xe58   :  { %v2218_v53 = vpop.xlane.xlu1 %2217  ;;  %v2500_v52 = vld [vmem:[#allocation8 + $0x1] sm:$0x1]  ;;  %vm2503_vm7 = vcmp.ne.f32.partialorder %v2499_v49, 0.0 }
 0xe59   :  { %5724 = vrsqrt.f32 %v2226_v48  ;;  %v2227_v54 = vadd.f32 1e-05, %v2223_v45  ;;  %v2224_v34 = vmul.f32 0.03125, %v2218_v53  ;;  %v2709_v48 = vsub.s32 0, %v6319_v22 }
 0xe5a   :  { %vm2504_vm8 = vcmp.ne.f32.partialorder %v2500_v52, 0.0  ;;  %v6050_v45 = vmov 0  }
 0xe5b   :  { %5726 = vrsqrt.f32 %v2227_v54  ;;  %v2228_v35 = vadd.f32 1e-05, %v2224_v34  ;;  %v2703_v53 = vsel %vm2503_vm7, 1, %v6050_v45  ;;  %v2704_v54 = vsel %vm2504_vm8, 1, %v6050_v45  ;;  %v2501_v34 = vld [vmem:[#allocation8 + $0x2] sm:$0x1] }
 0xe5c   :  { %v2221_v37 = vpop.xlane.xlu0 %2220  ;;  %vm2505_vm9 = vcmp.ne.f32.partialorder %v2501_v34, 0.0 }
 0xe5d   :  { %5728 = vrsqrt.f32 %v2228_v35  ;;  %v2225_v32 = vmul.f32 0.03125, %v2221_v37  ;;  %v2710_v35 = vrot.slane %v2703_v53, %v2709_v48  ;;  %v2502_v37 = vld [vmem:[#allocation8 + $0x3] sm:$0x1] }
 0xe5e   :  { %vm2506_vm11 = vcmp.ne.f32.partialorder %v2502_v37, 0.0 }
 0xe5f   :  { %v2229_v39 = vadd.f32 1e-05, %v2225_v32  ;;  %v2714_v32 = vrot.slane %v2704_v54, %v2709_v48  ;;  %vm6770_vm10 = vcmp.eq.s32.totalorder %v2710_v35, 1 }
 0xe61   :  { %5730 = vrsqrt.f32 %v2229_v39  ;;  %vm6774_vm12 = vcmp.eq.s32.totalorder %v2714_v32, 1 }
 0xe63   :  { %v5725_v57 = vpop.eup %5724 }
 0xe64   :  { %v2234_v63 = vmul.f32 %v5725_v57, %v2202_v29  ;;  %v5316_v29 = vpop.f32.mrb[70].mxu1  ;;  %v2705_v57 = vsel %vm2505_vm9, 1, %v6050_v45 }
 0xe65   :  { %v5727_v56 = vpop.eup %5726  ;;  %v2405_v30 = vpop.f32.mrb[71].mxu1  ;;  %v6723_v8 = vpack.c.bf16 %v5316_v29, %v5316_v29 }
 0xe66   :  { %v2235_v0 = vmul.f32 %v5727_v56, %v2203_v33  ;;  %v2242_v1 = vmul.f32 %v4852_v40, %v2234_v63  ;;  %v6713_v31 = vpack.c.bf16 %v2405_v30, %v2405_v30  ;;  %v2523_v33 = vsel %vm264_vm2, %v6711_v28, 0 }
 0xe67   :  { %v5729_v2 = vpop.eup %5728  ;;  %5326 = vmatpush3.bf16.xpose.msra.mxu1 %v2523_v33  ;;  %v2661_v55 = vsel %vm264_vm2, %v6723_v8, 0 }
 0xe68   :  { %v2236_v5 = vmul.f32 %v5729_v2, %v2204_v38  ;;  %v2243_v7 = vmul.f32 %v4852_v40, %v2235_v0  ;;  %v6689_v9 = vadd.f32 %v4853_v3, %v2242_v1  ;;  %v2569_v24 = vsel %vm264_vm2, %v6713_v31, 0  ;;  %5337 = vmatprep.subr.bf16.mxu1 %v6036_v4 }
 0xe69   :  { %v2706_v0 = vsel %vm2506_vm11, 1, %v6050_v45 }
 0xe6a   :  { %v6691_v10 = vadd.f32 %v4853_v3, %v2243_v7  ;;  %v2244_v14 = vmul.f32 %v4852_v40, %v2236_v5  ;;  %v2718_v5 = vrot.slane %v2705_v57, %v2709_v48 }
 0xe6b   :  { %v5731_v13 = vpop.eup %5730 }
 0xe6c   :  { %v2237_v15 = vmul.f32 %v5731_v13, %v2205_v51  ;;  %v2262_v16 = vpack.c.bf16 %v6691_v10, %v6689_v9  ;;  %v6696_v18 = vadd.f32 %v4853_v3, %v2244_v14  ;;  %v2615_v51 = vsel %vm264_vm2, %v6721_v36, 0 }
 0xe6d   :  { %vm6784_vm13 = vcmp.eq.s32.totalorder %v2718_v5, 1 }
 0xe6e   :  { %v2245_v17 = vmul.f32 %v4852_v40, %v2237_v15  ;;  %5305 = vmatprep.mubr.msk.bf16.mxu0 %vm196_vm0, %v2262_v16 }
 0xe70   :  { %v6698_v19 = vadd.f32 %v4853_v3, %v2245_v17  ;;  %v2722_v17 = vrot.slane %v2706_v0, %v2709_v48 }
 0xe72   :  { %v2263_v21 = vpack.c.bf16 %v6698_v19, %v6696_v18  ;;  %vm6788_vm14 = vcmp.eq.s32.totalorder %v2722_v17, 1 }
 0xe74   :  { %5306 = vmatmul.mubr.msk.bf16.vlgmr.msra.gmra.mrb[68].mxu0 %vm196_vm0, %v2263_v21 }
 0xe75   :  { %5318 = vmatpush3.bf16.msra.mxu0 %v5646_v43  ;;  %5321 = vmatprep.mubr.msk.bf16.mxu0 %vm196_vm0, %v5648_v20 }
 0xe76   :  { %5319 = vmatprep.subr.bf16.mxu0 %v5647_v23 }
 0xe79   :  { %5320 = vmatpush3.bf16.msra.mxu0 %v5647_v23 }
 0xe7a   :  { %5331 = vmatprep.subr.bf16.mxu0 %v6036_v4 }
 0xe7c   :  { %5322 = vmatmul.mubr.msk.bf16.vlgmr.msra.gmra.mrb[72].mxu0 %vm196_vm0, %v5649_v25 }
 0xe7d   :  { %5333 = vmatprep.mubr.msk.bf16.mxu0 %vm6037_vm1, %v6036_v4 }
 0xe82   :  { %5332 = vmatpush3.bf16.xpose.msra.mxu0 %v2569_v24 }
 0xe83   :  { %5343 = vmatprep.subr.bf16.mxu0 %v6036_v4 }
 0xf47   :  { %v5307_v38 = vpop.f32.mrb[68].mxu0 }
 0xf48   :  { %v2320_v41 = vpop.f32.mrb[69].mxu0  ;;  %v6745_v60 = vpack.c.bf16 %v5307_v38, %v5307_v38 }
 0xf49   :  { %v6725_v42 = vpack.c.bf16 %v2320_v41, %v2320_v41  ;;  %v5308_v44 = vpop.f32.mrb[70].mxu0 }
 0xf4a   :  { %v2323_v46 = vpop.f32.mrb[71].mxu0  ;;  %v6749_v62 = vpack.c.bf16 %v5308_v44, %v5308_v44 }
 0xf4b   :  { %v6727_v50 = vpack.c.bf16 %v2323_v46, %v2323_v46  ;;  %5328 = vmatmul.mubr.msk.bf16.vlgmr.msra.gmra.mrb[72].mxu1 %vm264_vm2, %v6725_v42 }
 0xf4c   :  { %5338 = vmatpush3.bf16.xpose.msra.mxu1 %v2615_v51  ;;  %5339 = vmatprep.mubr.msk.bf16.mxu1 %vm6037_vm1, %v6036_v4 }
 0xf4d   :  { %5334 = vmatmul.mubr.msk.bf16.vlgmr.msra.gmra.mrb[76].mxu0 %vm264_vm2, %v6727_v50  ;;  %5349 = vmatprep.subr.bf16.mxu1 %v6036_v4 }
 0xf4e   :  { %5344 = vmatpush3.bf16.xpose.msra.mxu0 %v2661_v55  ;;  %5345 = vmatprep.mubr.msk.bf16.mxu0 %vm6037_vm1, %v6036_v4 }
 0xf4f   :  { %v6742_v58 = vpop.f32.mrb[72].mxu0  ;;  %5355 = vmatprep.subr.bf16.mxu0 %v6036_v4 }
 0xf50   :  { %v2484_v59 = vpop.f32.mrb[73].mxu0 }
 0xf51   :  { %v6747_v61 = vpop.f32.mrb[74].mxu0  ;;  %v6759_v11 = vpack.c.bf16 %v2484_v59, %v2484_v59 }
 0xf52   :  { %v2487_v6 = vpop.f32.mrb[75].mxu0 }
 0xf53   :  { %5340 = vmatmul.mubr.msk.bf16.vlgmr.msra.gmra.mrb[76].mxu1 %vm264_vm2, %v6745_v60  ;;  %v6761_v12 = vpack.c.bf16 %v2487_v6, %v2487_v6  ;;  %v2783_v43 = vsel %vm517_vm4, %v6759_v11, 0 }
 0xf54   :  { %5351 = vmatprep.mubr.msk.bf16.mxu1 %vm6037_vm1, %v6036_v4  ;;  %5350 = vmatpush3.bf16.msra.mxu1 %v2783_v43 }
 0xf55   :  { %5346 = vmatmul.mubr.msk.bf16.vlgmr.msra.gmra.mrb[80].mxu0 %vm264_vm2, %v6749_v62  ;;  %v2829_v47 = vsel %vm517_vm4, %v6761_v12, 0  ;;  %5361 = vmatprep.subr.bf16.mxu1 %v6036_v4 }
 0xf56   :  { %5357 = vmatprep.mubr.msk.bf16.mxu0 %vm6037_vm1, %v6036_v4  ;;  %5356 = vmatpush3.bf16.msra.mxu0 %v2829_v47 }
 0xf57   :  { %5367 = vmatprep.subr.bf16.mxu0 %v6036_v4 }
0x101e   :  { %v2559_v40 = vpop.f32.mrb[72].mxu1 }
0x101f   :  { %v2727_v22 = vsel %vm6770_vm10, %v2559_v40, -1e+20  ;;  %v5329_v56 = vpop.f32.mrb[73].mxu1 }
0x1020   :  { %v2562_v1 = vpop.f32.mrb[74].mxu1  ;;  %v2605_v2 = vpop.f32.mrb[76].mxu0  ;;  %v2731_v3 = vsel %vm264_vm2, %v2727_v22, -inf }
0x1021   :  { %v2728_v7 = vsel %vm6774_vm12, %v2605_v2, -1e+20  ;;  %2732 = vmax.xlane.f32.xlu1 %v2731_v3  ;;  %v5330_v13 = vpop.f32.mrb[75].mxu1  ;;  %v5335_v14 = vpop.f32.mrb[77].mxu0 }
0x1022   :  { %v2608_v15 = vpop.f32.mrb[78].mxu0  ;;  %v2734_v16 = vsel %vm264_vm2, %v2728_v7, -inf }
0x1023   :  { %2735 = vmax.xlane.f32.xlu0 %v2734_v16  ;;  %v5336_v20 = vpop.f32.mrb[79].mxu0  ;;  %v6824_v15 = vpack.c.bf16 %v6747_v61, %v6747_v61 }
0x1026   :  { %v2651_v23 = vpop.f32.mrb[76].mxu1 }
0x1027   :  { %v2729_v26 = vsel %vm6784_vm13, %v2651_v23, -1e+20  ;;  %v5341_v27 = vpop.f32.mrb[77].mxu1 }
0x1028   :  { %v2654_v29 = vpop.f32.mrb[78].mxu1  ;;  %v2697_v30 = vpop.f32.mrb[80].mxu0  ;;  %v2737_v33 = vsel %vm264_vm2, %v2729_v26, -inf }
0x1029   :  { %v2730_v24 = vsel %vm6788_vm14, %v2697_v30, -1e+20  ;;  %2738 = vmax.xlane.f32.xlu1 %v2737_v33  ;;  %v5342_v38 = vpop.f32.mrb[79].mxu1  ;;  %v5347_v41 = vpop.f32.mrb[81].mxu0 }
0x102a   :  { %v2700_v44 = vpop.f32.mrb[82].mxu0  ;;  %v2740_v46 = vsel %vm264_vm2, %v2730_v24, -inf }
0x102b   :  { %2741 = vmax.xlane.f32.xlu0 %v2740_v46  ;;  %v5348_v51 = vpop.f32.mrb[83].mxu0 }
0x10ae   :  { %v2733_v55 = vpop.xlane.xlu1 %2732 }
0x10af   :  { %v2743_v59 = vsub.f32 %v2727_v22, %v2733_v55 }
0x10b0   :  { %v2736_v6 = vpop.xlane.xlu0 %2735 }
0x10b1   :  { %v2747_v43 = vmul.f32 1.442695, %v2743_v59  ;;  %v2744_v47 = vsub.f32 %v2728_v7, %v2736_v6  ;;  %v6820_v7 = vpack.c.bf16 %v6742_v58, %v6742_v58  ;;  %v2921_v58 = vsel %vm517_vm4, %v6824_v15, 0 }
0x10b3   :  { %5732 = vpow2.f32 %v2747_v43  ;;  %v2749_v49 = vmul.f32 1.442695, %v2744_v47  ;;  %v2875_v20 = vsel %vm517_vm4, %v6820_v7, 0 }
0x10b5   :  { %5734 = vpow2.f32 %v2749_v49 }
0x10b6   :  { %v2739_v57 = vpop.xlane.xlu1 %2738 }
0x10b7   :  { %v2745_v40 = vsub.f32 %v2729_v26, %v2739_v57 }
0x10b8   :  { %v2742_v52 = vpop.xlane.xlu0 %2741 }
0x10b9   :  { %v2746_v48 = vsub.f32 %v2730_v24, %v2742_v52  ;;  %v2751_v22 = vmul.f32 1.442695, %v2745_v40 }
0x10bb   :  { %v2753_v45 = vmul.f32 1.442695, %v2746_v48 }
0x10bd   :  { %v5733_v53 = vpop.eup %5732  ;;  %5736 = vpow2.f32 %v2753_v45 }
0x10be   :  { %v2755_v54 = vsel %vm264_vm2, %v5733_v53, 0.0  ;;  %5738 = vpow2.f32 %v2751_v22 }
0x10bf   :  { %v5735_v34 = vpop.eup %5734  ;;  %2756 = vadd.xlane.f32.xlu1 %v2755_v54 }
0x10c0   :  { %v2758_v35 = vsel %vm264_vm2, %v5735_v34, 0.0 }
0x10c1   :  { %2759 = vadd.xlane.f32.xlu0 %v2758_v35 }
0x10c7   :  { %v5737_v37 = vpop.eup %5736 }
0x10c8   :  { %v2764_v32 = vsel %vm264_vm2, %v5737_v37, 0.0  ;;  %v5739_v56 = vpop.eup %5738 }
0x10c9   :  { %2765 = vadd.xlane.f32.xlu0 %v2764_v32  ;;  %v2761_v0 = vsel %vm264_vm2, %v5739_v56, 0.0 }
0x10d0   :  { %2967 = vrot.lane.b32.xlu1 %v6711_v28, %s6040_s18 }
0x10df   :  { %3019 = vrot.lane.b32.xlu0 %v6713_v31, %s6040_s18 }
0x10e3   :  { %3071 = vrot.lane.b32.xlu0 %v6721_v36, %s6040_s18 }
0x10e7   :  { %3068 = vrot.lane.b32.xlu0 %v6745_v60, %s6040_s18 }
0x10f4   :  { %2762 = vadd.xlane.f32.xlu1 %v2761_v0 }
0x1105   :  { %2964 = vrot.lane.b32.xlu1 %v6725_v42, %s6040_s18 }
0x1109   :  { %3016 = vrot.lane.b32.xlu1 %v6727_v50, %s6040_s18 }
0x110d   :  { %3123 = vrot.lane.b32.xlu1 %v6723_v8, %s6040_s18 }
0x1111   :  { %3120 = vrot.lane.b32.xlu1 %v6749_v62, %s6040_s18 }
0x114c   :  { %v2757_v1 = vpop.xlane.xlu1 %2756 }
0x114d   :  { %5740 = vrcp.f32 %v2757_v1 }
0x114e   :  { %v2760_v2 = vpop.xlane.xlu0 %2759 }
0x114f   :  { %5742 = vrcp.f32 %v2760_v2 }
0x1150   :  { %v2968_v33 = vpop.permute.xlu1 %2967 }
0x1151   :  { %v2973_v6 = vsel %vm264_vm2, %v2968_v33, 0 }
0x1156   :  { %v2766_v3 = vpop.xlane.xlu0 %2765 }
0x1157   :  { %v5741_v5 = vpop.eup %5740  ;;  %5744 = vrcp.f32 %v2766_v3 }
0x1158   :  { %v2771_v13 = vmul.f32 %v5741_v5, %v5733_v53 }
0x1159   :  { %v5743_v14 = vpop.eup %5742 }
0x115a   :  { %v2772_v16 = vmul.f32 %v5743_v14, %v5735_v34  ;;  %v2775_v17 = vpack.c.bf16 %v2771_v13, %v2771_v13  ;;  %v3020_v27 = vpop.permute.xlu0 %3019 }
0x115b   :  { %v3025_v30 = vsel %vm264_vm2, %v3020_v27, 0 }
0x115c   :  { %5352 = vmatmul.mubr.msk.bf16.vlgmr.msra.gmra.mrb[80].mxu1 %vm264_vm2, %v2775_v17  ;;  %v2776_v23 = vpack.c.bf16 %v2772_v16, %v2772_v16 }
0x115d   :  { %5362 = vmatpush3.bf16.msra.mxu1 %v2875_v20  ;;  %5363 = vmatprep.mubr.msk.bf16.mxu1 %vm6037_vm1, %v6036_v4 }
0x115e   :  { %5358 = vmatmul.mubr.msk.bf16.vlgmr.msra.gmra.mrb[84].mxu0 %vm264_vm2, %v2776_v23  ;;  %5373 = vmatprep.subr.bf16.mxu1 %v6036_v4  ;;  %v3072_v47 = vpop.permute.xlu0 %3071 }
0x115f   :  { %5368 = vmatpush3.bf16.msra.mxu0 %v2921_v58  ;;  %5369 = vmatprep.mubr.msk.bf16.mxu0 %vm6037_vm1, %v6036_v4  ;;  %v3077_v49 = vsel %vm264_vm2, %v3072_v47, 0 }
0x1160   :  { %5379 = vmatprep.subr.bf16.mxu0 %v6036_v4 }
0x1161   :  { %v5745_v61 = vpop.eup %5744 }
0x1162   :  { %v2774_v26 = vmul.f32 %v5745_v61, %v5737_v37  ;;  %v3069_v52 = vpop.permute.xlu0 %3068 }
0x1164   :  { %v2778_v29 = vpack.c.bf16 %v2774_v26, %v2774_v26 }
0x1166   :  { %5370 = vmatmul.mubr.msk.bf16.vlgmr.msra.gmra.mrb[88].mxu0 %vm264_vm2, %v2778_v29 }
0x1167   :  { %5381 = vmatprep.mubr.msk.bf16.mxu0 %vm6037_vm1, %v6036_v4 }
0x1168   :  { %5380 = vmatpush3.bf16.xpose.msra.mxu0 %v3025_v30 }
0x1169   :  { %5391 = vmatprep.subr.bf16.mxu0 %v6036_v4 }
0x1181   :  { %v2763_v24 = vpop.xlane.xlu1 %2762 }
0x1182   :  { %5746 = vrcp.f32 %v2763_v24 }
0x1185   :  { %v2965_v38 = vpop.permute.xlu1 %2964 }
0x1189   :  { %v3017_v41 = vpop.permute.xlu1 %3016 }
0x118a   :  { %5382 = vmatmul.mubr.msk.bf16.vlgmr.msra.gmra.mrb[92].mxu0 %vm264_vm2, %v3017_v41 }
0x118b   :  { %5393 = vmatprep.mubr.msk.bf16.mxu0 %vm6037_vm1, %v6036_v4 }
0x118c   :  { %v5747_v44 = vpop.eup %5746 }
0x118d   :  { %v2773_v46 = vmul.f32 %v5747_v44, %v5739_v56  ;;  %v3124_v51 = vpop.permute.xlu1 %3123 }
0x118e   :  { %v3129_v55 = vsel %vm264_vm2, %v3124_v51, 0 }
0x118f   :  { %5392 = vmatpush3.bf16.xpose.msra.mxu0 %v3129_v55  ;;  %v2777_v59 = vpack.c.bf16 %v2773_v46, %v2773_v46 }
0x1190   :  { %5403 = vmatprep.subr.bf16.mxu0 %v6036_v4 }
0x1191   :  { %5364 = vmatmul.mubr.msk.bf16.vlgmr.msra.gmra.mrb[84].mxu1 %vm264_vm2, %v2777_v59  ;;  %v3121_v43 = vpop.permute.xlu1 %3120 }
0x1192   :  { %5374 = vmatpush3.bf16.xpose.msra.mxu1 %v2973_v6  ;;  %5375 = vmatprep.mubr.msk.bf16.mxu1 %vm6037_vm1, %v6036_v4 }
0x1193   :  { %5385 = vmatprep.subr.bf16.mxu1 %v6036_v4 }
0x1196   :  { %5394 = vmatmul.mubr.msk.bf16.vlgmr.msra.gmra.mrb[96].mxu0 %vm264_vm2, %v3121_v43 }
0x1197   :  { %5405 = vmatprep.mubr.msk.bf16.mxu0 %vm6037_vm1, %v6036_v4 }
0x1199   :  { %5376 = vmatmul.mubr.msk.bf16.vlgmr.msra.gmra.mrb[88].mxu1 %vm264_vm2, %v2965_v38 }
0x119a   :  { %5386 = vmatpush3.bf16.xpose.msra.mxu1 %v3077_v49  ;;  %5387 = vmatprep.mubr.msk.bf16.mxu1 %vm6037_vm1, %v6036_v4 }
0x119b   :  { %5397 = vmatprep.subr.bf16.mxu1 %v6036_v4 }
0x11a1   :  { %5388 = vmatmul.mubr.msk.bf16.vlgmr.msra.gmra.mrb[92].mxu1 %vm264_vm2, %v3069_v52 }
0x11a2   :  { %5399 = vmatprep.mubr.msk.bf16.mxu1 %vm6037_vm1, %v6036_v4 }
0x122f   :  { %v6864_v48 = vpop.f32.mrb[80].mxu1 }
0x1230   :  { %v5353_v45 = vpop.f32.mrb[81].mxu1 }
0x1231   :  { %v2822_v53 = vpop.f32.mrb[82].mxu1  ;;  %v6866_v54 = vpop.f32.mrb[84].mxu0 }
0x1232   :  { %v5354_v34 = vpop.f32.mrb[83].mxu1  ;;  %v5359_v35 = vpop.f32.mrb[85].mxu0 }
0x1233   :  { %v2868_v37 = vpop.f32.mrb[86].mxu0 }
0x1234   :  { %v5360_v32 = vpop.f32.mrb[87].mxu0 }
0x1239   :  { %v6868_v57 = vpop.f32.mrb[88].mxu0 }
0x123a   :  { %v5371_v40 = vpop.f32.mrb[89].mxu0 }
0x123b   :  { %v2960_v22 = vpop.f32.mrb[90].mxu0 }
0x123c   :  { %v5372_v56 = vpop.f32.mrb[91].mxu0 }
0x125d   :  { %v3061_v0 = vpop.f32.mrb[92].mxu0 }
0x125e   :  { %v3172_v1 = vsel %vm6774_vm12, %v3061_v0, -1e+20  ;;  %v5383_v2 = vpop.f32.mrb[93].mxu0 }
0x125f   :  { %v3178_v3 = vsel %vm264_vm2, %v3172_v1, -inf  ;;  %v3064_v5 = vpop.f32.mrb[94].mxu0 }
0x1260   :  { %3179 = vmax.xlane.f32.xlu1 %v3178_v3  ;;  %v5384_v13 = vpop.f32.mrb[95].mxu0 }
0x1264   :  { %v6873_v14 = vpop.f32.mrb[84].mxu1 }
0x1265   :  { %v5365_v16 = vpop.f32.mrb[85].mxu1 }
0x1266   :  { %v2914_v17 = vpop.f32.mrb[86].mxu1 }
0x1267   :  { %v5366_v20 = vpop.f32.mrb[87].mxu1 }
0x1269   :  { %v3165_v23 = vpop.f32.mrb[96].mxu0 }
0x126a   :  { %v5395_v58 = vpop.f32.mrb[97].mxu0  ;;  %v3174_v59 = vsel %vm6788_vm14, %v3165_v23, -1e+20 }
0x126b   :  { %v3168_v61 = vpop.f32.mrb[98].mxu0  ;;  %v3184_v43 = vsel %vm264_vm2, %v3174_v59, -inf }
0x126c   :  { %v3009_v26 = vpop.f32.mrb[88].mxu1  ;;  %v5396_v27 = vpop.f32.mrb[99].mxu0 }
0x126d   :  { %v3171_v29 = vsel %vm6770_vm10, %v3009_v26, -1e+20  ;;  %v5377_v30 = vpop.f32.mrb[89].mxu1 }
0x126e   :  { %v3175_v33 = vsel %vm264_vm2, %v3171_v29, -inf  ;;  %v3012_v24 = vpop.f32.mrb[90].mxu1 }
0x126f   :  { %v5378_v38 = vpop.f32.mrb[91].mxu1  ;;  %3176 = vmax.xlane.f32.xlu0 %v3175_v33 }
0x1271   :  { %3224 = vrot.lane.b32.xlu1 %v6759_v11, %s6040_s18 }
0x1274   :  { %v3113_v41 = vpop.f32.mrb[92].mxu1 }
0x1275   :  { %v3173_v44 = vsel %vm6784_vm13, %v3113_v41, -1e+20  ;;  %v5389_v46 = vpop.f32.mrb[93].mxu1 }
0x1276   :  { %v3181_v51 = vsel %vm264_vm2, %v3173_v44, -inf  ;;  %v3116_v55 = vpop.f32.mrb[94].mxu1 }
0x1277   :  { %3182 = vmax.xlane.f32.xlu0 %v3181_v51  ;;  %v5390_v6 = vpop.f32.mrb[95].mxu1 }
0x127b   :  { %3185 = vmax.xlane.f32.xlu0 %v3184_v43 }
0x12ed   :  { %v3180_v47 = vpop.xlane.xlu1 %3179 }
0x12ee   :  { %v3188_v49 = vsub.f32 %v3172_v1, %v3180_v47 }
0x12f0   :  { %v3193_v52 = vmul.f32 1.442695, %v3188_v49 }
0x12f1   :  { %v3225_v45 = vpop.permute.xlu1 %3224 }
0x12f2   :  { %5748 = vpow2.f32 %v3193_v52  ;;  %v3230_v53 = vsel %vm517_vm4, %v3225_v45, 0 }
0x12f3   :  { %5398 = vmatpush3.bf16.msra.mxu1 %v3230_v53 }
0x12f4   :  { %5409 = vmatprep.subr.bf16.mxu1 %v6036_v4 }
0x12fc   :  { %v5749_v34 = vpop.eup %5748  ;;  %v3177_v35 = vpop.xlane.xlu0 %3176 }
0x12fd   :  { %v3187_v37 = vsub.f32 %v3171_v29, %v3177_v35  ;;  %v3202_v32 = vsel %vm264_vm2, %v5749_v34, 0.0 }
0x12fe   :  { %3203 = vadd.xlane.f32.xlu0 %v3202_v32 }
0x12ff   :  { %v3191_v40 = vmul.f32 1.442695, %v3187_v37 }
0x1301   :  { %5750 = vpow2.f32 %v3191_v40 }
0x1304   :  { %v3183_v0 = vpop.xlane.xlu0 %3182 }
0x1305   :  { %v3189_v13 = vsub.f32 %v3173_v44, %v3183_v0 }
0x1307   :  { %v3195_v17 = vmul.f32 1.442695, %v3189_v13 }
0x1308   :  { %v3186_v1 = vpop.xlane.xlu0 %3185 }
0x1309   :  { %v3190_v2 = vsub.f32 %v3174_v59, %v3186_v1 }
0x130b   :  { %v5751_v22 = vpop.eup %5750  ;;  %v3197_v3 = vmul.f32 1.442695, %v3190_v2 }
0x130c   :  { %v3199_v56 = vsel %vm264_vm2, %v5751_v22, 0.0 }
0x130d   :  { %3200 = vadd.xlane.f32.xlu1 %v3199_v56  ;;  %5752 = vpow2.f32 %v3197_v3 }
0x130e   :  { %5754 = vpow2.f32 %v3195_v17 }
0x1314   :  { %3273 = vrot.lane.b32.xlu0 %v6761_v12, %s6040_s18 }
0x1317   :  { %v5753_v5 = vpop.eup %5752 }
0x1318   :  { %v3208_v16 = vsel %vm264_vm2, %v5753_v5, 0.0  ;;  %v5755_v20 = vpop.eup %5754 }
0x1319   :  { %v3205_v23 = vsel %vm264_vm2, %v5755_v20, 0.0 }
0x131e   :  { %3322 = vrot.lane.b32.xlu1 %v6820_v7, %s6040_s18 }
0x1322   :  { %3371 = vrot.lane.b32.xlu1 %v6824_v15, %s6040_s18 }
0x1333   :  { %3209 = vadd.xlane.f32.xlu0 %v3208_v16 }
0x1346   :  { %3206 = vadd.xlane.f32.xlu1 %v3205_v23 }
0x1349   :  { %3421 = vrot.lane.b32.xlu0 %v6711_v28, %s6043_s19 }
0x134d   :  { %3419 = vrot.lane.b32.xlu0 %v6725_v42, %s6043_s19 }
0x1351   :  { %3521 = vrot.lane.b32.xlu0 %v6721_v36, %s6043_s19 }
0x1355   :  { %3519 = vrot.lane.b32.xlu0 %v6745_v60, %s6043_s19 }
0x1357   :  { %3471 = vrot.lane.b32.xlu1 %v6713_v31, %s6043_s19 }
0x135b   :  { %3469 = vrot.lane.b32.xlu1 %v6727_v50, %s6043_s19 }
0x135f   :  { %3571 = vrot.lane.b32.xlu1 %v6723_v8, %s6043_s19 }
0x1363   :  { %3569 = vrot.lane.b32.xlu1 %v6749_v62, %s6043_s19 }
0x138b   :  { %v3204_v58 = vpop.xlane.xlu0 %3203 }
0x138c   :  { %5756 = vrcp.f32 %v3204_v58 }
0x138f   :  { %v3274_v61 = vpop.permute.xlu0 %3273 }
0x1390   :  { %v3279_v26 = vsel %vm517_vm4, %v3274_v61, 0 }
0x1391   :  { %5404 = vmatpush3.bf16.msra.mxu0 %v3279_v26 }
0x1392   :  { %5415 = vmatprep.subr.bf16.mxu0 %v6036_v4 }
0x1396   :  { %v5757_v27 = vpop.eup %5756 }
0x1397   :  { %v3216_v29 = vmul.f32 %v5757_v27, %v5749_v34 }
0x1399   :  { %v3220_v30 = vpack.c.bf16 %v3216_v29, %v3216_v29 }
0x139a   :  { %v3201_v33 = vpop.xlane.xlu1 %3200 }
0x139b   :  { %5758 = vrcp.f32 %v3201_v33  ;;  %5406 = vmatmul.mubr.msk.bf16.vlgmr.msra.gmra.mrb[100].mxu0 %vm264_vm2, %v3220_v30 }
0x139c   :  { %5417 = vmatprep.mubr.msk.bf16.mxu0 %vm6037_vm1, %v6036_v4 }
0x139e   :  { %v3323_v24 = vpop.permute.xlu1 %3322 }
0x139f   :  { %v3328_v55 = vsel %vm517_vm4, %v3323_v24, 0 }
0x13a2   :  { %v3372_v38 = vpop.permute.xlu1 %3371 }
0x13a3   :  { %v3377_v41 = vsel %vm517_vm4, %v3372_v38, 0 }
0x13a4   :  { %5416 = vmatpush3.bf16.msra.mxu0 %v3377_v41 }
0x13a5   :  { %v5759_v44 = vpop.eup %5758  ;;  %5427 = vmatprep.subr.bf16.mxu0 %v6036_v4 }
0x13a6   :  { %v3215_v46 = vmul.f32 %v5759_v44, %v5751_v22 }
0x13a8   :  { %v3219_v51 = vpack.c.bf16 %v3215_v46, %v3215_v46 }
0x13aa   :  { %5400 = vmatmul.mubr.msk.bf16.vlgmr.msra.gmra.mrb[96].mxu1 %vm264_vm2, %v3219_v51 }
0x13ab   :  { %5410 = vmatpush3.bf16.msra.mxu1 %v3328_v55  ;;  %5411 = vmatprep.mubr.msk.bf16.mxu1 %vm6037_vm1, %v6036_v4 }
0x13ac   :  { %5421 = vmatprep.subr.bf16.mxu1 %v6036_v4 }
0x13c0   :  { %v3210_v59 = vpop.xlane.xlu0 %3209 }
0x13c1   :  { %5760 = vrcp.f32 %v3210_v59 }
0x13c4   :  { %v3422_v34 = vpop.permute.xlu0 %3421 }
0x13c5   :  { %v3427_v0 = vsel %vm264_vm2, %v3422_v34, 0 }
0x13c8   :  { %v3420_v56 = vpop.permute.xlu0 %3419 }
0x13cb   :  { %v5761_v6 = vpop.eup %5760 }
0x13cc   :  { %v3218_v43 = vmul.f32 %v5761_v6, %v5753_v5  ;;  %v3522_v2 = vpop.permute.xlu0 %3521 }
0x13cd   :  { %v3527_v3 = vsel %vm264_vm2, %v3522_v2, 0 }
0x13ce   :  { %v3222_v47 = vpack.c.bf16 %v3218_v43, %v3218_v43 }
0x13d0   :  { %5418 = vmatmul.mubr.msk.bf16.vlgmr.msra.gmra.mrb[104].mxu0 %vm264_vm2, %v3222_v47  ;;  %v3520_v5 = vpop.permute.xlu0 %3519 }
0x13d1   :  { %5429 = vmatprep.mubr.msk.bf16.mxu0 %vm6037_vm1, %v6036_v4 }
0x13d3   :  { %v3207_v49 = vpop.xlane.xlu1 %3206 }
0x13d4   :  { %5762 = vrcp.f32 %v3207_v49 }
0x13d7   :  { %v3472_v52 = vpop.permute.xlu1 %3471 }
0x13d8   :  { %v3477_v45 = vsel %vm264_vm2, %v3472_v52, 0 }
0x13d9   :  { %5428 = vmatpush3.bf16.xpose.msra.mxu0 %v3477_v45 }
0x13da   :  { %5439 = vmatprep.subr.bf16.mxu0 %v6036_v4 }
0x13db   :  { %v3470_v53 = vpop.permute.xlu1 %3469 }
0x13de   :  { %v5763_v35 = vpop.eup %5762 }
0x13df   :  { %v3217_v37 = vmul.f32 %v5763_v35, %v5755_v20  ;;  %v3572_v32 = vpop.permute.xlu1 %3571 }
0x13e0   :  { %v3577_v40 = vsel %vm264_vm2, %v3572_v32, 0  ;;  %5430 = vmatmul.mubr.msk.bf16.vlgmr.msra.gmra.mrb[108].mxu0 %vm264_vm2, %v3470_v53 }
0x13e1   :  { %5440 = vmatpush3.bf16.xpose.msra.mxu0 %v3577_v40  ;;  %v3221_v22 = vpack.c.bf16 %v3217_v37, %v3217_v37  ;;  %5441 = vmatprep.mubr.msk.bf16.mxu0 %vm6037_vm1, %v6036_v4 }
0x13e2   :  { %5451 = vmatprep.subr.bf16.mxu0 %v6036_v4 }
0x13e3   :  { %5412 = vmatmul.mubr.msk.bf16.vlgmr.msra.gmra.mrb[100].mxu1 %vm264_vm2, %v3221_v22  ;;  %v3570_v1 = vpop.permute.xlu1 %3569 }
0x13e4   :  { %5422 = vmatpush3.bf16.xpose.msra.mxu1 %v3427_v0  ;;  %5423 = vmatprep.mubr.msk.bf16.mxu1 %vm6037_vm1, %v6036_v4 }
0x13e5   :  { %5433 = vmatprep.subr.bf16.mxu1 %v6036_v4 }
0x13e8   :  { %5442 = vmatmul.mubr.msk.bf16.vlgmr.msra.gmra.mrb[112].mxu0 %vm264_vm2, %v3570_v1 }
0x13e9   :  { %5453 = vmatprep.mubr.msk.bf16.mxu0 %vm6037_vm1, %v6036_v4 }
0x13eb   :  { %5424 = vmatmul.mubr.msk.bf16.vlgmr.msra.gmra.mrb[104].mxu1 %vm264_vm2, %v3420_v56 }
0x13ec   :  { %5434 = vmatpush3.bf16.xpose.msra.mxu1 %v3527_v3  ;;  %5435 = vmatprep.mubr.msk.bf16.mxu1 %vm6037_vm1, %v6036_v4 }
0x13ed   :  { %5445 = vmatprep.subr.bf16.mxu1 %v6036_v4 }
0x13f3   :  { %5436 = vmatmul.mubr.msk.bf16.vlgmr.msra.gmra.mrb[108].mxu1 %vm264_vm2, %v3520_v5 }
0x13f4   :  { %5447 = vmatprep.mubr.msk.bf16.mxu1 %vm6037_vm1, %v6036_v4 }
0x146e   :  { %v6952_v13 = vpop.f32.mrb[100].mxu0 }
0x146f   :  { %v5407_v16 = vpop.f32.mrb[101].mxu0 }
0x1470   :  { %v3318_v17 = vpop.f32.mrb[102].mxu0 }
0x1471   :  { %v5408_v20 = vpop.f32.mrb[103].mxu0 }
0x147d   :  { %v6954_v23 = vpop.f32.mrb[96].mxu1 }
0x147e   :  { %v5604_v58 = vpack.i.bf16 %v6952_v13, %v6954_v23  ;;  %v5401_v61 = vpop.f32.mrb[97].mxu1 }
0x147f   :  { %v3269_v26 = vpop.f32.mrb[98].mxu1 }
0x1480   :  { %v5402_v27 = vpop.f32.mrb[99].mxu1 }
0x14a3   :  { %v6958_v29 = vpop.f32.mrb[104].mxu0 }
0x14a4   :  { %v5419_v30 = vpop.f32.mrb[105].mxu0 }
0x14a5   :  { %v3416_v33 = vpop.f32.mrb[106].mxu0 }
0x14a6   :  { %v5420_v24 = vpop.f32.mrb[107].mxu0 }
0x14b3   :  { %v3513_v38 = vpop.f32.mrb[108].mxu0 }
0x14b4   :  { %v3620_v41 = vsel %vm6774_vm12, %v3513_v38, -1e+20  ;;  %v5431_v44 = vpop.f32.mrb[109].mxu0 }
0x14b5   :  { %v3626_v46 = vsel %vm264_vm2, %v3620_v41, -inf  ;;  %v3516_v51 = vpop.f32.mrb[110].mxu0 }
0x14b6   :  { %v6963_v55 = vpop.f32.mrb[100].mxu1  ;;  %3627 = vmax.xlane.f32.xlu1 %v3626_v46  ;;  %v5432_v59 = vpop.f32.mrb[111].mxu0 }
0x14b7   :  { %v5609_v6 = vpack.i.bf16 %v6958_v29, %v6963_v55  ;;  %v5413_v43 = vpop.f32.mrb[101].mxu1 }
0x14b8   :  { %v3367_v47 = vpop.f32.mrb[102].mxu1 }
0x14b9   :  { %v5414_v49 = vpop.f32.mrb[103].mxu1 }
0x14bb   :  { %v3613_v52 = vpop.f32.mrb[112].mxu0 }
0x14bc   :  { %v5443_v45 = vpop.f32.mrb[113].mxu0  ;;  %v3622_v16 = vsel %vm6788_vm14, %v3613_v52, -1e+20 }
0x14bd   :  { %v3616_v53 = vpop.f32.mrb[114].mxu0  ;;  %v3632_v20 = vsel %vm264_vm2, %v3622_v16, -inf }
0x14be   :  { %v3463_v34 = vpop.f32.mrb[104].mxu1  ;;  %v5444_v35 = vpop.f32.mrb[115].mxu0 }
0x14bf   :  { %v3619_v37 = vsel %vm6770_vm10, %v3463_v34, -1e+20  ;;  %v5425_v32 = vpop.f32.mrb[105].mxu1 }
0x14c0   :  { %v3623_v40 = vsel %vm264_vm2, %v3619_v37, -inf  ;;  %v3466_v22 = vpop.f32.mrb[106].mxu1 }
0x14c1   :  { %3624 = vmax.xlane.f32.xlu0 %v3623_v40  ;;  %v5426_v56 = vpop.f32.mrb[107].mxu1 }
0x14c6   :  { %v3563_v0 = vpop.f32.mrb[108].mxu1 }
0x14c7   :  { %v3621_v1 = vsel %vm6784_vm13, %v3563_v0, -1e+20  ;;  %v5437_v2 = vpop.f32.mrb[109].mxu1  ;;  %3671 = vrot.lane.b32.xlu1 %v6759_v11, %s6043_s19 }
0x14c8   :  { %v3629_v3 = vsel %vm264_vm2, %v3621_v1, -inf  ;;  %v3566_v5 = vpop.f32.mrb[110].mxu1 }
0x14c9   :  { %3630 = vmax.xlane.f32.xlu0 %v3629_v3  ;;  %v5438_v17 = vpop.f32.mrb[111].mxu1 }
0x14cd   :  { %3633 = vmax.xlane.f32.xlu0 %v3632_v20 }
0x1543   :  { %v3628_v61 = vpop.xlane.xlu1 %3627 }
0x1544   :  { %v3636_v26 = vsub.f32 %v3620_v41, %v3628_v61 }
0x1546   :  { %v3641_v27 = vmul.f32 1.442695, %v3636_v26 }
0x1547   :  { %v3672_v30 = vpop.permute.xlu1 %3671 }
0x1548   :  { %5764 = vpow2.f32 %v3641_v27  ;;  %v3677_v33 = vsel %vm517_vm4, %v3672_v30, 0 }
0x1549   :  { %5446 = vmatpush3.bf16.msra.mxu1 %v3677_v33 }
0x154a   :  { %5457 = vmatprep.subr.bf16.mxu1 %v6036_v4 }
0x154e   :  { %v3625_v24 = vpop.xlane.xlu0 %3624 }
0x154f   :  { %v3635_v38 = vsub.f32 %v3619_v37, %v3625_v24 }
0x1551   :  { %v3639_v44 = vmul.f32 1.442695, %v3635_v38 }
0x1552   :  { %v5765_v46 = vpop.eup %5764 }
0x1553   :  { %5766 = vpow2.f32 %v3639_v44  ;;  %v3650_v51 = vsel %vm264_vm2, %v5765_v46, 0.0 }
0x1554   :  { %3651 = vadd.xlane.f32.xlu0 %v3650_v51 }
0x1556   :  { %v3631_v41 = vpop.xlane.xlu0 %3630 }
0x1557   :  { %v3637_v45 = vsub.f32 %v3621_v1, %v3631_v41 }
0x1559   :  { %v3643_v34 = vmul.f32 1.442695, %v3637_v45 }
0x155a   :  { %v3634_v47 = vpop.xlane.xlu0 %3633 }
0x155b   :  { %v3638_v49 = vsub.f32 %v3622_v16, %v3634_v47 }
0x155d   :  { %v5767_v59 = vpop.eup %5766  ;;  %v3645_v52 = vmul.f32 1.442695, %v3638_v49 }
0x155e   :  { %v3647_v43 = vsel %vm264_vm2, %v5767_v59, 0.0 }
0x155f   :  { %3648 = vadd.xlane.f32.xlu1 %v3647_v43  ;;  %5768 = vpow2.f32 %v3645_v52 }
0x1560   :  { %5770 = vpow2.f32 %v3643_v34 }
0x1569   :  { %v5769_v53 = vpop.eup %5768 }
0x156a   :  { %3719 = vrot.lane.b32.xlu0 %v6761_v12, %s6043_s19  ;;  %v3656_v35 = vsel %vm264_vm2, %v5769_v53, 0.0  ;;  %v5771_v37 = vpop.eup %5770 }
0x156b   :  { %v3653_v32 = vsel %vm264_vm2, %v5771_v37, 0.0 }
0x1570   :  { %3767 = vrot.lane.b32.xlu1 %v6820_v7, %s6043_s19 }
0x1574   :  { %3815 = vrot.lane.b32.xlu1 %v6824_v15, %s6043_s19 }
0x1589   :  { %3657 = vadd.xlane.f32.xlu0 %v3656_v35 }
0x1598   :  { %3654 = vadd.xlane.f32.xlu1 %v3653_v32 }
0x159f   :  { %3865 = vrot.lane.b32.xlu0 %v6711_v28, %s6046_s21 }
0x15a3   :  { %3863 = vrot.lane.b32.xlu0 %v6725_v42, %s6046_s21 }
0x15a7   :  { %3965 = vrot.lane.b32.xlu0 %v6721_v36, %s6046_s21 }
0x15a9   :  { %3915 = vrot.lane.b32.xlu1 %v6713_v31, %s6046_s21 }
0x15ab   :  { %3963 = vrot.lane.b32.xlu0 %v6745_v60, %s6046_s21 }
0x15ad   :  { %3913 = vrot.lane.b32.xlu1 %v6727_v50, %s6046_s21 }
0x15b1   :  { %4015 = vrot.lane.b32.xlu1 %v6723_v8, %s6046_s21 }
0x15b5   :  { %4013 = vrot.lane.b32.xlu1 %v6749_v62, %s6046_s21 }
0x15e1   :  { %v3652_v28 = vpop.xlane.xlu0 %3651 }
0x15e2   :  { %5772 = vrcp.f32 %v3652_v28 }
0x15e5   :  { %v3720_v42 = vpop.permute.xlu0 %3719 }
0x15e6   :  { %v3725_v36 = vsel %vm517_vm4, %v3720_v42, 0 }
0x15e7   :  { %5452 = vmatpush3.bf16.msra.mxu0 %v3725_v36 }
0x15e8   :  { %5463 = vmatprep.subr.bf16.mxu0 %v6036_v4 }
0x15ec   :  { %v5773_v31 = vpop.eup %5772  ;;  %v3649_v40 = vpop.xlane.xlu1 %3648 }
0x15ed   :  { %v3664_v60 = vmul.f32 %v5773_v31, %v5765_v46  ;;  %5774 = vrcp.f32 %v3649_v40 }
0x15ef   :  { %v3668_v22 = vpack.c.bf16 %v3664_v60, %v3664_v60 }
0x15f0   :  { %v3768_v50 = vpop.permute.xlu1 %3767 }
0x15f1   :  { %5454 = vmatmul.mubr.msk.bf16.vlgmr.msra.gmra.mrb[116].mxu0 %vm264_vm2, %v3668_v22  ;;  %v3773_v2 = vsel %vm517_vm4, %v3768_v50, 0 }
0x15f2   :  { %5465 = vmatprep.mubr.msk.bf16.mxu0 %vm6037_vm1, %v6036_v4 }
0x15f4   :  { %v3816_v8 = vpop.permute.xlu1 %3815 }
0x15f5   :  { %v3821_v62 = vsel %vm517_vm4, %v3816_v8, 0 }
0x15f6   :  { %5464 = vmatpush3.bf16.msra.mxu0 %v3821_v62 }
0x15f7   :  { %v5775_v56 = vpop.eup %5774  ;;  %5475 = vmatprep.subr.bf16.mxu0 %v6036_v4 }
0x15f8   :  { %v3663_v0 = vmul.f32 %v5775_v56, %v5767_v59 }
0x15fa   :  { %v3667_v1 = vpack.c.bf16 %v3663_v0, %v3663_v0 }
0x15fc   :  { %5448 = vmatmul.mubr.msk.bf16.vlgmr.msra.gmra.mrb[112].mxu1 %vm264_vm2, %v3667_v1 }
0x15fd   :  { %5458 = vmatpush3.bf16.msra.mxu1 %v3773_v2  ;;  %5459 = vmatprep.mubr.msk.bf16.mxu1 %vm6037_vm1, %v6036_v4 }
0x15fe   :  { %5469 = vmatprep.subr.bf16.mxu1 %v6036_v4 }
0x1616   :  { %v3658_v3 = vpop.xlane.xlu0 %3657 }
0x1617   :  { %5776 = vrcp.f32 %v3658_v3 }
0x161a   :  { %v3866_v30 = vpop.permute.xlu0 %3865 }
0x161b   :  { %v3871_v59 = vsel %vm264_vm2, %v3866_v30, 0 }
0x161e   :  { %v3864_v51 = vpop.permute.xlu0 %3863 }
0x1621   :  { %v5777_v5 = vpop.eup %5776 }
0x1622   :  { %v3666_v16 = vmul.f32 %v5777_v5, %v5769_v53  ;;  %v3966_v41 = vpop.permute.xlu0 %3965 }
0x1623   :  { %v3971_v47 = vsel %vm264_vm2, %v3966_v41, 0 }
0x1624   :  { %v3670_v17 = vpack.c.bf16 %v3666_v16, %v3666_v16 }
0x1625   :  { %v3655_v20 = vpop.xlane.xlu1 %3654 }
0x1626   :  { %5778 = vrcp.f32 %v3655_v20  ;;  %5466 = vmatmul.mubr.msk.bf16.vlgmr.msra.gmra.mrb[120].mxu0 %vm264_vm2, %v3670_v17  ;;  %v3964_v49 = vpop.permute.xlu0 %3963 }
0x1627   :  { %5477 = vmatprep.mubr.msk.bf16.mxu0 %vm6037_vm1, %v6036_v4 }
0x1629   :  { %v3916_v61 = vpop.permute.xlu1 %3915 }
0x162a   :  { %v3921_v26 = vsel %vm264_vm2, %v3916_v61, 0 }
0x162b   :  { %5476 = vmatpush3.bf16.xpose.msra.mxu0 %v3921_v26 }
0x162c   :  { %5487 = vmatprep.subr.bf16.mxu0 %v6036_v4 }
0x162d   :  { %v3914_v27 = vpop.permute.xlu1 %3913 }
0x1630   :  { %v5779_v33 = vpop.eup %5778 }
0x1631   :  { %v3665_v24 = vmul.f32 %v5779_v33, %v5771_v37  ;;  %v4016_v38 = vpop.permute.xlu1 %4015 }
0x1632   :  { %v4021_v44 = vsel %vm264_vm2, %v4016_v38, 0  ;;  %5478 = vmatmul.mubr.msk.bf16.vlgmr.msra.gmra.mrb[124].mxu0 %vm264_vm2, %v3914_v27 }
0x1633   :  { %5488 = vmatpush3.bf16.xpose.msra.mxu0 %v4021_v44  ;;  %v3669_v46 = vpack.c.bf16 %v3665_v24, %v3665_v24  ;;  %5489 = vmatprep.mubr.msk.bf16.mxu0 %vm6037_vm1, %v6036_v4 }
0x1634   :  { %5499 = vmatprep.subr.bf16.mxu0 %v6036_v4 }
0x1635   :  { %5460 = vmatmul.mubr.msk.bf16.vlgmr.msra.gmra.mrb[116].mxu1 %vm264_vm2, %v3669_v46  ;;  %v4014_v43 = vpop.permute.xlu1 %4013 }
0x1636   :  { %5470 = vmatpush3.bf16.xpose.msra.mxu1 %v3871_v59  ;;  %5471 = vmatprep.mubr.msk.bf16.mxu1 %vm6037_vm1, %v6036_v4 }
0x1637   :  { %5481 = vmatprep.subr.bf16.mxu1 %v6036_v4 }
0x163a   :  { %5490 = vmatmul.mubr.msk.bf16.vlgmr.msra.gmra.mrb[128].mxu0 %vm264_vm2, %v4014_v43 }
0x163b   :  { %5501 = vmatprep.mubr.msk.bf16.mxu0 %vm6037_vm1, %v6036_v4 }
0x163d   :  { %5472 = vmatmul.mubr.msk.bf16.vlgmr.msra.gmra.mrb[120].mxu1 %vm264_vm2, %v3864_v51 }
0x163e   :  { %5482 = vmatpush3.bf16.xpose.msra.mxu1 %v3971_v47  ;;  %5483 = vmatprep.mubr.msk.bf16.mxu1 %vm6037_vm1, %v6036_v4 }
0x163f   :  { %5493 = vmatprep.subr.bf16.mxu1 %v6036_v4 }
0x1645   :  { %5484 = vmatmul.mubr.msk.bf16.vlgmr.msra.gmra.mrb[124].mxu1 %vm264_vm2, %v3964_v49 }
0x1646   :  { %5495 = vmatprep.mubr.msk.bf16.mxu1 %vm6037_vm1, %v6036_v4 }
0x16c4   :  { %v7044_v52 = vpop.f32.mrb[116].mxu0 }
0x16c5   :  { %v5455_v45 = vpop.f32.mrb[117].mxu0 }
0x16c6   :  { %v3764_v53 = vpop.f32.mrb[118].mxu0 }
0x16c7   :  { %v5456_v34 = vpop.f32.mrb[119].mxu0 }
0x16cf   :  { %v7046_v35 = vpop.f32.mrb[112].mxu1 }
0x16d0   :  { %v5614_v37 = vpack.i.bf16 %v7044_v52, %v7046_v35  ;;  %v5449_v32 = vpop.f32.mrb[113].mxu1 }
0x16d1   :  { %v3716_v28 = vpop.f32.mrb[114].mxu1 }
0x16d2   :  { %v5450_v42 = vpop.f32.mrb[115].mxu1 }
0x16f9   :  { %v7050_v36 = vpop.f32.mrb[120].mxu0 }
0x16fa   :  { %v5467_v31 = vpop.f32.mrb[121].mxu0 }
0x16fb   :  { %v3860_v40 = vpop.f32.mrb[122].mxu0 }
0x16fc   :  { %v5468_v60 = vpop.f32.mrb[123].mxu0 }
0x1705   :  { %v3957_v22 = vpop.f32.mrb[124].mxu0 }
0x1706   :  { %v4064_v50 = vsel %vm6774_vm12, %v3957_v22, -1e+20  ;;  %v5479_v8 = vpop.f32.mrb[125].mxu0 }
0x1707   :  { %v4070_v62 = vsel %vm264_vm2, %v4064_v50, -inf  ;;  %v3960_v56 = vpop.f32.mrb[126].mxu0 }
0x1708   :  { %v7055_v0 = vpop.f32.mrb[116].mxu1  ;;  %4071 = vmax.xlane.f32.xlu1 %v4070_v62  ;;  %v5480_v1 = vpop.f32.mrb[127].mxu0 }
0x1709   :  { %v5619_v2 = vpack.i.bf16 %v7050_v36, %v7055_v0  ;;  %v5461_v3 = vpop.f32.mrb[117].mxu1 }
0x170a   :  { %v3812_v5 = vpop.f32.mrb[118].mxu1 }
0x170b   :  { %v5462_v16 = vpop.f32.mrb[119].mxu1 }
0x170d   :  { %v4057_v17 = vpop.f32.mrb[128].mxu0 }
0x170e   :  { %v5491_v20 = vpop.f32.mrb[129].mxu0  ;;  %v4066_v39 = vsel %vm6788_vm14, %v4057_v17, -1e+20 }
0x170f   :  { %v4060_v61 = vpop.f32.mrb[130].mxu0  ;;  %v4076_v47 = vsel %vm264_vm2, %v4066_v39, -inf }
0x1710   :  { %v3907_v26 = vpop.f32.mrb[120].mxu1  ;;  %v5492_v63 = vpop.f32.mrb[131].mxu0 }
0x1711   :  { %v4063_v27 = vsel %vm6770_vm10, %v3907_v26, -1e+20  ;;  %v5473_v30 = vpop.f32.mrb[121].mxu1 }
0x1712   :  { %v4067_v33 = vsel %vm264_vm2, %v4063_v27, -inf  ;;  %v3910_v24 = vpop.f32.mrb[122].mxu1 }
0x1713   :  { %4068 = vmax.xlane.f32.xlu0 %v4067_v33  ;;  %v5474_v38 = vpop.f32.mrb[123].mxu1  ;;  %v5650_v33 = vld [vmem:[#allocation13] sm:$0xff]  }
0x1718   :  { %v4007_v44 = vpop.f32.mrb[124].mxu1 }
0x1719   :  { %v4065_v46 = vsel %vm6784_vm13, %v4007_v44, -1e+20  ;;  %v5485_v51 = vpop.f32.mrb[125].mxu1  ;;  %4115 = vrot.lane.b32.xlu1 %v6759_v11, %s6046_s21 }
0x171a   :  { %v4073_v59 = vsel %vm264_vm2, %v4065_v46, -inf  ;;  %v4010_v43 = vpop.f32.mrb[126].mxu1  ;;  %v5651_v51 = vld [vmem:[#allocation13 + $0x8] sm:$0xff]  }
0x171b   :  { %4074 = vmax.xlane.f32.xlu0 %v4073_v59  ;;  %v5486_v41 = vpop.f32.mrb[127].mxu1 }
0x171f   :  { %4077 = vmax.xlane.f32.xlu0 %v4076_v47 }
0x1795   :  { %v4072_v49 = vpop.xlane.xlu1 %4071 }
0x1796   :  { %v4080_v45 = vsub.f32 %v4064_v50, %v4072_v49 }
0x1798   :  { %v4085_v53 = vmul.f32 1.442695, %v4080_v45 }
0x1799   :  { %v4116_v21 = vpop.permute.xlu1 %4115 }
0x179a   :  { %5780 = vpow2.f32 %v4085_v53  ;;  %v4121_v34 = vsel %vm517_vm4, %v4116_v21, 0 }
0x179b   :  { %5494 = vmatpush3.bf16.msra.mxu1 %v4121_v34 }
0x179c   :  { %5505 = vmatprep.subr.bf16.mxu1 %v6036_v4 }
0x17a0   :  { %v4069_v11 = vpop.xlane.xlu0 %4068 }
0x17a1   :  { %v4079_v32 = vsub.f32 %v4063_v27, %v4069_v11 }
0x17a3   :  { %v4083_v28 = vmul.f32 1.442695, %v4079_v32 }
0x17a4   :  { %v5781_v25 = vpop.eup %5780 }
0x17a5   :  { %5782 = vpow2.f32 %v4083_v28  ;;  %v4094_v42 = vsel %vm264_vm2, %v5781_v25, 0.0 }
0x17a6   :  { %4095 = vadd.xlane.f32.xlu0 %v4094_v42 }
0x17a8   :  { %v4075_v36 = vpop.xlane.xlu0 %4074 }
0x17a9   :  { %v4081_v31 = vsub.f32 %v4065_v46, %v4075_v36 }
0x17ab   :  { %v4087_v40 = vmul.f32 1.442695, %v4081_v31 }
0x17ac   :  { %v4078_v60 = vpop.xlane.xlu0 %4077 }
0x17ad   :  { %5784 = vpow2.f32 %v4087_v40  ;;  %v4082_v22 = vsub.f32 %v4066_v39, %v4078_v60 }
0x17af   :  { %v5783_v50 = vpop.eup %5782  ;;  %v4089_v8 = vmul.f32 1.442695, %v4082_v22 }
0x17b0   :  { %v4091_v62 = vsel %vm264_vm2, %v5783_v50, 0.0 }
0x17b1   :  { %5786 = vpow2.f32 %v4089_v8  ;;  %4092 = vadd.xlane.f32.xlu1 %v4091_v62 }
0x17b7   :  { %v5785_v56 = vpop.eup %5784 }
0x17b8   :  { %v4097_v0 = vsel %vm264_vm2, %v5785_v56, 0.0 }
0x17b9   :  { %4098 = vadd.xlane.f32.xlu1 %v4097_v0 }
0x17bb   :  { %v5787_v1 = vpop.eup %5786 }
0x17bc   :  { %v4100_v3 = vsel %vm264_vm2, %v5787_v1, 0.0 }
0x17bd   :  { %4101 = vadd.xlane.f32.xlu0 %v4100_v3 }
0x17ca   :  { %4211 = vrot.lane.b32.xlu1 %v6820_v7, %s6046_s21 }
0x17ce   :  { %4259 = vrot.lane.b32.xlu1 %v6824_v15, %s6046_s21 }
0x17d2   :  { %5610 = vrot.lane.b32.xlu1 %v5609_v6, %s6048_s29 }
0x17d3   :  { %4163 = vrot.lane.b32.xlu0 %v6761_v12, %s6046_s21 }
0x17d6   :  { %5620 = vrot.lane.b32.xlu1 %v5619_v2, %s6028_s1 }
0x17d7   :  { %5605 = vrot.lane.b32.xlu0 %v5604_v58, %s6048_s29 }
0x17db   :  { %5615 = vrot.lane.b32.xlu0 %v5614_v37, %s6028_s1 }
0x1833   :  { %v4096_v7 = vpop.xlane.xlu0 %4095 }
0x183e   :  { %v4093_v15 = vpop.xlane.xlu1 %4092 }
0x183f   :  { %5788 = vrcp.f32 %v4093_v15 }
0x1840   :  { %5790 = vrcp.f32 %v4096_v7 }
0x1846   :  { %v4099_v29 = vpop.xlane.xlu1 %4098 }
0x1847   :  { %5792 = vrcp.f32 %v4099_v29 }
0x1849   :  { %v5789_v55 = vpop.eup %5788 }
0x184a   :  { %v5791_v12 = vpop.eup %5790  ;;  %v4107_v6 = vmul.f32 %v5789_v55, %v5783_v50  ;;  %v4212_v2 = vpop.permute.xlu1 %4211 }
0x184b   :  { %v4102_v5 = vpop.xlane.xlu0 %4101  ;;  %v4108_v13 = vmul.f32 %v5791_v12, %v5781_v25  ;;  %v4217_v23 = vsel %vm517_vm4, %v4212_v2, 0 }
0x184c   :  { %5794 = vrcp.f32 %v4102_v5  ;;  %v4111_v16 = vpack.c.bf16 %v4107_v6, %v4107_v6 }
0x184d   :  { %v4112_v17 = vpack.c.bf16 %v4108_v13, %v4108_v13 }
0x184e   :  { %5496 = vmatmul.mubr.msk.bf16.vlgmr.msra.gmra.mrb[128].mxu1 %vm264_vm2, %v4111_v16  ;;  %v4260_v35 = vpop.permute.xlu1 %4259 }
0x184f   :  { %v4164_v58 = vpop.permute.xlu0 %4163  ;;  %5506 = vmatpush3.bf16.msra.mxu1 %v4217_v23  ;;  %5507 = vmatprep.mubr.msk.bf16.mxu1 %vm6037_vm1, %v6036_v4  ;;  %v4265_v61 = vsel %vm517_vm4, %v4260_v35, 0 }
0x1850   :  { %v4169_v52 = vsel %vm517_vm4, %v4164_v58, 0  ;;  %5517 = vmatprep.subr.bf16.mxu1 %v5650_v33  ;;  %vm4654_vm4 = vcmask 523264  }
0x1851   :  { %5500 = vmatpush3.bf16.msra.mxu0 %v4169_v52  ;;  %v5793_v37 = vpop.eup %5792 }
0x1852   :  { %5511 = vmatprep.subr.bf16.mxu0 %v6036_v4  ;;  %v4109_v20 = vmul.f32 %v5793_v37, %v5785_v56  ;;  %v5611_v36 = vpop.permute.xlu1 %5610 }
0x1853   :  { %v5606_v25 = vpop.permute.xlu0 %5605  ;;  %v5613_v12 = vunpack.i.h.bf16 %v5611_v36  ;;  %v5612_v6 = vunpack.i.l.bf16 %v5611_v36 }
0x1854   :  { %5502 = vmatmul.mubr.msk.bf16.vlgmr.msra.gmra.mrb[132].mxu0 %vm264_vm2, %v4112_v17  ;;  %v4113_v26 = vpack.c.bf16 %v4109_v20, %v4109_v20  ;;  %v5608_v31 = vunpack.i.h.bf16 %v5606_v25  ;;  %v5607_v40 = vunpack.i.l.bf16 %v5606_v25  ;;  %v4910_v20 = vld [vmem:[#allocation14] ss:$0 sm:$0xff] }
0x1855   :  { %5512 = vmatpush3.bf16.msra.mxu0 %v4265_v61  ;;  %5513 = vmatprep.mubr.msk.bf16.mxu0 %vm6037_vm1, %v6036_v4  ;;  %v4357_v16 = vsel %vm264_vm2, %v6873_v14, %v5612_v6 }
0x1856   :  { %v5795_v63 = vpop.eup %5794  ;;  %5508 = vmatmul.mubr.msk.bf16.vlgmr.msra.gmra.mrb[132].mxu1 %vm264_vm2, %v4113_v26  ;;  %v4356_v8 = vsel %vm264_vm2, %v6866_v54, %v5608_v31  ;;  %v4355_v62 = vsel %vm264_vm2, %v6864_v48, %v5607_v40  ;;  %v5621_v7 = vpop.permute.xlu1 %5620  ;;  %v4358_v48 = vsel %vm264_vm2, %v6868_v57, %v5613_v12 }
0x1857   :  { %v4110_v27 = vmul.f32 %v5795_v63, %v5787_v1  ;;  %5518 = vmatpush3.bf16.msra.mxu1 %v5650_v33  ;;  %v5616_v42 = vpop.permute.xlu0 %5615  ;;  %v5623_v2 = vunpack.i.h.bf16 %v5621_v7  ;;  %v5622_v5 = vunpack.i.l.bf16 %v5621_v7 }
0x1858   :  { %5519 = vmatprep.subr.bf16.mxu1 %v5651_v51  ;;  %v5618_v60 = vunpack.i.h.bf16 %v5616_v42  ;;  %v5617_v22 = vunpack.i.l.bf16 %v5616_v42 }
0x1859   :  { %v4114_v30 = vpack.c.bf16 %v4110_v27, %v4110_v27  ;;  %v4361_v58 = vsel %vm2089_vm5, %v4357_v16, %v5622_v5  ;;  %v4362_v52 = vsel %vm2089_vm5, %v4358_v48, %v5623_v2  ;;  %v4915_v5 = vld [vmem:[%s7212_s10 + $0x1] ss:$0 sm:$0xff] }
0x185a   :  { %v4359_v1 = vsel %vm2089_vm5, %v4355_v62, %v5617_v22  ;;  %v4360_v3 = vsel %vm2089_vm5, %v4356_v8, %v5618_v60  ;;  %v5652_v60 = vld [vmem:[%s7214_s12] sm:$0xff]   ;;  %v5653_v22 = vld [vmem:[%s7214_s12 + $0x8] sm:$0xff]  }
0x185b   :  { %5520 = vmatpush3.bf16.msra.mxu1 %v5651_v51  ;;  %5525 = vmatprep.subr.bf16.mxu0 %v5652_v60 }
0x185c   :  { %5514 = vmatmul.mubr.msk.bf16.vlgmr.msra.gmra.mrb[136].mxu0 %vm264_vm2, %v4114_v30 }
0x185d   :  { %5526 = vmatpush3.bf16.msra.mxu0 %v5652_v60 }
0x185e   :  { %5527 = vmatprep.subr.bf16.mxu0 %v5653_v22 }
0x1861   :  { %5528 = vmatpush3.bf16.msra.mxu0 %v5653_v22 }
0x1921   :  { %v4157_v24 = vpop.f32.mrb[128].mxu1 }
0x1922   :  { %v5497_v38 = vpop.f32.mrb[129].mxu1 }
0x1923   :  { %v4160_v44 = vpop.f32.mrb[130].mxu1 }
0x1924   :  { %v5498_v46 = vpop.f32.mrb[131].mxu1 }
0x1927   :  { %v4205_v59 = vpop.f32.mrb[132].mxu0 }
0x1928   :  { %v5624_v43 = vpack.i.bf16 %v4205_v59, %v4157_v24  ;;  %v5503_v39 = vpop.f32.mrb[133].mxu0 }
0x1929   :  { %v4208_v4 = vpop.f32.mrb[134].mxu0  ;;  %v4253_v41 = vpop.f32.mrb[132].mxu1 }
0x192a   :  { %5625 = vrot.lane.b32.xlu0 %v5624_v43, %s6049_s2  ;;  %v5504_v47 = vpop.f32.mrb[135].mxu0  ;;  %v5509_v49 = vpop.f32.mrb[133].mxu1 }
0x192b   :  { %v4256_v45 = vpop.f32.mrb[134].mxu1 }
0x192c   :  { %v5510_v53 = vpop.f32.mrb[135].mxu1 }
0x192f   :  { %v4301_v21 = vpop.f32.mrb[136].mxu0 }
0x1930   :  { %v5629_v34 = vpack.i.bf16 %v4301_v21, %v4253_v41  ;;  %v5515_v11 = vpop.f32.mrb[137].mxu0 }
0x1931   :  { %v4304_v32 = vpop.f32.mrb[138].mxu0 }
0x1932   :  { %5630 = vrot.lane.b32.xlu1 %v5629_v34, %s6049_s2  ;;  %v5516_v28 = vpop.f32.mrb[139].mxu0 }
0x199c   :  { %v5626_v50 = vpop.permute.xlu0 %5625 }
0x199d   :  { %v5628_v56 = vunpack.i.h.bf16 %v5626_v50  ;;  %v5627_v0 = vunpack.i.l.bf16 %v5626_v50  ;;  %v5654_v50 = vld [vmem:[%s7216_s14] sm:$0xff]  }
0x199e   :  { %5533 = vmatprep.subr.bf16.mxu1 %v5654_v50 }
0x199f   :  { %v4364_v15 = vsel %vm2094_vm6, %v4360_v3, %v5628_v56  ;;  %v4363_v29 = vsel %vm2094_vm6, %v4359_v1, %v5627_v0 }
0x19a0   :  { %v4367_v55 = vpack.c.bf16 %v4364_v15, %v4363_v29 }
0x19a2   :  { %5521 = vmatprep.mubr.msk.bf16.mxu1 %vm196_vm0, %v4367_v55 }
0x19a4   :  { %v5631_v54 = vpop.permute.xlu1 %5630 }
0x19a5   :  { %v5633_v13 = vunpack.i.h.bf16 %v5631_v54  ;;  %v5632_v23 = vunpack.i.l.bf16 %v5631_v54 }
0x19a7   :  { %v4366_v35 = vsel %vm2094_vm6, %v4362_v52, %v5633_v13  ;;  %v4365_v37 = vsel %vm2094_vm6, %v4361_v58, %v5632_v23  ;;  %v4916_v58 = vld [vmem:[%s7213_s11 + $0x1] ss:$0 sm:$0xff] }
0x19a8   :  { %v4368_v17 = vpack.c.bf16 %v4366_v35, %v4365_v37 }
0x19aa   :  { %5522 = vmatmul.mubr.msk.bf16.vlgmr.msra.gmra.mrb[136].mxu1 %vm196_vm0, %v4368_v17 }
0x19ab   :  { %5534 = vmatpush3.bf16.msra.mxu1 %v5654_v50 }
0x1a7d   :  { %v5523_v61 = vpop.f32.mrb[136].mxu1 }
0x1a7e   :  { %v4432_v26 = vpop.f32.mrb[137].mxu1  ;;  %v4441_v57 = vadd.f32 %v5523_v61, %v4910_v20 }
0x1a7f   :  { %v4433_v63 = vadd.f32 %v4910_v20, %v4432_v26  ;;  %v5524_v27 = vpop.f32.mrb[138].mxu1 }
0x1a80   :  { %v4435_v14 = vpop.f32.mrb[139].mxu1  ;;  %v4449_v24 = vadd.f32 %v4441_v57, %v6696_v18  ;;  %v4444_v38 = vadd.f32 %v5524_v27, %v4910_v20 }
0x1a81   :  { %v4447_v30 = vadd.f32 %v4433_v63, %v6689_v9  ;;  %v4436_v33 = vadd.f32 %v4910_v20, %v4435_v14 }
0x1a82   :  { %v4450_v59 = vadd.f32 %v4444_v38, %v6698_v19  ;;  %v4459_v43 = vsel %vm196_vm0, %v4449_v24, 0.0  ;;  %v5657_v38 = vld [vmem:[%s7216_s14 + $0x18] sm:$0xff]  }
0x1a83   :  { %v4448_v44 = vadd.f32 %v4436_v33, %v6691_v10  ;;  %v4453_v46 = vsel %vm196_vm0, %v4447_v30, 0.0  ;;  %v5655_v33 = vld [vmem:[%s7216_s14 + $0x8] sm:$0xff]  }
0x1a84   :  { %4454 = vadd.xlane.f32.xlu0 %v4453_v46  ;;  %v4462_v39 = vsel %vm196_vm0, %v4450_v59, 0.0  ;;  %5535 = vmatprep.subr.bf16.mxu1 %v5655_v33 }
0x1a85   :  { %v4456_v51 = vsel %vm196_vm0, %v4448_v44, 0.0  ;;  %5536 = vmatpush3.bf16.msra.mxu1 %v5655_v33 }
0x1a86   :  { %4457 = vadd.xlane.f32.xlu1 %v4456_v51 }
0x1a88   :  { %4460 = vadd.xlane.f32.xlu0 %v4459_v43 }
0x1a8c   :  { %4463 = vadd.xlane.f32.xlu0 %v4462_v39 }
0x1b11   :  { %v4455_v9 = vpop.xlane.xlu0 %4454 }
0x1b12   :  { %v4465_v4 = vmul.f32 0.03125, %v4455_v9 }
0x1b13   :  { %v4458_v18 = vpop.xlane.xlu1 %4457 }
0x1b14   :  { %v4469_v41 = vsub.f32 %v4447_v30, %v4465_v4  ;;  %v4466_v47 = vmul.f32 0.03125, %v4458_v18 }
0x1b15   :  { %v4461_v10 = vpop.xlane.xlu0 %4460 }
0x1b16   :  { %v4470_v49 = vsub.f32 %v4448_v44, %v4466_v47  ;;  %v4467_v45 = vmul.f32 0.03125, %v4461_v10  ;;  %v4473_v53 = vmul.f32 %v4469_v41, %v4469_v41  ;;  %v4917_v44 = vld [vmem:[%s7215_s13] ss:$0 sm:$0xff] }
0x1b18   :  { %v4471_v21 = vsub.f32 %v4449_v24, %v4467_v45  ;;  %v4477_v34 = vsel %vm196_vm0, %v4473_v53, 0.0  ;;  %v4474_v11 = vmul.f32 %v4470_v49, %v4470_v49  ;;  %v5656_v24 = vld [vmem:[%s7216_s14 + $0x10] sm:$0xff]  }
0x1b19   :  { %4478 = vadd.xlane.f32.xlu1 %v4477_v34  ;;  %v4464_v19 = vpop.xlane.xlu0 %4463  ;;  %5537 = vmatprep.subr.bf16.mxu1 %v5656_v24 }
0x1b1a   :  { %v4468_v32 = vmul.f32 0.03125, %v4464_v19  ;;  %v4480_v28 = vsel %vm196_vm0, %v4474_v11, 0.0  ;;  %v4475_v25 = vmul.f32 %v4471_v21, %v4471_v21  ;;  %5538 = vmatpush3.bf16.msra.mxu1 %v5656_v24 }
0x1b1b   :  { %4481 = vadd.xlane.f32.xlu0 %v4480_v28  ;;  %5539 = vmatprep.subr.bf16.mxu1 %v5657_v38 }
0x1b1c   :  { %v4472_v42 = vsub.f32 %v4450_v59, %v4468_v32  ;;  %v4483_v36 = vsel %vm196_vm0, %v4475_v25, 0.0  ;;  %v4922_v32 = vld [vmem:[%s7217_s15] ss:$0 sm:$0xff] }
0x1b1d   :  { %4484 = vadd.xlane.f32.xlu1 %v4483_v36 }
0x1b1e   :  { %v4476_v31 = vmul.f32 %v4472_v42, %v4472_v42  ;;  %5540 = vmatpush3.bf16.msra.mxu1 %v5657_v38 }
0x1b20   :  { %v4486_v40 = vsel %vm196_vm0, %v4476_v31, 0.0 }
0x1b21   :  { %4487 = vadd.xlane.f32.xlu0 %v4486_v40 }
0x1ba6   :  { %v4479_v8 = vpop.xlane.xlu1 %4478 }
0x1ba7   :  { %v4489_v62 = vmul.f32 0.03125, %v4479_v8 }
0x1ba8   :  { %v4482_v56 = vpop.xlane.xlu0 %4481 }
0x1ba9   :  { %v4493_v0 = vadd.f32 1e-05, %v4489_v62  ;;  %v4490_v1 = vmul.f32 0.03125, %v4482_v56 }
0x1baa   :  { %v4485_v3 = vpop.xlane.xlu1 %4484 }
0x1bab   :  { %5796 = vrsqrt.f32 %v4493_v0  ;;  %v4494_v7 = vadd.f32 1e-05, %v4490_v1  ;;  %v4491_v15 = vmul.f32 0.03125, %v4485_v3 }
0x1bad   :  { %5798 = vrsqrt.f32 %v4494_v7  ;;  %v4495_v29 = vadd.f32 1e-05, %v4491_v15 }
0x1bae   :  { %v4488_v55 = vpop.xlane.xlu0 %4487 }
0x1baf   :  { %5800 = vrsqrt.f32 %v4495_v29  ;;  %v4492_v12 = vmul.f32 0.03125, %v4488_v55 }
0x1bb1   :  { %v4496_v6 = vadd.f32 1e-05, %v4492_v12 }
0x1bb3   :  { %5802 = vrsqrt.f32 %v4496_v6 }
0x1bb5   :  { %v5797_v2 = vpop.eup %5796 }
0x1bb6   :  { %v4501_v54 = vmul.f32 %v5797_v2, %v4469_v41 }
0x1bb7   :  { %v5799_v48 = vpop.eup %5798 }
0x1bb8   :  { %v4502_v16 = vmul.f32 %v5799_v48, %v4470_v49  ;;  %v4509_v13 = vmul.f32 %v4915_v5, %v4501_v54 }
0x1bb9   :  { %v5801_v23 = vpop.eup %5800 }
0x1bba   :  { %v4503_v52 = vmul.f32 %v5801_v23, %v4471_v21  ;;  %v4510_v35 = vmul.f32 %v4915_v5, %v4502_v16  ;;  %v4517_v37 = vadd.f32 %v4916_v58, %v4509_v13 }
0x1bbc   :  { %v4518_v17 = vadd.f32 %v4916_v58, %v4510_v35  ;;  %v4511_v61 = vmul.f32 %v4915_v5, %v4503_v52 }
0x1bbd   :  { %v5803_v20 = vpop.eup %5802 }
0x1bbe   :  { %v4504_v26 = vmul.f32 %v5803_v20, %v4472_v42  ;;  %v4521_v57 = vpack.c.bf16 %v4518_v17, %v4517_v37  ;;  %v4519_v27 = vadd.f32 %v4916_v58, %v4511_v61 }
0x1bc0   :  { %v4512_v63 = vmul.f32 %v4915_v5, %v4504_v26  ;;  %5529 = vmatprep.mubr.msk.bf16.mxu0 %vm196_vm0, %v4521_v57 }
0x1bc2   :  { %v4520_v14 = vadd.f32 %v4916_v58, %v4512_v63 }
0x1bc4   :  { %v4522_v30 = vpack.c.bf16 %v4520_v14, %v4519_v27 }
0x1bc6   :  { %5530 = vmatmul.mubr.msk.bf16.vlgmr.msra.gmra.mrb[140].mxu0 %vm196_vm0, %v4522_v30 }
0x1c99   :  { %v5531_v46 = vpop.f32.mrb[140].mxu0 }
0x1c9a   :  { %v4595_v51 = vadd.f32 %v5531_v46, %v4917_v44  ;;  %v4586_v59 = vpop.f32.mrb[141].mxu0 }
0x1c9b   :  { %v4587_v43 = vadd.f32 %v4917_v44, %v4586_v59  ;;  %v5532_v39 = vpop.f32.mrb[142].mxu0 }
0x1c9c   :  { %v4607_v9 = vmul.f32 0.01, %v4595_v51  ;;  %v4598_v4 = vadd.f32 %v5532_v39, %v4917_v44  ;;  %v4589_v18 = vpop.f32.mrb[143].mxu0  ;;  %vm4603_vm15 = vcmp.gt.f32.partialorder %v4595_v51, 0.0  ;;  %v4929_v39 = vld [vmem:[%s7212_s10 + $0x2] ss:$0 sm:$0xff] }
0x1c9d   :  { %v4605_v41 = vmul.f32 0.01, %v4587_v43  ;;  %v4590_v47 = vadd.f32 %v4917_v44, %v4589_v18  ;;  %vm4601_vm1 = vcmp.gt.f32.partialorder %v4587_v43, 0.0  ;;  %v4930_v18 = vld [vmem:[%s7213_s11 + $0x2] ss:$0 sm:$0xff]  ;;  %s4793_s10 = sshll.u32 %s6051_s4, 4  ;;  %s4794_s10 = int_to_ptr.vmem [resolvable:$true] %s4793_s10 }
0x1c9e   :  { %vm4604_vm2 = vcmp.gt.f32.partialorder %v4598_v4, 0.0  ;;  %v4608_v10 = vmul.f32 0.01, %v4598_v4  ;;  %v4611_v45 = vsel %vm4603_vm15, %v4595_v51, %v4607_v9  ;;  %s5990_s11 = scalar_lea.vmem %s4794_s10, 512  ;;  %p5995_p9 = scmp.lt.s32.totalorder %s4794_s10, %s4794_s10 }
0x1c9f   :  { %vm4602_vm3 = vcmp.gt.f32.partialorder %v4590_v47, 0.0  ;;  %v4606_v49 = vmul.f32 0.01, %v4590_v47  ;;  %v4609_v21 = vsel %vm4601_vm1, %v4587_v43, %v4605_v41  ;;  %p5991_p8 = scmp.ne.s32.totalorder %s4794_s10, %s5990_s11  ;;  %p5996_p10 = scmp.lt.s32.totalorder %s5990_s11, %s5990_s11 }
0x1ca0   :  { %v4612_v53 = vsel %vm4604_vm2, %v4598_v4, %v4608_v10 }
0x1ca1   :  { %v4614_v34 = vpack.c.bf16 %v4612_v53, %v4611_v45  ;;  %v4610_v11 = vsel %vm4602_vm3, %v4590_v47, %v4606_v49  ;;  %p5997_p11 = por %p5996_p10, %p5995_p9 }
0x1ca2   :  { %v4613_v19 = vpack.c.bf16 %v4610_v11, %v4609_v21 }
0x1ca3   :  { %p5998_p12 = pnand %p5997_p11, %p5991_p8 }
0x1ca4   :  { %5541 = vmatprep.mubr.msk.bf16.mxu1 %vm4654_vm4, %v4613_v19 }
0x1ca5   :  { %5542 = vmatmul.mubr.msk.bf16.vlgmr.msra.gmra.mrb[140].mxu1 %vm4654_vm4, %v4614_v34 }
0x1d78   :  { %v5543_v28 = vpop.f32.mrb[140].mxu1 }
0x1d79   :  { %v4695_v25 = vpop.f32.mrb[141].mxu1  ;;  %v4704_v42 = vadd.f32 %v5543_v28, %v4922_v32 }
0x1d7a   :  { %v4696_v36 = vadd.f32 %v4922_v32, %v4695_v25  ;;  %v5544_v31 = vpop.f32.mrb[142].mxu1 }
0x1d7b   :  { %v4698_v40 = vpop.f32.mrb[143].mxu1  ;;  %v4707_v22 = vadd.f32 %v5544_v31, %v4922_v32  ;;  %v4712_v8 = vadd.f32 %v4704_v42, %v4519_v27 }
0x1d7c   :  { %v4710_v60 = vadd.f32 %v4696_v36, %v4517_v37  ;;  %v4699_v50 = vadd.f32 %v4922_v32, %v4698_v40 }
0x1d7d   :  { %v4713_v0 = vadd.f32 %v4707_v22, %v4520_v14  ;;  %v4722_v3 = vsel %vm196_vm0, %v4712_v8, 0.0 }
0x1d7e   :  { %v4711_v62 = vadd.f32 %v4699_v50, %v4518_v17  ;;  %v4716_v56 = vsel %vm196_vm0, %v4710_v60, 0.0 }
0x1d7f   :  { %4717 = vadd.xlane.f32.xlu1 %v4716_v56  ;;  %v4725_v7 = vsel %vm196_vm0, %v4713_v0, 0.0 }
0x1d80   :  { %v4719_v1 = vsel %vm196_vm0, %v4711_v62, 0.0 }
0x1d81   :  { %4720 = vadd.xlane.f32.xlu0 %v4719_v1 }
0x1d83   :  { %4723 = vadd.xlane.f32.xlu1 %v4722_v3 }
0x1d85   :  { %4726 = vadd.xlane.f32.xlu0 %v4725_v7 }
0x1e0c   :  { %v4718_v15 = vpop.xlane.xlu1 %4717 }
0x1e0d   :  { %v4728_v29 = vmul.f32 0.03125, %v4718_v15 }
0x1e0e   :  { %v4721_v55 = vpop.xlane.xlu0 %4720 }
0x1e0f   :  { %v4732_v12 = vsub.f32 %v4710_v60, %v4728_v29  ;;  %v4729_v6 = vmul.f32 0.03125, %v4721_v55 }
0x1e10   :  { %v4724_v2 = vpop.xlane.xlu1 %4723 }
0x1e11   :  { %v4733_v5 = vsub.f32 %v4711_v62, %v4729_v6  ;;  %v4730_v54 = vmul.f32 0.03125, %v4724_v2  ;;  %v4736_v48 = vmul.f32 %v4732_v12, %v4732_v12 }
0x1e12   :  { %v4727_v16 = vpop.xlane.xlu0 %4726 }
0x1e13   :  { %v4734_v13 = vsub.f32 %v4712_v8, %v4730_v54  ;;  %v4731_v23 = vmul.f32 0.03125, %v4727_v16  ;;  %v4740_v58 = vsel %vm196_vm0, %v4736_v48, 0.0  ;;  %v4737_v52 = vmul.f32 %v4733_v5, %v4733_v5 }
0x1e14   :  { %4741 = vadd.xlane.f32.xlu1 %v4740_v58 }
0x1e15   :  { %v4735_v35 = vsub.f32 %v4713_v0, %v4731_v23  ;;  %v4743_v37 = vsel %vm196_vm0, %v4737_v52, 0.0  ;;  %v4738_v17 = vmul.f32 %v4734_v13, %v4734_v13 }
0x1e16   :  { %4744 = vadd.xlane.f32.xlu0 %v4743_v37 }
0x1e17   :  { %v4746_v20 = vsel %vm196_vm0, %v4738_v17, 0.0  ;;  %v4739_v61 = vmul.f32 %v4735_v35, %v4735_v35 }
0x1e18   :  { %4747 = vadd.xlane.f32.xlu1 %v4746_v20 }
0x1e19   :  { %v4749_v26 = vsel %vm196_vm0, %v4739_v61, 0.0 }
0x1e1a   :  { %4750 = vadd.xlane.f32.xlu0 %v4749_v26 }
0x1ea1   :  { %v4742_v57 = vpop.xlane.xlu1 %4741 }
0x1ea2   :  { %v4752_v63 = vmul.f32 0.03125, %v4742_v57 }
0x1ea3   :  { %v4745_v27 = vpop.xlane.xlu0 %4744 }
0x1ea4   :  { %v4756_v14 = vadd.f32 1e-05, %v4752_v63  ;;  %v4753_v30 = vmul.f32 0.03125, %v4745_v27 }
0x1ea5   :  { %v4748_v33 = vpop.xlane.xlu1 %4747 }
0x1ea6   :  { %5804 = vrsqrt.f32 %v4756_v14  ;;  %v4757_v24 = vadd.f32 1e-05, %v4753_v30  ;;  %v4754_v38 = vmul.f32 0.03125, %v4748_v33 }
0x1ea7   :  { %v4751_v44 = vpop.xlane.xlu0 %4750 }
0x1ea8   :  { %5806 = vrsqrt.f32 %v4757_v24  ;;  %v4758_v46 = vadd.f32 1e-05, %v4754_v38  ;;  %v4755_v51 = vmul.f32 0.03125, %v4751_v44 }
0x1eaa   :  { %5808 = vrsqrt.f32 %v4758_v46  ;;  %v4759_v59 = vadd.f32 1e-05, %v4755_v51 }
0x1eac   :  { %5810 = vrsqrt.f32 %v4759_v59 }
0x1eb0   :  { %v5805_v43 = vpop.eup %5804 }
0x1eb1   :  { %v4764_v9 = vmul.f32 %v5805_v43, %v4732_v12 }
0x1eb2   :  { %v5807_v4 = vpop.eup %5806 }
0x1eb3   :  { %v4772_v41 = vmul.f32 %v4929_v39, %v4764_v9  ;;  %v4765_v47 = vmul.f32 %v5807_v4, %v4733_v5 }
0x1eb4   :  { %v5809_v10 = vpop.eup %5808 }
0x1eb5   :  { %v4780_v49 = vadd.f32 %v4930_v18, %v4772_v41  ;;  %v4773_v45 = vmul.f32 %v4929_v39, %v4765_v47  ;;  %v4766_v53 = vmul.f32 %v5809_v10, %v4734_v13 }
0x1eb6   :  { %v5811_v21 = vpop.eup %5810 }
0x1eb7   :  { %4784 = vst.msk [vmem:[#allocation16] sm:$0xff] %vm196_vm0, %v4780_v49  ;;  %v4781_v34 = vadd.f32 %v4930_v18, %v4773_v45  ;;  %v4774_v11 = vmul.f32 %v4929_v39, %v4766_v53  ;;  %v4767_v19 = vmul.f32 %v5811_v21, %v4735_v35 }
0x1eb9   :  { %4785 = vst.msk [vmem:[#allocation16 + $0x8] sm:$0xff] %vm196_vm0, %v4781_v34  ;;  %v4782_v32 = vadd.f32 %v4930_v18, %v4774_v11  ;;  %v4775_v28 = vmul.f32 %v4929_v39, %v4767_v19 }
0x1ebb   :  { %4786 = vst.msk [vmem:[#allocation16 + $0x10] sm:$0xff] %vm196_vm0, %v4782_v32  ;;  %v4783_v25 = vadd.f32 %v4930_v18, %v4775_v28 }
0x1ebd   :  { %4787 = vst.msk [vmem:[#allocation16 + $0x18] sm:$0xff] %vm196_vm0, %v4783_v25 }
0x1ebe   :  { %6001 = shalt.err (!%p5998_p12)
}
0x1ebf   :  { %s6002_s7 = scalar_lea.hbm %s7218_s16, 512 }
0x1ec0   :  { %p6003_p13 = scmp.ne.s32.totalorder %s7218_s16, %s6002_s7  ;;  %p6006_p0 = scmp.lt.u32.totalorder %s6002_s7, %s7218_s16 }
0x1ec2   :  { %p6008_p1 = pnand %p6006_p0, %p6003_p13 }
0x1ec4   :  { %6011 = shalt.err (!%p6008_p1)
}
0x1ec5   :  { %s6052_s2 = smov 128  }
0x1ec6   :  { %4799 = dma.vmem_to_hbm [thread:$0]  %s4794_s10, 512, %s7218_s16, [#allocation4], %s6052_s2, %s6052_s2, %s6048_s29  }
0x1ec7   :  { %6022 = dma.done.wait [#allocation4], 512  }
0x1ec8   :  { %6023 = vsyncadd [#allocation4], 4294966784 }
0x1ec9   :  { %4803 = vsyncpa [#allocation3], 1 }
0x1eca   :  { %4804 = vsyncpa [#allocation6], 1 }
0x1ecb   :  { %4805 = vsyncpa [#allocation9], 1 }
0x1ecc   :  { %4806 = vsyncpa [#allocation12], 1 }
0x1ecd   :  { %4807 = vsyncpa [#allocation15], 1 }
0x1ece   :  { %4808 = vsyncpa [#allocation4], 1 }

// kernel: tpu_custom_call.1
= control target key start
LH: loop header
LB: loop body
LE: loop exit
PB: predicated region body
PF: predicated region fallthrough
CT: control target
= control target key end

     0   :  { %s7202_s0 = inlined_call_operand.hbm [shape: bf16[4,8,32], index: 0, kind: input, shape index: {}]   ;;  %s7203_s1 = inlined_call_operand.hbm [shape: bf16[4,8,32], index: 1, kind: input, shape index: {}]   ;;  %s7204_s2 = inlined_call_operand.hbm [shape: bf16[4,8,32], index: 2, kind: input, shape index: {}]   ;;  %s7205_s3 = inlined_call_operand.hbm [shape: f32[4,1,8], index: 3, kind: input, shape index: {}]   ;;  %s7206_s4 = inlined_call_operand.hbm [shape: bf16[32,96], index: 4, kind: input, shape index: {}]   ;;  %s7207_s5 = inlined_call_operand.hbm [shape: bf16[32,32], index: 5, kind: input, shape index: {}]   ;;  %s7208_s6 = inlined_call_operand.vmem [shape: f32[1,32], index: 6, kind: input, shape index: {}]   ;;  %s7209_s7 = inlined_call_operand.vmem [shape: bf16[3,32,32], index: 7, kind: input, shape index: {}]   ;;  %s7210_s8 = inlined_call_operand.hbm [shape: bf16[32,32], index: 8, kind: input, shape index: {}]   ;;  %s7211_s9 = inlined_call_operand.hbm [shape: f32[1,32], index: 9, kind: input, shape index: {}]   ;;  %s7212_s10 = inlined_call_operand.vmem [shape: f32[3,32], index: 10, kind: input, shape index: {}]   ;;  %s7213_s11 = inlined_call_operand.vmem [shape: f32[3,32], index: 11, kind: input, shape index: {}]   ;;  %s7214_s12 = inlined_call_operand.vmem [shape: bf16[32,64], index: 12, kind: input, shape index: {}]   ;;  %s7215_s13 = inlined_call_operand.vmem [shape: f32[1,64], index: 13, kind: input, shape index: {}]   ;;  %s7216_s14 = inlined_call_operand.vmem [shape: bf16[64,32], index: 14, kind: input, shape index: {}]   ;;  %s7217_s15 = inlined_call_operand.vmem [shape: f32[1,32], index: 15, kind: input, shape index: {}]   ;;  %s7218_s16 = inlined_call_operand.hbm [shape: f32[4,8,32], index: 16, kind: output, shape index: {}]  }
   0x1   :  { %7224 = sst [smem:[#allocation23_spill]] %s7202_s0 }
   0x2   :  { %21 = vsyncpa [#allocation3], 0 }
   0x3   :  { %22 = vsyncpa [#allocation6], 0 }
   0x4   :  { %23 = vsyncpa [#allocation9], 0 }
   0x5   :  { %24 = vsyncpa [#allocation12], 0 }
   0x6   :  { %25 = vsyncpa [#allocation15], 0 }
   0x7   :  { %26 = vsyncpa [#allocation4], 0  ;;  %s6024_s21 = smov [#allocation5]   ;;  %s6025_s23 = smov [#allocation8]  }
   0x8   :  { %s44_s22 = sshll.u32 %s6024_s21, 4  ;;  %s68_s24 = sshll.u32 %s6025_s23, 4  ;;  %s45_s22 = int_to_ptr.vmem [resolvable:$true] %s44_s22  ;;  %s6138_s24 = int_to_ptr.vmem [resolvable:$true] %s68_s24 }
   0x9   :  { %s5814_s27 = scalar_lea.hbm %s7203_s1, 256 }
   0xa   :  { %p5815_p0 = scmp.ne.s32.totalorder %s7203_s1, %s5814_s27  ;;  %p5818_p1 = scmp.lt.u32.totalorder %s5814_s27, %s7203_s1 }
   0xc   :  { %p5820_p2 = pnand %p5818_p1, %p5815_p0 }
   0xe   :  { %5823 = shalt.err (!%p5820_p2)
}
   0xf   :  { %s5824_s17 = scalar_lea.vmem %s45_s22, 256  ;;  %p5829_p4 = scmp.lt.s32.totalorder %s45_s22, %s45_s22 }
  0x10   :  { %p5825_p3 = scmp.ne.s32.totalorder %s45_s22, %s5824_s17  ;;  %p5830_p5 = scmp.lt.s32.totalorder %s5824_s17, %s5824_s17 }
  0x12   :  { %p5831_p6 = por %p5830_p5, %p5829_p4 }
  0x14   :  { %p5832_p7 = pnand %p5831_p6, %p5825_p3 }
  0x16   :  { %5835 = shalt.err (!%p5832_p7)
}
  0x17   :  { %s7220_s18 = smov 64   ;;  %s7222_s19 = smov 4  }
  0x18   :  { %50 = dma.hbm_to_vmem [thread:$0]  %s7203_s1, 256, %s45_s22, [#allocation6], %s7220_s18, %s7220_s18, %s7222_s19  }
  0x19   :  { %s5836_s26 = scalar_lea.hbm %s7205_s3, 64 }
  0x1a   :  { %p5837_p8 = scmp.ne.s32.totalorder %s7205_s3, %s5836_s26  ;;  %p5840_p9 = scmp.lt.u32.totalorder %s5836_s26, %s7205_s3 }
  0x1c   :  { %p5842_p10 = pnand %p5840_p9, %p5837_p8 }
  0x1e   :  { %5845 = shalt.err (!%p5842_p10)
}
  0x1f   :  { %s5846_s0 = scalar_lea.vmem %s6138_s24, 64  ;;  %p5851_p12 = scmp.lt.s32.totalorder %s6138_s24, %s6138_s24 }
  0x20   :  { %p5847_p11 = scmp.ne.s32.totalorder %s6138_s24, %s5846_s0  ;;  %p5852_p13 = scmp.lt.s32.totalorder %s5846_s0, %s5846_s0 }
  0x22   :  { %p5853_p0 = por %p5852_p13, %p5851_p12 }
  0x24   :  { %p5854_p1 = pnand %p5853_p0, %p5847_p11 }
  0x26   :  { %5857 = shalt.err (!%p5854_p1)
}
  0x27   :  { %s6028_s1 = smov 16   ;;  %s6029_s22 = smov 1  }
  0x28   :  { %74 = dma.hbm_to_vmem [thread:$0]  %s7205_s3, 64, %s6138_s24, [#allocation9], %s6028_s1, %s6028_s1, %s6029_s22  }
  0x29   :  { %s6030_s21 = smov [#allocation11]   ;;  %s6031_s25 = smov [#allocation2]  }
  0x2a   :  { %s92_s23 = sshll.u32 %s6030_s21, 4  ;;  %s32_s26 = sshll.u32 %s6031_s25, 4  ;;  %s93_s23 = int_to_ptr.vmem [resolvable:$true] %s92_s23  ;;  %s6174_s26 = int_to_ptr.vmem [resolvable:$true] %s32_s26 }
  0x2b   :  { %s5858_s29 = scalar_lea.hbm %s7207_s5, 256 }
  0x2c   :  { %p5859_p2 = scmp.ne.s32.totalorder %s7207_s5, %s5858_s29  ;;  %p5862_p3 = scmp.lt.u32.totalorder %s5858_s29, %s7207_s5 }
  0x2e   :  { %p5864_p4 = pnand %p5862_p3, %p5859_p2 }
  0x30   :  { %5867 = shalt.err (!%p5864_p4)
}
  0x31   :  { %s5868_s3 = scalar_lea.vmem %s93_s23, 256  ;;  %p5873_p6 = scmp.lt.s32.totalorder %s93_s23, %s93_s23 }
  0x32   :  { %p5869_p5 = scmp.ne.s32.totalorder %s93_s23, %s5868_s3  ;;  %p5874_p7 = scmp.lt.s32.totalorder %s5868_s3, %s5868_s3 }
  0x34   :  { %p5875_p8 = por %p5874_p7, %p5873_p6 }
  0x36   :  { %p5876_p9 = pnand %p5875_p8, %p5869_p5 }
  0x38   :  { %5879 = shalt.err (!%p5876_p9)
}
  0x39   :  { %s7225_s24 = smov 4   ;;  %s7226_s22 = smov 64  }
  0x3a   :  { %98 = dma.hbm_to_vmem [thread:$0]  %s7207_s5, 256, %s93_s23, [#allocation12], %s7226_s22, %s7226_s22, %s7225_s24  }
  0x3b   :  { %s7227_s18 = sld [smem:[#allocation23_spill]] }
  0x41   :  { %s5880_s19 = scalar_lea.hbm %s7227_s18, 256 }
  0x42   :  { %p5881_p10 = scmp.ne.s32.totalorder %s7227_s18, %s5880_s19  ;;  %p5884_p11 = scmp.lt.u32.totalorder %s5880_s19, %s7227_s18 }
  0x44   :  { %p5886_p12 = pnand %p5884_p11, %p5881_p10 }
  0x46   :  { %5889 = shalt.err (!%p5886_p12)
}
  0x47   :  { %s5890_s0 = scalar_lea.vmem %s6174_s26, 256  ;;  %p5895_p0 = scmp.lt.s32.totalorder %s6174_s26, %s6174_s26 }
  0x48   :  { %p5891_p13 = scmp.ne.s32.totalorder %s6174_s26, %s5890_s0  ;;  %p5896_p1 = scmp.lt.s32.totalorder %s5890_s0, %s5890_s0 }
  0x4a   :  { %p5897_p2 = por %p5896_p1, %p5895_p0 }
  0x4c   :  { %p5898_p3 = pnand %p5897_p2, %p5891_p13 }
  0x4e   :  { %5901 = shalt.err (!%p5898_p3)
}
  0x4f   :  { %38 = dma.hbm_to_vmem [thread:$0]  %s7227_s18, 256, %s6174_s26, [#allocation3], %s7226_s22, %s7226_s22, %s7225_s24  }
  0x50   :  { %s6032_s3 = smov [#allocation7]   ;;  %s6033_s20 = smov [#allocation10]  }
  0x51   :  { %s56_s17 = sshll.u32 %s6032_s3, 4  ;;  %s80_s21 = sshll.u32 %s6033_s20, 4  ;;  %s57_s17 = int_to_ptr.vmem [resolvable:$true] %s56_s17  ;;  %s6211_s21 = int_to_ptr.vmem [resolvable:$true] %s80_s21 }
  0x52   :  { %s5902_s27 = scalar_lea.hbm %s7204_s2, 256 }
  0x53   :  { %p5903_p4 = scmp.ne.s32.totalorder %s7204_s2, %s5902_s27  ;;  %p5906_p5 = scmp.lt.u32.totalorder %s5902_s27, %s7204_s2 }
  0x55   :  { %p5908_p6 = pnand %p5906_p5, %p5903_p4 }
  0x57   :  { %5911 = shalt.err (!%p5908_p6)
}
  0x58   :  { %s5912_s26 = scalar_lea.vmem %s57_s17, 256  ;;  %p5917_p8 = scmp.lt.s32.totalorder %s57_s17, %s57_s17 }
  0x59   :  { %p5913_p7 = scmp.ne.s32.totalorder %s57_s17, %s5912_s26  ;;  %p5918_p9 = scmp.lt.s32.totalorder %s5912_s26, %s5912_s26 }
  0x5b   :  { %p5919_p10 = por %p5918_p9, %p5917_p8 }
  0x5d   :  { %p5920_p11 = pnand %p5919_p10, %p5913_p7 }
  0x5f   :  { %5923 = shalt.err (!%p5920_p11)
}
  0x60   :  { %62 = dma.hbm_to_vmem [thread:$0]  %s7204_s2, 256, %s57_s17, [#allocation6], %s7226_s22, %s7226_s22, %s7225_s24  }
  0x61   :  { %s5924_s20 = scalar_lea.hbm %s7206_s4, 256 }
  0x62   :  { %p5925_p12 = scmp.ne.s32.totalorder %s7206_s4, %s5924_s20  ;;  %p5928_p13 = scmp.lt.u32.totalorder %s5924_s20, %s7206_s4 }
  0x64   :  { %p5930_p0 = pnand %p5928_p13, %p5925_p12 }
  0x66   :  { %5933 = shalt.err (!%p5930_p0)
}
  0x67   :  { %s5934_s29 = scalar_lea.vmem %s6211_s21, 256  ;;  %p5939_p2 = scmp.lt.s32.totalorder %s6211_s21, %s6211_s21 }
  0x68   :  { %p5935_p1 = scmp.ne.s32.totalorder %s6211_s21, %s5934_s29  ;;  %p5940_p3 = scmp.lt.s32.totalorder %s5934_s29, %s5934_s29 }
  0x6a   :  { %p5941_p4 = por %p5940_p3, %p5939_p2 }
  0x6c   :  { %p5942_p5 = pnand %p5941_p4, %p5935_p1 }
  0x6e   :  { %5945 = shalt.err (!%p5942_p5)
}
  0x6f   :  { %86 = dma.hbm_to_vmem [thread:$0]  %s7206_s4, 256, %s6211_s21, [#allocation9], %s7226_s22, %s7226_s22, %s7225_s24  }
  0x70   :  { %s6034_s30 = smov [#allocation13]   ;;  %s6035_s26 = smov [#allocation14]  }
  0x71   :  { %s108_s0 = sshll.u32 %s6034_s30, 4  ;;  %s121_s18 = sshll.u32 %s6035_s26, 4  ;;  %s109_s0 = int_to_ptr.vmem [resolvable:$true] %s108_s0  ;;  %s122_s18 = int_to_ptr.vmem [resolvable:$true] %s121_s18 }
  0x72   :  { %s5946_s3 = scalar_lea.hbm %s7210_s8, 256 }
  0x73   :  { %p5947_p6 = scmp.ne.s32.totalorder %s7210_s8, %s5946_s3  ;;  %p5950_p7 = scmp.lt.u32.totalorder %s5946_s3, %s7210_s8 }
  0x75   :  { %p5952_p8 = pnand %p5950_p7, %p5947_p6 }
  0x77   :  { %5955 = shalt.err (!%p5952_p8)
}
  0x78   :  { %s5956_s4 = scalar_lea.vmem %s109_s0, 256  ;;  %p5961_p10 = scmp.lt.s32.totalorder %s109_s0, %s109_s0 }
  0x79   :  { %p5957_p9 = scmp.ne.s32.totalorder %s109_s0, %s5956_s4  ;;  %p5962_p11 = scmp.lt.s32.totalorder %s5956_s4, %s5956_s4 }
  0x7b   :  { %p5963_p12 = por %p5962_p11, %p5961_p10 }
  0x7d   :  { %p5964_p13 = pnand %p5963_p12, %p5957_p9 }
  0x7f   :  { %5967 = shalt.err (!%p5964_p13)
}
  0x80   :  { %114 = dma.hbm_to_vmem [thread:$0]  %s7210_s8, 256, %s109_s0, [#allocation12], %s7226_s22, %s7226_s22, %s7225_s24  }
  0x81   :  { %s5968_s17 = scalar_lea.hbm %s7211_s9, 16 }
  0x82   :  { %p5969_p0 = scmp.ne.s32.totalorder %s7211_s9, %s5968_s17  ;;  %p5972_p1 = scmp.lt.u32.totalorder %s5968_s17, %s7211_s9 }
  0x84   :  { %p5974_p2 = pnand %p5972_p1, %p5969_p0 }
  0x86   :  { %5977 = shalt.err (!%p5974_p2)
}
  0x87   :  { %s5978_s3 = scalar_lea.vmem %s122_s18, 16  ;;  %s5982_s20 = scalar_lea.vmem %s122_s18, 32 }
  0x88   :  { %p5979_p3 = scmp.ne.s32.totalorder %s122_s18, %s5978_s3  ;;  %p5983_p4 = scmp.lt.s32.totalorder %s122_s18, %s122_s18 }
  0x89   :  { %p5984_p5 = scmp.lt.s32.totalorder %s5982_s20, %s5978_s3 }
  0x8b   :  { %p5985_p6 = por %p5984_p5, %p5983_p4 }
  0x8d   :  { %p5986_p7 = pnand %p5985_p6, %p5979_p3 }
  0x8f   :  { %5989 = shalt.err (!%p5986_p7)
}
  0x90   :  { %124 = dma.hbm_to_vmem [thread:$0]  %s7211_s9, 16, %s122_s18, [#allocation15]  }
  0x91   :  { %6012 = dma.done.wait [#allocation3], 256  }
  0x92   :  { %6013 = vsyncadd [#allocation3], 4294967040 }
  0x93   :  { %6014 = dma.done.wait [#allocation6], 512  }
  0x94   :  { %6015 = vsyncadd [#allocation6], 4294966784 }
  0x95   :  { %6016 = dma.done.wait [#allocation9], 320  }
  0x96   :  { %6017 = vsyncadd [#allocation9], 4294966976 }
  0x97   :  { %6018 = dma.done.wait [#allocation12], 512  }
  0x98   :  { %6019 = vsyncadd [#allocation12], 4294966784 }
  0x99   :  { %6020 = dma.done.wait [#allocation15], 16  }
  0x9a   :  { %6021 = vsyncadd [#allocation15], 4294967280  ;;  %v5634_v0 = vld [vmem:[#allocation10] sm:$0xff]   ;;  %v5635_v1 = vld [vmem:[#allocation10 + $0x8] sm:$0xff]   ;;  %vm196_vm0 = vcmask 261120   ;;  %v6036_v4 = vmov 0.0   ;;  %v252_v21 = vlaneseq }
  0x9b   :  { %5093 = vmatprep.subr.bf16.mxu0 %v5634_v0  ;;  %v162_v2 = vld [vmem:[#allocation2] sm:$0xff]   ;;  %v164_v3 = vld [vmem:[#allocation2 + $0x8] sm:$0xff]   ;;  %5101 = vmatprep.subr.bf16.mxu1 %v6036_v4  ;;  %vm6037_vm1 = vmmov 0   ;;  %s6038_s9 = smov 96   ;;  %vm264_vm2 = vcmask 64512   ;;  %vm517_vm4 = vcmask 1043456  }
  0x9c   :  { %5094 = vmatpush3.bf16.msra.mxu0 %v5634_v0  ;;  %5097 = vmatprep.mubr.msk.bf16.mxu0 %vm196_vm0, %v162_v2  ;;  %v6319_v22 = vshrl.u32 %v252_v21, 7  ;;  %v255_v23 = vand.u32 127, %v252_v21  ;;  %s6039_s0 = smov 88   ;;  %s6040_s18 = smov 120   ;;  %vm2089_vm5 = vcmask 130048   ;;  %vm2094_vm6 = vcmask 195584  }
  0x9d   :  { %5095 = vmatprep.subr.bf16.mxu0 %v5635_v1  ;;  %5103 = vmatprep.mubr.msk.bf16.mxu1 %vm6037_vm1, %v6036_v4  ;;  %s6042_s25 = smov 80   ;;  %s6043_s19 = smov 112  }
  0x9e   :  { %vm6322_vm3 = vcmp.ge.s32.totalorder %v6319_v22, %v255_v23  ;;  %s6044_s27 = smov 48   ;;  %s6045_s4 = smov 72  }
  0x9f   :  { %s6046_s21 = smov 104   ;;  %s6047_s28 = smov 40  }
  0xa0   :  { %5096 = vmatpush3.bf16.msra.mxu0 %v5635_v1  ;;  %s6048_s29 = smov 8   ;;  %s6049_s2 = smov 24  }
  0xa1   :  { %5107 = vmatprep.subr.bf16.mxu0 %v6036_v4 }
  0xa3   :  { %5098 = vmatmul.mubr.msk.bf16.vlgmr.msra.gmra.mrb[0].mxu0 %vm196_vm0, %v164_v3 }
  0xa4   :  { %5109 = vmatprep.mubr.msk.bf16.mxu0 %vm6037_vm1, %v6036_v4 }
 0x176   :  { %v5099_v5 = vpop.f32.mrb[0].mxu0 }
 0x177   :  { %v6283_v6 = vpack.c.bf16 %v5099_v5, %v5099_v5  ;;  %v237_v7 = vpop.f32.mrb[1].mxu0 }
 0x178   :  { %v6285_v8 = vpack.c.bf16 %v237_v7, %v237_v7  ;;  %v5100_v9 = vpop.f32.mrb[2].mxu0 }
 0x179   :  { %361 = vrot.lane.b32.xlu1 %v6283_v6, %s6038_s9  ;;  %v240_v10 = vpop.f32.mrb[3].mxu0  ;;  %v6289_v11 = vpack.c.bf16 %v5100_v9, %v5100_v9 }
 0x17a   :  { %262 = vrot.lane.b32.xlu0 %v6285_v8, %s6038_s9  ;;  %v6291_v12 = vpack.c.bf16 %v240_v10, %v240_v10 }
 0x17d   :  { %410 = vrot.lane.b32.xlu1 %v6289_v11, %s6038_s9 }
 0x17e   :  { %312 = vrot.lane.b32.xlu0 %v6291_v12, %s6038_s9 }
 0x1eb   :  { %v362_v15 = vpop.permute.xlu1 %361 }
 0x1ec   :  { %v263_v13 = vpop.permute.xlu0 %262  ;;  %v367_v18 = vsel %vm264_vm2, %v362_v15, 0 }
 0x1ed   :  { %v269_v14 = vsel %vm264_vm2, %v263_v13, 0 }
 0x1ee   :  { %5102 = vmatpush3.bf16.xpose.msra.mxu1 %v269_v14 }
 0x1ef   :  { %5113 = vmatprep.subr.bf16.mxu1 %v6036_v4  ;;  %v411_v19 = vpop.permute.xlu1 %410 }
 0x1f0   :  { %v313_v16 = vpop.permute.xlu0 %312  ;;  %v416_v20 = vsel %vm264_vm2, %v411_v19, 0 }
 0x1f1   :  { %v318_v17 = vsel %vm264_vm2, %v313_v16, 0 }
 0x1f2   :  { %5108 = vmatpush3.bf16.xpose.msra.mxu0 %v318_v17 }
 0x1f3   :  { %5119 = vmatprep.subr.bf16.mxu0 %v6036_v4 }
 0x1f5   :  { %5104 = vmatmul.mubr.msk.bf16.vlgmr.msra.gmra.mrb[0].mxu1 %vm264_vm2, %v6285_v8 }
 0x1f6   :  { %5114 = vmatpush3.bf16.xpose.msra.mxu1 %v367_v18  ;;  %5115 = vmatprep.mubr.msk.bf16.mxu1 %vm6037_vm1, %v6036_v4 }
 0x1f7   :  { %5125 = vmatprep.subr.bf16.mxu1 %v6036_v4 }
 0x1f9   :  { %5110 = vmatmul.mubr.msk.bf16.vlgmr.msra.gmra.mrb[4].mxu0 %vm264_vm2, %v6291_v12 }
 0x1fa   :  { %5120 = vmatpush3.bf16.xpose.msra.mxu0 %v416_v20  ;;  %5121 = vmatprep.mubr.msk.bf16.mxu0 %vm6037_vm1, %v6036_v4 }
 0x1fb   :  { %5131 = vmatprep.subr.bf16.mxu0 %v6036_v4 }
 0x1fd   :  { %5116 = vmatmul.mubr.msk.bf16.vlgmr.msra.gmra.mrb[4].mxu1 %vm264_vm2, %v6283_v6 }
 0x1fe   :  { %5127 = vmatprep.mubr.msk.bf16.mxu1 %vm6037_vm1, %v6036_v4 }
 0x201   :  { %5122 = vmatmul.mubr.msk.bf16.vlgmr.msra.gmra.mrb[8].mxu0 %vm264_vm2, %v6289_v11 }
 0x202   :  { %5133 = vmatprep.mubr.msk.bf16.mxu0 %vm6037_vm1, %v6036_v4 }
 0x2c8   :  { %v305_v25 = vpop.f32.mrb[0].mxu1 }
 0x2c9   :  { %v460_v26 = vsel %vm6322_vm3, %v305_v25, -1e+20  ;;  %v5105_v27 = vpop.f32.mrb[1].mxu1 }
 0x2ca   :  { %v308_v28 = vpop.f32.mrb[2].mxu1  ;;  %v464_v29 = vsel %vm264_vm2, %v460_v26, -inf }
 0x2cb   :  { %v5106_v30 = vpop.f32.mrb[3].mxu1  ;;  %465 = vmax.xlane.f32.xlu0 %v464_v29 }
 0x2cc   :  { %v354_v31 = vpop.f32.mrb[4].mxu0 }
 0x2cd   :  { %v461_v32 = vsel %vm6322_vm3, %v354_v31, -1e+20  ;;  %v5111_v33 = vpop.f32.mrb[5].mxu0 }
 0x2ce   :  { %v357_v34 = vpop.f32.mrb[6].mxu0  ;;  %v467_v35 = vsel %vm264_vm2, %v461_v32, -inf }
 0x2cf   :  { %468 = vmax.xlane.f32.xlu1 %v467_v35  ;;  %v5112_v36 = vpop.f32.mrb[7].mxu0 }
 0x2d0   :  { %v403_v37 = vpop.f32.mrb[4].mxu1 }
 0x2d1   :  { %v462_v38 = vsel %vm6322_vm3, %v403_v37, -1e+20  ;;  %v5117_v39 = vpop.f32.mrb[5].mxu1 }
 0x2d2   :  { %v406_v40 = vpop.f32.mrb[6].mxu1  ;;  %v470_v41 = vsel %vm264_vm2, %v462_v38, -inf }
 0x2d3   :  { %v5118_v42 = vpop.f32.mrb[7].mxu1  ;;  %471 = vmax.xlane.f32.xlu0 %v470_v41 }
 0x2d4   :  { %v452_v43 = vpop.f32.mrb[8].mxu0 }
 0x2d5   :  { %v463_v44 = vsel %vm6322_vm3, %v452_v43, -1e+20  ;;  %v5123_v45 = vpop.f32.mrb[9].mxu0 }
 0x2d6   :  { %v455_v46 = vpop.f32.mrb[10].mxu0  ;;  %v473_v47 = vsel %vm264_vm2, %v463_v44, -inf }
 0x2d7   :  { %474 = vmax.xlane.f32.xlu0 %v473_v47  ;;  %v5124_v48 = vpop.f32.mrb[11].mxu0 }
 0x2e0   :  { %512 = vrot.lane.b32.xlu1 %v6285_v8, %s7226_s22 }
 0x358   :  { %v466_v49 = vpop.xlane.xlu0 %465 }
 0x359   :  { %v476_v50 = vsub.f32 %v460_v26, %v466_v49 }
 0x35b   :  { %v480_v51 = vmul.f32 1.442695, %v476_v50 }
 0x35c   :  { %v469_v52 = vpop.xlane.xlu1 %468 }
 0x35d   :  { %5660 = vpow2.f32 %v480_v51  ;;  %v477_v53 = vsub.f32 %v461_v32, %v469_v52 }
 0x35f   :  { %v482_v54 = vmul.f32 1.442695, %v477_v53 }
 0x360   :  { %v513_v55 = vpop.permute.xlu1 %512  ;;  %v472_v61 = vpop.xlane.xlu0 %471 }
 0x361   :  { %5662 = vpow2.f32 %v482_v54  ;;  %v519_v56 = vsel %vm517_vm4, %v513_v55, 0  ;;  %v478_v63 = vsub.f32 %v462_v38, %v472_v61 }
 0x362   :  { %5126 = vmatpush3.bf16.msra.mxu1 %v519_v56 }
 0x363   :  { %5137 = vmatprep.subr.bf16.mxu1 %v6036_v4  ;;  %v484_v1 = vmul.f32 1.442695, %v478_v63 }
 0x364   :  { %v475_v62 = vpop.xlane.xlu0 %474 }
 0x365   :  { %v479_v0 = vsub.f32 %v463_v44, %v475_v62  ;;  %5664 = vpow2.f32 %v484_v1 }
 0x367   :  { %v5661_v57 = vpop.eup %5660  ;;  %v486_v2 = vmul.f32 1.442695, %v479_v0 }
 0x368   :  { %v488_v58 = vsel %vm264_vm2, %v5661_v57, 0.0 }
 0x369   :  { %489 = vadd.xlane.f32.xlu1 %v488_v58  ;;  %5666 = vpow2.f32 %v486_v2 }
 0x36b   :  { %v5663_v59 = vpop.eup %5662 }
 0x36c   :  { %v491_v60 = vsel %vm264_vm2, %v5663_v59, 0.0 }
 0x36d   :  { %492 = vadd.xlane.f32.xlu0 %v491_v60 }
 0x36f   :  { %v5665_v3 = vpop.eup %5664 }
 0x370   :  { %v494_v7 = vsel %vm264_vm2, %v5665_v3, 0.0 }
 0x373   :  { %v5667_v5 = vpop.eup %5666 }
 0x374   :  { %v497_v9 = vsel %vm264_vm2, %v5667_v5, 0.0 }
 0x37a   :  { %609 = vrot.lane.b32.xlu1 %v6283_v6, %s7226_s22 }
 0x37e   :  { %657 = vrot.lane.b32.xlu1 %v6289_v11, %s7226_s22 }
 0x383   :  { %561 = vrot.lane.b32.xlu0 %v6291_v12, %s7226_s22  ;;  %s6041_s22 = smov 56  }
 0x3a2   :  { %495 = vadd.xlane.f32.xlu1 %v494_v7  ;;  %498 = vadd.xlane.f32.xlu0 %v497_v9 }
 0x3b3   :  { %757 = vrot.lane.b32.xlu1 %v6291_v12, %s6039_s0 }
 0x3b7   :  { %755 = vrot.lane.b32.xlu1 %v6291_v12, %s6040_s18 }
 0x3b8   :  { %707 = vrot.lane.b32.xlu0 %v6285_v8, %s6039_s0 }
 0x3bb   :  { %857 = vrot.lane.b32.xlu1 %v6289_v11, %s6039_s0 }
 0x3bc   :  { %705 = vrot.lane.b32.xlu0 %v6285_v8, %s6040_s18 }
 0x3bf   :  { %855 = vrot.lane.b32.xlu1 %v6289_v11, %s6040_s18 }
 0x3c0   :  { %807 = vrot.lane.b32.xlu0 %v6283_v6, %s6039_s0 }
 0x3c4   :  { %805 = vrot.lane.b32.xlu0 %v6283_v6, %s6040_s18 }
 0x3f6   :  { %v490_v10 = vpop.xlane.xlu1 %489 }
 0x3f7   :  { %5668 = vrcp.f32 %v490_v10 }
 0x3fa   :  { %v493_v13 = vpop.xlane.xlu0 %492  ;;  %v610_v17 = vpop.permute.xlu1 %609 }
 0x3fb   :  { %5670 = vrcp.f32 %v493_v13  ;;  %v615_v21 = vsel %vm517_vm4, %v610_v17, 0 }
 0x3fe   :  { %v562_v14 = vpop.permute.xlu0 %561  ;;  %v658_v25 = vpop.permute.xlu1 %657 }
 0x3ff   :  { %v567_v15 = vsel %vm517_vm4, %v562_v14, 0  ;;  %v663_v27 = vsel %vm517_vm4, %v658_v25, 0 }
 0x400   :  { %5132 = vmatpush3.bf16.msra.mxu0 %v567_v15 }
 0x401   :  { %v5669_v16 = vpop.eup %5668  ;;  %5143 = vmatprep.subr.bf16.mxu0 %v6036_v4 }
 0x402   :  { %v504_v18 = vmul.f32 %v5669_v16, %v5661_v57 }
 0x404   :  { %v508_v19 = vpack.c.bf16 %v504_v18, %v504_v18 }
 0x405   :  { %v5671_v20 = vpop.eup %5670 }
 0x406   :  { %5128 = vmatmul.mubr.msk.bf16.vlgmr.msra.gmra.mrb[8].mxu1 %vm264_vm2, %v508_v19  ;;  %v505_v23 = vmul.f32 %v5671_v20, %v5663_v59 }
 0x407   :  { %5138 = vmatpush3.bf16.msra.mxu1 %v615_v21  ;;  %5139 = vmatprep.mubr.msk.bf16.mxu1 %vm6037_vm1, %v6036_v4 }
 0x408   :  { %v509_v26 = vpack.c.bf16 %v505_v23, %v505_v23  ;;  %5149 = vmatprep.subr.bf16.mxu1 %v6036_v4 }
 0x40a   :  { %5134 = vmatmul.mubr.msk.bf16.vlgmr.msra.gmra.mrb[12].mxu0 %vm264_vm2, %v509_v26 }
 0x40b   :  { %5144 = vmatpush3.bf16.msra.mxu0 %v663_v27  ;;  %5145 = vmatprep.mubr.msk.bf16.mxu0 %vm6037_vm1, %v6036_v4 }
 0x40c   :  { %5155 = vmatprep.subr.bf16.mxu0 %v6036_v4 }
 0x42f   :  { %v496_v28 = vpop.xlane.xlu1 %495  ;;  %v499_v29 = vpop.xlane.xlu0 %498 }
 0x430   :  { %5672 = vrcp.f32 %v496_v28 }
 0x431   :  { %5674 = vrcp.f32 %v499_v29 }
 0x433   :  { %v708_v30 = vpop.permute.xlu0 %707  ;;  %v758_v31 = vpop.permute.xlu1 %757 }
 0x434   :  { %v713_v39 = vsel %vm264_vm2, %v708_v30, 0  ;;  %v763_v41 = vsel %vm264_vm2, %v758_v31, 0 }
 0x437   :  { %v706_v37 = vpop.permute.xlu0 %705  ;;  %v756_v40 = vpop.permute.xlu1 %755 }
 0x43a   :  { %v5673_v32 = vpop.eup %5672 }
 0x43b   :  { %v5675_v33 = vpop.eup %5674  ;;  %v506_v34 = vmul.f32 %v5673_v32, %v5665_v3  ;;  %v808_v42 = vpop.permute.xlu0 %807 }
 0x43c   :  { %v507_v35 = vmul.f32 %v5675_v33, %v5667_v5  ;;  %v858_v43 = vpop.permute.xlu1 %857  ;;  %v813_v44 = vsel %vm264_vm2, %v808_v42, 0 }
 0x43d   :  { %v510_v36 = vpack.c.bf16 %v506_v34, %v506_v34  ;;  %v863_v45 = vsel %vm264_vm2, %v858_v43, 0 }
 0x43e   :  { %v511_v38 = vpack.c.bf16 %v507_v35, %v507_v35 }
 0x43f   :  { %5140 = vmatmul.mubr.msk.bf16.vlgmr.msra.gmra.mrb[12].mxu1 %vm264_vm2, %v510_v36  ;;  %v806_v46 = vpop.permute.xlu0 %805 }
 0x440   :  { %5146 = vmatmul.mubr.msk.bf16.vlgmr.msra.gmra.mrb[16].mxu0 %vm264_vm2, %v511_v38  ;;  %5150 = vmatpush3.bf16.xpose.msra.mxu1 %v713_v39  ;;  %v856_v47 = vpop.permute.xlu1 %855 }
 0x441   :  { %5156 = vmatpush3.bf16.xpose.msra.mxu0 %v763_v41  ;;  %5151 = vmatprep.mubr.msk.bf16.mxu1 %vm6037_vm1, %v6036_v4 }
 0x442   :  { %5157 = vmatprep.mubr.msk.bf16.mxu0 %vm6037_vm1, %v6036_v4  ;;  %5161 = vmatprep.subr.bf16.mxu1 %v6036_v4 }
 0x443   :  { %5167 = vmatprep.subr.bf16.mxu0 %v6036_v4 }
 0x447   :  { %5152 = vmatmul.mubr.msk.bf16.vlgmr.msra.gmra.mrb[16].mxu1 %vm264_vm2, %v706_v37 }
 0x448   :  { %5158 = vmatmul.mubr.msk.bf16.vlgmr.msra.gmra.mrb[20].mxu0 %vm264_vm2, %v756_v40  ;;  %5162 = vmatpush3.bf16.xpose.msra.mxu1 %v813_v44 }
 0x449   :  { %5168 = vmatpush3.bf16.xpose.msra.mxu0 %v863_v45  ;;  %5163 = vmatprep.mubr.msk.bf16.mxu1 %vm6037_vm1, %v6036_v4 }
 0x44a   :  { %5169 = vmatprep.mubr.msk.bf16.mxu0 %vm6037_vm1, %v6036_v4  ;;  %5173 = vmatprep.subr.bf16.mxu1 %v6036_v4 }
 0x44b   :  { %5179 = vmatprep.subr.bf16.mxu0 %v6036_v4 }
 0x44f   :  { %5164 = vmatmul.mubr.msk.bf16.vlgmr.msra.gmra.mrb[20].mxu1 %vm264_vm2, %v806_v46 }
 0x450   :  { %5170 = vmatmul.mubr.msk.bf16.vlgmr.msra.gmra.mrb[24].mxu0 %vm264_vm2, %v856_v47  ;;  %5175 = vmatprep.mubr.msk.bf16.mxu1 %vm6037_vm1, %v6036_v4 }
 0x451   :  { %5181 = vmatprep.mubr.msk.bf16.mxu0 %vm6037_vm1, %v6036_v4 }
 0x4d9   :  { %v6402_v48 = vpop.f32.mrb[8].mxu1 }
 0x4da   :  { %v5129_v49 = vpop.f32.mrb[9].mxu1 }
 0x4db   :  { %v558_v50 = vpop.f32.mrb[10].mxu1 }
 0x4dc   :  { %v5130_v51 = vpop.f32.mrb[11].mxu1 }
 0x4dd   :  { %v6404_v52 = vpop.f32.mrb[12].mxu0 }
 0x4de   :  { %v5135_v53 = vpop.f32.mrb[13].mxu0 }
 0x4df   :  { %v606_v54 = vpop.f32.mrb[14].mxu0 }
 0x4e0   :  { %v5136_v55 = vpop.f32.mrb[15].mxu0 }
 0x512   :  { %v6406_v56 = vpop.f32.mrb[12].mxu1 }
 0x513   :  { %v6408_v57 = vpop.f32.mrb[16].mxu0  ;;  %v5141_v58 = vpop.f32.mrb[13].mxu1 }
 0x514   :  { %v5147_v59 = vpop.f32.mrb[17].mxu0  ;;  %v654_v60 = vpop.f32.mrb[14].mxu1 }
 0x515   :  { %v702_v61 = vpop.f32.mrb[18].mxu0  ;;  %v5142_v62 = vpop.f32.mrb[15].mxu1 }
 0x516   :  { %v5148_v63 = vpop.f32.mrb[19].mxu0 }
 0x51a   :  { %v749_v0 = vpop.f32.mrb[16].mxu1 }
 0x51b   :  { %v905_v1 = vsel %vm6322_vm3, %v749_v0, -1e+20  ;;  %v799_v2 = vpop.f32.mrb[20].mxu0  ;;  %v5153_v3 = vpop.f32.mrb[17].mxu1 }
 0x51c   :  { %v906_v5 = vsel %vm6322_vm3, %v799_v2, -1e+20  ;;  %v5159_v7 = vpop.f32.mrb[21].mxu0  ;;  %v752_v9 = vpop.f32.mrb[18].mxu1  ;;  %v909_v10 = vsel %vm264_vm2, %v905_v1, -inf }
 0x51d   :  { %v802_v13 = vpop.f32.mrb[22].mxu0  ;;  %v912_v14 = vsel %vm264_vm2, %v906_v5, -inf  ;;  %910 = vmax.xlane.f32.xlu0 %v909_v10  ;;  %v5154_v15 = vpop.f32.mrb[19].mxu1 }
 0x51e   :  { %913 = vmax.xlane.f32.xlu1 %v912_v14  ;;  %v5160_v16 = vpop.f32.mrb[23].mxu0 }
 0x522   :  { %v849_v17 = vpop.f32.mrb[20].mxu1 }
 0x523   :  { %v907_v18 = vsel %vm6322_vm3, %v849_v17, -1e+20  ;;  %v899_v19 = vpop.f32.mrb[24].mxu0  ;;  %v5165_v20 = vpop.f32.mrb[21].mxu1 }
 0x524   :  { %v5171_v21 = vpop.f32.mrb[25].mxu0  ;;  %v852_v23 = vpop.f32.mrb[22].mxu1  ;;  %v915_v25 = vsel %vm264_vm2, %v907_v18, -inf  ;;  %v908_v26 = vsel %vm6322_vm3, %v899_v19, -1e+20 }
 0x525   :  { %v902_v27 = vpop.f32.mrb[26].mxu0  ;;  %916 = vmax.xlane.f32.xlu0 %v915_v25  ;;  %v5166_v28 = vpop.f32.mrb[23].mxu1  ;;  %v918_v30 = vsel %vm264_vm2, %v908_v26, -inf }
 0x526   :  { %v5172_v29 = vpop.f32.mrb[27].mxu0 }
 0x529   :  { %919 = vmax.xlane.f32.xlu0 %v918_v30 }
 0x52f   :  { %957 = vrot.lane.b32.xlu1 %v6285_v8, %s6041_s22 }
 0x5aa   :  { %v911_v31 = vpop.xlane.xlu0 %910 }
 0x5ab   :  { %v914_v32 = vpop.xlane.xlu1 %913  ;;  %v921_v33 = vsub.f32 %v905_v1, %v911_v31 }
 0x5ac   :  { %v922_v34 = vsub.f32 %v906_v5, %v914_v32 }
 0x5ad   :  { %v925_v35 = vmul.f32 1.442695, %v921_v33 }
 0x5ae   :  { %v927_v36 = vmul.f32 1.442695, %v922_v34 }
 0x5af   :  { %5676 = vpow2.f32 %v925_v35  ;;  %v958_v37 = vpop.permute.xlu1 %957 }
 0x5b0   :  { %5678 = vpow2.f32 %v927_v36  ;;  %v963_v38 = vsel %vm517_vm4, %v958_v37, 0 }
 0x5b1   :  { %5174 = vmatpush3.bf16.msra.mxu1 %v963_v38 }
 0x5b2   :  { %5185 = vmatprep.subr.bf16.mxu1 %v6036_v4  ;;  %v917_v43 = vpop.xlane.xlu0 %916 }
 0x5b3   :  { %v923_v46 = vsub.f32 %v907_v18, %v917_v43 }
 0x5b5   :  { %v929_v49 = vmul.f32 1.442695, %v923_v46 }
 0x5b6   :  { %v920_v44 = vpop.xlane.xlu0 %919 }
 0x5b7   :  { %v924_v45 = vsub.f32 %v908_v26, %v920_v44 }
 0x5b9   :  { %v5677_v39 = vpop.eup %5676  ;;  %v931_v47 = vmul.f32 1.442695, %v924_v45 }
 0x5ba   :  { %v5679_v40 = vpop.eup %5678  ;;  %v933_v41 = vsel %vm264_vm2, %v5677_v39, 0.0 }
 0x5bb   :  { %v936_v42 = vsel %vm264_vm2, %v5679_v40, 0.0  ;;  %934 = vadd.xlane.f32.xlu1 %v933_v41  ;;  %5680 = vpow2.f32 %v931_v47 }
 0x5bc   :  { %937 = vadd.xlane.f32.xlu0 %v936_v42  ;;  %5682 = vpow2.f32 %v929_v49 }
 0x5c5   :  { %v5681_v50 = vpop.eup %5680 }
 0x5c6   :  { %v5683_v51 = vpop.eup %5682  ;;  %v942_v53 = vsel %vm264_vm2, %v5681_v50, 0.0 }
 0x5c7   :  { %v939_v54 = vsel %vm264_vm2, %v5683_v51, 0.0 }
 0x5cc   :  { %1053 = vrot.lane.b32.xlu1 %v6283_v6, %s6041_s22 }
 0x5d0   :  { %1101 = vrot.lane.b32.xlu1 %v6289_v11, %s6041_s22 }
 0x5d2   :  { %1005 = vrot.lane.b32.xlu0 %v6291_v12, %s6041_s22 }
 0x5f1   :  { %943 = vadd.xlane.f32.xlu0 %v942_v53 }
 0x5f4   :  { %940 = vadd.xlane.f32.xlu1 %v939_v54 }
 0x605   :  { %1201 = vrot.lane.b32.xlu1 %v6291_v12, %s6042_s25 }
 0x607   :  { %1151 = vrot.lane.b32.xlu0 %v6285_v8, %s6042_s25 }
 0x609   :  { %1199 = vrot.lane.b32.xlu1 %v6291_v12, %s6043_s19 }
 0x60b   :  { %1149 = vrot.lane.b32.xlu0 %v6285_v8, %s6043_s19 }
 0x60d   :  { %1301 = vrot.lane.b32.xlu1 %v6289_v11, %s6042_s25 }
 0x60f   :  { %1251 = vrot.lane.b32.xlu0 %v6283_v6, %s6042_s25 }
 0x611   :  { %1299 = vrot.lane.b32.xlu1 %v6289_v11, %s6043_s19 }
 0x613   :  { %1249 = vrot.lane.b32.xlu0 %v6283_v6, %s6043_s19 }
 0x648   :  { %v935_v55 = vpop.xlane.xlu1 %934 }
 0x649   :  { %5684 = vrcp.f32 %v935_v55  ;;  %v938_v58 = vpop.xlane.xlu0 %937 }
 0x64a   :  { %5686 = vrcp.f32 %v938_v58 }
 0x64c   :  { %v1054_v61 = vpop.permute.xlu1 %1053 }
 0x64d   :  { %v1006_v59 = vpop.permute.xlu0 %1005  ;;  %v1059_v7 = vsel %vm517_vm4, %v1054_v61, 0 }
 0x64e   :  { %v1011_v60 = vsel %vm517_vm4, %v1006_v59, 0 }
 0x64f   :  { %5180 = vmatpush3.bf16.msra.mxu0 %v1011_v60 }
 0x650   :  { %5191 = vmatprep.subr.bf16.mxu0 %v6036_v4  ;;  %v1102_v2 = vpop.permute.xlu1 %1101 }
 0x651   :  { %v1107_v9 = vsel %vm517_vm4, %v1102_v2, 0 }
 0x653   :  { %v5685_v62 = vpop.eup %5684 }
 0x654   :  { %v5687_v63 = vpop.eup %5686  ;;  %v949_v0 = vmul.f32 %v5685_v62, %v5677_v39 }
 0x655   :  { %v950_v1 = vmul.f32 %v5687_v63, %v5679_v40 }
 0x656   :  { %v953_v3 = vpack.c.bf16 %v949_v0, %v949_v0 }
 0x657   :  { %v954_v5 = vpack.c.bf16 %v950_v1, %v950_v1 }
 0x658   :  { %5176 = vmatmul.mubr.msk.bf16.vlgmr.msra.gmra.mrb[24].mxu1 %vm264_vm2, %v953_v3 }
 0x659   :  { %5182 = vmatmul.mubr.msk.bf16.vlgmr.msra.gmra.mrb[28].mxu0 %vm264_vm2, %v954_v5  ;;  %5186 = vmatpush3.bf16.msra.mxu1 %v1059_v7 }
 0x65a   :  { %5192 = vmatpush3.bf16.msra.mxu0 %v1107_v9  ;;  %5193 = vmatprep.mubr.msk.bf16.mxu0 %vm6037_vm1, %v6036_v4 }
 0x65b   :  { %5203 = vmatprep.subr.bf16.mxu0 %v6036_v4  ;;  %5187 = vmatprep.mubr.msk.bf16.mxu1 %vm6037_vm1, %v6036_v4 }
 0x65c   :  { %5197 = vmatprep.subr.bf16.mxu1 %v6036_v4 }
 0x67e   :  { %v944_v10 = vpop.xlane.xlu0 %943 }
 0x67f   :  { %5688 = vrcp.f32 %v944_v10 }
 0x681   :  { %v941_v13 = vpop.xlane.xlu1 %940 }
 0x682   :  { %5690 = vrcp.f32 %v941_v13  ;;  %v1152_v16 = vpop.permute.xlu0 %1151 }
 0x683   :  { %v1157_v27 = vsel %vm264_vm2, %v1152_v16, 0 }
 0x685   :  { %v1202_v14 = vpop.permute.xlu1 %1201 }
 0x686   :  { %v1207_v23 = vsel %vm264_vm2, %v1202_v14, 0  ;;  %v1150_v26 = vpop.permute.xlu0 %1149 }
 0x689   :  { %v5689_v15 = vpop.eup %5688  ;;  %v1200_v20 = vpop.permute.xlu1 %1199 }
 0x68a   :  { %v952_v17 = vmul.f32 %v5689_v15, %v5681_v50  ;;  %v1252_v29 = vpop.permute.xlu0 %1251 }
 0x68b   :  { %v1257_v31 = vsel %vm264_vm2, %v1252_v29, 0 }
 0x68c   :  { %v5691_v18 = vpop.eup %5690  ;;  %v956_v19 = vpack.c.bf16 %v952_v17, %v952_v17 }
 0x68d   :  { %v951_v21 = vmul.f32 %v5691_v18, %v5683_v51  ;;  %v1302_v28 = vpop.permute.xlu1 %1301 }
 0x68e   :  { %5194 = vmatmul.mubr.msk.bf16.vlgmr.msra.gmra.mrb[32].mxu0 %vm264_vm2, %v956_v19  ;;  %v1307_v30 = vsel %vm264_vm2, %v1302_v28, 0  ;;  %v1250_v33 = vpop.permute.xlu0 %1249 }
 0x68f   :  { %5204 = vmatpush3.bf16.xpose.msra.mxu0 %v1207_v23  ;;  %v955_v25 = vpack.c.bf16 %v951_v21, %v951_v21  ;;  %5205 = vmatprep.mubr.msk.bf16.mxu0 %vm6037_vm1, %v6036_v4 }
 0x690   :  { %5215 = vmatprep.subr.bf16.mxu0 %v6036_v4 }
 0x691   :  { %5188 = vmatmul.mubr.msk.bf16.vlgmr.msra.gmra.mrb[28].mxu1 %vm264_vm2, %v955_v25  ;;  %v1300_v32 = vpop.permute.xlu1 %1299 }
 0x692   :  { %5198 = vmatpush3.bf16.xpose.msra.mxu1 %v1157_v27  ;;  %5199 = vmatprep.mubr.msk.bf16.mxu1 %vm6037_vm1, %v6036_v4 }
 0x693   :  { %5209 = vmatprep.subr.bf16.mxu1 %v6036_v4 }
 0x696   :  { %5206 = vmatmul.mubr.msk.bf16.vlgmr.msra.gmra.mrb[36].mxu0 %vm264_vm2, %v1200_v20 }
 0x697   :  { %5216 = vmatpush3.bf16.xpose.msra.mxu0 %v1307_v30  ;;  %5217 = vmatprep.mubr.msk.bf16.mxu0 %vm6037_vm1, %v6036_v4 }
 0x698   :  { %5227 = vmatprep.subr.bf16.mxu0 %v6036_v4 }
 0x699   :  { %5200 = vmatmul.mubr.msk.bf16.vlgmr.msra.gmra.mrb[32].mxu1 %vm264_vm2, %v1150_v26 }
 0x69a   :  { %5210 = vmatpush3.bf16.xpose.msra.mxu1 %v1257_v31  ;;  %5211 = vmatprep.mubr.msk.bf16.mxu1 %vm6037_vm1, %v6036_v4 }
 0x69b   :  { %5221 = vmatprep.subr.bf16.mxu1 %v6036_v4 }
 0x69e   :  { %5218 = vmatmul.mubr.msk.bf16.vlgmr.msra.gmra.mrb[40].mxu0 %vm264_vm2, %v1300_v32 }
 0x69f   :  { %5229 = vmatprep.mubr.msk.bf16.mxu0 %vm6037_vm1, %v6036_v4 }
 0x6a1   :  { %5212 = vmatmul.mubr.msk.bf16.vlgmr.msra.gmra.mrb[36].mxu1 %vm264_vm2, %v1250_v33 }
 0x6a2   :  { %5223 = vmatprep.mubr.msk.bf16.mxu1 %vm6037_vm1, %v6036_v4 }
 0x72b   :  { %v6482_v34 = vpop.f32.mrb[24].mxu1 }
 0x72c   :  { %v6484_v35 = vpop.f32.mrb[28].mxu0  ;;  %v5177_v36 = vpop.f32.mrb[25].mxu1 }
 0x72d   :  { %v5574_v37 = vpack.i.bf16 %v6484_v35, %v6482_v34  ;;  %v5183_v38 = vpop.f32.mrb[29].mxu0  ;;  %v1002_v39 = vpop.f32.mrb[26].mxu1 }
 0x72e   :  { %v1050_v40 = vpop.f32.mrb[30].mxu0  ;;  %v5178_v41 = vpop.f32.mrb[27].mxu1 }
 0x72f   :  { %v5184_v42 = vpop.f32.mrb[31].mxu0 }
 0x761   :  { %v6488_v43 = vpop.f32.mrb[32].mxu0 }
 0x762   :  { %v5195_v44 = vpop.f32.mrb[33].mxu0 }
 0x763   :  { %v1146_v45 = vpop.f32.mrb[34].mxu0 }
 0x764   :  { %v5196_v46 = vpop.f32.mrb[35].mxu0  ;;  %v6490_v47 = vpop.f32.mrb[28].mxu1 }
 0x765   :  { %v5579_v49 = vpack.i.bf16 %v6488_v43, %v6490_v47  ;;  %v5189_v50 = vpop.f32.mrb[29].mxu1 }
 0x766   :  { %v1098_v51 = vpop.f32.mrb[30].mxu1 }
 0x767   :  { %v5190_v53 = vpop.f32.mrb[31].mxu1 }
 0x769   :  { %v1243_v54 = vpop.f32.mrb[36].mxu0 }
 0x76a   :  { %v1350_v55 = vsel %vm6322_vm3, %v1243_v54, -1e+20  ;;  %v5207_v58 = vpop.f32.mrb[37].mxu0 }
 0x76b   :  { %v1246_v59 = vpop.f32.mrb[38].mxu0  ;;  %v1356_v60 = vsel %vm264_vm2, %v1350_v55, -inf }
 0x76c   :  { %1357 = vmax.xlane.f32.xlu1 %v1356_v60  ;;  %v5208_v61 = vpop.f32.mrb[39].mxu0  ;;  %v1193_v62 = vpop.f32.mrb[32].mxu1 }
 0x76d   :  { %v1349_v63 = vsel %vm6322_vm3, %v1193_v62, -1e+20  ;;  %v5201_v0 = vpop.f32.mrb[33].mxu1 }
 0x76e   :  { %v1196_v1 = vpop.f32.mrb[34].mxu1  ;;  %v1353_v2 = vsel %vm264_vm2, %v1349_v63, -inf }
 0x76f   :  { %1354 = vmax.xlane.f32.xlu0 %v1353_v2  ;;  %v5202_v3 = vpop.f32.mrb[35].mxu1 }
 0x771   :  { %v1343_v5 = vpop.f32.mrb[40].mxu0 }
 0x772   :  { %v5219_v7 = vpop.f32.mrb[41].mxu0  ;;  %v1352_v18 = vsel %vm6322_vm3, %v1343_v5, -1e+20 }
 0x773   :  { %v1346_v9 = vpop.f32.mrb[42].mxu0  ;;  %v1362_v20 = vsel %vm264_vm2, %v1352_v18, -inf }
 0x774   :  { %v5220_v10 = vpop.f32.mrb[43].mxu0  ;;  %v1293_v13 = vpop.f32.mrb[36].mxu1 }
 0x775   :  { %v1351_v14 = vsel %vm6322_vm3, %v1293_v13, -1e+20  ;;  %v5213_v15 = vpop.f32.mrb[37].mxu1 }
 0x776   :  { %v1296_v16 = vpop.f32.mrb[38].mxu1  ;;  %v1359_v17 = vsel %vm264_vm2, %v1351_v14, -inf }
 0x777   :  { %1360 = vmax.xlane.f32.xlu0 %v1359_v17  ;;  %v5214_v19 = vpop.f32.mrb[39].mxu1 }
 0x77b   :  { %1363 = vmax.xlane.f32.xlu0 %v1362_v20 }
 0x77d   :  { %1401 = vrot.lane.b32.xlu1 %v6285_v8, %s6044_s27 }
 0x7f9   :  { %v1358_v21 = vpop.xlane.xlu1 %1357 }
 0x7fa   :  { %v1366_v23 = vsub.f32 %v1350_v55, %v1358_v21 }
 0x7fc   :  { %v1371_v25 = vmul.f32 1.442695, %v1366_v23  ;;  %v1355_v26 = vpop.xlane.xlu0 %1354 }
 0x7fd   :  { %v1402_v27 = vpop.permute.xlu1 %1401  ;;  %v1365_v28 = vsub.f32 %v1349_v63, %v1355_v26 }
 0x7fe   :  { %5692 = vpow2.f32 %v1371_v25  ;;  %v1407_v29 = vsel %vm517_vm4, %v1402_v27, 0 }
 0x7ff   :  { %v1369_v30 = vmul.f32 1.442695, %v1365_v28  ;;  %5222 = vmatpush3.bf16.msra.mxu1 %v1407_v29 }
 0x800   :  { %5233 = vmatprep.subr.bf16.mxu1 %v6036_v4 }
 0x801   :  { %5694 = vpow2.f32 %v1369_v30 }
 0x804   :  { %v1361_v38 = vpop.xlane.xlu0 %1360 }
 0x805   :  { %v1367_v42 = vsub.f32 %v1351_v14, %v1361_v38 }
 0x807   :  { %v1373_v44 = vmul.f32 1.442695, %v1367_v42 }
 0x808   :  { %v5693_v31 = vpop.eup %5692  ;;  %v1364_v39 = vpop.xlane.xlu0 %1363 }
 0x809   :  { %v1380_v32 = vsel %vm264_vm2, %v5693_v31, 0.0  ;;  %v1368_v40 = vsub.f32 %v1352_v18, %v1364_v39 }
 0x80a   :  { %1381 = vadd.xlane.f32.xlu0 %v1380_v32 }
 0x80b   :  { %v5695_v33 = vpop.eup %5694  ;;  %v1375_v41 = vmul.f32 1.442695, %v1368_v40 }
 0x80c   :  { %v1377_v36 = vsel %vm264_vm2, %v5695_v33, 0.0 }
 0x80d   :  { %1378 = vadd.xlane.f32.xlu1 %v1377_v36  ;;  %5696 = vpow2.f32 %v1375_v41 }
 0x80e   :  { %5698 = vpow2.f32 %v1373_v44 }
 0x817   :  { %v5697_v45 = vpop.eup %5696 }
 0x818   :  { %v1386_v46 = vsel %vm264_vm2, %v5697_v45, 0.0  ;;  %v5699_v50 = vpop.eup %5698 }
 0x819   :  { %v1383_v51 = vsel %vm264_vm2, %v5699_v50, 0.0 }
 0x81e   :  { %1497 = vrot.lane.b32.xlu1 %v6283_v6, %s6044_s27 }
 0x820   :  { %1449 = vrot.lane.b32.xlu0 %v6291_v12, %s6044_s27 }
 0x822   :  { %1545 = vrot.lane.b32.xlu1 %v6289_v11, %s6044_s27 }
 0x83f   :  { %1387 = vadd.xlane.f32.xlu0 %v1386_v46 }
 0x846   :  { %1384 = vadd.xlane.f32.xlu1 %v1383_v51 }
 0x855   :  { %1595 = vrot.lane.b32.xlu0 %v6285_v8, %s6045_s4 }
 0x857   :  { %1645 = vrot.lane.b32.xlu1 %v6291_v12, %s6045_s4 }
 0x859   :  { %1593 = vrot.lane.b32.xlu0 %v6285_v8, %s6046_s21 }
 0x85b   :  { %1643 = vrot.lane.b32.xlu1 %v6291_v12, %s6046_s21 }
 0x85d   :  { %1695 = vrot.lane.b32.xlu0 %v6283_v6, %s6045_s4 }
 0x85f   :  { %1745 = vrot.lane.b32.xlu1 %v6289_v11, %s6045_s4  ;;  %s6051_s4 = smov [#allocation16]  }
 0x861   :  { %1693 = vrot.lane.b32.xlu0 %v6283_v6, %s6046_s21 }
 0x863   :  { %1743 = vrot.lane.b32.xlu1 %v6289_v11, %s6046_s21 }
 0x897   :  { %v1382_v53 = vpop.xlane.xlu0 %1381 }
 0x898   :  { %5700 = vrcp.f32 %v1382_v53 }
 0x89a   :  { %v1379_v54 = vpop.xlane.xlu1 %1378 }
 0x89b   :  { %5702 = vrcp.f32 %v1379_v54  ;;  %v1450_v55 = vpop.permute.xlu0 %1449 }
 0x89c   :  { %v1455_v58 = vsel %vm517_vm4, %v1450_v55, 0 }
 0x89d   :  { %5228 = vmatpush3.bf16.msra.mxu0 %v1455_v58 }
 0x89e   :  { %v1498_v59 = vpop.permute.xlu1 %1497  ;;  %5239 = vmatprep.subr.bf16.mxu0 %v6036_v4 }
 0x89f   :  { %v1503_v5 = vsel %vm517_vm4, %v1498_v59, 0 }
 0x8a2   :  { %v5701_v60 = vpop.eup %5700  ;;  %v1546_v62 = vpop.permute.xlu1 %1545 }
 0x8a3   :  { %v1394_v61 = vmul.f32 %v5701_v60, %v5693_v31  ;;  %v1551_v2 = vsel %vm517_vm4, %v1546_v62, 0 }
 0x8a5   :  { %v5703_v63 = vpop.eup %5702  ;;  %v1398_v0 = vpack.c.bf16 %v1394_v61, %v1394_v61 }
 0x8a6   :  { %v1393_v1 = vmul.f32 %v5703_v63, %v5695_v33 }
 0x8a7   :  { %5230 = vmatmul.mubr.msk.bf16.vlgmr.msra.gmra.mrb[44].mxu0 %vm264_vm2, %v1398_v0 }
 0x8a8   :  { %5240 = vmatpush3.bf16.msra.mxu0 %v1551_v2  ;;  %v1397_v3 = vpack.c.bf16 %v1393_v1, %v1393_v1  ;;  %5241 = vmatprep.mubr.msk.bf16.mxu0 %vm6037_vm1, %v6036_v4 }
 0x8a9   :  { %5251 = vmatprep.subr.bf16.mxu0 %v6036_v4 }
 0x8aa   :  { %5224 = vmatmul.mubr.msk.bf16.vlgmr.msra.gmra.mrb[40].mxu1 %vm264_vm2, %v1397_v3 }
 0x8ab   :  { %5234 = vmatpush3.bf16.msra.mxu1 %v1503_v5  ;;  %5235 = vmatprep.mubr.msk.bf16.mxu1 %vm6037_vm1, %v6036_v4 }
 0x8ac   :  { %5245 = vmatprep.subr.bf16.mxu1 %v6036_v4 }
 0x8cc   :  { %v1388_v7 = vpop.xlane.xlu0 %1387 }
 0x8cd   :  { %5704 = vrcp.f32 %v1388_v7 }
 0x8d0   :  { %v1596_v17 = vpop.permute.xlu0 %1595 }
 0x8d1   :  { %v1601_v26 = vsel %vm264_vm2, %v1596_v17, 0 }
 0x8d3   :  { %v1385_v9 = vpop.xlane.xlu1 %1384 }
 0x8d4   :  { %5706 = vrcp.f32 %v1385_v9  ;;  %v1594_v25 = vpop.permute.xlu0 %1593 }
 0x8d7   :  { %v5705_v10 = vpop.eup %5704  ;;  %v1646_v13 = vpop.permute.xlu1 %1645 }
 0x8d8   :  { %v1396_v14 = vmul.f32 %v5705_v10, %v5697_v45  ;;  %v1651_v18 = vsel %vm264_vm2, %v1646_v13, 0  ;;  %v1696_v28 = vpop.permute.xlu0 %1695 }
 0x8d9   :  { %v1701_v29 = vsel %vm264_vm2, %v1696_v28, 0 }
 0x8da   :  { %v1400_v15 = vpack.c.bf16 %v1396_v14, %v1396_v14 }
 0x8db   :  { %v1644_v16 = vpop.permute.xlu1 %1643 }
 0x8dc   :  { %5242 = vmatmul.mubr.msk.bf16.vlgmr.msra.gmra.mrb[48].mxu0 %vm264_vm2, %v1400_v15  ;;  %v1694_v31 = vpop.permute.xlu0 %1693 }
 0x8dd   :  { %5252 = vmatpush3.bf16.xpose.msra.mxu0 %v1651_v18  ;;  %5253 = vmatprep.mubr.msk.bf16.mxu0 %vm6037_vm1, %v6036_v4 }
 0x8de   :  { %v5707_v19 = vpop.eup %5706  ;;  %5263 = vmatprep.subr.bf16.mxu0 %v6036_v4 }
 0x8df   :  { %v1395_v20 = vmul.f32 %v5707_v19, %v5699_v50  ;;  %v1746_v21 = vpop.permute.xlu1 %1745 }
 0x8e0   :  { %v1751_v27 = vsel %vm264_vm2, %v1746_v21, 0 }
 0x8e1   :  { %v1399_v23 = vpack.c.bf16 %v1395_v20, %v1395_v20 }
 0x8e3   :  { %5236 = vmatmul.mubr.msk.bf16.vlgmr.msra.gmra.mrb[44].mxu1 %vm264_vm2, %v1399_v23  ;;  %v1744_v30 = vpop.permute.xlu1 %1743 }
 0x8e4   :  { %5246 = vmatpush3.bf16.xpose.msra.mxu1 %v1601_v26  ;;  %5254 = vmatmul.mubr.msk.bf16.vlgmr.msra.gmra.mrb[52].mxu0 %vm264_vm2, %v1644_v16 }
 0x8e5   :  { %5264 = vmatpush3.bf16.xpose.msra.mxu0 %v1751_v27  ;;  %5247 = vmatprep.mubr.msk.bf16.mxu1 %vm6037_vm1, %v6036_v4 }
 0x8e6   :  { %5257 = vmatprep.subr.bf16.mxu1 %v6036_v4  ;;  %5265 = vmatprep.mubr.msk.bf16.mxu0 %vm6037_vm1, %v6036_v4 }
 0x8e7   :  { %5275 = vmatprep.subr.bf16.mxu0 %v6036_v4 }
 0x8eb   :  { %5248 = vmatmul.mubr.msk.bf16.vlgmr.msra.gmra.mrb[48].mxu1 %vm264_vm2, %v1594_v25 }
 0x8ec   :  { %5258 = vmatpush3.bf16.xpose.msra.mxu1 %v1701_v29  ;;  %5266 = vmatmul.mubr.msk.bf16.vlgmr.msra.gmra.mrb[56].mxu0 %vm264_vm2, %v1744_v30 }
 0x8ed   :  { %5259 = vmatprep.mubr.msk.bf16.mxu1 %vm6037_vm1, %v6036_v4  ;;  %5269 = vmatprep.subr.bf16.mxu1 %v6036_v4 }
 0x8ee   :  { %5277 = vmatprep.mubr.msk.bf16.mxu0 %vm6037_vm1, %v6036_v4 }
 0x8f3   :  { %5260 = vmatmul.mubr.msk.bf16.vlgmr.msra.gmra.mrb[52].mxu1 %vm264_vm2, %v1694_v31 }
 0x8f4   :  { %5271 = vmatprep.mubr.msk.bf16.mxu1 %vm6037_vm1, %v6036_v4 }
 0x97a   :  { %v6566_v32 = vpop.f32.mrb[44].mxu0 }
 0x97b   :  { %v5231_v33 = vpop.f32.mrb[45].mxu0 }
 0x97c   :  { %v1494_v36 = vpop.f32.mrb[46].mxu0 }
 0x97d   :  { %v5232_v38 = vpop.f32.mrb[47].mxu0  ;;  %v6568_v39 = vpop.f32.mrb[40].mxu1 }
 0x97e   :  { %v5584_v40 = vpack.i.bf16 %v6566_v32, %v6568_v39  ;;  %v5225_v41 = vpop.f32.mrb[41].mxu1 }
 0x97f   :  { %v1446_v42 = vpop.f32.mrb[42].mxu1 }
 0x980   :  { %v5226_v44 = vpop.f32.mrb[43].mxu1 }
 0x9af   :  { %v6572_v45 = vpop.f32.mrb[48].mxu0 }
 0x9b0   :  { %v5243_v46 = vpop.f32.mrb[49].mxu0 }
 0x9b1   :  { %v1590_v50 = vpop.f32.mrb[50].mxu0 }
 0x9b2   :  { %v5244_v51 = vpop.f32.mrb[51].mxu0 }
 0x9b6   :  { %v6574_v53 = vpop.f32.mrb[44].mxu1 }
 0x9b7   :  { %v5589_v54 = vpack.i.bf16 %v6572_v45, %v6574_v53  ;;  %v1687_v55 = vpop.f32.mrb[52].mxu0  ;;  %v5237_v58 = vpop.f32.mrb[45].mxu1 }
 0x9b8   :  { %v1794_v59 = vsel %vm6322_vm3, %v1687_v55, -1e+20  ;;  %v5255_v60 = vpop.f32.mrb[53].mxu0  ;;  %v1542_v61 = vpop.f32.mrb[46].mxu1 }
 0x9b9   :  { %v1690_v62 = vpop.f32.mrb[54].mxu0  ;;  %v5238_v63 = vpop.f32.mrb[47].mxu1  ;;  %v1800_v0 = vsel %vm264_vm2, %v1794_v59, -inf }
 0x9ba   :  { %1801 = vmax.xlane.f32.xlu1 %v1800_v0  ;;  %v5256_v1 = vpop.f32.mrb[55].mxu0 }
 0x9be   :  { %v1637_v2 = vpop.f32.mrb[48].mxu1 }
 0x9bf   :  { %v1793_v3 = vsel %vm6322_vm3, %v1637_v2, -1e+20  ;;  %v1787_v5 = vpop.f32.mrb[56].mxu0  ;;  %v5249_v7 = vpop.f32.mrb[49].mxu1 }
 0x9c0   :  { %v5267_v9 = vpop.f32.mrb[57].mxu0  ;;  %v1640_v10 = vpop.f32.mrb[50].mxu1  ;;  %v1797_v13 = vsel %vm264_vm2, %v1793_v3, -inf  ;;  %v1796_v23 = vsel %vm6322_vm3, %v1787_v5, -1e+20 }
 0x9c1   :  { %v1790_v14 = vpop.f32.mrb[58].mxu0  ;;  %1798 = vmax.xlane.f32.xlu0 %v1797_v13  ;;  %v5250_v15 = vpop.f32.mrb[51].mxu1  ;;  %v1806_v26 = vsel %vm264_vm2, %v1796_v23, -inf  ;;  %v5638_v9 = vld [vmem:[#allocation11] sm:$0xff]  }
 0x9c2   :  { %v5268_v16 = vpop.f32.mrb[59].mxu0 }
 0x9c3   :  { %v5639_v16 = vld [vmem:[#allocation11 + $0x8] sm:$0xff]  }
 0x9c6   :  { %v1737_v17 = vpop.f32.mrb[52].mxu1 }
 0x9c7   :  { %v1795_v18 = vsel %vm6322_vm3, %v1737_v17, -1e+20  ;;  %v5261_v19 = vpop.f32.mrb[53].mxu1 }
 0x9c8   :  { %v1740_v20 = vpop.f32.mrb[54].mxu1  ;;  %v1803_v21 = vsel %vm264_vm2, %v1795_v18, -inf }
 0x9c9   :  { %1804 = vmax.xlane.f32.xlu0 %v1803_v21  ;;  %v5262_v25 = vpop.f32.mrb[55].mxu1 }
 0x9cb   :  { %1845 = vrot.lane.b32.xlu1 %v6285_v8, %s6047_s28 }
 0x9cd   :  { %1807 = vmax.xlane.f32.xlu0 %v1806_v26 }
 0xa47   :  { %v1802_v27 = vpop.xlane.xlu1 %1801 }
 0xa48   :  { %v1810_v28 = vsub.f32 %v1794_v59, %v1802_v27 }
 0xa4a   :  { %v1815_v29 = vmul.f32 1.442695, %v1810_v28 }
 0xa4b   :  { %v1846_v30 = vpop.permute.xlu1 %1845 }
 0xa4c   :  { %5708 = vpow2.f32 %v1815_v29  ;;  %v1851_v31 = vsel %vm517_vm4, %v1846_v30, 0 }
 0xa4d   :  { %5270 = vmatpush3.bf16.msra.mxu1 %v1851_v31 }
 0xa4e   :  { %v1799_v33 = vpop.xlane.xlu0 %1798  ;;  %5281 = vmatprep.subr.bf16.mxu1 %v6036_v4 }
 0xa4f   :  { %v1809_v24 = vsub.f32 %v1793_v3, %v1799_v33 }
 0xa51   :  { %v1813_v36 = vmul.f32 1.442695, %v1809_v24 }
 0xa53   :  { %5710 = vpow2.f32 %v1813_v36 }
 0xa56   :  { %v5709_v38 = vpop.eup %5708  ;;  %v1805_v41 = vpop.xlane.xlu0 %1804 }
 0xa57   :  { %v1811_v8 = vsub.f32 %v1795_v18, %v1805_v41  ;;  %v1824_v42 = vsel %vm264_vm2, %v5709_v38, 0.0 }
 0xa58   :  { %1825 = vadd.xlane.f32.xlu0 %v1824_v42 }
 0xa59   :  { %v1817_v44 = vmul.f32 1.442695, %v1811_v8 }
 0xa5a   :  { %v1808_v46 = vpop.xlane.xlu0 %1807 }
 0xa5b   :  { %5712 = vpow2.f32 %v1817_v44  ;;  %v1812_v50 = vsub.f32 %v1796_v23, %v1808_v46 }
 0xa5d   :  { %v5711_v51 = vpop.eup %5710  ;;  %v1819_v55 = vmul.f32 1.442695, %v1812_v50 }
 0xa5e   :  { %v1821_v58 = vsel %vm264_vm2, %v5711_v51, 0.0 }
 0xa5f   :  { %5714 = vpow2.f32 %v1819_v55  ;;  %1822 = vadd.xlane.f32.xlu1 %v1821_v58 }
 0xa65   :  { %v5713_v59 = vpop.eup %5712 }
 0xa66   :  { %v1827_v60 = vsel %vm264_vm2, %v5713_v59, 0.0 }
 0xa67   :  { %1828 = vadd.xlane.f32.xlu1 %v1827_v60 }
 0xa69   :  { %v5715_v61 = vpop.eup %5714 }
 0xa6a   :  { %v1830_v62 = vsel %vm264_vm2, %v5715_v61, 0.0 }
 0xa6b   :  { %1831 = vadd.xlane.f32.xlu0 %v1830_v62 }
 0xa78   :  { %1941 = vrot.lane.b32.xlu1 %v6283_v6, %s6047_s28 }
 0xa7c   :  { %1989 = vrot.lane.b32.xlu1 %v6289_v11, %s6047_s28 }
 0xa80   :  { %5580 = vrot.lane.b32.xlu1 %v5579_v49, %s6048_s29 }
 0xa81   :  { %1893 = vrot.lane.b32.xlu0 %v6291_v12, %s6047_s28 }
 0xa84   :  { %5590 = vrot.lane.b32.xlu1 %v5589_v54, %s6028_s1 }
 0xa85   :  { %5575 = vrot.lane.b32.xlu0 %v5574_v37, %s6048_s29 }
 0xa89   :  { %5585 = vrot.lane.b32.xlu0 %v5584_v40, %s6028_s1 }
 0xae5   :  { %v1826_v6 = vpop.xlane.xlu0 %1825 }
 0xaec   :  { %v1823_v11 = vpop.xlane.xlu1 %1822 }
 0xaed   :  { %5716 = vrcp.f32 %v1823_v11 }
 0xaee   :  { %5718 = vrcp.f32 %v1826_v6 }
 0xaf4   :  { %v1829_v12 = vpop.xlane.xlu1 %1828 }
 0xaf5   :  { %5720 = vrcp.f32 %v1829_v12 }
 0xaf7   :  { %v5717_v43 = vpop.eup %5716 }
 0xaf8   :  { %v5719_v47 = vpop.eup %5718  ;;  %v1942_v49 = vpop.permute.xlu1 %1941  ;;  %v1837_v53 = vmul.f32 %v5717_v43, %v5711_v51 }
 0xaf9   :  { %v1832_v45 = vpop.xlane.xlu0 %1831  ;;  %v1838_v34 = vmul.f32 %v5719_v47, %v5709_v38  ;;  %v1947_v35 = vsel %vm517_vm4, %v1942_v49, 0 }
 0xafa   :  { %5722 = vrcp.f32 %v1832_v45  ;;  %v1841_v54 = vpack.c.bf16 %v1837_v53, %v1837_v53 }
 0xafb   :  { %v1842_v63 = vpack.c.bf16 %v1838_v34, %v1838_v34 }
 0xafc   :  { %5272 = vmatmul.mubr.msk.bf16.vlgmr.msra.gmra.mrb[56].mxu1 %vm264_vm2, %v1841_v54  ;;  %v1990_v39 = vpop.permute.xlu1 %1989 }
 0xafd   :  { %v1894_v37 = vpop.permute.xlu0 %1893  ;;  %5282 = vmatpush3.bf16.msra.mxu1 %v1947_v35  ;;  %5283 = vmatprep.mubr.msk.bf16.mxu1 %vm6037_vm1, %v6036_v4  ;;  %v1995_v1 = vsel %vm517_vm4, %v1990_v39, 0 }
 0xafe   :  { %v1899_v32 = vsel %vm517_vm4, %v1894_v37, 0  ;;  %5293 = vmatprep.subr.bf16.mxu1 %v5638_v9 }
 0xaff   :  { %5276 = vmatpush3.bf16.msra.mxu0 %v1899_v32  ;;  %v5721_v40 = vpop.eup %5720 }
 0xb00   :  { %5287 = vmatprep.subr.bf16.mxu0 %v6036_v4  ;;  %v1839_v0 = vmul.f32 %v5721_v40, %v5713_v59  ;;  %v5581_v38 = vpop.permute.xlu1 %5580  ;;  %v5812_v40 = vld [vmem:[#allocation2] sm:$0xff]  }
 0xb01   :  { %v5576_v24 = vpop.permute.xlu0 %5575  ;;  %v5583_v12 = vunpack.i.h.bf16 %v5581_v38  ;;  %v5582_v43 = vunpack.i.l.bf16 %v5581_v38 }
 0xb02   :  { %5278 = vmatmul.mubr.msk.bf16.vlgmr.msra.gmra.mrb[60].mxu0 %vm264_vm2, %v1842_v63  ;;  %v1843_v2 = vpack.c.bf16 %v1839_v0, %v1839_v0  ;;  %v5578_v41 = vunpack.i.h.bf16 %v5576_v24  ;;  %v5577_v8 = vunpack.i.l.bf16 %v5576_v24  ;;  %v166_v63 = vunpack.c.l.bf16 %v5812_v40 }
 0xb03   :  { %5288 = vmatpush3.bf16.msra.mxu0 %v1995_v1  ;;  %5289 = vmatprep.mubr.msk.bf16.mxu0 %vm6037_vm1, %v6036_v4  ;;  %v2087_v45 = vsel %vm264_vm2, %v6406_v56, %v5582_v43  ;;  %v167_v1 = vunpack.c.h.bf16 %v5812_v40  ;;  %v5646_v43 = vld [vmem:[%s7209_s7 + $0x20] sm:$0xff]  }
 0xb04   :  { %v5723_v3 = vpop.eup %5722  ;;  %5284 = vmatmul.mubr.msk.bf16.vlgmr.msra.gmra.mrb[60].mxu1 %vm264_vm2, %v1843_v2  ;;  %v2086_v50 = vsel %vm264_vm2, %v6404_v52, %v5578_v41  ;;  %v2085_v51 = vsel %vm264_vm2, %v6402_v48, %v5577_v8  ;;  %v2088_v48 = vsel %vm264_vm2, %v6408_v57, %v5583_v12  ;;  %v4847_v57 = vld [vmem:[%s7208_s6] ss:$0 sm:$0xff]  ;;  %v5645_v12 = vld [vmem:[%s7209_s7 + $0x8] sm:$0xff]  }
 0xb05   :  { %v1840_v5 = vmul.f32 %v5723_v3, %v5715_v61  ;;  %5294 = vmatpush3.bf16.msra.mxu1 %v5638_v9  ;;  %v5586_v36 = vpop.permute.xlu0 %5585  ;;  %v5591_v61 = vpop.permute.xlu1 %5590  ;;  %v4852_v40 = vld [vmem:[%s7212_s10] ss:$0 sm:$0xff] }
 0xb06   :  { %5295 = vmatprep.subr.bf16.mxu1 %v5639_v16  ;;  %v5588_v42 = vunpack.i.h.bf16 %v5586_v36  ;;  %v5587_v44 = vunpack.i.l.bf16 %v5586_v36  ;;  %v5593_v47 = vunpack.i.h.bf16 %v5591_v61  ;;  %v5592_v49 = vunpack.i.l.bf16 %v5591_v61  ;;  %v5641_v61 = vld [vmem:[%s7209_s7 + $0x18] sm:$0xff]  }
 0xb07   :  { %v1844_v7 = vpack.c.bf16 %v1840_v5, %v1840_v5 }
 0xb08   :  { %v2090_v59 = vsel %vm2089_vm5, %v2085_v51, %v5587_v44  ;;  %v2091_v60 = vsel %vm2089_vm5, %v2086_v50, %v5588_v42  ;;  %v2092_v34 = vsel %vm2089_vm5, %v2087_v45, %v5592_v49  ;;  %v2093_v35 = vsel %vm2089_vm5, %v2088_v48, %v5593_v47 }
 0xb09   :  { %5296 = vmatpush3.bf16.msra.mxu1 %v5639_v16 }
 0xb0a   :  { %5290 = vmatmul.mubr.msk.bf16.vlgmr.msra.gmra.mrb[64].mxu0 %vm264_vm2, %v1844_v7  ;;  %v5813_v7 = vld [vmem:[#allocation2 + $0x8] sm:$0xff]  }
 0xb0b   :  { %v168_v9 = vunpack.c.l.bf16 %v5813_v7 }
 0xbcf   :  { %v1887_v10 = vpop.f32.mrb[56].mxu1 }
 0xbd0   :  { %v5273_v13 = vpop.f32.mrb[57].mxu1 }
 0xbd1   :  { %v1890_v14 = vpop.f32.mrb[58].mxu1 }
 0xbd2   :  { %v5274_v15 = vpop.f32.mrb[59].mxu1 }
 0xbd3   :  { %v169_v15 = vunpack.c.h.bf16 %v5813_v7 }
 0xbd5   :  { %v1935_v17 = vpop.f32.mrb[60].mxu0 }
 0xbd6   :  { %v5594_v18 = vpack.i.bf16 %v1935_v17, %v1887_v10  ;;  %v5279_v19 = vpop.f32.mrb[61].mxu0 }
 0xbd7   :  { %v1938_v20 = vpop.f32.mrb[62].mxu0  ;;  %v1983_v21 = vpop.f32.mrb[60].mxu1 }
 0xbd8   :  { %5595 = vrot.lane.b32.xlu0 %v5594_v18, %s6049_s2  ;;  %v5280_v23 = vpop.f32.mrb[63].mxu0  ;;  %v5285_v25 = vpop.f32.mrb[61].mxu1 }
 0xbd9   :  { %v1986_v26 = vpop.f32.mrb[62].mxu1 }
 0xbda   :  { %v5286_v27 = vpop.f32.mrb[63].mxu1 }
 0xbdd   :  { %v2031_v28 = vpop.f32.mrb[64].mxu0 }
 0xbde   :  { %v5599_v29 = vpack.i.bf16 %v2031_v28, %v1983_v21  ;;  %v5291_v30 = vpop.f32.mrb[65].mxu0 }
 0xbdf   :  { %v2034_v31 = vpop.f32.mrb[66].mxu0 }
 0xbe0   :  { %5600 = vrot.lane.b32.xlu1 %v5599_v29, %s6049_s2  ;;  %v5292_v33 = vpop.f32.mrb[67].mxu0 }
 0xc4a   :  { %v5596_v46 = vpop.permute.xlu0 %5595 }
 0xc4b   :  { %v5598_v55 = vunpack.i.h.bf16 %v5596_v46  ;;  %v5597_v58 = vunpack.i.l.bf16 %v5596_v46 }
 0xc4d   :  { %v2095_v62 = vsel %vm2094_vm6, %v2090_v59, %v5597_v58  ;;  %v2096_v6 = vsel %vm2094_vm6, %v2091_v60, %v5598_v55  ;;  %v5640_v60 = vld [vmem:[%s7209_s7 + $0x10] sm:$0xff]  }
 0xc4e   :  { %v2099_v11 = vpack.c.bf16 %v2096_v6, %v2095_v62  ;;  %5309 = vmatprep.subr.bf16.mxu1 %v5640_v60  ;;  %v5642_v62 = vld [vmem:[#allocation5] sm:$0xff]   ;;  %v5643_v6 = vld [vmem:[#allocation5 + $0x8] sm:$0xff]  }
 0xc50   :  { %5297 = vmatprep.mubr.msk.bf16.mxu1 %vm196_vm0, %v2099_v11  ;;  %v5644_v11 = vld [vmem:[%s7209_s7] sm:$0xff]  }
 0xc51   :  { %5301 = vmatprep.subr.bf16.mxu0 %v5644_v11 }
 0xc52   :  { %v5601_v52 = vpop.permute.xlu1 %5600  ;;  %5302 = vmatpush3.bf16.msra.mxu0 %v5644_v11 }
 0xc53   :  { %v5603_v53 = vunpack.i.h.bf16 %v5601_v52  ;;  %v5602_v54 = vunpack.i.l.bf16 %v5601_v52  ;;  %5303 = vmatprep.subr.bf16.mxu0 %v5645_v12 }
 0xc55   :  { %v2098_v37 = vsel %vm2094_vm6, %v2093_v35, %v5603_v53  ;;  %v2097_v32 = vsel %vm2094_vm6, %v2092_v34, %v5602_v54 }
 0xc56   :  { %v2100_v39 = vpack.c.bf16 %v2098_v37, %v2097_v32  ;;  %5304 = vmatpush3.bf16.msra.mxu0 %v5645_v12 }
 0xc57   :  { %5317 = vmatprep.subr.bf16.mxu0 %v5646_v43 }
 0xc58   :  { %5298 = vmatmul.mubr.msk.bf16.vlgmr.msra.gmra.mrb[64].mxu1 %vm196_vm0, %v2100_v39 }
 0xc59   :  { %5310 = vmatpush3.bf16.msra.mxu1 %v5640_v60  ;;  %5313 = vmatprep.mubr.msk.bf16.mxu1 %vm196_vm0, %v5642_v62 }
 0xc5a   :  { %5311 = vmatprep.subr.bf16.mxu1 %v5641_v61 }
 0xc5d   :  { %5312 = vmatpush3.bf16.msra.mxu1 %v5641_v61 }
 0xc5e   :  { %5325 = vmatprep.subr.bf16.mxu1 %v6036_v4 }
 0xc60   :  { %5314 = vmatmul.mubr.msk.bf16.vlgmr.msra.gmra.mrb[68].mxu1 %vm196_vm0, %v5643_v6 }
 0xc61   :  { %5327 = vmatprep.mubr.msk.bf16.mxu1 %vm6037_vm1, %v6036_v4 }
 0xd2b   :  { %v5299_v56 = vpop.f32.mrb[64].mxu1 }
 0xd2c   :  { %v2164_v0 = vpop.f32.mrb[65].mxu1  ;;  %v2173_v2 = vadd.f32 %v5299_v56, %v4847_v57 }
 0xd2d   :  { %v2165_v3 = vadd.f32 %v4847_v57, %v2164_v0  ;;  %v5300_v5 = vpop.f32.mrb[66].mxu1 }
 0xd2e   :  { %v2167_v10 = vpop.f32.mrb[67].mxu1  ;;  %v2176_v16 = vadd.f32 %v5300_v5, %v4847_v57  ;;  %v2181_v19 = vadd.f32 %v2173_v2, %v168_v9 }
 0xd2f   :  { %v2168_v13 = vadd.f32 %v4847_v57, %v2167_v10  ;;  %v2179_v14 = vadd.f32 %v2165_v3, %v166_v63  ;;  %v4853_v3 = vld [vmem:[%s7213_s11] ss:$0 sm:$0xff] }
 0xd30   :  { %v2191_v21 = vsel %vm196_vm0, %v2181_v19, 0.0  ;;  %v2182_v23 = vadd.f32 %v2176_v16, %v169_v15 }
 0xd31   :  { %v2185_v17 = vsel %vm196_vm0, %v2179_v14, 0.0  ;;  %v2180_v18 = vadd.f32 %v2168_v13, %v167_v1 }
 0xd32   :  { %2186 = vadd.xlane.f32.xlu0 %v2185_v17  ;;  %v2194_v25 = vsel %vm196_vm0, %v2182_v23, 0.0 }
 0xd33   :  { %v2188_v20 = vsel %vm196_vm0, %v2180_v18, 0.0 }
 0xd34   :  { %2189 = vadd.xlane.f32.xlu1 %v2188_v20  ;;  %v5648_v20 = vld [vmem:[#allocation7] sm:$0xff]  }
 0xd36   :  { %2192 = vadd.xlane.f32.xlu0 %v2191_v21 }
 0xd3a   :  { %2195 = vadd.xlane.f32.xlu0 %v2194_v25  ;;  %v5649_v25 = vld [vmem:[#allocation7 + $0x8] sm:$0xff]  }
 0xdbf   :  { %v2187_v26 = vpop.xlane.xlu0 %2186 }
 0xdc0   :  { %v2198_v27 = vmul.f32 0.03125, %v2187_v26  ;;  %v5315_v26 = vpop.f32.mrb[68].mxu1 }
 0xdc1   :  { %v2190_v28 = vpop.xlane.xlu1 %2189 }
 0xdc2   :  { %v2202_v29 = vsub.f32 %v2179_v14, %v2198_v27  ;;  %v2199_v30 = vmul.f32 0.03125, %v2190_v28  ;;  %v2402_v27 = vpop.f32.mrb[69].mxu1 }
 0xdc3   :  { %v2193_v31 = vpop.xlane.xlu0 %2192  ;;  %v6711_v28 = vpack.c.bf16 %v2402_v27, %v2402_v27 }
 0xdc4   :  { %v2203_v33 = vsub.f32 %v2180_v18, %v2199_v30  ;;  %v2200_v24 = vmul.f32 0.03125, %v2193_v31  ;;  %v2206_v36 = vmul.f32 %v2202_v29, %v2202_v29 }
 0xdc6   :  { %v2204_v38 = vsub.f32 %v2181_v19, %v2200_v24  ;;  %v2210_v41 = vsel %vm196_vm0, %v2206_v36, 0.0  ;;  %v2207_v8 = vmul.f32 %v2203_v33, %v2203_v33  ;;  %v6721_v36 = vpack.c.bf16 %v5315_v26, %v5315_v26 }
 0xdc7   :  { %2211 = vadd.xlane.f32.xlu1 %v2210_v41  ;;  %v2196_v42 = vpop.xlane.xlu0 %2195 }
 0xdc8   :  { %v2201_v44 = vmul.f32 0.03125, %v2196_v42  ;;  %v2213_v46 = vsel %vm196_vm0, %v2207_v8, 0.0  ;;  %v2208_v50 = vmul.f32 %v2204_v38, %v2204_v38 }
 0xdc9   :  { %2214 = vadd.xlane.f32.xlu0 %v2213_v46 }
 0xdca   :  { %v2205_v51 = vsub.f32 %v2182_v23, %v2201_v44  ;;  %v2216_v55 = vsel %vm196_vm0, %v2208_v50, 0.0  ;;  %v5647_v23 = vld [vmem:[%s7209_s7 + $0x28] sm:$0xff]  }
 0xdcb   :  { %2217 = vadd.xlane.f32.xlu1 %v2216_v55 }
 0xdcc   :  { %v2209_v58 = vmul.f32 %v2205_v51, %v2205_v51 }
 0xdce   :  { %v2219_v59 = vsel %vm196_vm0, %v2209_v58, 0.0 }
 0xdcf   :  { %2220 = vadd.xlane.f32.xlu0 %v2219_v59 }
 0xe54   :  { %v2212_v47 = vpop.xlane.xlu1 %2211 }
 0xe55   :  { %v2222_v49 = vmul.f32 0.03125, %v2212_v47 }
 0xe56   :  { %v2215_v52 = vpop.xlane.xlu0 %2214 }
 0xe57   :  { %v2226_v48 = vadd.f32 1e-05, %v2222_v49  ;;  %v2223_v45 = vmul.f32 0.03125, %v2215_v52  ;;  %v2499_v49 = vld [vmem:[#allocation8] sm:$0x1] }
 0xe58   :  { %v2218_v53 = vpop.xlane.xlu1 %2217  ;;  %v2500_v52 = vld [vmem:[#allocation8 + $0x1] sm:$0x1]  ;;  %vm2503_vm7 = vcmp.ne.f32.partialorder %v2499_v49, 0.0 }
 0xe59   :  { %5724 = vrsqrt.f32 %v2226_v48  ;;  %v2227_v54 = vadd.f32 1e-05, %v2223_v45  ;;  %v2224_v34 = vmul.f32 0.03125, %v2218_v53  ;;  %v2709_v48 = vsub.s32 0, %v6319_v22 }
 0xe5a   :  { %vm2504_vm8 = vcmp.ne.f32.partialorder %v2500_v52, 0.0  ;;  %v6050_v45 = vmov 0  }
 0xe5b   :  { %5726 = vrsqrt.f32 %v2227_v54  ;;  %v2228_v35 = vadd.f32 1e-05, %v2224_v34  ;;  %v2703_v53 = vsel %vm2503_vm7, 1, %v6050_v45  ;;  %v2704_v54 = vsel %vm2504_vm8, 1, %v6050_v45  ;;  %v2501_v34 = vld [vmem:[#allocation8 + $0x2] sm:$0x1] }
 0xe5c   :  { %v2221_v37 = vpop.xlane.xlu0 %2220  ;;  %vm2505_vm9 = vcmp.ne.f32.partialorder %v2501_v34, 0.0 }
 0xe5d   :  { %5728 = vrsqrt.f32 %v2228_v35  ;;  %v2225_v32 = vmul.f32 0.03125, %v2221_v37  ;;  %v2710_v35 = vrot.slane %v2703_v53, %v2709_v48  ;;  %v2502_v37 = vld [vmem:[#allocation8 + $0x3] sm:$0x1] }
 0xe5e   :  { %vm2506_vm11 = vcmp.ne.f32.partialorder %v2502_v37, 0.0 }
 0xe5f   :  { %v2229_v39 = vadd.f32 1e-05, %v2225_v32  ;;  %v2714_v32 = vrot.slane %v2704_v54, %v2709_v48  ;;  %vm6770_vm10 = vcmp.eq.s32.totalorder %v2710_v35, 1 }
 0xe61   :  { %5730 = vrsqrt.f32 %v2229_v39  ;;  %vm6774_vm12 = vcmp.eq.s32.totalorder %v2714_v32, 1 }
 0xe63   :  { %v5725_v57 = vpop.eup %5724 }
 0xe64   :  { %v2234_v63 = vmul.f32 %v5725_v57, %v2202_v29  ;;  %v5316_v29 = vpop.f32.mrb[70].mxu1  ;;  %v2705_v57 = vsel %vm2505_vm9, 1, %v6050_v45 }
 0xe65   :  { %v5727_v56 = vpop.eup %5726  ;;  %v2405_v30 = vpop.f32.mrb[71].mxu1  ;;  %v6723_v8 = vpack.c.bf16 %v5316_v29, %v5316_v29 }
 0xe66   :  { %v2235_v0 = vmul.f32 %v5727_v56, %v2203_v33  ;;  %v2242_v1 = vmul.f32 %v4852_v40, %v2234_v63  ;;  %v6713_v31 = vpack.c.bf16 %v2405_v30, %v2405_v30  ;;  %v2523_v33 = vsel %vm264_vm2, %v6711_v28, 0 }
 0xe67   :  { %v5729_v2 = vpop.eup %5728  ;;  %5326 = vmatpush3.bf16.xpose.msra.mxu1 %v2523_v33  ;;  %v2661_v55 = vsel %vm264_vm2, %v6723_v8, 0 }
 0xe68   :  { %v2236_v5 = vmul.f32 %v5729_v2, %v2204_v38  ;;  %v2243_v7 = vmul.f32 %v4852_v40, %v2235_v0  ;;  %v6689_v9 = vadd.f32 %v4853_v3, %v2242_v1  ;;  %v2569_v24 = vsel %vm264_vm2, %v6713_v31, 0  ;;  %5337 = vmatprep.subr.bf16.mxu1 %v6036_v4 }
 0xe69   :  { %v2706_v0 = vsel %vm2506_vm11, 1, %v6050_v45 }
 0xe6a   :  { %v6691_v10 = vadd.f32 %v4853_v3, %v2243_v7  ;;  %v2244_v14 = vmul.f32 %v4852_v40, %v2236_v5  ;;  %v2718_v5 = vrot.slane %v2705_v57, %v2709_v48 }
 0xe6b   :  { %v5731_v13 = vpop.eup %5730 }
 0xe6c   :  { %v2237_v15 = vmul.f32 %v5731_v13, %v2205_v51  ;;  %v2262_v16 = vpack.c.bf16 %v6691_v10, %v6689_v9  ;;  %v6696_v18 = vadd.f32 %v4853_v3, %v2244_v14  ;;  %v2615_v51 = vsel %vm264_vm2, %v6721_v36, 0 }
 0xe6d   :  { %vm6784_vm13 = vcmp.eq.s32.totalorder %v2718_v5, 1 }
 0xe6e   :  { %v2245_v17 = vmul.f32 %v4852_v40, %v2237_v15  ;;  %5305 = vmatprep.mubr.msk.bf16.mxu0 %vm196_vm0, %v2262_v16 }
 0xe70   :  { %v6698_v19 = vadd.f32 %v4853_v3, %v2245_v17  ;;  %v2722_v17 = vrot.slane %v2706_v0, %v2709_v48 }
 0xe72   :  { %v2263_v21 = vpack.c.bf16 %v6698_v19, %v6696_v18  ;;  %vm6788_vm14 = vcmp.eq.s32.totalorder %v2722_v17, 1 }
 0xe74   :  { %5306 = vmatmul.mubr.msk.bf16.vlgmr.msra.gmra.mrb[68].mxu0 %vm196_vm0, %v2263_v21 }
 0xe75   :  { %5318 = vmatpush3.bf16.msra.mxu0 %v5646_v43  ;;  %5321 = vmatprep.mubr.msk.bf16.mxu0 %vm196_vm0, %v5648_v20 }
 0xe76   :  { %5319 = vmatprep.subr.bf16.mxu0 %v5647_v23 }
 0xe79   :  { %5320 = vmatpush3.bf16.msra.mxu0 %v5647_v23 }
 0xe7a   :  { %5331 = vmatprep.subr.bf16.mxu0 %v6036_v4 }
 0xe7c   :  { %5322 = vmatmul.mubr.msk.bf16.vlgmr.msra.gmra.mrb[72].mxu0 %vm196_vm0, %v5649_v25 }
 0xe7d   :  { %5333 = vmatprep.mubr.msk.bf16.mxu0 %vm6037_vm1, %v6036_v4 }
 0xe82   :  { %5332 = vmatpush3.bf16.xpose.msra.mxu0 %v2569_v24 }
 0xe83   :  { %5343 = vmatprep.subr.bf16.mxu0 %v6036_v4 }
 0xf47   :  { %v5307_v38 = vpop.f32.mrb[68].mxu0 }
 0xf48   :  { %v2320_v41 = vpop.f32.mrb[69].mxu0  ;;  %v6745_v60 = vpack.c.bf16 %v5307_v38, %v5307_v38 }
 0xf49   :  { %v6725_v42 = vpack.c.bf16 %v2320_v41, %v2320_v41  ;;  %v5308_v44 = vpop.f32.mrb[70].mxu0 }
 0xf4a   :  { %v2323_v46 = vpop.f32.mrb[71].mxu0  ;;  %v6749_v62 = vpack.c.bf16 %v5308_v44, %v5308_v44 }
 0xf4b   :  { %v6727_v50 = vpack.c.bf16 %v2323_v46, %v2323_v46  ;;  %5328 = vmatmul.mubr.msk.bf16.vlgmr.msra.gmra.mrb[72].mxu1 %vm264_vm2, %v6725_v42 }
 0xf4c   :  { %5338 = vmatpush3.bf16.xpose.msra.mxu1 %v2615_v51  ;;  %5339 = vmatprep.mubr.msk.bf16.mxu1 %vm6037_vm1, %v6036_v4 }
 0xf4d   :  { %5334 = vmatmul.mubr.msk.bf16.vlgmr.msra.gmra.mrb[76].mxu0 %vm264_vm2, %v6727_v50  ;;  %5349 = vmatprep.subr.bf16.mxu1 %v6036_v4 }
 0xf4e   :  { %5344 = vmatpush3.bf16.xpose.msra.mxu0 %v2661_v55  ;;  %5345 = vmatprep.mubr.msk.bf16.mxu0 %vm6037_vm1, %v6036_v4 }
 0xf4f   :  { %v6742_v58 = vpop.f32.mrb[72].mxu0  ;;  %5355 = vmatprep.subr.bf16.mxu0 %v6036_v4 }
 0xf50   :  { %v2484_v59 = vpop.f32.mrb[73].mxu0 }
 0xf51   :  { %v6747_v61 = vpop.f32.mrb[74].mxu0  ;;  %v6759_v11 = vpack.c.bf16 %v2484_v59, %v2484_v59 }
 0xf52   :  { %v2487_v6 = vpop.f32.mrb[75].mxu0 }
 0xf53   :  { %5340 = vmatmul.mubr.msk.bf16.vlgmr.msra.gmra.mrb[76].mxu1 %vm264_vm2, %v6745_v60  ;;  %v6761_v12 = vpack.c.bf16 %v2487_v6, %v2487_v6  ;;  %v2783_v43 = vsel %vm517_vm4, %v6759_v11, 0 }
 0xf54   :  { %5351 = vmatprep.mubr.msk.bf16.mxu1 %vm6037_vm1, %v6036_v4  ;;  %5350 = vmatpush3.bf16.msra.mxu1 %v2783_v43 }
 0xf55   :  { %5346 = vmatmul.mubr.msk.bf16.vlgmr.msra.gmra.mrb[80].mxu0 %vm264_vm2, %v6749_v62  ;;  %v2829_v47 = vsel %vm517_vm4, %v6761_v12, 0  ;;  %5361 = vmatprep.subr.bf16.mxu1 %v6036_v4 }
 0xf56   :  { %5357 = vmatprep.mubr.msk.bf16.mxu0 %vm6037_vm1, %v6036_v4  ;;  %5356 = vmatpush3.bf16.msra.mxu0 %v2829_v47 }
 0xf57   :  { %5367 = vmatprep.subr.bf16.mxu0 %v6036_v4 }
0x101e   :  { %v2559_v40 = vpop.f32.mrb[72].mxu1 }
0x101f   :  { %v2727_v22 = vsel %vm6770_vm10, %v2559_v40, -1e+20  ;;  %v5329_v56 = vpop.f32.mrb[73].mxu1 }
0x1020   :  { %v2562_v1 = vpop.f32.mrb[74].mxu1  ;;  %v2605_v2 = vpop.f32.mrb[76].mxu0  ;;  %v2731_v3 = vsel %vm264_vm2, %v2727_v22, -inf }
0x1021   :  { %v2728_v7 = vsel %vm6774_vm12, %v2605_v2, -1e+20  ;;  %2732 = vmax.xlane.f32.xlu1 %v2731_v3  ;;  %v5330_v13 = vpop.f32.mrb[75].mxu1  ;;  %v5335_v14 = vpop.f32.mrb[77].mxu0 }
0x1022   :  { %v2608_v15 = vpop.f32.mrb[78].mxu0  ;;  %v2734_v16 = vsel %vm264_vm2, %v2728_v7, -inf }
0x1023   :  { %2735 = vmax.xlane.f32.xlu0 %v2734_v16  ;;  %v5336_v20 = vpop.f32.mrb[79].mxu0  ;;  %v6824_v15 = vpack.c.bf16 %v6747_v61, %v6747_v61 }
0x1026   :  { %v2651_v23 = vpop.f32.mrb[76].mxu1 }
0x1027   :  { %v2729_v26 = vsel %vm6784_vm13, %v2651_v23, -1e+20  ;;  %v5341_v27 = vpop.f32.mrb[77].mxu1 }
0x1028   :  { %v2654_v29 = vpop.f32.mrb[78].mxu1  ;;  %v2697_v30 = vpop.f32.mrb[80].mxu0  ;;  %v2737_v33 = vsel %vm264_vm2, %v2729_v26, -inf }
0x1029   :  { %v2730_v24 = vsel %vm6788_vm14, %v2697_v30, -1e+20  ;;  %2738 = vmax.xlane.f32.xlu1 %v2737_v33  ;;  %v5342_v38 = vpop.f32.mrb[79].mxu1  ;;  %v5347_v41 = vpop.f32.mrb[81].mxu0 }
0x102a   :  { %v2700_v44 = vpop.f32.mrb[82].mxu0  ;;  %v2740_v46 = vsel %vm264_vm2, %v2730_v24, -inf }
0x102b   :  { %2741 = vmax.xlane.f32.xlu0 %v2740_v46  ;;  %v5348_v51 = vpop.f32.mrb[83].mxu0 }
0x10ae   :  { %v2733_v55 = vpop.xlane.xlu1 %2732 }
0x10af   :  { %v2743_v59 = vsub.f32 %v2727_v22, %v2733_v55 }
0x10b0   :  { %v2736_v6 = vpop.xlane.xlu0 %2735 }
0x10b1   :  { %v2747_v43 = vmul.f32 1.442695, %v2743_v59  ;;  %v2744_v47 = vsub.f32 %v2728_v7, %v2736_v6  ;;  %v6820_v7 = vpack.c.bf16 %v6742_v58, %v6742_v58  ;;  %v2921_v58 = vsel %vm517_vm4, %v6824_v15, 0 }
0x10b3   :  { %5732 = vpow2.f32 %v2747_v43  ;;  %v2749_v49 = vmul.f32 1.442695, %v2744_v47  ;;  %v2875_v20 = vsel %vm517_vm4, %v6820_v7, 0 }
0x10b5   :  { %5734 = vpow2.f32 %v2749_v49 }
0x10b6   :  { %v2739_v57 = vpop.xlane.xlu1 %2738 }
0x10b7   :  { %v2745_v40 = vsub.f32 %v2729_v26, %v2739_v57 }
0x10b8   :  { %v2742_v52 = vpop.xlane.xlu0 %2741 }
0x10b9   :  { %v2746_v48 = vsub.f32 %v2730_v24, %v2742_v52  ;;  %v2751_v22 = vmul.f32 1.442695, %v2745_v40 }
0x10bb   :  { %v2753_v45 = vmul.f32 1.442695, %v2746_v48 }
0x10bd   :  { %v5733_v53 = vpop.eup %5732  ;;  %5736 = vpow2.f32 %v2753_v45 }
0x10be   :  { %v2755_v54 = vsel %vm264_vm2, %v5733_v53, 0.0  ;;  %5738 = vpow2.f32 %v2751_v22 }
0x10bf   :  { %v5735_v34 = vpop.eup %5734  ;;  %2756 = vadd.xlane.f32.xlu1 %v2755_v54 }
0x10c0   :  { %v2758_v35 = vsel %vm264_vm2, %v5735_v34, 0.0 }
0x10c1   :  { %2759 = vadd.xlane.f32.xlu0 %v2758_v35 }
0x10c7   :  { %v5737_v37 = vpop.eup %5736 }
0x10c8   :  { %v2764_v32 = vsel %vm264_vm2, %v5737_v37, 0.0  ;;  %v5739_v56 = vpop.eup %5738 }
0x10c9   :  { %2765 = vadd.xlane.f32.xlu0 %v2764_v32  ;;  %v2761_v0 = vsel %vm264_vm2, %v5739_v56, 0.0 }
0x10d0   :  { %2967 = vrot.lane.b32.xlu1 %v6711_v28, %s6040_s18 }
0x10df   :  { %3019 = vrot.lane.b32.xlu0 %v6713_v31, %s6040_s18 }
0x10e3   :  { %3071 = vrot.lane.b32.xlu0 %v6721_v36, %s6040_s18 }
0x10e7   :  { %3068 = vrot.lane.b32.xlu0 %v6745_v60, %s6040_s18 }
0x10f4   :  { %2762 = vadd.xlane.f32.xlu1 %v2761_v0 }
0x1105   :  { %2964 = vrot.lane.b32.xlu1 %v6725_v42, %s6040_s18 }
0x1109   :  { %3016 = vrot.lane.b32.xlu1 %v6727_v50, %s6040_s18 }
0x110d   :  { %3123 = vrot.lane.b32.xlu1 %v6723_v8, %s6040_s18 }
0x1111   :  { %3120 = vrot.lane.b32.xlu1 %v6749_v62, %s6040_s18 }
0x114c   :  { %v2757_v1 = vpop.xlane.xlu1 %2756 }
0x114d   :  { %5740 = vrcp.f32 %v2757_v1 }
0x114e   :  { %v2760_v2 = vpop.xlane.xlu0 %2759 }
0x114f   :  { %5742 = vrcp.f32 %v2760_v2 }
0x1150   :  { %v2968_v33 = vpop.permute.xlu1 %2967 }
0x1151   :  { %v2973_v6 = vsel %vm264_vm2, %v2968_v33, 0 }
0x1156   :  { %v2766_v3 = vpop.xlane.xlu0 %2765 }
0x1157   :  { %v5741_v5 = vpop.eup %5740  ;;  %5744 = vrcp.f32 %v2766_v3 }
0x1158   :  { %v2771_v13 = vmul.f32 %v5741_v5, %v5733_v53 }
0x1159   :  { %v5743_v14 = vpop.eup %5742 }
0x115a   :  { %v2772_v16 = vmul.f32 %v5743_v14, %v5735_v34  ;;  %v2775_v17 = vpack.c.bf16 %v2771_v13, %v2771_v13  ;;  %v3020_v27 = vpop.permute.xlu0 %3019 }
0x115b   :  { %v3025_v30 = vsel %vm264_vm2, %v3020_v27, 0 }
0x115c   :  { %5352 = vmatmul.mubr.msk.bf16.vlgmr.msra.gmra.mrb[80].mxu1 %vm264_vm2, %v2775_v17  ;;  %v2776_v23 = vpack.c.bf16 %v2772_v16, %v2772_v16 }
0x115d   :  { %5362 = vmatpush3.bf16.msra.mxu1 %v2875_v20  ;;  %5363 = vmatprep.mubr.msk.bf16.mxu1 %vm6037_vm1, %v6036_v4 }
0x115e   :  { %5358 = vmatmul.mubr.msk.bf16.vlgmr.msra.gmra.mrb[84].mxu0 %vm264_vm2, %v2776_v23  ;;  %5373 = vmatprep.subr.bf16.mxu1 %v6036_v4  ;;  %v3072_v47 = vpop.permute.xlu0 %3071 }
0x115f   :  { %5368 = vmatpush3.bf16.msra.mxu0 %v2921_v58  ;;  %5369 = vmatprep.mubr.msk.bf16.mxu0 %vm6037_vm1, %v6036_v4  ;;  %v3077_v49 = vsel %vm264_vm2, %v3072_v47, 0 }
0x1160   :  { %5379 = vmatprep.subr.bf16.mxu0 %v6036_v4 }
0x1161   :  { %v5745_v61 = vpop.eup %5744 }
0x1162   :  { %v2774_v26 = vmul.f32 %v5745_v61, %v5737_v37  ;;  %v3069_v52 = vpop.permute.xlu0 %3068 }
0x1164   :  { %v2778_v29 = vpack.c.bf16 %v2774_v26, %v2774_v26 }
0x1166   :  { %5370 = vmatmul.mubr.msk.bf16.vlgmr.msra.gmra.mrb[88].mxu0 %vm264_vm2, %v2778_v29 }
0x1167   :  { %5381 = vmatprep.mubr.msk.bf16.mxu0 %vm6037_vm1, %v6036_v4 }
0x1168   :  { %5380 = vmatpush3.bf16.xpose.msra.mxu0 %v3025_v30 }
0x1169   :  { %5391 = vmatprep.subr.bf16.mxu0 %v6036_v4 }
0x1181   :  { %v2763_v24 = vpop.xlane.xlu1 %2762 }
0x1182   :  { %5746 = vrcp.f32 %v2763_v24 }
0x1185   :  { %v2965_v38 = vpop.permute.xlu1 %2964 }
0x1189   :  { %v3017_v41 = vpop.permute.xlu1 %3016 }
0x118a   :  { %5382 = vmatmul.mubr.msk.bf16.vlgmr.msra.gmra.mrb[92].mxu0 %vm264_vm2, %v3017_v41 }
0x118b   :  { %5393 = vmatprep.mubr.msk.bf16.mxu0 %vm6037_vm1, %v6036_v4 }
0x118c   :  { %v5747_v44 = vpop.eup %5746 }
0x118d   :  { %v2773_v46 = vmul.f32 %v5747_v44, %v5739_v56  ;;  %v3124_v51 = vpop.permute.xlu1 %3123 }
0x118e   :  { %v3129_v55 = vsel %vm264_vm2, %v3124_v51, 0 }
0x118f   :  { %5392 = vmatpush3.bf16.xpose.msra.mxu0 %v3129_v55  ;;  %v2777_v59 = vpack.c.bf16 %v2773_v46, %v2773_v46 }
0x1190   :  { %5403 = vmatprep.subr.bf16.mxu0 %v6036_v4 }
0x1191   :  { %5364 = vmatmul.mubr.msk.bf16.vlgmr.msra.gmra.mrb[84].mxu1 %vm264_vm2, %v2777_v59  ;;  %v3121_v43 = vpop.permute.xlu1 %3120 }
0x1192   :  { %5374 = vmatpush3.bf16.xpose.msra.mxu1 %v2973_v6  ;;  %5375 = vmatprep.mubr.msk.bf16.mxu1 %vm6037_vm1, %v6036_v4 }
0x1193   :  { %5385 = vmatprep.subr.bf16.mxu1 %v6036_v4 }
0x1196   :  { %5394 = vmatmul.mubr.msk.bf16.vlgmr.msra.gmra.mrb[96].mxu0 %vm264_vm2, %v3121_v43 }
0x1197   :  { %5405 = vmatprep.mubr.msk.bf16.mxu0 %vm6037_vm1, %v6036_v4 }
0x1199   :  { %5376 = vmatmul.mubr.msk.bf16.vlgmr.msra.gmra.mrb[88].mxu1 %vm264_vm2, %v2965_v38 }
0x119a   :  { %5386 = vmatpush3.bf16.xpose.msra.mxu1 %v3077_v49  ;;  %5387 = vmatprep.mubr.msk.bf16.mxu1 %vm6037_vm1, %v6036_v4 }
0x119b   :  { %5397 = vmatprep.subr.bf16.mxu1 %v6036_v4 }
0x11a1   :  { %5388 = vmatmul.mubr.msk.bf16.vlgmr.msra.gmra.mrb[92].mxu1 %vm264_vm2, %v3069_v52 }
0x11a2   :  { %5399 = vmatprep.mubr.msk.bf16.mxu1 %vm6037_vm1, %v6036_v4 }
0x122f   :  { %v6864_v48 = vpop.f32.mrb[80].mxu1 }
0x1230   :  { %v5353_v45 = vpop.f32.mrb[81].mxu1 }
0x1231   :  { %v2822_v53 = vpop.f32.mrb[82].mxu1  ;;  %v6866_v54 = vpop.f32.mrb[84].mxu0 }
0x1232   :  { %v5354_v34 = vpop.f32.mrb[83].mxu1  ;;  %v5359_v35 = vpop.f32.mrb[85].mxu0 }
0x1233   :  { %v2868_v37 = vpop.f32.mrb[86].mxu0 }
0x1234   :  { %v5360_v32 = vpop.f32.mrb[87].mxu0 }
0x1239   :  { %v6868_v57 = vpop.f32.mrb[88].mxu0 }
0x123a   :  { %v5371_v40 = vpop.f32.mrb[89].mxu0 }
0x123b   :  { %v2960_v22 = vpop.f32.mrb[90].mxu0 }
0x123c   :  { %v5372_v56 = vpop.f32.mrb[91].mxu0 }
0x125d   :  { %v3061_v0 = vpop.f32.mrb[92].mxu0 }
0x125e   :  { %v3172_v1 = vsel %vm6774_vm12, %v3061_v0, -1e+20  ;;  %v5383_v2 = vpop.f32.mrb[93].mxu0 }
0x125f   :  { %v3178_v3 = vsel %vm264_vm2, %v3172_v1, -inf  ;;  %v3064_v5 = vpop.f32.mrb[94].mxu0 }
0x1260   :  { %3179 = vmax.xlane.f32.xlu1 %v3178_v3  ;;  %v5384_v13 = vpop.f32.mrb[95].mxu0 }
0x1264   :  { %v6873_v14 = vpop.f32.mrb[84].mxu1 }
0x1265   :  { %v5365_v16 = vpop.f32.mrb[85].mxu1 }
0x1266   :  { %v2914_v17 = vpop.f32.mrb[86].mxu1 }
0x1267   :  { %v5366_v20 = vpop.f32.mrb[87].mxu1 }
0x1269   :  { %v3165_v23 = vpop.f32.mrb[96].mxu0 }
0x126a   :  { %v5395_v58 = vpop.f32.mrb[97].mxu0  ;;  %v3174_v59 = vsel %vm6788_vm14, %v3165_v23, -1e+20 }
0x126b   :  { %v3168_v61 = vpop.f32.mrb[98].mxu0  ;;  %v3184_v43 = vsel %vm264_vm2, %v3174_v59, -inf }
0x126c   :  { %v3009_v26 = vpop.f32.mrb[88].mxu1  ;;  %v5396_v27 = vpop.f32.mrb[99].mxu0 }
0x126d   :  { %v3171_v29 = vsel %vm6770_vm10, %v3009_v26, -1e+20  ;;  %v5377_v30 = vpop.f32.mrb[89].mxu1 }
0x126e   :  { %v3175_v33 = vsel %vm264_vm2, %v3171_v29, -inf  ;;  %v3012_v24 = vpop.f32.mrb[90].mxu1 }
0x126f   :  { %v5378_v38 = vpop.f32.mrb[91].mxu1  ;;  %3176 = vmax.xlane.f32.xlu0 %v3175_v33 }
0x1271   :  { %3224 = vrot.lane.b32.xlu1 %v6759_v11, %s6040_s18 }
0x1274   :  { %v3113_v41 = vpop.f32.mrb[92].mxu1 }
0x1275   :  { %v3173_v44 = vsel %vm6784_vm13, %v3113_v41, -1e+20  ;;  %v5389_v46 = vpop.f32.mrb[93].mxu1 }
0x1276   :  { %v3181_v51 = vsel %vm264_vm2, %v3173_v44, -inf  ;;  %v3116_v55 = vpop.f32.mrb[94].mxu1 }
0x1277   :  { %3182 = vmax.xlane.f32.xlu0 %v3181_v51  ;;  %v5390_v6 = vpop.f32.mrb[95].mxu1 }
0x127b   :  { %3185 = vmax.xlane.f32.xlu0 %v3184_v43 }
0x12ed   :  { %v3180_v47 = vpop.xlane.xlu1 %3179 }
0x12ee   :  { %v3188_v49 = vsub.f32 %v3172_v1, %v3180_v47 }
0x12f0   :  { %v3193_v52 = vmul.f32 1.442695, %v3188_v49 }
0x12f1   :  { %v3225_v45 = vpop.permute.xlu1 %3224 }
0x12f2   :  { %5748 = vpow2.f32 %v3193_v52  ;;  %v3230_v53 = vsel %vm517_vm4, %v3225_v45, 0 }
0x12f3   :  { %5398 = vmatpush3.bf16.msra.mxu1 %v3230_v53 }
0x12f4   :  { %5409 = vmatprep.subr.bf16.mxu1 %v6036_v4 }
0x12fc   :  { %v5749_v34 = vpop.eup %5748  ;;  %v3177_v35 = vpop.xlane.xlu0 %3176 }
0x12fd   :  { %v3187_v37 = vsub.f32 %v3171_v29, %v3177_v35  ;;  %v3202_v32 = vsel %vm264_vm2, %v5749_v34, 0.0 }
0x12fe   :  { %3203 = vadd.xlane.f32.xlu0 %v3202_v32 }
0x12ff   :  { %v3191_v40 = vmul.f32 1.442695, %v3187_v37 }
0x1301   :  { %5750 = vpow2.f32 %v3191_v40 }
0x1304   :  { %v3183_v0 = vpop.xlane.xlu0 %3182 }
0x1305   :  { %v3189_v13 = vsub.f32 %v3173_v44, %v3183_v0 }
0x1307   :  { %v3195_v17 = vmul.f32 1.442695, %v3189_v13 }
0x1308   :  { %v3186_v1 = vpop.xlane.xlu0 %3185 }
0x1309   :  { %v3190_v2 = vsub.f32 %v3174_v59, %v3186_v1 }
0x130b   :  { %v5751_v22 = vpop.eup %5750  ;;  %v3197_v3 = vmul.f32 1.442695, %v3190_v2 }
0x130c   :  { %v3199_v56 = vsel %vm264_vm2, %v5751_v22, 0.0 }
0x130d   :  { %3200 = vadd.xlane.f32.xlu1 %v3199_v56  ;;  %5752 = vpow2.f32 %v3197_v3 }
0x130e   :  { %5754 = vpow2.f32 %v3195_v17 }
0x1314   :  { %3273 = vrot.lane.b32.xlu0 %v6761_v12, %s6040_s18 }
0x1317   :  { %v5753_v5 = vpop.eup %5752 }
0x1318   :  { %v3208_v16 = vsel %vm264_vm2, %v5753_v5, 0.0  ;;  %v5755_v20 = vpop.eup %5754 }
0x1319   :  { %v3205_v23 = vsel %vm264_vm2, %v5755_v20, 0.0 }
0x131e   :  { %3322 = vrot.lane.b32.xlu1 %v6820_v7, %s6040_s18 }
0x1322   :  { %3371 = vrot.lane.b32.xlu1 %v6824_v15, %s6040_s18 }
0x1333   :  { %3209 = vadd.xlane.f32.xlu0 %v3208_v16 }
0x1346   :  { %3206 = vadd.xlane.f32.xlu1 %v3205_v23 }
0x1349   :  { %3421 = vrot.lane.b32.xlu0 %v6711_v28, %s6043_s19 }
0x134d   :  { %3419 = vrot.lane.b32.xlu0 %v6725_v42, %s6043_s19 }
0x1351   :  { %3521 = vrot.lane.b32.xlu0 %v6721_v36, %s6043_s19 }
0x1355   :  { %3519 = vrot.lane.b32.xlu0 %v6745_v60, %s6043_s19 }
0x1357   :  { %3471 = vrot.lane.b32.xlu1 %v6713_v31, %s6043_s19 }
0x135b   :  { %3469 = vrot.lane.b32.xlu1 %v6727_v50, %s6043_s19 }
0x135f   :  { %3571 = vrot.lane.b32.xlu1 %v6723_v8, %s6043_s19 }
0x1363   :  { %3569 = vrot.lane.b32.xlu1 %v6749_v62, %s6043_s19 }
0x138b   :  { %v3204_v58 = vpop.xlane.xlu0 %3203 }
0x138c   :  { %5756 = vrcp.f32 %v3204_v58 }
0x138f   :  { %v3274_v61 = vpop.permute.xlu0 %3273 }
0x1390   :  { %v3279_v26 = vsel %vm517_vm4, %v3274_v61, 0 }
0x1391   :  { %5404 = vmatpush3.bf16.msra.mxu0 %v3279_v26 }
0x1392   :  { %5415 = vmatprep.subr.bf16.mxu0 %v6036_v4 }
0x1396   :  { %v5757_v27 = vpop.eup %5756 }
0x1397   :  { %v3216_v29 = vmul.f32 %v5757_v27, %v5749_v34 }
0x1399   :  { %v3220_v30 = vpack.c.bf16 %v3216_v29, %v3216_v29 }
0x139a   :  { %v3201_v33 = vpop.xlane.xlu1 %3200 }
0x139b   :  { %5758 = vrcp.f32 %v3201_v33  ;;  %5406 = vmatmul.mubr.msk.bf16.vlgmr.msra.gmra.mrb[100].mxu0 %vm264_vm2, %v3220_v30 }
0x139c   :  { %5417 = vmatprep.mubr.msk.bf16.mxu0 %vm6037_vm1, %v6036_v4 }
0x139e   :  { %v3323_v24 = vpop.permute.xlu1 %3322 }
0x139f   :  { %v3328_v55 = vsel %vm517_vm4, %v3323_v24, 0 }
0x13a2   :  { %v3372_v38 = vpop.permute.xlu1 %3371 }
0x13a3   :  { %v3377_v41 = vsel %vm517_vm4, %v3372_v38, 0 }
0x13a4   :  { %5416 = vmatpush3.bf16.msra.mxu0 %v3377_v41 }
0x13a5   :  { %v5759_v44 = vpop.eup %5758  ;;  %5427 = vmatprep.subr.bf16.mxu0 %v6036_v4 }
0x13a6   :  { %v3215_v46 = vmul.f32 %v5759_v44, %v5751_v22 }
0x13a8   :  { %v3219_v51 = vpack.c.bf16 %v3215_v46, %v3215_v46 }
0x13aa   :  { %5400 = vmatmul.mubr.msk.bf16.vlgmr.msra.gmra.mrb[96].mxu1 %vm264_vm2, %v3219_v51 }
0x13ab   :  { %5410 = vmatpush3.bf16.msra.mxu1 %v3328_v55  ;;  %5411 = vmatprep.mubr.msk.bf16.mxu1 %vm6037_vm1, %v6036_v4 }
0x13ac   :  { %5421 = vmatprep.subr.bf16.mxu1 %v6036_v4 }
0x13c0   :  { %v3210_v59 = vpop.xlane.xlu0 %3209 }
0x13c1   :  { %5760 = vrcp.f32 %v3210_v59 }
0x13c4   :  { %v3422_v34 = vpop.permute.xlu0 %3421 }
0x13c5   :  { %v3427_v0 = vsel %vm264_vm2, %v3422_v34, 0 }
0x13c8   :  { %v3420_v56 = vpop.permute.xlu0 %3419 }
0x13cb   :  { %v5761_v6 = vpop.eup %5760 }
0x13cc   :  { %v3218_v43 = vmul.f32 %v5761_v6, %v5753_v5  ;;  %v3522_v2 = vpop.permute.xlu0 %3521 }
0x13cd   :  { %v3527_v3 = vsel %vm264_vm2, %v3522_v2, 0 }
0x13ce   :  { %v3222_v47 = vpack.c.bf16 %v3218_v43, %v3218_v43 }
0x13d0   :  { %5418 = vmatmul.mubr.msk.bf16.vlgmr.msra.gmra.mrb[104].mxu0 %vm264_vm2, %v3222_v47  ;;  %v3520_v5 = vpop.permute.xlu0 %3519 }
0x13d1   :  { %5429 = vmatprep.mubr.msk.bf16.mxu0 %vm6037_vm1, %v6036_v4 }
0x13d3   :  { %v3207_v49 = vpop.xlane.xlu1 %3206 }
0x13d4   :  { %5762 = vrcp.f32 %v3207_v49 }
0x13d7   :  { %v3472_v52 = vpop.permute.xlu1 %3471 }
0x13d8   :  { %v3477_v45 = vsel %vm264_vm2, %v3472_v52, 0 }
0x13d9   :  { %5428 = vmatpush3.bf16.xpose.msra.mxu0 %v3477_v45 }
0x13da   :  { %5439 = vmatprep.subr.bf16.mxu0 %v6036_v4 }
0x13db   :  { %v3470_v53 = vpop.permute.xlu1 %3469 }
0x13de   :  { %v5763_v35 = vpop.eup %5762 }
0x13df   :  { %v3217_v37 = vmul.f32 %v5763_v35, %v5755_v20  ;;  %v3572_v32 = vpop.permute.xlu1 %3571 }
0x13e0   :  { %v3577_v40 = vsel %vm264_vm2, %v3572_v32, 0  ;;  %5430 = vmatmul.mubr.msk.bf16.vlgmr.msra.gmra.mrb[108].mxu0 %vm264_vm2, %v3470_v53 }
0x13e1   :  { %5440 = vmatpush3.bf16.xpose.msra.mxu0 %v3577_v40  ;;  %v3221_v22 = vpack.c.bf16 %v3217_v37, %v3217_v37  ;;  %5441 = vmatprep.mubr.msk.bf16.mxu0 %vm6037_vm1, %v6036_v4 }
0x13e2   :  { %5451 = vmatprep.subr.bf16.mxu0 %v6036_v4 }
0x13e3   :  { %5412 = vmatmul.mubr.msk.bf16.vlgmr.msra.gmra.mrb[100].mxu1 %vm264_vm2, %v3221_v22  ;;  %v3570_v1 = vpop.permute.xlu1 %3569 }
0x13e4   :  { %5422 = vmatpush3.bf16.xpose.msra.mxu1 %v3427_v0  ;;  %5423 = vmatprep.mubr.msk.bf16.mxu1 %vm6037_vm1, %v6036_v4 }
0x13e5   :  { %5433 = vmatprep.subr.bf16.mxu1 %v6036_v4 }
0x13e8   :  { %5442 = vmatmul.mubr.msk.bf16.vlgmr.msra.gmra.mrb[112].mxu0 %vm264_vm2, %v3570_v1 }
0x13e9   :  { %5453 = vmatprep.mubr.msk.bf16.mxu0 %vm6037_vm1, %v6036_v4 }
0x13eb   :  { %5424 = vmatmul.mubr.msk.bf16.vlgmr.msra.gmra.mrb[104].mxu1 %vm264_vm2, %v3420_v56 }
0x13ec   :  { %5434 = vmatpush3.bf16.xpose.msra.mxu1 %v3527_v3  ;;  %5435 = vmatprep.mubr.msk.bf16.mxu1 %vm6037_vm1, %v6036_v4 }
0x13ed   :  { %5445 = vmatprep.subr.bf16.mxu1 %v6036_v4 }
0x13f3   :  { %5436 = vmatmul.mubr.msk.bf16.vlgmr.msra.gmra.mrb[108].mxu1 %vm264_vm2, %v3520_v5 }
0x13f4   :  { %5447 = vmatprep.mubr.msk.bf16.mxu1 %vm6037_vm1, %v6036_v4 }
0x146e   :  { %v6952_v13 = vpop.f32.mrb[100].mxu0 }
0x146f   :  { %v5407_v16 = vpop.f32.mrb[101].mxu0 }
0x1470   :  { %v3318_v17 = vpop.f32.mrb[102].mxu0 }
0x1471   :  { %v5408_v20 = vpop.f32.mrb[103].mxu0 }
0x147d   :  { %v6954_v23 = vpop.f32.mrb[96].mxu1 }
0x147e   :  { %v5604_v58 = vpack.i.bf16 %v6952_v13, %v6954_v23  ;;  %v5401_v61 = vpop.f32.mrb[97].mxu1 }
0x147f   :  { %v3269_v26 = vpop.f32.mrb[98].mxu1 }
0x1480   :  { %v5402_v27 = vpop.f32.mrb[99].mxu1 }
0x14a3   :  { %v6958_v29 = vpop.f32.mrb[104].mxu0 }
0x14a4   :  { %v5419_v30 = vpop.f32.mrb[105].mxu0 }
0x14a5   :  { %v3416_v33 = vpop.f32.mrb[106].mxu0 }
0x14a6   :  { %v5420_v24 = vpop.f32.mrb[107].mxu0 }
0x14b3   :  { %v3513_v38 = vpop.f32.mrb[108].mxu0 }
0x14b4   :  { %v3620_v41 = vsel %vm6774_vm12, %v3513_v38, -1e+20  ;;  %v5431_v44 = vpop.f32.mrb[109].mxu0 }
0x14b5   :  { %v3626_v46 = vsel %vm264_vm2, %v3620_v41, -inf  ;;  %v3516_v51 = vpop.f32.mrb[110].mxu0 }
0x14b6   :  { %v6963_v55 = vpop.f32.mrb[100].mxu1  ;;  %3627 = vmax.xlane.f32.xlu1 %v3626_v46  ;;  %v5432_v59 = vpop.f32.mrb[111].mxu0 }
0x14b7   :  { %v5609_v6 = vpack.i.bf16 %v6958_v29, %v6963_v55  ;;  %v5413_v43 = vpop.f32.mrb[101].mxu1 }
0x14b8   :  { %v3367_v47 = vpop.f32.mrb[102].mxu1 }
0x14b9   :  { %v5414_v49 = vpop.f32.mrb[103].mxu1 }
0x14bb   :  { %v3613_v52 = vpop.f32.mrb[112].mxu0 }
0x14bc   :  { %v5443_v45 = vpop.f32.mrb[113].mxu0  ;;  %v3622_v16 = vsel %vm6788_vm14, %v3613_v52, -1e+20 }
0x14bd   :  { %v3616_v53 = vpop.f32.mrb[114].mxu0  ;;  %v3632_v20 = vsel %vm264_vm2, %v3622_v16, -inf }
0x14be   :  { %v3463_v34 = vpop.f32.mrb[104].mxu1  ;;  %v5444_v35 = vpop.f32.mrb[115].mxu0 }
0x14bf   :  { %v3619_v37 = vsel %vm6770_vm10, %v3463_v34, -1e+20  ;;  %v5425_v32 = vpop.f32.mrb[105].mxu1 }
0x14c0   :  { %v3623_v40 = vsel %vm264_vm2, %v3619_v37, -inf  ;;  %v3466_v22 = vpop.f32.mrb[106].mxu1 }
0x14c1   :  { %3624 = vmax.xlane.f32.xlu0 %v3623_v40  ;;  %v5426_v56 = vpop.f32.mrb[107].mxu1 }
0x14c6   :  { %v3563_v0 = vpop.f32.mrb[108].mxu1 }
0x14c7   :  { %v3621_v1 = vsel %vm6784_vm13, %v3563_v0, -1e+20  ;;  %v5437_v2 = vpop.f32.mrb[109].mxu1  ;;  %3671 = vrot.lane.b32.xlu1 %v6759_v11, %s6043_s19 }
0x14c8   :  { %v3629_v3 = vsel %vm264_vm2, %v3621_v1, -inf  ;;  %v3566_v5 = vpop.f32.mrb[110].mxu1 }
0x14c9   :  { %3630 = vmax.xlane.f32.xlu0 %v3629_v3  ;;  %v5438_v17 = vpop.f32.mrb[111].mxu1 }
0x14cd   :  { %3633 = vmax.xlane.f32.xlu0 %v3632_v20 }
0x1543   :  { %v3628_v61 = vpop.xlane.xlu1 %3627 }
0x1544   :  { %v3636_v26 = vsub.f32 %v3620_v41, %v3628_v61 }
0x1546   :  { %v3641_v27 = vmul.f32 1.442695, %v3636_v26 }
0x1547   :  { %v3672_v30 = vpop.permute.xlu1 %3671 }
0x1548   :  { %5764 = vpow2.f32 %v3641_v27  ;;  %v3677_v33 = vsel %vm517_vm4, %v3672_v30, 0 }
0x1549   :  { %5446 = vmatpush3.bf16.msra.mxu1 %v3677_v33 }
0x154a   :  { %5457 = vmatprep.subr.bf16.mxu1 %v6036_v4 }
0x154e   :  { %v3625_v24 = vpop.xlane.xlu0 %3624 }
0x154f   :  { %v3635_v38 = vsub.f32 %v3619_v37, %v3625_v24 }
0x1551   :  { %v3639_v44 = vmul.f32 1.442695, %v3635_v38 }
0x1552   :  { %v5765_v46 = vpop.eup %5764 }
0x1553   :  { %5766 = vpow2.f32 %v3639_v44  ;;  %v3650_v51 = vsel %vm264_vm2, %v5765_v46, 0.0 }
0x1554   :  { %3651 = vadd.xlane.f32.xlu0 %v3650_v51 }
0x1556   :  { %v3631_v41 = vpop.xlane.xlu0 %3630 }
0x1557   :  { %v3637_v45 = vsub.f32 %v3621_v1, %v3631_v41 }
0x1559   :  { %v3643_v34 = vmul.f32 1.442695, %v3637_v45 }
0x155a   :  { %v3634_v47 = vpop.xlane.xlu0 %3633 }
0x155b   :  { %v3638_v49 = vsub.f32 %v3622_v16, %v3634_v47 }
0x155d   :  { %v5767_v59 = vpop.eup %5766  ;;  %v3645_v52 = vmul.f32 1.442695, %v3638_v49 }
0x155e   :  { %v3647_v43 = vsel %vm264_vm2, %v5767_v59, 0.0 }
0x155f   :  { %3648 = vadd.xlane.f32.xlu1 %v3647_v43  ;;  %5768 = vpow2.f32 %v3645_v52 }
0x1560   :  { %5770 = vpow2.f32 %v3643_v34 }
0x1569   :  { %v5769_v53 = vpop.eup %5768 }
0x156a   :  { %3719 = vrot.lane.b32.xlu0 %v6761_v12, %s6043_s19  ;;  %v3656_v35 = vsel %vm264_vm2, %v5769_v53, 0.0  ;;  %v5771_v37 = vpop.eup %5770 }
0x156b   :  { %v3653_v32 = vsel %vm264_vm2, %v5771_v37, 0.0 }
0x1570   :  { %3767 = vrot.lane.b32.xlu1 %v6820_v7, %s6043_s19 }
0x1574   :  { %3815 = vrot.lane.b32.xlu1 %v6824_v15, %s6043_s19 }
0x1589   :  { %3657 = vadd.xlane.f32.xlu0 %v3656_v35 }
0x1598   :  { %3654 = vadd.xlane.f32.xlu1 %v3653_v32 }
0x159f   :  { %3865 = vrot.lane.b32.xlu0 %v6711_v28, %s6046_s21 }
0x15a3   :  { %3863 = vrot.lane.b32.xlu0 %v6725_v42, %s6046_s21 }
0x15a7   :  { %3965 = vrot.lane.b32.xlu0 %v6721_v36, %s6046_s21 }
0x15a9   :  { %3915 = vrot.lane.b32.xlu1 %v6713_v31, %s6046_s21 }
0x15ab   :  { %3963 = vrot.lane.b32.xlu0 %v6745_v60, %s6046_s21 }
0x15ad   :  { %3913 = vrot.lane.b32.xlu1 %v6727_v50, %s6046_s21 }
0x15b1   :  { %4015 = vrot.lane.b32.xlu1 %v6723_v8, %s6046_s21 }
0x15b5   :  { %4013 = vrot.lane.b32.xlu1 %v6749_v62, %s6046_s21 }
0x15e1   :  { %v3652_v28 = vpop.xlane.xlu0 %3651 }
0x15e2   :  { %5772 = vrcp.f32 %v3652_v28 }
0x15e5   :  { %v3720_v42 = vpop.permute.xlu0 %3719 }
0x15e6   :  { %v3725_v36 = vsel %vm517_vm4, %v3720_v42, 0 }
0x15e7   :  { %5452 = vmatpush3.bf16.msra.mxu0 %v3725_v36 }
0x15e8   :  { %5463 = vmatprep.subr.bf16.mxu0 %v6036_v4 }
0x15ec   :  { %v5773_v31 = vpop.eup %5772  ;;  %v3649_v40 = vpop.xlane.xlu1 %3648 }
0x15ed   :  { %v3664_v60 = vmul.f32 %v5773_v31, %v5765_v46  ;;  %5774 = vrcp.f32 %v3649_v40 }
0x15ef   :  { %v3668_v22 = vpack.c.bf16 %v3664_v60, %v3664_v60 }
0x15f0   :  { %v3768_v50 = vpop.permute.xlu1 %3767 }
0x15f1   :  { %5454 = vmatmul.mubr.msk.bf16.vlgmr.msra.gmra.mrb[116].mxu0 %vm264_vm2, %v3668_v22  ;;  %v3773_v2 = vsel %vm517_vm4, %v3768_v50, 0 }
0x15f2   :  { %5465 = vmatprep.mubr.msk.bf16.mxu0 %vm6037_vm1, %v6036_v4 }
0x15f4   :  { %v3816_v8 = vpop.permute.xlu1 %3815 }
0x15f5   :  { %v3821_v62 = vsel %vm517_vm4, %v3816_v8, 0 }
0x15f6   :  { %5464 = vmatpush3.bf16.msra.mxu0 %v3821_v62 }
0x15f7   :  { %v5775_v56 = vpop.eup %5774  ;;  %5475 = vmatprep.subr.bf16.mxu0 %v6036_v4 }
0x15f8   :  { %v3663_v0 = vmul.f32 %v5775_v56, %v5767_v59 }
0x15fa   :  { %v3667_v1 = vpack.c.bf16 %v3663_v0, %v3663_v0 }
0x15fc   :  { %5448 = vmatmul.mubr.msk.bf16.vlgmr.msra.gmra.mrb[112].mxu1 %vm264_vm2, %v3667_v1 }
0x15fd   :  { %5458 = vmatpush3.bf16.msra.mxu1 %v3773_v2  ;;  %5459 = vmatprep.mubr.msk.bf16.mxu1 %vm6037_vm1, %v6036_v4 }
0x15fe   :  { %5469 = vmatprep.subr.bf16.mxu1 %v6036_v4 }
0x1616   :  { %v3658_v3 = vpop.xlane.xlu0 %3657 }
0x1617   :  { %5776 = vrcp.f32 %v3658_v3 }
0x161a   :  { %v3866_v30 = vpop.permute.xlu0 %3865 }
0x161b   :  { %v3871_v59 = vsel %vm264_vm2, %v3866_v30, 0 }
0x161e   :  { %v3864_v51 = vpop.permute.xlu0 %3863 }
0x1621   :  { %v5777_v5 = vpop.eup %5776 }
0x1622   :  { %v3666_v16 = vmul.f32 %v5777_v5, %v5769_v53  ;;  %v3966_v41 = vpop.permute.xlu0 %3965 }
0x1623   :  { %v3971_v47 = vsel %vm264_vm2, %v3966_v41, 0 }
0x1624   :  { %v3670_v17 = vpack.c.bf16 %v3666_v16, %v3666_v16 }
0x1625   :  { %v3655_v20 = vpop.xlane.xlu1 %3654 }
0x1626   :  { %5778 = vrcp.f32 %v3655_v20  ;;  %5466 = vmatmul.mubr.msk.bf16.vlgmr.msra.gmra.mrb[120].mxu0 %vm264_vm2, %v3670_v17  ;;  %v3964_v49 = vpop.permute.xlu0 %3963 }
0x1627   :  { %5477 = vmatprep.mubr.msk.bf16.mxu0 %vm6037_vm1, %v6036_v4 }
0x1629   :  { %v3916_v61 = vpop.permute.xlu1 %3915 }
0x162a   :  { %v3921_v26 = vsel %vm264_vm2, %v3916_v61, 0 }
0x162b   :  { %5476 = vmatpush3.bf16.xpose.msra.mxu0 %v3921_v26 }
0x162c   :  { %5487 = vmatprep.subr.bf16.mxu0 %v6036_v4 }
0x162d   :  { %v3914_v27 = vpop.permute.xlu1 %3913 }
0x1630   :  { %v5779_v33 = vpop.eup %5778 }
0x1631   :  { %v3665_v24 = vmul.f32 %v5779_v33, %v5771_v37  ;;  %v4016_v38 = vpop.permute.xlu1 %4015 }
0x1632   :  { %v4021_v44 = vsel %vm264_vm2, %v4016_v38, 0  ;;  %5478 = vmatmul.mubr.msk.bf16.vlgmr.msra.gmra.mrb[124].mxu0 %vm264_vm2, %v3914_v27 }
0x1633   :  { %5488 = vmatpush3.bf16.xpose.msra.mxu0 %v4021_v44  ;;  %v3669_v46 = vpack.c.bf16 %v3665_v24, %v3665_v24  ;;  %5489 = vmatprep.mubr.msk.bf16.mxu0 %vm6037_vm1, %v6036_v4 }
0x1634   :  { %5499 = vmatprep.subr.bf16.mxu0 %v6036_v4 }
0x1635   :  { %5460 = vmatmul.mubr.msk.bf16.vlgmr.msra.gmra.mrb[116].mxu1 %vm264_vm2, %v3669_v46  ;;  %v4014_v43 = vpop.permute.xlu1 %4013 }
0x1636   :  { %5470 = vmatpush3.bf16.xpose.msra.mxu1 %v3871_v59  ;;  %5471 = vmatprep.mubr.msk.bf16.mxu1 %vm6037_vm1, %v6036_v4 }
0x1637   :  { %5481 = vmatprep.subr.bf16.mxu1 %v6036_v4 }
0x163a   :  { %5490 = vmatmul.mubr.msk.bf16.vlgmr.msra.gmra.mrb[128].mxu0 %vm264_vm2, %v4014_v43 }
0x163b   :  { %5501 = vmatprep.mubr.msk.bf16.mxu0 %vm6037_vm1, %v6036_v4 }
0x163d   :  { %5472 = vmatmul.mubr.msk.bf16.vlgmr.msra.gmra.mrb[120].mxu1 %vm264_vm2, %v3864_v51 }
0x163e   :  { %5482 = vmatpush3.bf16.xpose.msra.mxu1 %v3971_v47  ;;  %5483 = vmatprep.mubr.msk.bf16.mxu1 %vm6037_vm1, %v6036_v4 }
0x163f   :  { %5493 = vmatprep.subr.bf16.mxu1 %v6036_v4 }
0x1645   :  { %5484 = vmatmul.mubr.msk.bf16.vlgmr.msra.gmra.mrb[124].mxu1 %vm264_vm2, %v3964_v49 }
0x1646   :  { %5495 = vmatprep.mubr.msk.bf16.mxu1 %vm6037_vm1, %v6036_v4 }
0x16c4   :  { %v7044_v52 = vpop.f32.mrb[116].mxu0 }
0x16c5   :  { %v5455_v45 = vpop.f32.mrb[117].mxu0 }
0x16c6   :  { %v3764_v53 = vpop.f32.mrb[118].mxu0 }
0x16c7   :  { %v5456_v34 = vpop.f32.mrb[119].mxu0 }
0x16cf   :  { %v7046_v35 = vpop.f32.mrb[112].mxu1 }
0x16d0   :  { %v5614_v37 = vpack.i.bf16 %v7044_v52, %v7046_v35  ;;  %v5449_v32 = vpop.f32.mrb[113].mxu1 }
0x16d1   :  { %v3716_v28 = vpop.f32.mrb[114].mxu1 }
0x16d2   :  { %v5450_v42 = vpop.f32.mrb[115].mxu1 }
0x16f9   :  { %v7050_v36 = vpop.f32.mrb[120].mxu0 }
0x16fa   :  { %v5467_v31 = vpop.f32.mrb[121].mxu0 }
0x16fb   :  { %v3860_v40 = vpop.f32.mrb[122].mxu0 }
0x16fc   :  { %v5468_v60 = vpop.f32.mrb[123].mxu0 }
0x1705   :  { %v3957_v22 = vpop.f32.mrb[124].mxu0 }
0x1706   :  { %v4064_v50 = vsel %vm6774_vm12, %v3957_v22, -1e+20  ;;  %v5479_v8 = vpop.f32.mrb[125].mxu0 }
0x1707   :  { %v4070_v62 = vsel %vm264_vm2, %v4064_v50, -inf  ;;  %v3960_v56 = vpop.f32.mrb[126].mxu0 }
0x1708   :  { %v7055_v0 = vpop.f32.mrb[116].mxu1  ;;  %4071 = vmax.xlane.f32.xlu1 %v4070_v62  ;;  %v5480_v1 = vpop.f32.mrb[127].mxu0 }
0x1709   :  { %v5619_v2 = vpack.i.bf16 %v7050_v36, %v7055_v0  ;;  %v5461_v3 = vpop.f32.mrb[117].mxu1 }
0x170a   :  { %v3812_v5 = vpop.f32.mrb[118].mxu1 }
0x170b   :  { %v5462_v16 = vpop.f32.mrb[119].mxu1 }
0x170d   :  { %v4057_v17 = vpop.f32.mrb[128].mxu0 }
0x170e   :  { %v5491_v20 = vpop.f32.mrb[129].mxu0  ;;  %v4066_v39 = vsel %vm6788_vm14, %v4057_v17, -1e+20 }
0x170f   :  { %v4060_v61 = vpop.f32.mrb[130].mxu0  ;;  %v4076_v47 = vsel %vm264_vm2, %v4066_v39, -inf }
0x1710   :  { %v3907_v26 = vpop.f32.mrb[120].mxu1  ;;  %v5492_v63 = vpop.f32.mrb[131].mxu0 }
0x1711   :  { %v4063_v27 = vsel %vm6770_vm10, %v3907_v26, -1e+20  ;;  %v5473_v30 = vpop.f32.mrb[121].mxu1 }
0x1712   :  { %v4067_v33 = vsel %vm264_vm2, %v4063_v27, -inf  ;;  %v3910_v24 = vpop.f32.mrb[122].mxu1 }
0x1713   :  { %4068 = vmax.xlane.f32.xlu0 %v4067_v33  ;;  %v5474_v38 = vpop.f32.mrb[123].mxu1  ;;  %v5650_v33 = vld [vmem:[#allocation13] sm:$0xff]  }
0x1718   :  { %v4007_v44 = vpop.f32.mrb[124].mxu1 }
0x1719   :  { %v4065_v46 = vsel %vm6784_vm13, %v4007_v44, -1e+20  ;;  %v5485_v51 = vpop.f32.mrb[125].mxu1  ;;  %4115 = vrot.lane.b32.xlu1 %v6759_v11, %s6046_s21 }
0x171a   :  { %v4073_v59 = vsel %vm264_vm2, %v4065_v46, -inf  ;;  %v4010_v43 = vpop.f32.mrb[126].mxu1  ;;  %v5651_v51 = vld [vmem:[#allocation13 + $0x8] sm:$0xff]  }
0x171b   :  { %4074 = vmax.xlane.f32.xlu0 %v4073_v59  ;;  %v5486_v41 = vpop.f32.mrb[127].mxu1 }
0x171f   :  { %4077 = vmax.xlane.f32.xlu0 %v4076_v47 }
0x1795   :  { %v4072_v49 = vpop.xlane.xlu1 %4071 }
0x1796   :  { %v4080_v45 = vsub.f32 %v4064_v50, %v4072_v49 }
0x1798   :  { %v4085_v53 = vmul.f32 1.442695, %v4080_v45 }
0x1799   :  { %v4116_v21 = vpop.permute.xlu1 %4115 }
0x179a   :  { %5780 = vpow2.f32 %v4085_v53  ;;  %v4121_v34 = vsel %vm517_vm4, %v4116_v21, 0 }
0x179b   :  { %5494 = vmatpush3.bf16.msra.mxu1 %v4121_v34 }
0x179c   :  { %5505 = vmatprep.subr.bf16.mxu1 %v6036_v4 }
0x17a0   :  { %v4069_v11 = vpop.xlane.xlu0 %4068 }
0x17a1   :  { %v4079_v32 = vsub.f32 %v4063_v27, %v4069_v11 }
0x17a3   :  { %v4083_v28 = vmul.f32 1.442695, %v4079_v32 }
0x17a4   :  { %v5781_v25 = vpop.eup %5780 }
0x17a5   :  { %5782 = vpow2.f32 %v4083_v28  ;;  %v4094_v42 = vsel %vm264_vm2, %v5781_v25, 0.0 }
0x17a6   :  { %4095 = vadd.xlane.f32.xlu0 %v4094_v42 }
0x17a8   :  { %v4075_v36 = vpop.xlane.xlu0 %4074 }
0x17a9   :  { %v4081_v31 = vsub.f32 %v4065_v46, %v4075_v36 }
0x17ab   :  { %v4087_v40 = vmul.f32 1.442695, %v4081_v31 }
0x17ac   :  { %v4078_v60 = vpop.xlane.xlu0 %4077 }
0x17ad   :  { %5784 = vpow2.f32 %v4087_v40  ;;  %v4082_v22 = vsub.f32 %v4066_v39, %v4078_v60 }
0x17af   :  { %v5783_v50 = vpop.eup %5782  ;;  %v4089_v8 = vmul.f32 1.442695, %v4082_v22 }
0x17b0   :  { %v4091_v62 = vsel %vm264_vm2, %v5783_v50, 0.0 }
0x17b1   :  { %5786 = vpow2.f32 %v4089_v8  ;;  %4092 = vadd.xlane.f32.xlu1 %v4091_v62 }
0x17b7   :  { %v5785_v56 = vpop.eup %5784 }
0x17b8   :  { %v4097_v0 = vsel %vm264_vm2, %v5785_v56, 0.0 }
0x17b9   :  { %4098 = vadd.xlane.f32.xlu1 %v4097_v0 }
0x17bb   :  { %v5787_v1 = vpop.eup %5786 }
0x17bc   :  { %v4100_v3 = vsel %vm264_vm2, %v5787_v1, 0.0 }
0x17bd   :  { %4101 = vadd.xlane.f32.xlu0 %v4100_v3 }
0x17ca   :  { %4211 = vrot.lane.b32.xlu1 %v6820_v7, %s6046_s21 }
0x17ce   :  { %4259 = vrot.lane.b32.xlu1 %v6824_v15, %s6046_s21 }
0x17d2   :  { %5610 = vrot.lane.b32.xlu1 %v5609_v6, %s6048_s29 }
0x17d3   :  { %4163 = vrot.lane.b32.xlu0 %v6761_v12, %s6046_s21 }
0x17d6   :  { %5620 = vrot.lane.b32.xlu1 %v5619_v2, %s6028_s1 }
0x17d7   :  { %5605 = vrot.lane.b32.xlu0 %v5604_v58, %s6048_s29 }
0x17db   :  { %5615 = vrot.lane.b32.xlu0 %v5614_v37, %s6028_s1 }
0x1833   :  { %v4096_v7 = vpop.xlane.xlu0 %4095 }
0x183e   :  { %v4093_v15 = vpop.xlane.xlu1 %4092 }
0x183f   :  { %5788 = vrcp.f32 %v4093_v15 }
0x1840   :  { %5790 = vrcp.f32 %v4096_v7 }
0x1846   :  { %v4099_v29 = vpop.xlane.xlu1 %4098 }
0x1847   :  { %5792 = vrcp.f32 %v4099_v29 }
0x1849   :  { %v5789_v55 = vpop.eup %5788 }
0x184a   :  { %v5791_v12 = vpop.eup %5790  ;;  %v4107_v6 = vmul.f32 %v5789_v55, %v5783_v50  ;;  %v4212_v2 = vpop.permute.xlu1 %4211 }
0x184b   :  { %v4102_v5 = vpop.xlane.xlu0 %4101  ;;  %v4108_v13 = vmul.f32 %v5791_v12, %v5781_v25  ;;  %v4217_v23 = vsel %vm517_vm4, %v4212_v2, 0 }
0x184c   :  { %5794 = vrcp.f32 %v4102_v5  ;;  %v4111_v16 = vpack.c.bf16 %v4107_v6, %v4107_v6 }
0x184d   :  { %v4112_v17 = vpack.c.bf16 %v4108_v13, %v4108_v13 }
0x184e   :  { %5496 = vmatmul.mubr.msk.bf16.vlgmr.msra.gmra.mrb[128].mxu1 %vm264_vm2, %v4111_v16  ;;  %v4260_v35 = vpop.permute.xlu1 %4259 }
0x184f   :  { %v4164_v58 = vpop.permute.xlu0 %4163  ;;  %5506 = vmatpush3.bf16.msra.mxu1 %v4217_v23  ;;  %5507 = vmatprep.mubr.msk.bf16.mxu1 %vm6037_vm1, %v6036_v4  ;;  %v4265_v61 = vsel %vm517_vm4, %v4260_v35, 0 }
0x1850   :  { %v4169_v52 = vsel %vm517_vm4, %v4164_v58, 0  ;;  %5517 = vmatprep.subr.bf16.mxu1 %v5650_v33  ;;  %vm4654_vm4 = vcmask 523264  }
0x1851   :  { %5500 = vmatpush3.bf16.msra.mxu0 %v4169_v52  ;;  %v5793_v37 = vpop.eup %5792 }
0x1852   :  { %5511 = vmatprep.subr.bf16.mxu0 %v6036_v4  ;;  %v4109_v20 = vmul.f32 %v5793_v37, %v5785_v56  ;;  %v5611_v36 = vpop.permute.xlu1 %5610 }
0x1853   :  { %v5606_v25 = vpop.permute.xlu0 %5605  ;;  %v5613_v12 = vunpack.i.h.bf16 %v5611_v36  ;;  %v5612_v6 = vunpack.i.l.bf16 %v5611_v36 }
0x1854   :  { %5502 = vmatmul.mubr.msk.bf16.vlgmr.msra.gmra.mrb[132].mxu0 %vm264_vm2, %v4112_v17  ;;  %v4113_v26 = vpack.c.bf16 %v4109_v20, %v4109_v20  ;;  %v5608_v31 = vunpack.i.h.bf16 %v5606_v25  ;;  %v5607_v40 = vunpack.i.l.bf16 %v5606_v25  ;;  %v4910_v20 = vld [vmem:[#allocation14] ss:$0 sm:$0xff] }
0x1855   :  { %5512 = vmatpush3.bf16.msra.mxu0 %v4265_v61  ;;  %5513 = vmatprep.mubr.msk.bf16.mxu0 %vm6037_vm1, %v6036_v4  ;;  %v4357_v16 = vsel %vm264_vm2, %v6873_v14, %v5612_v6 }
0x1856   :  { %v5795_v63 = vpop.eup %5794  ;;  %5508 = vmatmul.mubr.msk.bf16.vlgmr.msra.gmra.mrb[132].mxu1 %vm264_vm2, %v4113_v26  ;;  %v4356_v8 = vsel %vm264_vm2, %v6866_v54, %v5608_v31  ;;  %v4355_v62 = vsel %vm264_vm2, %v6864_v48, %v5607_v40  ;;  %v5621_v7 = vpop.permute.xlu1 %5620  ;;  %v4358_v48 = vsel %vm264_vm2, %v6868_v57, %v5613_v12 }
0x1857   :  { %v4110_v27 = vmul.f32 %v5795_v63, %v5787_v1  ;;  %5518 = vmatpush3.bf16.msra.mxu1 %v5650_v33  ;;  %v5616_v42 = vpop.permute.xlu0 %5615  ;;  %v5623_v2 = vunpack.i.h.bf16 %v5621_v7  ;;  %v5622_v5 = vunpack.i.l.bf16 %v5621_v7 }
0x1858   :  { %5519 = vmatprep.subr.bf16.mxu1 %v5651_v51  ;;  %v5618_v60 = vunpack.i.h.bf16 %v5616_v42  ;;  %v5617_v22 = vunpack.i.l.bf16 %v5616_v42 }
0x1859   :  { %v4114_v30 = vpack.c.bf16 %v4110_v27, %v4110_v27  ;;  %v4361_v58 = vsel %vm2089_vm5, %v4357_v16, %v5622_v5  ;;  %v4362_v52 = vsel %vm2089_vm5, %v4358_v48, %v5623_v2  ;;  %v4915_v5 = vld [vmem:[%s7212_s10 + $0x1] ss:$0 sm:$0xff] }
0x185a   :  { %v4359_v1 = vsel %vm2089_vm5, %v4355_v62, %v5617_v22  ;;  %v4360_v3 = vsel %vm2089_vm5, %v4356_v8, %v5618_v60  ;;  %v5652_v60 = vld [vmem:[%s7214_s12] sm:$0xff]   ;;  %v5653_v22 = vld [vmem:[%s7214_s12 + $0x8] sm:$0xff]  }
0x185b   :  { %5520 = vmatpush3.bf16.msra.mxu1 %v5651_v51  ;;  %5525 = vmatprep.subr.bf16.mxu0 %v5652_v60 }
0x185c   :  { %5514 = vmatmul.mubr.msk.bf16.vlgmr.msra.gmra.mrb[136].mxu0 %vm264_vm2, %v4114_v30 }
0x185d   :  { %5526 = vmatpush3.bf16.msra.mxu0 %v5652_v60 }
0x185e   :  { %5527 = vmatprep.subr.bf16.mxu0 %v5653_v22 }
0x1861   :  { %5528 = vmatpush3.bf16.msra.mxu0 %v5653_v22 }
0x1921   :  { %v4157_v24 = vpop.f32.mrb[128].mxu1 }
0x1922   :  { %v5497_v38 = vpop.f32.mrb[129].mxu1 }
0x1923   :  { %v4160_v44 = vpop.f32.mrb[130].mxu1 }
0x1924   :  { %v5498_v46 = vpop.f32.mrb[131].mxu1 }
0x1927   :  { %v4205_v59 = vpop.f32.mrb[132].mxu0 }
0x1928   :  { %v5624_v43 = vpack.i.bf16 %v4205_v59, %v4157_v24  ;;  %v5503_v39 = vpop.f32.mrb[133].mxu0 }
0x1929   :  { %v4208_v4 = vpop.f32.mrb[134].mxu0  ;;  %v4253_v41 = vpop.f32.mrb[132].mxu1 }
0x192a   :  { %5625 = vrot.lane.b32.xlu0 %v5624_v43, %s6049_s2  ;;  %v5504_v47 = vpop.f32.mrb[135].mxu0  ;;  %v5509_v49 = vpop.f32.mrb[133].mxu1 }
0x192b   :  { %v4256_v45 = vpop.f32.mrb[134].mxu1 }
0x192c   :  { %v5510_v53 = vpop.f32.mrb[135].mxu1 }
0x192f   :  { %v4301_v21 = vpop.f32.mrb[136].mxu0 }
0x1930   :  { %v5629_v34 = vpack.i.bf16 %v4301_v21, %v4253_v41  ;;  %v5515_v11 = vpop.f32.mrb[137].mxu0 }
0x1931   :  { %v4304_v32 = vpop.f32.mrb[138].mxu0 }
0x1932   :  { %5630 = vrot.lane.b32.xlu1 %v5629_v34, %s6049_s2  ;;  %v5516_v28 = vpop.f32.mrb[139].mxu0 }
0x199c   :  { %v5626_v50 = vpop.permute.xlu0 %5625 }
0x199d   :  { %v5628_v56 = vunpack.i.h.bf16 %v5626_v50  ;;  %v5627_v0 = vunpack.i.l.bf16 %v5626_v50  ;;  %v5654_v50 = vld [vmem:[%s7216_s14] sm:$0xff]  }
0x199e   :  { %5533 = vmatprep.subr.bf16.mxu1 %v5654_v50 }
0x199f   :  { %v4364_v15 = vsel %vm2094_vm6, %v4360_v3, %v5628_v56  ;;  %v4363_v29 = vsel %vm2094_vm6, %v4359_v1, %v5627_v0 }
0x19a0   :  { %v4367_v55 = vpack.c.bf16 %v4364_v15, %v4363_v29 }
0x19a2   :  { %5521 = vmatprep.mubr.msk.bf16.mxu1 %vm196_vm0, %v4367_v55 }
0x19a4   :  { %v5631_v54 = vpop.permute.xlu1 %5630 }
0x19a5   :  { %v5633_v13 = vunpack.i.h.bf16 %v5631_v54  ;;  %v5632_v23 = vunpack.i.l.bf16 %v5631_v54 }
0x19a7   :  { %v4366_v35 = vsel %vm2094_vm6, %v4362_v52, %v5633_v13  ;;  %v4365_v37 = vsel %vm2094_vm6, %v4361_v58, %v5632_v23  ;;  %v4916_v58 = vld [vmem:[%s7213_s11 + $0x1] ss:$0 sm:$0xff] }
0x19a8   :  { %v4368_v17 = vpack.c.bf16 %v4366_v35, %v4365_v37 }
0x19aa   :  { %5522 = vmatmul.mubr.msk.bf16.vlgmr.msra.gmra.mrb[136].mxu1 %vm196_vm0, %v4368_v17 }
0x19ab   :  { %5534 = vmatpush3.bf16.msra.mxu1 %v5654_v50 }
0x1a7d   :  { %v5523_v61 = vpop.f32.mrb[136].mxu1 }
0x1a7e   :  { %v4432_v26 = vpop.f32.mrb[137].mxu1  ;;  %v4441_v57 = vadd.f32 %v5523_v61, %v4910_v20 }
0x1a7f   :  { %v4433_v63 = vadd.f32 %v4910_v20, %v4432_v26  ;;  %v5524_v27 = vpop.f32.mrb[138].mxu1 }
0x1a80   :  { %v4435_v14 = vpop.f32.mrb[139].mxu1  ;;  %v4449_v24 = vadd.f32 %v4441_v57, %v6696_v18  ;;  %v4444_v38 = vadd.f32 %v5524_v27, %v4910_v20 }
0x1a81   :  { %v4447_v30 = vadd.f32 %v4433_v63, %v6689_v9  ;;  %v4436_v33 = vadd.f32 %v4910_v20, %v4435_v14 }
0x1a82   :  { %v4450_v59 = vadd.f32 %v4444_v38, %v6698_v19  ;;  %v4459_v43 = vsel %vm196_vm0, %v4449_v24, 0.0  ;;  %v5657_v38 = vld [vmem:[%s7216_s14 + $0x18] sm:$0xff]  }
0x1a83   :  { %v4448_v44 = vadd.f32 %v4436_v33, %v6691_v10  ;;  %v4453_v46 = vsel %vm196_vm0, %v4447_v30, 0.0  ;;  %v5655_v33 = vld [vmem:[%s7216_s14 + $0x8] sm:$0xff]  }
0x1a84   :  { %4454 = vadd.xlane.f32.xlu0 %v4453_v46  ;;  %v4462_v39 = vsel %vm196_vm0, %v4450_v59, 0.0  ;;  %5535 = vmatprep.subr.bf16.mxu1 %v5655_v33 }
0x1a85   :  { %v4456_v51 = vsel %vm196_vm0, %v4448_v44, 0.0  ;;  %5536 = vmatpush3.bf16.msra.mxu1 %v5655_v33 }
0x1a86   :  { %4457 = vadd.xlane.f32.xlu1 %v4456_v51 }
0x1a88   :  { %4460 = vadd.xlane.f32.xlu0 %v4459_v43 }
0x1a8c   :  { %4463 = vadd.xlane.f32.xlu0 %v4462_v39 }
0x1b11   :  { %v4455_v9 = vpop.xlane.xlu0 %4454 }
0x1b12   :  { %v4465_v4 = vmul.f32 0.03125, %v4455_v9 }
0x1b13   :  { %v4458_v18 = vpop.xlane.xlu1 %4457 }
0x1b14   :  { %v4469_v41 = vsub.f32 %v4447_v30, %v4465_v4  ;;  %v4466_v47 = vmul.f32 0.03125, %v4458_v18 }
0x1b15   :  { %v4461_v10 = vpop.xlane.xlu0 %4460 }
0x1b16   :  { %v4470_v49 = vsub.f32 %v4448_v44, %v4466_v47  ;;  %v4467_v45 = vmul.f32 0.03125, %v4461_v10  ;;  %v4473_v53 = vmul.f32 %v4469_v41, %v4469_v41  ;;  %v4917_v44 = vld [vmem:[%s7215_s13] ss:$0 sm:$0xff] }
0x1b18   :  { %v4471_v21 = vsub.f32 %v4449_v24, %v4467_v45  ;;  %v4477_v34 = vsel %vm196_vm0, %v4473_v53, 0.0  ;;  %v4474_v11 = vmul.f32 %v4470_v49, %v4470_v49  ;;  %v5656_v24 = vld [vmem:[%s7216_s14 + $0x10] sm:$0xff]  }
0x1b19   :  { %4478 = vadd.xlane.f32.xlu1 %v4477_v34  ;;  %v4464_v19 = vpop.xlane.xlu0 %4463  ;;  %5537 = vmatprep.subr.bf16.mxu1 %v5656_v24 }
0x1b1a   :  { %v4468_v32 = vmul.f32 0.03125, %v4464_v19  ;;  %v4480_v28 = vsel %vm196_vm0, %v4474_v11, 0.0  ;;  %v4475_v25 = vmul.f32 %v4471_v21, %v4471_v21  ;;  %5538 = vmatpush3.bf16.msra.mxu1 %v5656_v24 }
0x1b1b   :  { %4481 = vadd.xlane.f32.xlu0 %v4480_v28  ;;  %5539 = vmatprep.subr.bf16.mxu1 %v5657_v38 }
0x1b1c   :  { %v4472_v42 = vsub.f32 %v4450_v59, %v4468_v32  ;;  %v4483_v36 = vsel %vm196_vm0, %v4475_v25, 0.0  ;;  %v4922_v32 = vld [vmem:[%s7217_s15] ss:$0 sm:$0xff] }
0x1b1d   :  { %4484 = vadd.xlane.f32.xlu1 %v4483_v36 }
0x1b1e   :  { %v4476_v31 = vmul.f32 %v4472_v42, %v4472_v42  ;;  %5540 = vmatpush3.bf16.msra.mxu1 %v5657_v38 }
0x1b20   :  { %v4486_v40 = vsel %vm196_vm0, %v4476_v31, 0.0 }
0x1b21   :  { %4487 = vadd.xlane.f32.xlu0 %v4486_v40 }
0x1ba6   :  { %v4479_v8 = vpop.xlane.xlu1 %4478 }
0x1ba7   :  { %v4489_v62 = vmul.f32 0.03125, %v4479_v8 }
0x1ba8   :  { %v4482_v56 = vpop.xlane.xlu0 %4481 }
0x1ba9   :  { %v4493_v0 = vadd.f32 1e-05, %v4489_v62  ;;  %v4490_v1 = vmul.f32 0.03125, %v4482_v56 }
0x1baa   :  { %v4485_v3 = vpop.xlane.xlu1 %4484 }
0x1bab   :  { %5796 = vrsqrt.f32 %v4493_v0  ;;  %v4494_v7 = vadd.f32 1e-05, %v4490_v1  ;;  %v4491_v15 = vmul.f32 0.03125, %v4485_v3 }
0x1bad   :  { %5798 = vrsqrt.f32 %v4494_v7  ;;  %v4495_v29 = vadd.f32 1e-05, %v4491_v15 }
0x1bae   :  { %v4488_v55 = vpop.xlane.xlu0 %4487 }
0x1baf   :  { %5800 = vrsqrt.f32 %v4495_v29  ;;  %v4492_v12 = vmul.f32 0.03125, %v4488_v55 }
0x1bb1   :  { %v4496_v6 = vadd.f32 1e-05, %v4492_v12 }
0x1bb3   :  { %5802 = vrsqrt.f32 %v4496_v6 }
0x1bb5   :  { %v5797_v2 = vpop.eup %5796 }
0x1bb6   :  { %v4501_v54 = vmul.f32 %v5797_v2, %v4469_v41 }
0x1bb7   :  { %v5799_v48 = vpop.eup %5798 }
0x1bb8   :  { %v4502_v16 = vmul.f32 %v5799_v48, %v4470_v49  ;;  %v4509_v13 = vmul.f32 %v4915_v5, %v4501_v54 }
0x1bb9   :  { %v5801_v23 = vpop.eup %5800 }
0x1bba   :  { %v4503_v52 = vmul.f32 %v5801_v23, %v4471_v21  ;;  %v4510_v35 = vmul.f32 %v4915_v5, %v4502_v16  ;;  %v4517_v37 = vadd.f32 %v4916_v58, %v4509_v13 }
0x1bbc   :  { %v4518_v17 = vadd.f32 %v4916_v58, %v4510_v35  ;;  %v4511_v61 = vmul.f32 %v4915_v5, %v4503_v52 }
0x1bbd   :  { %v5803_v20 = vpop.eup %5802 }
0x1bbe   :  { %v4504_v26 = vmul.f32 %v5803_v20, %v4472_v42  ;;  %v4521_v57 = vpack.c.bf16 %v4518_v17, %v4517_v37  ;;  %v4519_v27 = vadd.f32 %v4916_v58, %v4511_v61 }
0x1bc0   :  { %v4512_v63 = vmul.f32 %v4915_v5, %v4504_v26  ;;  %5529 = vmatprep.mubr.msk.bf16.mxu0 %vm196_vm0, %v4521_v57 }
0x1bc2   :  { %v4520_v14 = vadd.f32 %v4916_v58, %v4512_v63 }
0x1bc4   :  { %v4522_v30 = vpack.c.bf16 %v4520_v14, %v4519_v27 }
0x1bc6   :  { %5530 = vmatmul.mubr.msk.bf16.vlgmr.msra.gmra.mrb[140].mxu0 %vm196_vm0, %v4522_v30 }
0x1c99   :  { %v5531_v46 = vpop.f32.mrb[140].mxu0 }
0x1c9a   :  { %v4595_v51 = vadd.f32 %v5531_v46, %v4917_v44  ;;  %v4586_v59 = vpop.f32.mrb[141].mxu0 }
0x1c9b   :  { %v4587_v43 = vadd.f32 %v4917_v44, %v4586_v59  ;;  %v5532_v39 = vpop.f32.mrb[142].mxu0 }
0x1c9c   :  { %v4607_v9 = vmul.f32 0.01, %v4595_v51  ;;  %v4598_v4 = vadd.f32 %v5532_v39, %v4917_v44  ;;  %v4589_v18 = vpop.f32.mrb[143].mxu0  ;;  %vm4603_vm15 = vcmp.gt.f32.partialorder %v4595_v51, 0.0  ;;  %v4929_v39 = vld [vmem:[%s7212_s10 + $0x2] ss:$0 sm:$0xff] }
0x1c9d   :  { %v4605_v41 = vmul.f32 0.01, %v4587_v43  ;;  %v4590_v47 = vadd.f32 %v4917_v44, %v4589_v18  ;;  %vm4601_vm1 = vcmp.gt.f32.partialorder %v4587_v43, 0.0  ;;  %v4930_v18 = vld [vmem:[%s7213_s11 + $0x2] ss:$0 sm:$0xff]  ;;  %s4793_s10 = sshll.u32 %s6051_s4, 4  ;;  %s4794_s10 = int_to_ptr.vmem [resolvable:$true] %s4793_s10 }
0x1c9e   :  { %vm4604_vm2 = vcmp.gt.f32.partialorder %v4598_v4, 0.0  ;;  %v4608_v10 = vmul.f32 0.01, %v4598_v4  ;;  %v4611_v45 = vsel %vm4603_vm15, %v4595_v51, %v4607_v9  ;;  %s5990_s11 = scalar_lea.vmem %s4794_s10, 512  ;;  %p5995_p9 = scmp.lt.s32.totalorder %s4794_s10, %s4794_s10 }
0x1c9f   :  { %vm4602_vm3 = vcmp.gt.f32.partialorder %v4590_v47, 0.0  ;;  %v4606_v49 = vmul.f32 0.01, %v4590_v47  ;;  %v4609_v21 = vsel %vm4601_vm1, %v4587_v43, %v4605_v41  ;;  %p5991_p8 = scmp.ne.s32.totalorder %s4794_s10, %s5990_s11  ;;  %p5996_p10 = scmp.lt.s32.totalorder %s5990_s11, %s5990_s11 }
0x1ca0   :  { %v4612_v53 = vsel %vm4604_vm2, %v4598_v4, %v4608_v10 }
0x1ca1   :  { %v4614_v34 = vpack.c.bf16 %v4612_v53, %v4611_v45  ;;  %v4610_v11 = vsel %vm4602_vm3, %v4590_v47, %v4606_v49  ;;  %p5997_p11 = por %p5996_p10, %p5995_p9 }
0x1ca2   :  { %v4613_v19 = vpack.c.bf16 %v4610_v11, %v4609_v21 }
0x1ca3   :  { %p5998_p12 = pnand %p5997_p11, %p5991_p8 }
0x1ca4   :  { %5541 = vmatprep.mubr.msk.bf16.mxu1 %vm4654_vm4, %v4613_v19 }
0x1ca5   :  { %5542 = vmatmul.mubr.msk.bf16.vlgmr.msra.gmra.mrb[140].mxu1 %vm4654_vm4, %v4614_v34 }
0x1d78   :  { %v5543_v28 = vpop.f32.mrb[140].mxu1 }
0x1d79   :  { %v4695_v25 = vpop.f32.mrb[141].mxu1  ;;  %v4704_v42 = vadd.f32 %v5543_v28, %v4922_v32 }
0x1d7a   :  { %v4696_v36 = vadd.f32 %v4922_v32, %v4695_v25  ;;  %v5544_v31 = vpop.f32.mrb[142].mxu1 }
0x1d7b   :  { %v4698_v40 = vpop.f32.mrb[143].mxu1  ;;  %v4707_v22 = vadd.f32 %v5544_v31, %v4922_v32  ;;  %v4712_v8 = vadd.f32 %v4704_v42, %v4519_v27 }
0x1d7c   :  { %v4710_v60 = vadd.f32 %v4696_v36, %v4517_v37  ;;  %v4699_v50 = vadd.f32 %v4922_v32, %v4698_v40 }
0x1d7d   :  { %v4713_v0 = vadd.f32 %v4707_v22, %v4520_v14  ;;  %v4722_v3 = vsel %vm196_vm0, %v4712_v8, 0.0 }
0x1d7e   :  { %v4711_v62 = vadd.f32 %v4699_v50, %v4518_v17  ;;  %v4716_v56 = vsel %vm196_vm0, %v4710_v60, 0.0 }
0x1d7f   :  { %4717 = vadd.xlane.f32.xlu1 %v4716_v56  ;;  %v4725_v7 = vsel %vm196_vm0, %v4713_v0, 0.0 }
0x1d80   :  { %v4719_v1 = vsel %vm196_vm0, %v4711_v62, 0.0 }
0x1d81   :  { %4720 = vadd.xlane.f32.xlu0 %v4719_v1 }
0x1d83   :  { %4723 = vadd.xlane.f32.xlu1 %v4722_v3 }
0x1d85   :  { %4726 = vadd.xlane.f32.xlu0 %v4725_v7 }
0x1e0c   :  { %v4718_v15 = vpop.xlane.xlu1 %4717 }
0x1e0d   :  { %v4728_v29 = vmul.f32 0.03125, %v4718_v15 }
0x1e0e   :  { %v4721_v55 = vpop.xlane.xlu0 %4720 }
0x1e0f   :  { %v4732_v12 = vsub.f32 %v4710_v60, %v4728_v29  ;;  %v4729_v6 = vmul.f32 0.03125, %v4721_v55 }
0x1e10   :  { %v4724_v2 = vpop.xlane.xlu1 %4723 }
0x1e11   :  { %v4733_v5 = vsub.f32 %v4711_v62, %v4729_v6  ;;  %v4730_v54 = vmul.f32 0.03125, %v4724_v2  ;;  %v4736_v48 = vmul.f32 %v4732_v12, %v4732_v12 }
0x1e12   :  { %v4727_v16 = vpop.xlane.xlu0 %4726 }
0x1e13   :  { %v4734_v13 = vsub.f32 %v4712_v8, %v4730_v54  ;;  %v4731_v23 = vmul.f32 0.03125, %v4727_v16  ;;  %v4740_v58 = vsel %vm196_vm0, %v4736_v48, 0.0  ;;  %v4737_v52 = vmul.f32 %v4733_v5, %v4733_v5 }
0x1e14   :  { %4741 = vadd.xlane.f32.xlu1 %v4740_v58 }
0x1e15   :  { %v4735_v35 = vsub.f32 %v4713_v0, %v4731_v23  ;;  %v4743_v37 = vsel %vm196_vm0, %v4737_v52, 0.0  ;;  %v4738_v17 = vmul.f32 %v4734_v13, %v4734_v13 }
0x1e16   :  { %4744 = vadd.xlane.f32.xlu0 %v4743_v37 }
0x1e17   :  { %v4746_v20 = vsel %vm196_vm0, %v4738_v17, 0.0  ;;  %v4739_v61 = vmul.f32 %v4735_v35, %v4735_v35 }
0x1e18   :  { %4747 = vadd.xlane.f32.xlu1 %v4746_v20 }
0x1e19   :  { %v4749_v26 = vsel %vm196_vm0, %v4739_v61, 0.0 }
0x1e1a   :  { %4750 = vadd.xlane.f32.xlu0 %v4749_v26 }
0x1ea1   :  { %v4742_v57 = vpop.xlane.xlu1 %4741 }
0x1ea2   :  { %v4752_v63 = vmul.f32 0.03125, %v4742_v57 }
0x1ea3   :  { %v4745_v27 = vpop.xlane.xlu0 %4744 }
0x1ea4   :  { %v4756_v14 = vadd.f32 1e-05, %v4752_v63  ;;  %v4753_v30 = vmul.f32 0.03125, %v4745_v27 }
0x1ea5   :  { %v4748_v33 = vpop.xlane.xlu1 %4747 }
0x1ea6   :  { %5804 = vrsqrt.f32 %v4756_v14  ;;  %v4757_v24 = vadd.f32 1e-05, %v4753_v30  ;;  %v4754_v38 = vmul.f32 0.03125, %v4748_v33 }
0x1ea7   :  { %v4751_v44 = vpop.xlane.xlu0 %4750 }
0x1ea8   :  { %5806 = vrsqrt.f32 %v4757_v24  ;;  %v4758_v46 = vadd.f32 1e-05, %v4754_v38  ;;  %v4755_v51 = vmul.f32 0.03125, %v4751_v44 }
0x1eaa   :  { %5808 = vrsqrt.f32 %v4758_v46  ;;  %v4759_v59 = vadd.f32 1e-05, %v4755_v51 }
0x1eac   :  { %5810 = vrsqrt.f32 %v4759_v59 }
0x1eb0   :  { %v5805_v43 = vpop.eup %5804 }
0x1eb1   :  { %v4764_v9 = vmul.f32 %v5805_v43, %v4732_v12 }
0x1eb2   :  { %v5807_v4 = vpop.eup %5806 }
0x1eb3   :  { %v4772_v41 = vmul.f32 %v4929_v39, %v4764_v9  ;;  %v4765_v47 = vmul.f32 %v5807_v4, %v4733_v5 }
0x1eb4   :  { %v5809_v10 = vpop.eup %5808 }
0x1eb5   :  { %v4780_v49 = vadd.f32 %v4930_v18, %v4772_v41  ;;  %v4773_v45 = vmul.f32 %v4929_v39, %v4765_v47  ;;  %v4766_v53 = vmul.f32 %v5809_v10, %v4734_v13 }
0x1eb6   :  { %v5811_v21 = vpop.eup %5810 }
0x1eb7   :  { %4784 = vst.msk [vmem:[#allocation16] sm:$0xff] %vm196_vm0, %v4780_v49  ;;  %v4781_v34 = vadd.f32 %v4930_v18, %v4773_v45  ;;  %v4774_v11 = vmul.f32 %v4929_v39, %v4766_v53  ;;  %v4767_v19 = vmul.f32 %v5811_v21, %v4735_v35 }
0x1eb9   :  { %4785 = vst.msk [vmem:[#allocation16 + $0x8] sm:$0xff] %vm196_vm0, %v4781_v34  ;;  %v4782_v32 = vadd.f32 %v4930_v18, %v4774_v11  ;;  %v4775_v28 = vmul.f32 %v4929_v39, %v4767_v19 }
0x1ebb   :  { %4786 = vst.msk [vmem:[#allocation16 + $0x10] sm:$0xff] %vm196_vm0, %v4782_v32  ;;  %v4783_v25 = vadd.f32 %v4930_v18, %v4775_v28 }
0x1ebd   :  { %4787 = vst.msk [vmem:[#allocation16 + $0x18] sm:$0xff] %vm196_vm0, %v4783_v25 }
0x1ebe   :  { %6001 = shalt.err (!%p5998_p12)
}
0x1ebf   :  { %s6002_s7 = scalar_lea.hbm %s7218_s16, 512 }
0x1ec0   :  { %p6003_p13 = scmp.ne.s32.totalorder %s7218_s16, %s6002_s7  ;;  %p6006_p0 = scmp.lt.u32.totalorder %s6002_s7, %s7218_s16 }
0x1ec2   :  { %p6008_p1 = pnand %p6006_p0, %p6003_p13 }
0x1ec4   :  { %6011 = shalt.err (!%p6008_p1)
}
0x1ec5   :  { %s6052_s2 = smov 128  }
0x1ec6   :  { %4799 = dma.vmem_to_hbm [thread:$0]  %s4794_s10, 512, %s7218_s16, [#allocation4], %s6052_s2, %s6052_s2, %s6048_s29  }
0x1ec7   :  { %6022 = dma.done.wait [#allocation4], 512  }
0x1ec8   :  { %6023 = vsyncadd [#allocation4], 4294966784 }
0x1ec9   :  { %4803 = vsyncpa [#allocation3], 1 }
0x1eca   :  { %4804 = vsyncpa [#allocation6], 1 }
0x1ecb   :  { %4805 = vsyncpa [#allocation9], 1 }
0x1ecc   :  { %4806 = vsyncpa [#allocation12], 1 }
0x1ecd   :  { %4807 = vsyncpa [#allocation15], 1 }
0x1ece   :  { %4808 = vsyncpa [#allocation4], 1 }

</bundles_post_ra>
